<compile_context>
chip_gen: v5e
topology: v5e:2x2
jax: 0.10.0
libtpu: 0.0.40
codegen_flags: <defaults>
</compile_context>

<pallas_src>
import numpy as np
import jax
import jax.numpy as jnp
from jax import lax
from jax.experimental import pallas as pl
from jax.experimental.pallas import tpu as pltpu

EPS = 1e-5
OUT_PAD = 128  # FC output padded to a full 128-lane vreg (sliced to 11 outside)


# ----------------------------------------------------------------------------
# Static network configuration (mirrors Classifier.__init__)
# ----------------------------------------------------------------------------
def make_config(base=8, width_mult=1, in_hw=32, in_ch=3):
    multiplier = [1, 2, 4, 8, 16, 16, 16, 16]
    bandwidth = [base * m for m in multiplier]
    for i in range(3, 7):
        bandwidth[i] = int(bandwidth[i] * width_mult)
    chans = [in_ch] + bandwidth
    cfg = []
    hw = in_hw
    for li in range(8):
        pool = li < 4  # first four blocks have MaxPool2d(2, 2, 0)
        cfg.append(dict(H=hw, W=hw, Cin=chans[li], Cout=chans[li + 1],
                        pool=pool, cfirst=li < 4))
        if pool:
            hw //= 2
    return cfg, bandwidth


# ----------------------------------------------------------------------------
# Single fused Pallas kernel: 8x(conv3x3+BN+ReLU6) + 4x maxpool + avgpool + FC
# ----------------------------------------------------------------------------
def _build_fused_kernel(cfg):
    n_layers = len(cfg)

    def kernel(*refs):
        x_ref = refs[0]
        conv_refs = refs[1:1 + 2 * n_layers]          # w0, b0, w1, b1, ...
        fcw_ref = refs[1 + 2 * n_layers]              # (C_last, OUT_PAD) bf16
        fcb_ref = refs[2 + 2 * n_layers]              # (1, OUT_PAD) f32
        out_ref = refs[3 + 2 * n_layers]              # (1, 1, OUT_PAD) f32
        bufs = refs[4 + 2 * n_layers:]                # per-layer padded activations

        # Zero the padded activation buffers (bf16, lane-dense layouts => only
        # ~30 vector stores per image in total).  Interiors are rewritten
        # below; the 1-pixel borders stay zero for "same" padding.
        for buf in bufs:
            buf[...] = jnp.zeros_like(buf)

        # Stage the NCHW image straight into layer 0's channel-first flat
        # padded buffer (Cin0, (H0+2)*(W0+2)).
        c0 = cfg[0]
        H0, W0 = c0["H"], c0["W"]
        S0 = W0 + 2
        xv = x_ref[0].astype(jnp.bfloat16)            # (Cin0, H0, W0)
        for h in range(H0):
            base = (h + 1) * S0 + 1
            bufs[0][:, base:base + W0] = xv[:, h, :]

        y_last = None
        for li, c in enumerate(cfg):
            H, W, Cin, Cout = c["H"], c["W"], c["Cin"], c["Cout"]
            w_ref = conv_refs[2 * li]
            b_ref = conv_refs[2 * li + 1]

            if c["cfirst"]:
                # ---- channel-first layers 0-3 -------------------------------
                # Flat padded buffer (Cin, (H+2)*S), S = W+2.  Every 3x3 tap is
                # a contiguous lane window at offset ki*S+kj, so the implicit
                # im2col is 9 lane-offset slices stacked on sublanes, and the
                # whole conv is ONE bf16 MXU matmul with K = 9*Cin.
                assert c["pool"]
                S = W + 2
                L = H * S - 2                 # flat window; valid t = h*S + w
                p = bufs[li]
                pieces = [p[:, ki * S + kj: ki * S + kj + L]
                          for ki in range(3) for kj in range(3)]
                patch = jnp.concatenate(pieces, axis=0)             # (9Cin, L)
                acc = jnp.dot(w_ref[...], patch,
                              preferred_element_type=jnp.float32)   # (Cout, L)
                y = jnp.clip(acc + b_ref[...], 0.0, 6.0)            # +bias, ReLU6

                # Fused MaxPool2d(2,2): pair maxima via offset slices, then an
                # even-column compaction with a tiny 0/1 matmul.
                Ho, Wo = H // 2, W // 2
                yh = jnp.maximum(y[:, :L - S], y[:, S:])            # H-pair max
                yw = jnp.maximum(yh[:, :-1], yh[:, 1:])             # + W-pair max
                row_i = lax.broadcasted_iota(jnp.int32, (W - 1, Wo), 0)
                col_i = lax.broadcasted_iota(jnp.int32, (W - 1, Wo), 1)
                sel = jnp.where(row_i == 2 * col_i, 1.0, 0.0).astype(jnp.bfloat16)

                nxt = cfg[li + 1]
                if nxt["cfirst"]:
                    # All Ho pooled rows compacted with a single MXU push.
                    rows = jnp.concatenate(
                        [yw[:, 2 * hp * S: 2 * hp * S + W - 1] for hp in range(Ho)],
                        axis=0)                                      # (Ho*Cout, W-1)
                    pooled = jnp.dot(rows.astype(jnp.bfloat16), sel,
                                     preferred_element_type=jnp.float32)
                    Sn = nxt["W"] + 2
                    for hp in range(Ho):
                        prow = pooled[hp * Cout:(hp + 1) * Cout, :]  # (Cout, Wo)
                        base = (hp + 1) * Sn + 1
                        bufs[li + 1][:, base:base + Wo] = prow.astype(jnp.bfloat16)
                else:
                    # Transition to the channel-last layers (layer 3 -> 4):
                    # two tiny pooled rows, transposed to (Wo, Cout).
                    for hp in range(Ho):
                        row = yw[:, 2 * hp * S: 2 * hp * S + W - 1]
                        prow = jnp.dot(row.astype(jnp.bfloat16), sel,
                                       preferred_element_type=jnp.float32)
                        prow_cl = jnp.transpose(prow, (1, 0))        # (Wo, Cout)
                        bufs[li + 1][hp + 1:hp + 2, 1:1 + Wo, :] = (
                            prow_cl.astype(jnp.bfloat16).reshape(1, Wo, Cout))
            else:
                # ---- channel-last layers 4-7 (128 ch, 2x2 spatial) ----------
                assert not c["pool"]
                q = bufs[li]                                         # (H+2, W+2, Cin)
                M = H * W
                pieces = [q[ki:ki + H, kj:kj + W, :].reshape(M, Cin)
                          for ki in range(3) for kj in range(3)]
                patch = jnp.concatenate(pieces, axis=1)              # (M, 9Cin)
                acc = jnp.dot(patch, w_ref[...],
                              preferred_element_type=jnp.float32)    # (M, Cout)
                y = jnp.clip(acc + b_ref[...], 0.0, 6.0)
                if li + 1 < n_layers:
                    bufs[li + 1][1:1 + H, 1:1 + W, :] = (
                        y.astype(jnp.bfloat16).reshape(H, W, Cout))
                else:
                    y_last = y                                       # (M, C_last)

        # Fused head: AdaptiveAvgPool2d((1,1)) + Linear, lane-dense 128 store.
        pooled = jnp.mean(y_last, axis=0, keepdims=True)             # (1, C_last)
        logits = jnp.dot(pooled.astype(jnp.bfloat16), fcw_ref[...],
                         preferred_element_type=jnp.float32) + fcb_ref[...]
        out_ref[...] = logits.reshape(1, 1, OUT_PAD)

    return kernel


def _fused_forward(cfg, x_nchw, conv_folded, fc_folded):
    N = x_nchw.shape[0]
    kernel = _build_fused_kernel(cfg)

    inputs = [x_nchw]
    in_specs = [pl.BlockSpec((1,) + tuple(x_nchw.shape[1:]),
                             lambda n: (n, 0, 0, 0))]
    for w, b in conv_folded:
        inputs += [w, b]
        in_specs += [pl.BlockSpec(tuple(w.shape), lambda n: (0, 0)),
                     pl.BlockSpec(tuple(b.shape), lambda n: (0, 0))]
    wfc, bfc = fc_folded
    inputs += [wfc, bfc]
    in_specs += [pl.BlockSpec(tuple(wfc.shape), lambda n: (0, 0)),
                 pl.BlockSpec(tuple(bfc.shape), lambda n: (0, 0))]

    # Per-layer padded activation buffers (bf16):
    #   layers 0-3: channel-first flat  (Cin, (H+2)*(W+2))
    #   layers 4-7: channel-last 3-D    (H+2, W+2, Cin)
    scratch_shapes = []
    for c in cfg:
        if c["cfirst"]:
            scratch_shapes.append(
                pltpu.VMEM((c["Cin"], (c["H"] + 2) * (c["W"] + 2)), jnp.bfloat16))
        else:
            scratch_shapes.append(
                pltpu.VMEM((c["H"] + 2, c["W"] + 2, c["Cin"]), jnp.bfloat16))

    out = pl.pallas_call(
        kernel,
        out_shape=jax.ShapeDtypeStruct((N, 1, OUT_PAD), jnp.float32),
        grid=(N,),
        in_specs=in_specs,
        out_specs=pl.BlockSpec((1, 1, OUT_PAD), lambda n: (n, 0, 0)),
        scratch_shapes=scratch_shapes,
        compiler_params=pltpu.CompilerParams(
            dimension_semantics=("parallel",),      # one image per TC on v7x
        ),
    )(*inputs)
    return out.reshape(N, OUT_PAD)


def classifier_forward(x_nchw, folded, cfg, num_classes=11):
    conv_folded, fc_folded = folded
    out = _fused_forward(cfg, x_nchw, conv_folded, fc_folded)
    return out[:, :num_classes]


# ----------------------------------------------------------------------------
# One-time parameter folding (BN into weights/bias, bf16 MXU weights)
# ----------------------------------------------------------------------------
def fold_params(conv_params, fc_params, cfg):
    folded = []
    for li, p in enumerate(conv_params):
        cout, cin = p["w"].shape[0], p["w"].shape[1]
        scale = p["gamma"] / jnp.sqrt(p["var"] + EPS)                   # (Cout,)
        bias = ((p["b"] - p["mean"]) * scale + p["beta"]).astype(jnp.float32)
        if cfg[li]["cfirst"]:
            # (Cout,Cin,3,3) -> (Cout, ki,kj,Cin) -> (Cout, 9*Cin), col = t*Cin+ci
            w = jnp.transpose(p["w"], (0, 2, 3, 1)).reshape(cout, 9 * cin)
            w = (w * scale[:, None]).astype(jnp.bfloat16)
            b = bias.reshape(cout, 1)
        else:
            # (Cout,Cin,3,3) -> (ki,kj,Cin,Cout) -> (9*Cin, Cout), row = t*Cin+ci
            w = jnp.transpose(p["w"], (2, 3, 1, 0)).reshape(9 * cin, cout)
            w = (w * scale[None, :]).astype(jnp.bfloat16)
            b = bias.reshape(1, cout)
        folded.append((w, b))
    fc_w, fc_b = fc_params
    n_cls, c_last = fc_w.shape
    wfc = jnp.zeros((c_last, OUT_PAD), jnp.float32).at[:, :n_cls].set(fc_w.T)
    wfc = wfc.astype(jnp.bfloat16)
    bfc = jnp.zeros((1, OUT_PAD), jnp.float32).at[:, :n_cls].set(fc_b[None, :])
    return folded, (wfc, bfc)


# ----------------------------------------------------------------------------
# Deterministic parameter init (shapes per Classifier.__init__)
# ----------------------------------------------------------------------------
def init_params(key, base=8, width_mult=1):
    multiplier = [1, 2, 4, 8, 16, 16, 16, 16]
    bandwidth = [base * m for m in multiplier]
    for i in range(3, 7):
        bandwidth[i] = int(bandwidth[i] * width_mult)
    chans = [3] + bandwidth
    conv_params = []
    for li in range(8):
        cin, cout = chans[li], chans[li + 1]
        key, k1, k2, k3, k4, k5, k6 = jax.random.split(key, 7)
        w_std = (9 * cin) ** -0.5            # fan-in (He-style) init
        conv_params.append(dict(
            w=w_std * jax.random.normal(k1, (cout, cin, 3, 3), jnp.float32),
            b=0.05 * jax.random.normal(k2, (cout,), jnp.float32),
            gamma=1.0 + 0.1 * jax.random.normal(k3, (cout,), jnp.float32),
            beta=0.1 * jax.random.normal(k4, (cout,), jnp.float32),
            mean=0.1 * jax.random.normal(k5, (cout,), jnp.float32),
            var=jnp.abs(1.0 + 0.1 * jax.random.normal(k6, (cout,), jnp.float32)),
        ))
    key, kf1, kf2 = jax.random.split(key, 3)
    fc_w = (bandwidth[7] ** -0.5) * jax.random.normal(
        kf1, (11, bandwidth[7]), jnp.float32)
    fc_b = 0.05 * jax.random.normal(kf2, (11,), jnp.float32)
    return conv_params, (fc_w, fc_b)


# ----------------------------------------------------------------------------
# Pure-JAX reference (f32, for the correctness check)
# ----------------------------------------------------------------------------
def reference_forward(x_nhwc, conv_params, fc_params):
    h = x_nhwc
    for li, p in enumerate(conv_params):
        w_hwio = jnp.transpose(p["w"], (2, 3, 1, 0))
        h = lax.conv_general_dilated(
            h, w_hwio, (1, 1), ((1, 1), (1, 1)),
            dimension_numbers=("NHWC", "HWIO", "NHWC"),
        ) + p["b"]
        scale = p["gamma"] / jnp.sqrt(p["var"] + EPS)
        h = (h - p["mean"]) * scale + p["beta"]
        h = jnp.clip(h, 0.0, 6.0)
        if li < 4:
            N, H, W, C = h.shape
            h = h.reshape(N, H // 2, 2, W // 2, 2, C).max(axis=(2, 4))
    pooled = h.mean(axis=(1, 2))
    return pooled @ fc_params[0].T + fc_params[1]


if __name__ == "__main__":
    key = jax.random.PRNGKey(0)
    key, kx = jax.random.split(key)
    # PyTorch-style NCHW input (2, 3, 32, 32) -- consumed directly (no transpose).
    x_nchw = jax.random.normal(kx, (2, 3, 32, 32), jnp.float32)

    base, width_mult = 8, 1
    cfg, bandwidth = make_config(base=base, width_mult=width_mult, in_hw=32)
    conv_params, fc_params = init_params(key, base=base, width_mult=width_mult)

    # BN folding / bf16 weight layout conversion done ONCE (not per forward).
    folded = fold_params(conv_params, fc_params, cfg)

    fwd = jax.jit(lambda x, params: classifier_forward(x, params, cfg))
    out = jax.block_until_ready(fwd(x_nchw, folded))

    ref = jax.block_until_ready(
        reference_forward(jnp.transpose(x_nchw, (0, 2, 3, 1)),
                          conv_params, fc_params))
    # bf16 MXU operands (f32 accumulation) => compare at a bf16-level tolerance.
    np.testing.assert_allclose(np.asarray(out), np.asarray(ref),
                               rtol=2e-2, atol=2e-2)

    print("KERNEL_OK")
</pallas_src>

<mosaic_0001>
module attributes {stable_mosaic.version = 11 : i64} {
  func.func @kernel(%arg0: i32, %arg1: memref<1x3x32x32xf32, #tpu.memory_space<vmem>>, %arg2: memref<8x27xbf16, #tpu.memory_space<vmem>>, %arg3: memref<8x1xf32, #tpu.memory_space<vmem>>, %arg4: memref<16x72xbf16, #tpu.memory_space<vmem>>, %arg5: memref<16x1xf32, #tpu.memory_space<vmem>>, %arg6: memref<32x144xbf16, #tpu.memory_space<vmem>>, %arg7: memref<32x1xf32, #tpu.memory_space<vmem>>, %arg8: memref<64x288xbf16, #tpu.memory_space<vmem>>, %arg9: memref<64x1xf32, #tpu.memory_space<vmem>>, %arg10: memref<576x128xbf16, #tpu.memory_space<vmem>>, %arg11: memref<1x128xf32, #tpu.memory_space<vmem>>, %arg12: memref<1152x128xbf16, #tpu.memory_space<vmem>>, %arg13: memref<1x128xf32, #tpu.memory_space<vmem>>, %arg14: memref<1152x128xbf16, #tpu.memory_space<vmem>>, %arg15: memref<1x128xf32, #tpu.memory_space<vmem>>, %arg16: memref<1152x128xbf16, #tpu.memory_space<vmem>>, %arg17: memref<1x128xf32, #tpu.memory_space<vmem>>, %arg18: memref<128x128xbf16, #tpu.memory_space<vmem>>, %arg19: memref<1x128xf32, #tpu.memory_space<vmem>>, %arg20: memref<1x1x128xf32, #tpu.memory_space<vmem>>, %arg21: memref<3x1156xbf16, #tpu.memory_space<vmem>>, %arg22: memref<8x324xbf16, #tpu.memory_space<vmem>>, %arg23: memref<16x100xbf16, #tpu.memory_space<vmem>>, %arg24: memref<32x36xbf16, #tpu.memory_space<vmem>>, %arg25: memref<4x4x64xbf16, #tpu.memory_space<vmem>>, %arg26: memref<4x4x128xbf16, #tpu.memory_space<vmem>>, %arg27: memref<4x4x128xbf16, #tpu.memory_space<vmem>>, %arg28: memref<4x4x128xbf16, #tpu.memory_space<vmem>>) attributes {dimension_semantics = [#tpu.dimension_semantics<parallel>], iteration_bounds = array<i64: 2>, scalar_prefetch = 0 : i64, scratch_operands = 8 : i64, tpu.core_type = #tpu.core_type<tc>, window_params = [{transform_indices = @transform_0, window_bounds = array<i64: 1, 3, 32, 32>}, {pipeline_mode = #tpu.pipeline_mode<synchronous>, transform_indices = @transform_1, window_bounds = array<i64: 8, 27>}, {pipeline_mode = #tpu.pipeline_mode<synchronous>, transform_indices = @transform_2, window_bounds = array<i64: 8, 1>}, {pipeline_mode = #tpu.pipeline_mode<synchronous>, transform_indices = @transform_3, window_bounds = array<i64: 16, 72>}, {pipeline_mode = #tpu.pipeline_mode<synchronous>, transform_indices = @transform_4, window_bounds = array<i64: 16, 1>}, {pipeline_mode = #tpu.pipeline_mode<synchronous>, transform_indices = @transform_5, window_bounds = array<i64: 32, 144>}, {pipeline_mode = #tpu.pipeline_mode<synchronous>, transform_indices = @transform_6, window_bounds = array<i64: 32, 1>}, {pipeline_mode = #tpu.pipeline_mode<synchronous>, transform_indices = @transform_7, window_bounds = array<i64: 64, 288>}, {pipeline_mode = #tpu.pipeline_mode<synchronous>, transform_indices = @transform_8, window_bounds = array<i64: 64, 1>}, {pipeline_mode = #tpu.pipeline_mode<synchronous>, transform_indices = @transform_9, window_bounds = array<i64: 576, 128>}, {pipeline_mode = #tpu.pipeline_mode<synchronous>, transform_indices = @transform_10, window_bounds = array<i64: 1, 128>}, {pipeline_mode = #tpu.pipeline_mode<synchronous>, transform_indices = @transform_11, window_bounds = array<i64: 1152, 128>}, {pipeline_mode = #tpu.pipeline_mode<synchronous>, transform_indices = @transform_12, window_bounds = array<i64: 1, 128>}, {pipeline_mode = #tpu.pipeline_mode<synchronous>, transform_indices = @transform_13, window_bounds = array<i64: 1152, 128>}, {pipeline_mode = #tpu.pipeline_mode<synchronous>, transform_indices = @transform_14, window_bounds = array<i64: 1, 128>}, {pipeline_mode = #tpu.pipeline_mode<synchronous>, transform_indices = @transform_15, window_bounds = array<i64: 1152, 128>}, {pipeline_mode = #tpu.pipeline_mode<synchronous>, transform_indices = @transform_16, window_bounds = array<i64: 1, 128>}, {pipeline_mode = #tpu.pipeline_mode<synchronous>, transform_indices = @transform_17, window_bounds = array<i64: 128, 128>}, {pipeline_mode = #tpu.pipeline_mode<synchronous>, transform_indices = @transform_18, window_bounds = array<i64: 1, 128>}, {transform_indices = @transform_19, window_bounds = array<i64: 1, 1, 128>}]} {
    %cst = arith.constant 0.000000e+00 : bf16
    %0 = vector.broadcast %cst : bf16 to vector<3x1156xbf16>
    %c0 = arith.constant 0 : index
    %c0_0 = arith.constant 0 : index
    %1 = vector.load %arg21[%c0, %c0_0] : memref<3x1156xbf16, #tpu.memory_space<vmem>>, vector<3x1156xbf16>
    tpu.vector_store %arg21[%c0, %c0_0], %0 {strides = array<i32>} : memref<3x1156xbf16, #tpu.memory_space<vmem>>, vector<3x1156xbf16>,
    %cst_1 = arith.constant 0.000000e+00 : bf16
    %2 = vector.broadcast %cst_1 : bf16 to vector<8x324xbf16>
    %c0_2 = arith.constant 0 : index
    %c0_3 = arith.constant 0 : index
    %3 = vector.load %arg22[%c0_2, %c0_3] : memref<8x324xbf16, #tpu.memory_space<vmem>>, vector<8x324xbf16>
    tpu.vector_store %arg22[%c0_2, %c0_3], %2 {strides = array<i32>} : memref<8x324xbf16, #tpu.memory_space<vmem>>, vector<8x324xbf16>,
    %cst_4 = arith.constant 0.000000e+00 : bf16
    %4 = vector.broadcast %cst_4 : bf16 to vector<16x100xbf16>
    %c0_5 = arith.constant 0 : index
    %c0_6 = arith.constant 0 : index
    %5 = vector.load %arg23[%c0_5, %c0_6] : memref<16x100xbf16, #tpu.memory_space<vmem>>, vector<16x100xbf16>
    tpu.vector_store %arg23[%c0_5, %c0_6], %4 {strides = array<i32>} : memref<16x100xbf16, #tpu.memory_space<vmem>>, vector<16x100xbf16>,
    %cst_7 = arith.constant 0.000000e+00 : bf16
    %6 = vector.broadcast %cst_7 : bf16 to vector<32x36xbf16>
    %c0_8 = arith.constant 0 : index
    %c0_9 = arith.constant 0 : index
    %7 = vector.load %arg24[%c0_8, %c0_9] : memref<32x36xbf16, #tpu.memory_space<vmem>>, vector<32x36xbf16>
    tpu.vector_store %arg24[%c0_8, %c0_9], %6 {strides = array<i32>} : memref<32x36xbf16, #tpu.memory_space<vmem>>, vector<32x36xbf16>,
    %cst_10 = arith.constant 0.000000e+00 : bf16
    %8 = vector.broadcast %cst_10 : bf16 to vector<4x4x64xbf16>
    %c0_11 = arith.constant 0 : index
    %c0_12 = arith.constant 0 : index
    %c0_13 = arith.constant 0 : index
    %9 = vector.load %arg25[%c0_11, %c0_12, %c0_13] : memref<4x4x64xbf16, #tpu.memory_space<vmem>>, vector<4x4x64xbf16>
    tpu.vector_store %arg25[%c0_11, %c0_12, %c0_13], %8 {strides = array<i32>} : memref<4x4x64xbf16, #tpu.memory_space<vmem>>, vector<4x4x64xbf16>,
    %cst_14 = arith.constant 0.000000e+00 : bf16
    %10 = vector.broadcast %cst_14 : bf16 to vector<4x4x128xbf16>
    %c0_15 = arith.constant 0 : index
    %c0_16 = arith.constant 0 : index
    %c0_17 = arith.constant 0 : index
    %11 = vector.load %arg26[%c0_15, %c0_16, %c0_17] : memref<4x4x128xbf16, #tpu.memory_space<vmem>>, vector<4x4x128xbf16>
    tpu.vector_store %arg26[%c0_15, %c0_16, %c0_17], %10 {strides = array<i32>} : memref<4x4x128xbf16, #tpu.memory_space<vmem>>, vector<4x4x128xbf16>,
    %cst_18 = arith.constant 0.000000e+00 : bf16
    %12 = vector.broadcast %cst_18 : bf16 to vector<4x4x128xbf16>
    %c0_19 = arith.constant 0 : index
    %c0_20 = arith.constant 0 : index
    %c0_21 = arith.constant 0 : index
    %13 = vector.load %arg27[%c0_19, %c0_20, %c0_21] : memref<4x4x128xbf16, #tpu.memory_space<vmem>>, vector<4x4x128xbf16>
    tpu.vector_store %arg27[%c0_19, %c0_20, %c0_21], %12 {strides = array<i32>} : memref<4x4x128xbf16, #tpu.memory_space<vmem>>, vector<4x4x128xbf16>,
    %cst_22 = arith.constant 0.000000e+00 : bf16
    %14 = vector.broadcast %cst_22 : bf16 to vector<4x4x128xbf16>
    %c0_23 = arith.constant 0 : index
    %c0_24 = arith.constant 0 : index
    %c0_25 = arith.constant 0 : index
    %15 = vector.load %arg28[%c0_23, %c0_24, %c0_25] : memref<4x4x128xbf16, #tpu.memory_space<vmem>>, vector<4x4x128xbf16>
    tpu.vector_store %arg28[%c0_23, %c0_24, %c0_25], %14 {strides = array<i32>} : memref<4x4x128xbf16, #tpu.memory_space<vmem>>, vector<4x4x128xbf16>,
    %c0_26 = arith.constant 0 : index
    %c0_27 = arith.constant 0 : index
    %c0_28 = arith.constant 0 : index
    %c0_29 = arith.constant 0 : index
    %16 = vector.load %arg1[%c0_26, %c0_27, %c0_28, %c0_29] : memref<1x3x32x32xf32, #tpu.memory_space<vmem>>, vector<1x3x32x32xf32>
    %17 = vector.shape_cast %16 : vector<1x3x32x32xf32> to vector<3x32x32xf32>
    %18 = arith.truncf %17 : vector<3x32x32xf32> to vector<3x32x32xbf16>
    %19 = vector.extract_strided_slice %18 {offsets = [0, 0, 0], sizes = [3, 1, 32], strides = [1, 1, 1]} : vector<3x32x32xbf16> to vector<3x1x32xbf16>
    %20 = vector.shape_cast %19 : vector<3x1x32xbf16> to vector<3x32xbf16>
    %c0_30 = arith.constant 0 : index
    %c35 = arith.constant 35 : index
    %21 = vector.load %arg21[%c0_30, %c35] : memref<3x1156xbf16, #tpu.memory_space<vmem>>, vector<3x32xbf16>
    tpu.vector_store %arg21[%c0_30, %c35], %20 {strides = array<i32>} : memref<3x1156xbf16, #tpu.memory_space<vmem>>, vector<3x32xbf16>,
    %22 = vector.extract_strided_slice %18 {offsets = [0, 1, 0], sizes = [3, 1, 32], strides = [1, 1, 1]} : vector<3x32x32xbf16> to vector<3x1x32xbf16>
    %23 = vector.shape_cast %22 : vector<3x1x32xbf16> to vector<3x32xbf16>
    %c0_31 = arith.constant 0 : index
    %c69 = arith.constant 69 : index
    %24 = vector.load %arg21[%c0_31, %c69] : memref<3x1156xbf16, #tpu.memory_space<vmem>>, vector<3x32xbf16>
    tpu.vector_store %arg21[%c0_31, %c69], %23 {strides = array<i32>} : memref<3x1156xbf16, #tpu.memory_space<vmem>>, vector<3x32xbf16>,
    %25 = vector.extract_strided_slice %18 {offsets = [0, 2, 0], sizes = [3, 1, 32], strides = [1, 1, 1]} : vector<3x32x32xbf16> to vector<3x1x32xbf16>
    %26 = vector.shape_cast %25 : vector<3x1x32xbf16> to vector<3x32xbf16>
    %c0_32 = arith.constant 0 : index
    %c103 = arith.constant 103 : index
    %27 = vector.load %arg21[%c0_32, %c103] : memref<3x1156xbf16, #tpu.memory_space<vmem>>, vector<3x32xbf16>
    tpu.vector_store %arg21[%c0_32, %c103], %26 {strides = array<i32>} : memref<3x1156xbf16, #tpu.memory_space<vmem>>, vector<3x32xbf16>,
    %28 = vector.extract_strided_slice %18 {offsets = [0, 3, 0], sizes = [3, 1, 32], strides = [1, 1, 1]} : vector<3x32x32xbf16> to vector<3x1x32xbf16>
    %29 = vector.shape_cast %28 : vector<3x1x32xbf16> to vector<3x32xbf16>
    %c0_33 = arith.constant 0 : index
    %c137 = arith.constant 137 : index
    %30 = vector.load %arg21[%c0_33, %c137] : memref<3x1156xbf16, #tpu.memory_space<vmem>>, vector<3x32xbf16>
    tpu.vector_store %arg21[%c0_33, %c137], %29 {strides = array<i32>} : memref<3x1156xbf16, #tpu.memory_space<vmem>>, vector<3x32xbf16>,
    %31 = vector.extract_strided_slice %18 {offsets = [0, 4, 0], sizes = [3, 1, 32], strides = [1, 1, 1]} : vector<3x32x32xbf16> to vector<3x1x32xbf16>
    %32 = vector.shape_cast %31 : vector<3x1x32xbf16> to vector<3x32xbf16>
    %c0_34 = arith.constant 0 : index
    %c171 = arith.constant 171 : index
    %33 = vector.load %arg21[%c0_34, %c171] : memref<3x1156xbf16, #tpu.memory_space<vmem>>, vector<3x32xbf16>
    tpu.vector_store %arg21[%c0_34, %c171], %32 {strides = array<i32>} : memref<3x1156xbf16, #tpu.memory_space<vmem>>, vector<3x32xbf16>,
    %34 = vector.extract_strided_slice %18 {offsets = [0, 5, 0], sizes = [3, 1, 32], strides = [1, 1, 1]} : vector<3x32x32xbf16> to vector<3x1x32xbf16>
    %35 = vector.shape_cast %34 : vector<3x1x32xbf16> to vector<3x32xbf16>
    %c0_35 = arith.constant 0 : index
    %c205 = arith.constant 205 : index
    %36 = vector.load %arg21[%c0_35, %c205] : memref<3x1156xbf16, #tpu.memory_space<vmem>>, vector<3x32xbf16>
    tpu.vector_store %arg21[%c0_35, %c205], %35 {strides = array<i32>} : memref<3x1156xbf16, #tpu.memory_space<vmem>>, vector<3x32xbf16>,
    %37 = vector.extract_strided_slice %18 {offsets = [0, 6, 0], sizes = [3, 1, 32], strides = [1, 1, 1]} : vector<3x32x32xbf16> to vector<3x1x32xbf16>
    %38 = vector.shape_cast %37 : vector<3x1x32xbf16> to vector<3x32xbf16>
    %c0_36 = arith.constant 0 : index
    %c239 = arith.constant 239 : index
    %39 = vector.load %arg21[%c0_36, %c239] : memref<3x1156xbf16, #tpu.memory_space<vmem>>, vector<3x32xbf16>
    tpu.vector_store %arg21[%c0_36, %c239], %38 {strides = array<i32>} : memref<3x1156xbf16, #tpu.memory_space<vmem>>, vector<3x32xbf16>,
    %40 = vector.extract_strided_slice %18 {offsets = [0, 7, 0], sizes = [3, 1, 32], strides = [1, 1, 1]} : vector<3x32x32xbf16> to vector<3x1x32xbf16>
    %41 = vector.shape_cast %40 : vector<3x1x32xbf16> to vector<3x32xbf16>
    %c0_37 = arith.constant 0 : index
    %c273 = arith.constant 273 : index
    %42 = vector.load %arg21[%c0_37, %c273] : memref<3x1156xbf16, #tpu.memory_space<vmem>>, vector<3x32xbf16>
    tpu.vector_store %arg21[%c0_37, %c273], %41 {strides = array<i32>} : memref<3x1156xbf16, #tpu.memory_space<vmem>>, vector<3x32xbf16>,
    %43 = vector.extract_strided_slice %18 {offsets = [0, 8, 0], sizes = [3, 1, 32], strides = [1, 1, 1]} : vector<3x32x32xbf16> to vector<3x1x32xbf16>
    %44 = vector.shape_cast %43 : vector<3x1x32xbf16> to vector<3x32xbf16>
    %c0_38 = arith.constant 0 : index
    %c307 = arith.constant 307 : index
    %45 = vector.load %arg21[%c0_38, %c307] : memref<3x1156xbf16, #tpu.memory_space<vmem>>, vector<3x32xbf16>
    tpu.vector_store %arg21[%c0_38, %c307], %44 {strides = array<i32>} : memref<3x1156xbf16, #tpu.memory_space<vmem>>, vector<3x32xbf16>,
    %46 = vector.extract_strided_slice %18 {offsets = [0, 9, 0], sizes = [3, 1, 32], strides = [1, 1, 1]} : vector<3x32x32xbf16> to vector<3x1x32xbf16>
    %47 = vector.shape_cast %46 : vector<3x1x32xbf16> to vector<3x32xbf16>
    %c0_39 = arith.constant 0 : index
    %c341 = arith.constant 341 : index
    %48 = vector.load %arg21[%c0_39, %c341] : memref<3x1156xbf16, #tpu.memory_space<vmem>>, vector<3x32xbf16>
    tpu.vector_store %arg21[%c0_39, %c341], %47 {strides = array<i32>} : memref<3x1156xbf16, #tpu.memory_space<vmem>>, vector<3x32xbf16>,
    %49 = vector.extract_strided_slice %18 {offsets = [0, 10, 0], sizes = [3, 1, 32], strides = [1, 1, 1]} : vector<3x32x32xbf16> to vector<3x1x32xbf16>
    %50 = vector.shape_cast %49 : vector<3x1x32xbf16> to vector<3x32xbf16>
    %c0_40 = arith.constant 0 : index
    %c375 = arith.constant 375 : index
    %51 = vector.load %arg21[%c0_40, %c375] : memref<3x1156xbf16, #tpu.memory_space<vmem>>, vector<3x32xbf16>
    tpu.vector_store %arg21[%c0_40, %c375], %50 {strides = array<i32>} : memref<3x1156xbf16, #tpu.memory_space<vmem>>, vector<3x32xbf16>,
    %52 = vector.extract_strided_slice %18 {offsets = [0, 11, 0], sizes = [3, 1, 32], strides = [1, 1, 1]} : vector<3x32x32xbf16> to vector<3x1x32xbf16>
    %53 = vector.shape_cast %52 : vector<3x1x32xbf16> to vector<3x32xbf16>
    %c0_41 = arith.constant 0 : index
    %c409 = arith.constant 409 : index
    %54 = vector.load %arg21[%c0_41, %c409] : memref<3x1156xbf16, #tpu.memory_space<vmem>>, vector<3x32xbf16>
    tpu.vector_store %arg21[%c0_41, %c409], %53 {strides = array<i32>} : memref<3x1156xbf16, #tpu.memory_space<vmem>>, vector<3x32xbf16>,
    %55 = vector.extract_strided_slice %18 {offsets = [0, 12, 0], sizes = [3, 1, 32], strides = [1, 1, 1]} : vector<3x32x32xbf16> to vector<3x1x32xbf16>
    %56 = vector.shape_cast %55 : vector<3x1x32xbf16> to vector<3x32xbf16>
    %c0_42 = arith.constant 0 : index
    %c443 = arith.constant 443 : index
    %57 = vector.load %arg21[%c0_42, %c443] : memref<3x1156xbf16, #tpu.memory_space<vmem>>, vector<3x32xbf16>
    tpu.vector_store %arg21[%c0_42, %c443], %56 {strides = array<i32>} : memref<3x1156xbf16, #tpu.memory_space<vmem>>, vector<3x32xbf16>,
    %58 = vector.extract_strided_slice %18 {offsets = [0, 13, 0], sizes = [3, 1, 32], strides = [1, 1, 1]} : vector<3x32x32xbf16> to vector<3x1x32xbf16>
    %59 = vector.shape_cast %58 : vector<3x1x32xbf16> to vector<3x32xbf16>
    %c0_43 = arith.constant 0 : index
    %c477 = arith.constant 477 : index
    %60 = vector.load %arg21[%c0_43, %c477] : memref<3x1156xbf16, #tpu.memory_space<vmem>>, vector<3x32xbf16>
    tpu.vector_store %arg21[%c0_43, %c477], %59 {strides = array<i32>} : memref<3x1156xbf16, #tpu.memory_space<vmem>>, vector<3x32xbf16>,
    %61 = vector.extract_strided_slice %18 {offsets = [0, 14, 0], sizes = [3, 1, 32], strides = [1, 1, 1]} : vector<3x32x32xbf16> to vector<3x1x32xbf16>
    %62 = vector.shape_cast %61 : vector<3x1x32xbf16> to vector<3x32xbf16>
    %c0_44 = arith.constant 0 : index
    %c511 = arith.constant 511 : index
    %63 = vector.load %arg21[%c0_44, %c511] : memref<3x1156xbf16, #tpu.memory_space<vmem>>, vector<3x32xbf16>
    tpu.vector_store %arg21[%c0_44, %c511], %62 {strides = array<i32>} : memref<3x1156xbf16, #tpu.memory_space<vmem>>, vector<3x32xbf16>,
    %64 = vector.extract_strided_slice %18 {offsets = [0, 15, 0], sizes = [3, 1, 32], strides = [1, 1, 1]} : vector<3x32x32xbf16> to vector<3x1x32xbf16>
    %65 = vector.shape_cast %64 : vector<3x1x32xbf16> to vector<3x32xbf16>
    %c0_45 = arith.constant 0 : index
    %c545 = arith.constant 545 : index
    %66 = vector.load %arg21[%c0_45, %c545] : memref<3x1156xbf16, #tpu.memory_space<vmem>>, vector<3x32xbf16>
    tpu.vector_store %arg21[%c0_45, %c545], %65 {strides = array<i32>} : memref<3x1156xbf16, #tpu.memory_space<vmem>>, vector<3x32xbf16>,
    %67 = vector.extract_strided_slice %18 {offsets = [0, 16, 0], sizes = [3, 1, 32], strides = [1, 1, 1]} : vector<3x32x32xbf16> to vector<3x1x32xbf16>
    %68 = vector.shape_cast %67 : vector<3x1x32xbf16> to vector<3x32xbf16>
    %c0_46 = arith.constant 0 : index
    %c579 = arith.constant 579 : index
    %69 = vector.load %arg21[%c0_46, %c579] : memref<3x1156xbf16, #tpu.memory_space<vmem>>, vector<3x32xbf16>
    tpu.vector_store %arg21[%c0_46, %c579], %68 {strides = array<i32>} : memref<3x1156xbf16, #tpu.memory_space<vmem>>, vector<3x32xbf16>,
    %70 = vector.extract_strided_slice %18 {offsets = [0, 17, 0], sizes = [3, 1, 32], strides = [1, 1, 1]} : vector<3x32x32xbf16> to vector<3x1x32xbf16>
    %71 = vector.shape_cast %70 : vector<3x1x32xbf16> to vector<3x32xbf16>
    %c0_47 = arith.constant 0 : index
    %c613 = arith.constant 613 : index
    %72 = vector.load %arg21[%c0_47, %c613] : memref<3x1156xbf16, #tpu.memory_space<vmem>>, vector<3x32xbf16>
    tpu.vector_store %arg21[%c0_47, %c613], %71 {strides = array<i32>} : memref<3x1156xbf16, #tpu.memory_space<vmem>>, vector<3x32xbf16>,
    %73 = vector.extract_strided_slice %18 {offsets = [0, 18, 0], sizes = [3, 1, 32], strides = [1, 1, 1]} : vector<3x32x32xbf16> to vector<3x1x32xbf16>
    %74 = vector.shape_cast %73 : vector<3x1x32xbf16> to vector<3x32xbf16>
    %c0_48 = arith.constant 0 : index
    %c647 = arith.constant 647 : index
    %75 = vector.load %arg21[%c0_48, %c647] : memref<3x1156xbf16, #tpu.memory_space<vmem>>, vector<3x32xbf16>
    tpu.vector_store %arg21[%c0_48, %c647], %74 {strides = array<i32>} : memref<3x1156xbf16, #tpu.memory_space<vmem>>, vector<3x32xbf16>,
    %76 = vector.extract_strided_slice %18 {offsets = [0, 19, 0], sizes = [3, 1, 32], strides = [1, 1, 1]} : vector<3x32x32xbf16> to vector<3x1x32xbf16>
    %77 = vector.shape_cast %76 : vector<3x1x32xbf16> to vector<3x32xbf16>
    %c0_49 = arith.constant 0 : index
    %c681 = arith.constant 681 : index
    %78 = vector.load %arg21[%c0_49, %c681] : memref<3x1156xbf16, #tpu.memory_space<vmem>>, vector<3x32xbf16>
    tpu.vector_store %arg21[%c0_49, %c681], %77 {strides = array<i32>} : memref<3x1156xbf16, #tpu.memory_space<vmem>>, vector<3x32xbf16>,
    %79 = vector.extract_strided_slice %18 {offsets = [0, 20, 0], sizes = [3, 1, 32], strides = [1, 1, 1]} : vector<3x32x32xbf16> to vector<3x1x32xbf16>
    %80 = vector.shape_cast %79 : vector<3x1x32xbf16> to vector<3x32xbf16>
    %c0_50 = arith.constant 0 : index
    %c715 = arith.constant 715 : index
    %81 = vector.load %arg21[%c0_50, %c715] : memref<3x1156xbf16, #tpu.memory_space<vmem>>, vector<3x32xbf16>
    tpu.vector_store %arg21[%c0_50, %c715], %80 {strides = array<i32>} : memref<3x1156xbf16, #tpu.memory_space<vmem>>, vector<3x32xbf16>,
    %82 = vector.extract_strided_slice %18 {offsets = [0, 21, 0], sizes = [3, 1, 32], strides = [1, 1, 1]} : vector<3x32x32xbf16> to vector<3x1x32xbf16>
    %83 = vector.shape_cast %82 : vector<3x1x32xbf16> to vector<3x32xbf16>
    %c0_51 = arith.constant 0 : index
    %c749 = arith.constant 749 : index
    %84 = vector.load %arg21[%c0_51, %c749] : memref<3x1156xbf16, #tpu.memory_space<vmem>>, vector<3x32xbf16>
    tpu.vector_store %arg21[%c0_51, %c749], %83 {strides = array<i32>} : memref<3x1156xbf16, #tpu.memory_space<vmem>>, vector<3x32xbf16>,
    %85 = vector.extract_strided_slice %18 {offsets = [0, 22, 0], sizes = [3, 1, 32], strides = [1, 1, 1]} : vector<3x32x32xbf16> to vector<3x1x32xbf16>
    %86 = vector.shape_cast %85 : vector<3x1x32xbf16> to vector<3x32xbf16>
    %c0_52 = arith.constant 0 : index
    %c783 = arith.constant 783 : index
    %87 = vector.load %arg21[%c0_52, %c783] : memref<3x1156xbf16, #tpu.memory_space<vmem>>, vector<3x32xbf16>
    tpu.vector_store %arg21[%c0_52, %c783], %86 {strides = array<i32>} : memref<3x1156xbf16, #tpu.memory_space<vmem>>, vector<3x32xbf16>,
    %88 = vector.extract_strided_slice %18 {offsets = [0, 23, 0], sizes = [3, 1, 32], strides = [1, 1, 1]} : vector<3x32x32xbf16> to vector<3x1x32xbf16>
    %89 = vector.shape_cast %88 : vector<3x1x32xbf16> to vector<3x32xbf16>
    %c0_53 = arith.constant 0 : index
    %c817 = arith.constant 817 : index
    %90 = vector.load %arg21[%c0_53, %c817] : memref<3x1156xbf16, #tpu.memory_space<vmem>>, vector<3x32xbf16>
    tpu.vector_store %arg21[%c0_53, %c817], %89 {strides = array<i32>} : memref<3x1156xbf16, #tpu.memory_space<vmem>>, vector<3x32xbf16>,
    %91 = vector.extract_strided_slice %18 {offsets = [0, 24, 0], sizes = [3, 1, 32], strides = [1, 1, 1]} : vector<3x32x32xbf16> to vector<3x1x32xbf16>
    %92 = vector.shape_cast %91 : vector<3x1x32xbf16> to vector<3x32xbf16>
    %c0_54 = arith.constant 0 : index
    %c851 = arith.constant 851 : index
    %93 = vector.load %arg21[%c0_54, %c851] : memref<3x1156xbf16, #tpu.memory_space<vmem>>, vector<3x32xbf16>
    tpu.vector_store %arg21[%c0_54, %c851], %92 {strides = array<i32>} : memref<3x1156xbf16, #tpu.memory_space<vmem>>, vector<3x32xbf16>,
    %94 = vector.extract_strided_slice %18 {offsets = [0, 25, 0], sizes = [3, 1, 32], strides = [1, 1, 1]} : vector<3x32x32xbf16> to vector<3x1x32xbf16>
    %95 = vector.shape_cast %94 : vector<3x1x32xbf16> to vector<3x32xbf16>
    %c0_55 = arith.constant 0 : index
    %c885 = arith.constant 885 : index
    %96 = vector.load %arg21[%c0_55, %c885] : memref<3x1156xbf16, #tpu.memory_space<vmem>>, vector<3x32xbf16>
    tpu.vector_store %arg21[%c0_55, %c885], %95 {strides = array<i32>} : memref<3x1156xbf16, #tpu.memory_space<vmem>>, vector<3x32xbf16>,
    %97 = vector.extract_strided_slice %18 {offsets = [0, 26, 0], sizes = [3, 1, 32], strides = [1, 1, 1]} : vector<3x32x32xbf16> to vector<3x1x32xbf16>
    %98 = vector.shape_cast %97 : vector<3x1x32xbf16> to vector<3x32xbf16>
    %c0_56 = arith.constant 0 : index
    %c919 = arith.constant 919 : index
    %99 = vector.load %arg21[%c0_56, %c919] : memref<3x1156xbf16, #tpu.memory_space<vmem>>, vector<3x32xbf16>
    tpu.vector_store %arg21[%c0_56, %c919], %98 {strides = array<i32>} : memref<3x1156xbf16, #tpu.memory_space<vmem>>, vector<3x32xbf16>,
    %100 = vector.extract_strided_slice %18 {offsets = [0, 27, 0], sizes = [3, 1, 32], strides = [1, 1, 1]} : vector<3x32x32xbf16> to vector<3x1x32xbf16>
    %101 = vector.shape_cast %100 : vector<3x1x32xbf16> to vector<3x32xbf16>
    %c0_57 = arith.constant 0 : index
    %c953 = arith.constant 953 : index
    %102 = vector.load %arg21[%c0_57, %c953] : memref<3x1156xbf16, #tpu.memory_space<vmem>>, vector<3x32xbf16>
    tpu.vector_store %arg21[%c0_57, %c953], %101 {strides = array<i32>} : memref<3x1156xbf16, #tpu.memory_space<vmem>>, vector<3x32xbf16>,
    %103 = vector.extract_strided_slice %18 {offsets = [0, 28, 0], sizes = [3, 1, 32], strides = [1, 1, 1]} : vector<3x32x32xbf16> to vector<3x1x32xbf16>
    %104 = vector.shape_cast %103 : vector<3x1x32xbf16> to vector<3x32xbf16>
    %c0_58 = arith.constant 0 : index
    %c987 = arith.constant 987 : index
    %105 = vector.load %arg21[%c0_58, %c987] : memref<3x1156xbf16, #tpu.memory_space<vmem>>, vector<3x32xbf16>
    tpu.vector_store %arg21[%c0_58, %c987], %104 {strides = array<i32>} : memref<3x1156xbf16, #tpu.memory_space<vmem>>, vector<3x32xbf16>,
    %106 = vector.extract_strided_slice %18 {offsets = [0, 29, 0], sizes = [3, 1, 32], strides = [1, 1, 1]} : vector<3x32x32xbf16> to vector<3x1x32xbf16>
    %107 = vector.shape_cast %106 : vector<3x1x32xbf16> to vector<3x32xbf16>
    %c0_59 = arith.constant 0 : index
    %c1021 = arith.constant 1021 : index
    %108 = vector.load %arg21[%c0_59, %c1021] : memref<3x1156xbf16, #tpu.memory_space<vmem>>, vector<3x32xbf16>
    tpu.vector_store %arg21[%c0_59, %c1021], %107 {strides = array<i32>} : memref<3x1156xbf16, #tpu.memory_space<vmem>>, vector<3x32xbf16>,
    %109 = vector.extract_strided_slice %18 {offsets = [0, 30, 0], sizes = [3, 1, 32], strides = [1, 1, 1]} : vector<3x32x32xbf16> to vector<3x1x32xbf16>
    %110 = vector.shape_cast %109 : vector<3x1x32xbf16> to vector<3x32xbf16>
    %c0_60 = arith.constant 0 : index
    %c1055 = arith.constant 1055 : index
    %111 = vector.load %arg21[%c0_60, %c1055] : memref<3x1156xbf16, #tpu.memory_space<vmem>>, vector<3x32xbf16>
    tpu.vector_store %arg21[%c0_60, %c1055], %110 {strides = array<i32>} : memref<3x1156xbf16, #tpu.memory_space<vmem>>, vector<3x32xbf16>,
    %112 = vector.extract_strided_slice %18 {offsets = [0, 31, 0], sizes = [3, 1, 32], strides = [1, 1, 1]} : vector<3x32x32xbf16> to vector<3x1x32xbf16>
    %113 = vector.shape_cast %112 : vector<3x1x32xbf16> to vector<3x32xbf16>
    %c0_61 = arith.constant 0 : index
    %c1089 = arith.constant 1089 : index
    %114 = vector.load %arg21[%c0_61, %c1089] : memref<3x1156xbf16, #tpu.memory_space<vmem>>, vector<3x32xbf16>
    tpu.vector_store %arg21[%c0_61, %c1089], %113 {strides = array<i32>} : memref<3x1156xbf16, #tpu.memory_space<vmem>>, vector<3x32xbf16>,
    %c0_62 = arith.constant 0 : index
    %c0_63 = arith.constant 0 : index
    %115 = vector.load %arg21[%c0_62, %c0_63] : memref<3x1156xbf16, #tpu.memory_space<vmem>>, vector<3x1086xbf16>
    %c0_64 = arith.constant 0 : index
    %c1 = arith.constant 1 : index
    %116 = vector.load %arg21[%c0_64, %c1] : memref<3x1156xbf16, #tpu.memory_space<vmem>>, vector<3x1086xbf16>
    %c0_65 = arith.constant 0 : index
    %c2 = arith.constant 2 : index
    %117 = vector.load %arg21[%c0_65, %c2] : memref<3x1156xbf16, #tpu.memory_space<vmem>>, vector<3x1086xbf16>
    %c0_66 = arith.constant 0 : index
    %c34 = arith.constant 34 : index
    %118 = vector.load %arg21[%c0_66, %c34] : memref<3x1156xbf16, #tpu.memory_space<vmem>>, vector<3x1086xbf16>
    %c0_67 = arith.constant 0 : index
    %c35_68 = arith.constant 35 : index
    %119 = vector.load %arg21[%c0_67, %c35_68] : memref<3x1156xbf16, #tpu.memory_space<vmem>>, vector<3x1086xbf16>
    %c0_69 = arith.constant 0 : index
    %c36 = arith.constant 36 : index
    %120 = vector.load %arg21[%c0_69, %c36] : memref<3x1156xbf16, #tpu.memory_space<vmem>>, vector<3x1086xbf16>
    %c0_70 = arith.constant 0 : index
    %c68 = arith.constant 68 : index
    %121 = vector.load %arg21[%c0_70, %c68] : memref<3x1156xbf16, #tpu.memory_space<vmem>>, vector<3x1086xbf16>
    %c0_71 = arith.constant 0 : index
    %c69_72 = arith.constant 69 : index
    %122 = vector.load %arg21[%c0_71, %c69_72] : memref<3x1156xbf16, #tpu.memory_space<vmem>>, vector<3x1086xbf16>
    %c0_73 = arith.constant 0 : index
    %c70 = arith.constant 70 : index
    %123 = vector.load %arg21[%c0_73, %c70] : memref<3x1156xbf16, #tpu.memory_space<vmem>>, vector<3x1086xbf16>
    %124 = tpu.concatenate %115, %116, %117, %118, %119, %120, %121, %122, %123 in 0 : vector<3x1086xbf16>, vector<3x1086xbf16>, vector<3x1086xbf16>, vector<3x1086xbf16>, vector<3x1086xbf16>, vector<3x1086xbf16>, vector<3x1086xbf16>, vector<3x1086xbf16>, vector<3x1086xbf16> -> vector<27x1086xbf16>
    %c0_74 = arith.constant 0 : index
    %c0_75 = arith.constant 0 : index
    %125 = vector.load %arg2[%c0_74, %c0_75] : memref<8x27xbf16, #tpu.memory_space<vmem>>, vector<8x27xbf16>
    %cst_76 = arith.constant dense<0.000000e+00> : vector<8x1086xf32>
    %126 = tpu.matmul %125, %124, %cst_76 {dimension_numbers = #tpu.dot_dimension_numbers<[1], [0], [0], [1], [0, 0, 1, 1], [], []>} : vector<8x27xbf16>, vector<27x1086xbf16>, vector<8x1086xf32> -> vector<8x1086xf32>
    %c0_77 = arith.constant 0 : index
    %c0_78 = arith.constant 0 : index
    %127 = vector.load %arg3[%c0_77, %c0_78] : memref<8x1xf32, #tpu.memory_space<vmem>>, vector<8x1xf32>
    %128 = vector.broadcast %127 : vector<8x1xf32> to vector<8x1086xf32>
    %129 = arith.addf %126, %128 : vector<8x1086xf32>
    %cst_79 = arith.constant 0.000000e+00 : f32
    %cst_80 = arith.constant 6.000000e+00 : f32
    %130 = vector.broadcast %cst_79 : f32 to vector<8x1086xf32>
    %131 = arith.maximumf %130, %129 : vector<8x1086xf32>
    %132 = vector.broadcast %cst_80 : f32 to vector<8x1086xf32>
    %133 = arith.minimumf %132, %131 : vector<8x1086xf32>
    %134 = vector.extract_strided_slice %133 {offsets = [0, 0], sizes = [8, 1052], strides = [1, 1]} : vector<8x1086xf32> to vector<8x1052xf32>
    %135 = vector.extract_strided_slice %133 {offsets = [0, 34], sizes = [8, 1052], strides = [1, 1]} : vector<8x1086xf32> to vector<8x1052xf32>
    %136 = arith.maximumf %134, %135 : vector<8x1052xf32>
    %137 = vector.extract_strided_slice %136 {offsets = [0, 0], sizes = [8, 1051], strides = [1, 1]} : vector<8x1052xf32> to vector<8x1051xf32>
    %138 = vector.extract_strided_slice %136 {offsets = [0, 1], sizes = [8, 1051], strides = [1, 1]} : vector<8x1052xf32> to vector<8x1051xf32>
    %139 = arith.maximumf %137, %138 : vector<8x1051xf32>
    %140 = tpu.iota {dimensions = array<i32: 0>} : vector<31x16xi32>
    %141 = tpu.iota {dimensions = array<i32: 1>} : vector<31x16xi32>
    %c2_i32 = arith.constant 2 : i32
    %142 = vector.broadcast %c2_i32 : i32 to vector<31x16xi32>
    %143 = arith.muli %142, %141 : vector<31x16xi32>
    %144 = arith.cmpi eq, %140, %143 : vector<31x16xi32>
    %cst_81 = arith.constant 1.000000e+00 : f32
    %cst_82 = arith.constant 0.000000e+00 : f32
    %145 = vector.broadcast %cst_81 : f32 to vector<31x16xf32>
    %146 = vector.broadcast %cst_82 : f32 to vector<31x16xf32>
    %147 = arith.select %144, %145, %146 : vector<31x16xi1>, vector<31x16xf32>
    %148 = arith.truncf %147 : vector<31x16xf32> to vector<31x16xbf16>
    %149 = vector.extract_strided_slice %139 {offsets = [0, 0], sizes = [8, 31], strides = [1, 1]} : vector<8x1051xf32> to vector<8x31xf32>
    %150 = vector.extract_strided_slice %139 {offsets = [0, 68], sizes = [8, 31], strides = [1, 1]} : vector<8x1051xf32> to vector<8x31xf32>
    %151 = vector.extract_strided_slice %139 {offsets = [0, 136], sizes = [8, 31], strides = [1, 1]} : vector<8x1051xf32> to vector<8x31xf32>
    %152 = vector.extract_strided_slice %139 {offsets = [0, 204], sizes = [8, 31], strides = [1, 1]} : vector<8x1051xf32> to vector<8x31xf32>
    %153 = vector.extract_strided_slice %139 {offsets = [0, 272], sizes = [8, 31], strides = [1, 1]} : vector<8x1051xf32> to vector<8x31xf32>
    %154 = vector.extract_strided_slice %139 {offsets = [0, 340], sizes = [8, 31], strides = [1, 1]} : vector<8x1051xf32> to vector<8x31xf32>
    %155 = vector.extract_strided_slice %139 {offsets = [0, 408], sizes = [8, 31], strides = [1, 1]} : vector<8x1051xf32> to vector<8x31xf32>
    %156 = vector.extract_strided_slice %139 {offsets = [0, 476], sizes = [8, 31], strides = [1, 1]} : vector<8x1051xf32> to vector<8x31xf32>
    %157 = vector.extract_strided_slice %139 {offsets = [0, 544], sizes = [8, 31], strides = [1, 1]} : vector<8x1051xf32> to vector<8x31xf32>
    %158 = vector.extract_strided_slice %139 {offsets = [0, 612], sizes = [8, 31], strides = [1, 1]} : vector<8x1051xf32> to vector<8x31xf32>
    %159 = vector.extract_strided_slice %139 {offsets = [0, 680], sizes = [8, 31], strides = [1, 1]} : vector<8x1051xf32> to vector<8x31xf32>
    %160 = vector.extract_strided_slice %139 {offsets = [0, 748], sizes = [8, 31], strides = [1, 1]} : vector<8x1051xf32> to vector<8x31xf32>
    %161 = vector.extract_strided_slice %139 {offsets = [0, 816], sizes = [8, 31], strides = [1, 1]} : vector<8x1051xf32> to vector<8x31xf32>
    %162 = vector.extract_strided_slice %139 {offsets = [0, 884], sizes = [8, 31], strides = [1, 1]} : vector<8x1051xf32> to vector<8x31xf32>
    %163 = vector.extract_strided_slice %139 {offsets = [0, 952], sizes = [8, 31], strides = [1, 1]} : vector<8x1051xf32> to vector<8x31xf32>
    %164 = vector.extract_strided_slice %139 {offsets = [0, 1020], sizes = [8, 31], strides = [1, 1]} : vector<8x1051xf32> to vector<8x31xf32>
    %165 = tpu.concatenate %149, %150, %151, %152, %153, %154, %155, %156, %157, %158, %159, %160, %161, %162, %163, %164 in 0 : vector<8x31xf32>, vector<8x31xf32>, vector<8x31xf32>, vector<8x31xf32>, vector<8x31xf32>, vector<8x31xf32>, vector<8x31xf32>, vector<8x31xf32>, vector<8x31xf32>, vector<8x31xf32>, vector<8x31xf32>, vector<8x31xf32>, vector<8x31xf32>, vector<8x31xf32>, vector<8x31xf32>, vector<8x31xf32> -> vector<128x31xf32>
    %166 = arith.truncf %165 : vector<128x31xf32> to vector<128x31xbf16>
    %cst_83 = arith.constant dense<0.000000e+00> : vector<128x16xf32>
    %167 = tpu.matmul %166, %148, %cst_83 {dimension_numbers = #tpu.dot_dimension_numbers<[1], [0], [0], [1], [0, 0, 1, 1], [], []>} : vector<128x31xbf16>, vector<31x16xbf16>, vector<128x16xf32> -> vector<128x16xf32>
    %168 = vector.extract_strided_slice %167 {offsets = [0, 0], sizes = [8, 16], strides = [1, 1]} : vector<128x16xf32> to vector<8x16xf32>
    %169 = arith.truncf %168 : vector<8x16xf32> to vector<8x16xbf16>
    %c0_84 = arith.constant 0 : index
    %c19 = arith.constant 19 : index
    %170 = vector.load %arg22[%c0_84, %c19] : memref<8x324xbf16, #tpu.memory_space<vmem>>, vector<8x16xbf16>
    tpu.vector_store %arg22[%c0_84, %c19], %169 {strides = array<i32>} : memref<8x324xbf16, #tpu.memory_space<vmem>>, vector<8x16xbf16>,
    %171 = vector.extract_strided_slice %167 {offsets = [8, 0], sizes = [8, 16], strides = [1, 1]} : vector<128x16xf32> to vector<8x16xf32>
    %172 = arith.truncf %171 : vector<8x16xf32> to vector<8x16xbf16>
    %c0_85 = arith.constant 0 : index
    %c37 = arith.constant 37 : index
    %173 = vector.load %arg22[%c0_85, %c37] : memref<8x324xbf16, #tpu.memory_space<vmem>>, vector<8x16xbf16>
    tpu.vector_store %arg22[%c0_85, %c37], %172 {strides = array<i32>} : memref<8x324xbf16, #tpu.memory_space<vmem>>, vector<8x16xbf16>,
    %174 = vector.extract_strided_slice %167 {offsets = [16, 0], sizes = [8, 16], strides = [1, 1]} : vector<128x16xf32> to vector<8x16xf32>
    %175 = arith.truncf %174 : vector<8x16xf32> to vector<8x16xbf16>
    %c0_86 = arith.constant 0 : index
    %c55 = arith.constant 55 : index
    %176 = vector.load %arg22[%c0_86, %c55] : memref<8x324xbf16, #tpu.memory_space<vmem>>, vector<8x16xbf16>
    tpu.vector_store %arg22[%c0_86, %c55], %175 {strides = array<i32>} : memref<8x324xbf16, #tpu.memory_space<vmem>>, vector<8x16xbf16>,
    %177 = vector.extract_strided_slice %167 {offsets = [24, 0], sizes = [8, 16], strides = [1, 1]} : vector<128x16xf32> to vector<8x16xf32>
    %178 = arith.truncf %177 : vector<8x16xf32> to vector<8x16xbf16>
    %c0_87 = arith.constant 0 : index
    %c73 = arith.constant 73 : index
    %179 = vector.load %arg22[%c0_87, %c73] : memref<8x324xbf16, #tpu.memory_space<vmem>>, vector<8x16xbf16>
    tpu.vector_store %arg22[%c0_87, %c73], %178 {strides = array<i32>} : memref<8x324xbf16, #tpu.memory_space<vmem>>, vector<8x16xbf16>,
    %180 = vector.extract_strided_slice %167 {offsets = [32, 0], sizes = [8, 16], strides = [1, 1]} : vector<128x16xf32> to vector<8x16xf32>
    %181 = arith.truncf %180 : vector<8x16xf32> to vector<8x16xbf16>
    %c0_88 = arith.constant 0 : index
    %c91 = arith.constant 91 : index
    %182 = vector.load %arg22[%c0_88, %c91] : memref<8x324xbf16, #tpu.memory_space<vmem>>, vector<8x16xbf16>
    tpu.vector_store %arg22[%c0_88, %c91], %181 {strides = array<i32>} : memref<8x324xbf16, #tpu.memory_space<vmem>>, vector<8x16xbf16>,
    %183 = vector.extract_strided_slice %167 {offsets = [40, 0], sizes = [8, 16], strides = [1, 1]} : vector<128x16xf32> to vector<8x16xf32>
    %184 = arith.truncf %183 : vector<8x16xf32> to vector<8x16xbf16>
    %c0_89 = arith.constant 0 : index
    %c109 = arith.constant 109 : index
    %185 = vector.load %arg22[%c0_89, %c109] : memref<8x324xbf16, #tpu.memory_space<vmem>>, vector<8x16xbf16>
    tpu.vector_store %arg22[%c0_89, %c109], %184 {strides = array<i32>} : memref<8x324xbf16, #tpu.memory_space<vmem>>, vector<8x16xbf16>,
    %186 = vector.extract_strided_slice %167 {offsets = [48, 0], sizes = [8, 16], strides = [1, 1]} : vector<128x16xf32> to vector<8x16xf32>
    %187 = arith.truncf %186 : vector<8x16xf32> to vector<8x16xbf16>
    %c0_90 = arith.constant 0 : index
    %c127 = arith.constant 127 : index
    %188 = vector.load %arg22[%c0_90, %c127] : memref<8x324xbf16, #tpu.memory_space<vmem>>, vector<8x16xbf16>
    tpu.vector_store %arg22[%c0_90, %c127], %187 {strides = array<i32>} : memref<8x324xbf16, #tpu.memory_space<vmem>>, vector<8x16xbf16>,
    %189 = vector.extract_strided_slice %167 {offsets = [56, 0], sizes = [8, 16], strides = [1, 1]} : vector<128x16xf32> to vector<8x16xf32>
    %190 = arith.truncf %189 : vector<8x16xf32> to vector<8x16xbf16>
    %c0_91 = arith.constant 0 : index
    %c145 = arith.constant 145 : index
    %191 = vector.load %arg22[%c0_91, %c145] : memref<8x324xbf16, #tpu.memory_space<vmem>>, vector<8x16xbf16>
    tpu.vector_store %arg22[%c0_91, %c145], %190 {strides = array<i32>} : memref<8x324xbf16, #tpu.memory_space<vmem>>, vector<8x16xbf16>,
    %192 = vector.extract_strided_slice %167 {offsets = [64, 0], sizes = [8, 16], strides = [1, 1]} : vector<128x16xf32> to vector<8x16xf32>
    %193 = arith.truncf %192 : vector<8x16xf32> to vector<8x16xbf16>
    %c0_92 = arith.constant 0 : index
    %c163 = arith.constant 163 : index
    %194 = vector.load %arg22[%c0_92, %c163] : memref<8x324xbf16, #tpu.memory_space<vmem>>, vector<8x16xbf16>
    tpu.vector_store %arg22[%c0_92, %c163], %193 {strides = array<i32>} : memref<8x324xbf16, #tpu.memory_space<vmem>>, vector<8x16xbf16>,
    %195 = vector.extract_strided_slice %167 {offsets = [72, 0], sizes = [8, 16], strides = [1, 1]} : vector<128x16xf32> to vector<8x16xf32>
    %196 = arith.truncf %195 : vector<8x16xf32> to vector<8x16xbf16>
    %c0_93 = arith.constant 0 : index
    %c181 = arith.constant 181 : index
    %197 = vector.load %arg22[%c0_93, %c181] : memref<8x324xbf16, #tpu.memory_space<vmem>>, vector<8x16xbf16>
    tpu.vector_store %arg22[%c0_93, %c181], %196 {strides = array<i32>} : memref<8x324xbf16, #tpu.memory_space<vmem>>, vector<8x16xbf16>,
    %198 = vector.extract_strided_slice %167 {offsets = [80, 0], sizes = [8, 16], strides = [1, 1]} : vector<128x16xf32> to vector<8x16xf32>
    %199 = arith.truncf %198 : vector<8x16xf32> to vector<8x16xbf16>
    %c0_94 = arith.constant 0 : index
    %c199 = arith.constant 199 : index
    %200 = vector.load %arg22[%c0_94, %c199] : memref<8x324xbf16, #tpu.memory_space<vmem>>, vector<8x16xbf16>
    tpu.vector_store %arg22[%c0_94, %c199], %199 {strides = array<i32>} : memref<8x324xbf16, #tpu.memory_space<vmem>>, vector<8x16xbf16>,
    %201 = vector.extract_strided_slice %167 {offsets = [88, 0], sizes = [8, 16], strides = [1, 1]} : vector<128x16xf32> to vector<8x16xf32>
    %202 = arith.truncf %201 : vector<8x16xf32> to vector<8x16xbf16>
    %c0_95 = arith.constant 0 : index
    %c217 = arith.constant 217 : index
    %203 = vector.load %arg22[%c0_95, %c217] : memref<8x324xbf16, #tpu.memory_space<vmem>>, vector<8x16xbf16>
    tpu.vector_store %arg22[%c0_95, %c217], %202 {strides = array<i32>} : memref<8x324xbf16, #tpu.memory_space<vmem>>, vector<8x16xbf16>,
    %204 = vector.extract_strided_slice %167 {offsets = [96, 0], sizes = [8, 16], strides = [1, 1]} : vector<128x16xf32> to vector<8x16xf32>
    %205 = arith.truncf %204 : vector<8x16xf32> to vector<8x16xbf16>
    %c0_96 = arith.constant 0 : index
    %c235 = arith.constant 235 : index
    %206 = vector.load %arg22[%c0_96, %c235] : memref<8x324xbf16, #tpu.memory_space<vmem>>, vector<8x16xbf16>
    tpu.vector_store %arg22[%c0_96, %c235], %205 {strides = array<i32>} : memref<8x324xbf16, #tpu.memory_space<vmem>>, vector<8x16xbf16>,
    %207 = vector.extract_strided_slice %167 {offsets = [104, 0], sizes = [8, 16], strides = [1, 1]} : vector<128x16xf32> to vector<8x16xf32>
    %208 = arith.truncf %207 : vector<8x16xf32> to vector<8x16xbf16>
    %c0_97 = arith.constant 0 : index
    %c253 = arith.constant 253 : index
    %209 = vector.load %arg22[%c0_97, %c253] : memref<8x324xbf16, #tpu.memory_space<vmem>>, vector<8x16xbf16>
    tpu.vector_store %arg22[%c0_97, %c253], %208 {strides = array<i32>} : memref<8x324xbf16, #tpu.memory_space<vmem>>, vector<8x16xbf16>,
    %210 = vector.extract_strided_slice %167 {offsets = [112, 0], sizes = [8, 16], strides = [1, 1]} : vector<128x16xf32> to vector<8x16xf32>
    %211 = arith.truncf %210 : vector<8x16xf32> to vector<8x16xbf16>
    %c0_98 = arith.constant 0 : index
    %c271 = arith.constant 271 : index
    %212 = vector.load %arg22[%c0_98, %c271] : memref<8x324xbf16, #tpu.memory_space<vmem>>, vector<8x16xbf16>
    tpu.vector_store %arg22[%c0_98, %c271], %211 {strides = array<i32>} : memref<8x324xbf16, #tpu.memory_space<vmem>>, vector<8x16xbf16>,
    %213 = vector.extract_strided_slice %167 {offsets = [120, 0], sizes = [8, 16], strides = [1, 1]} : vector<128x16xf32> to vector<8x16xf32>
    %214 = arith.truncf %213 : vector<8x16xf32> to vector<8x16xbf16>
    %c0_99 = arith.constant 0 : index
    %c289 = arith.constant 289 : index
    %215 = vector.load %arg22[%c0_99, %c289] : memref<8x324xbf16, #tpu.memory_space<vmem>>, vector<8x16xbf16>
    tpu.vector_store %arg22[%c0_99, %c289], %214 {strides = array<i32>} : memref<8x324xbf16, #tpu.memory_space<vmem>>, vector<8x16xbf16>,
    %c0_100 = arith.constant 0 : index
    %c0_101 = arith.constant 0 : index
    %216 = vector.load %arg22[%c0_100, %c0_101] : memref<8x324xbf16, #tpu.memory_space<vmem>>, vector<8x286xbf16>
    %c0_102 = arith.constant 0 : index
    %c1_103 = arith.constant 1 : index
    %217 = vector.load %arg22[%c0_102, %c1_103] : memref<8x324xbf16, #tpu.memory_space<vmem>>, vector<8x286xbf16>
    %c0_104 = arith.constant 0 : index
    %c2_105 = arith.constant 2 : index
    %218 = vector.load %arg22[%c0_104, %c2_105] : memref<8x324xbf16, #tpu.memory_space<vmem>>, vector<8x286xbf16>
    %c0_106 = arith.constant 0 : index
    %c18 = arith.constant 18 : index
    %219 = vector.load %arg22[%c0_106, %c18] : memref<8x324xbf16, #tpu.memory_space<vmem>>, vector<8x286xbf16>
    %c0_107 = arith.constant 0 : index
    %c19_108 = arith.constant 19 : index
    %220 = vector.load %arg22[%c0_107, %c19_108] : memref<8x324xbf16, #tpu.memory_space<vmem>>, vector<8x286xbf16>
    %c0_109 = arith.constant 0 : index
    %c20 = arith.constant 20 : index
    %221 = vector.load %arg22[%c0_109, %c20] : memref<8x324xbf16, #tpu.memory_space<vmem>>, vector<8x286xbf16>
    %c0_110 = arith.constant 0 : index
    %c36_111 = arith.constant 36 : index
    %222 = vector.load %arg22[%c0_110, %c36_111] : memref<8x324xbf16, #tpu.memory_space<vmem>>, vector<8x286xbf16>
    %c0_112 = arith.constant 0 : index
    %c37_113 = arith.constant 37 : index
    %223 = vector.load %arg22[%c0_112, %c37_113] : memref<8x324xbf16, #tpu.memory_space<vmem>>, vector<8x286xbf16>
    %c0_114 = arith.constant 0 : index
    %c38 = arith.constant 38 : index
    %224 = vector.load %arg22[%c0_114, %c38] : memref<8x324xbf16, #tpu.memory_space<vmem>>, vector<8x286xbf16>
    %225 = tpu.concatenate %216, %217, %218, %219, %220, %221, %222, %223, %224 in 0 : vector<8x286xbf16>, vector<8x286xbf16>, vector<8x286xbf16>, vector<8x286xbf16>, vector<8x286xbf16>, vector<8x286xbf16>, vector<8x286xbf16>, vector<8x286xbf16>, vector<8x286xbf16> -> vector<72x286xbf16>
    %c0_115 = arith.constant 0 : index
    %c0_116 = arith.constant 0 : index
    %226 = vector.load %arg4[%c0_115, %c0_116] : memref<16x72xbf16, #tpu.memory_space<vmem>>, vector<16x72xbf16>
    %cst_117 = arith.constant dense<0.000000e+00> : vector<16x286xf32>
    %227 = tpu.matmul %226, %225, %cst_117 {dimension_numbers = #tpu.dot_dimension_numbers<[1], [0], [0], [1], [0, 0, 1, 1], [], []>} : vector<16x72xbf16>, vector<72x286xbf16>, vector<16x286xf32> -> vector<16x286xf32>
    %c0_118 = arith.constant 0 : index
    %c0_119 = arith.constant 0 : index
    %228 = vector.load %arg5[%c0_118, %c0_119] : memref<16x1xf32, #tpu.memory_space<vmem>>, vector<16x1xf32>
    %229 = vector.broadcast %228 : vector<16x1xf32> to vector<16x286xf32>
    %230 = arith.addf %227, %229 : vector<16x286xf32>
    %cst_120 = arith.constant 0.000000e+00 : f32
    %cst_121 = arith.constant 6.000000e+00 : f32
    %231 = vector.broadcast %cst_120 : f32 to vector<16x286xf32>
    %232 = arith.maximumf %231, %230 : vector<16x286xf32>
    %233 = vector.broadcast %cst_121 : f32 to vector<16x286xf32>
    %234 = arith.minimumf %233, %232 : vector<16x286xf32>
    %235 = vector.extract_strided_slice %234 {offsets = [0, 0], sizes = [16, 268], strides = [1, 1]} : vector<16x286xf32> to vector<16x268xf32>
    %236 = vector.extract_strided_slice %234 {offsets = [0, 18], sizes = [16, 268], strides = [1, 1]} : vector<16x286xf32> to vector<16x268xf32>
    %237 = arith.maximumf %235, %236 : vector<16x268xf32>
    %238 = vector.extract_strided_slice %237 {offsets = [0, 0], sizes = [16, 267], strides = [1, 1]} : vector<16x268xf32> to vector<16x267xf32>
    %239 = vector.extract_strided_slice %237 {offsets = [0, 1], sizes = [16, 267], strides = [1, 1]} : vector<16x268xf32> to vector<16x267xf32>
    %240 = arith.maximumf %238, %239 : vector<16x267xf32>
    %241 = tpu.iota {dimensions = array<i32: 0>} : vector<15x8xi32>
    %242 = tpu.iota {dimensions = array<i32: 1>} : vector<15x8xi32>
    %c2_i32_122 = arith.constant 2 : i32
    %243 = vector.broadcast %c2_i32_122 : i32 to vector<15x8xi32>
    %244 = arith.muli %243, %242 : vector<15x8xi32>
    %245 = arith.cmpi eq, %241, %244 : vector<15x8xi32>
    %cst_123 = arith.constant 1.000000e+00 : f32
    %cst_124 = arith.constant 0.000000e+00 : f32
    %246 = vector.broadcast %cst_123 : f32 to vector<15x8xf32>
    %247 = vector.broadcast %cst_124 : f32 to vector<15x8xf32>
    %248 = arith.select %245, %246, %247 : vector<15x8xi1>, vector<15x8xf32>
    %249 = arith.truncf %248 : vector<15x8xf32> to vector<15x8xbf16>
    %250 = vector.extract_strided_slice %240 {offsets = [0, 0], sizes = [16, 15], strides = [1, 1]} : vector<16x267xf32> to vector<16x15xf32>
    %251 = vector.extract_strided_slice %240 {offsets = [0, 36], sizes = [16, 15], strides = [1, 1]} : vector<16x267xf32> to vector<16x15xf32>
    %252 = vector.extract_strided_slice %240 {offsets = [0, 72], sizes = [16, 15], strides = [1, 1]} : vector<16x267xf32> to vector<16x15xf32>
    %253 = vector.extract_strided_slice %240 {offsets = [0, 108], sizes = [16, 15], strides = [1, 1]} : vector<16x267xf32> to vector<16x15xf32>
    %254 = vector.extract_strided_slice %240 {offsets = [0, 144], sizes = [16, 15], strides = [1, 1]} : vector<16x267xf32> to vector<16x15xf32>
    %255 = vector.extract_strided_slice %240 {offsets = [0, 180], sizes = [16, 15], strides = [1, 1]} : vector<16x267xf32> to vector<16x15xf32>
    %256 = vector.extract_strided_slice %240 {offsets = [0, 216], sizes = [16, 15], strides = [1, 1]} : vector<16x267xf32> to vector<16x15xf32>
    %257 = vector.extract_strided_slice %240 {offsets = [0, 252], sizes = [16, 15], strides = [1, 1]} : vector<16x267xf32> to vector<16x15xf32>
    %258 = tpu.concatenate %250, %251, %252, %253, %254, %255, %256, %257 in 0 : vector<16x15xf32>, vector<16x15xf32>, vector<16x15xf32>, vector<16x15xf32>, vector<16x15xf32>, vector<16x15xf32>, vector<16x15xf32>, vector<16x15xf32> -> vector<128x15xf32>
    %259 = arith.truncf %258 : vector<128x15xf32> to vector<128x15xbf16>
    %cst_125 = arith.constant dense<0.000000e+00> : vector<128x8xf32>
    %260 = tpu.matmul %259, %249, %cst_125 {dimension_numbers = #tpu.dot_dimension_numbers<[1], [0], [0], [1], [0, 0, 1, 1], [], []>} : vector<128x15xbf16>, vector<15x8xbf16>, vector<128x8xf32> -> vector<128x8xf32>
    %261 = vector.extract_strided_slice %260 {offsets = [0, 0], sizes = [16, 8], strides = [1, 1]} : vector<128x8xf32> to vector<16x8xf32>
    %262 = arith.truncf %261 : vector<16x8xf32> to vector<16x8xbf16>
    %c0_126 = arith.constant 0 : index
    %c11 = arith.constant 11 : index
    %263 = vector.load %arg23[%c0_126, %c11] : memref<16x100xbf16, #tpu.memory_space<vmem>>, vector<16x8xbf16>
    tpu.vector_store %arg23[%c0_126, %c11], %262 {strides = array<i32>} : memref<16x100xbf16, #tpu.memory_space<vmem>>, vector<16x8xbf16>,
    %264 = vector.extract_strided_slice %260 {offsets = [16, 0], sizes = [16, 8], strides = [1, 1]} : vector<128x8xf32> to vector<16x8xf32>
    %265 = arith.truncf %264 : vector<16x8xf32> to vector<16x8xbf16>
    %c0_127 = arith.constant 0 : index
    %c21 = arith.constant 21 : index
    %266 = vector.load %arg23[%c0_127, %c21] : memref<16x100xbf16, #tpu.memory_space<vmem>>, vector<16x8xbf16>
    tpu.vector_store %arg23[%c0_127, %c21], %265 {strides = array<i32>} : memref<16x100xbf16, #tpu.memory_space<vmem>>, vector<16x8xbf16>,
    %267 = vector.extract_strided_slice %260 {offsets = [32, 0], sizes = [16, 8], strides = [1, 1]} : vector<128x8xf32> to vector<16x8xf32>
    %268 = arith.truncf %267 : vector<16x8xf32> to vector<16x8xbf16>
    %c0_128 = arith.constant 0 : index
    %c31 = arith.constant 31 : index
    %269 = vector.load %arg23[%c0_128, %c31] : memref<16x100xbf16, #tpu.memory_space<vmem>>, vector<16x8xbf16>
    tpu.vector_store %arg23[%c0_128, %c31], %268 {strides = array<i32>} : memref<16x100xbf16, #tpu.memory_space<vmem>>, vector<16x8xbf16>,
    %270 = vector.extract_strided_slice %260 {offsets = [48, 0], sizes = [16, 8], strides = [1, 1]} : vector<128x8xf32> to vector<16x8xf32>
    %271 = arith.truncf %270 : vector<16x8xf32> to vector<16x8xbf16>
    %c0_129 = arith.constant 0 : index
    %c41 = arith.constant 41 : index
    %272 = vector.load %arg23[%c0_129, %c41] : memref<16x100xbf16, #tpu.memory_space<vmem>>, vector<16x8xbf16>
    tpu.vector_store %arg23[%c0_129, %c41], %271 {strides = array<i32>} : memref<16x100xbf16, #tpu.memory_space<vmem>>, vector<16x8xbf16>,
    %273 = vector.extract_strided_slice %260 {offsets = [64, 0], sizes = [16, 8], strides = [1, 1]} : vector<128x8xf32> to vector<16x8xf32>
    %274 = arith.truncf %273 : vector<16x8xf32> to vector<16x8xbf16>
    %c0_130 = arith.constant 0 : index
    %c51 = arith.constant 51 : index
    %275 = vector.load %arg23[%c0_130, %c51] : memref<16x100xbf16, #tpu.memory_space<vmem>>, vector<16x8xbf16>
    tpu.vector_store %arg23[%c0_130, %c51], %274 {strides = array<i32>} : memref<16x100xbf16, #tpu.memory_space<vmem>>, vector<16x8xbf16>,
    %276 = vector.extract_strided_slice %260 {offsets = [80, 0], sizes = [16, 8], strides = [1, 1]} : vector<128x8xf32> to vector<16x8xf32>
    %277 = arith.truncf %276 : vector<16x8xf32> to vector<16x8xbf16>
    %c0_131 = arith.constant 0 : index
    %c61 = arith.constant 61 : index
    %278 = vector.load %arg23[%c0_131, %c61] : memref<16x100xbf16, #tpu.memory_space<vmem>>, vector<16x8xbf16>
    tpu.vector_store %arg23[%c0_131, %c61], %277 {strides = array<i32>} : memref<16x100xbf16, #tpu.memory_space<vmem>>, vector<16x8xbf16>,
    %279 = vector.extract_strided_slice %260 {offsets = [96, 0], sizes = [16, 8], strides = [1, 1]} : vector<128x8xf32> to vector<16x8xf32>
    %280 = arith.truncf %279 : vector<16x8xf32> to vector<16x8xbf16>
    %c0_132 = arith.constant 0 : index
    %c71 = arith.constant 71 : index
    %281 = vector.load %arg23[%c0_132, %c71] : memref<16x100xbf16, #tpu.memory_space<vmem>>, vector<16x8xbf16>
    tpu.vector_store %arg23[%c0_132, %c71], %280 {strides = array<i32>} : memref<16x100xbf16, #tpu.memory_space<vmem>>, vector<16x8xbf16>,
    %282 = vector.extract_strided_slice %260 {offsets = [112, 0], sizes = [16, 8], strides = [1, 1]} : vector<128x8xf32> to vector<16x8xf32>
    %283 = arith.truncf %282 : vector<16x8xf32> to vector<16x8xbf16>
    %c0_133 = arith.constant 0 : index
    %c81 = arith.constant 81 : index
    %284 = vector.load %arg23[%c0_133, %c81] : memref<16x100xbf16, #tpu.memory_space<vmem>>, vector<16x8xbf16>
    tpu.vector_store %arg23[%c0_133, %c81], %283 {strides = array<i32>} : memref<16x100xbf16, #tpu.memory_space<vmem>>, vector<16x8xbf16>,
    %c0_134 = arith.constant 0 : index
    %c0_135 = arith.constant 0 : index
    %285 = vector.load %arg23[%c0_134, %c0_135] : memref<16x100xbf16, #tpu.memory_space<vmem>>, vector<16x78xbf16>
    %c0_136 = arith.constant 0 : index
    %c1_137 = arith.constant 1 : index
    %286 = vector.load %arg23[%c0_136, %c1_137] : memref<16x100xbf16, #tpu.memory_space<vmem>>, vector<16x78xbf16>
    %c0_138 = arith.constant 0 : index
    %c2_139 = arith.constant 2 : index
    %287 = vector.load %arg23[%c0_138, %c2_139] : memref<16x100xbf16, #tpu.memory_space<vmem>>, vector<16x78xbf16>
    %c0_140 = arith.constant 0 : index
    %c10 = arith.constant 10 : index
    %288 = vector.load %arg23[%c0_140, %c10] : memref<16x100xbf16, #tpu.memory_space<vmem>>, vector<16x78xbf16>
    %c0_141 = arith.constant 0 : index
    %c11_142 = arith.constant 11 : index
    %289 = vector.load %arg23[%c0_141, %c11_142] : memref<16x100xbf16, #tpu.memory_space<vmem>>, vector<16x78xbf16>
    %c0_143 = arith.constant 0 : index
    %c12 = arith.constant 12 : index
    %290 = vector.load %arg23[%c0_143, %c12] : memref<16x100xbf16, #tpu.memory_space<vmem>>, vector<16x78xbf16>
    %c0_144 = arith.constant 0 : index
    %c20_145 = arith.constant 20 : index
    %291 = vector.load %arg23[%c0_144, %c20_145] : memref<16x100xbf16, #tpu.memory_space<vmem>>, vector<16x78xbf16>
    %c0_146 = arith.constant 0 : index
    %c21_147 = arith.constant 21 : index
    %292 = vector.load %arg23[%c0_146, %c21_147] : memref<16x100xbf16, #tpu.memory_space<vmem>>, vector<16x78xbf16>
    %c0_148 = arith.constant 0 : index
    %c22 = arith.constant 22 : index
    %293 = vector.load %arg23[%c0_148, %c22] : memref<16x100xbf16, #tpu.memory_space<vmem>>, vector<16x78xbf16>
    %294 = tpu.concatenate %285, %286, %287, %288, %289, %290, %291, %292, %293 in 0 : vector<16x78xbf16>, vector<16x78xbf16>, vector<16x78xbf16>, vector<16x78xbf16>, vector<16x78xbf16>, vector<16x78xbf16>, vector<16x78xbf16>, vector<16x78xbf16>, vector<16x78xbf16> -> vector<144x78xbf16>
    %c0_149 = arith.constant 0 : index
    %c0_150 = arith.constant 0 : index
    %295 = vector.load %arg6[%c0_149, %c0_150] : memref<32x144xbf16, #tpu.memory_space<vmem>>, vector<32x144xbf16>
    %cst_151 = arith.constant dense<0.000000e+00> : vector<32x78xf32>
    %296 = tpu.matmul %295, %294, %cst_151 {dimension_numbers = #tpu.dot_dimension_numbers<[1], [0], [0], [1], [0, 0, 1, 1], [], []>} : vector<32x144xbf16>, vector<144x78xbf16>, vector<32x78xf32> -> vector<32x78xf32>
    %c0_152 = arith.constant 0 : index
    %c0_153 = arith.constant 0 : index
    %297 = vector.load %arg7[%c0_152, %c0_153] : memref<32x1xf32, #tpu.memory_space<vmem>>, vector<32x1xf32>
    %298 = vector.broadcast %297 : vector<32x1xf32> to vector<32x78xf32>
    %299 = arith.addf %296, %298 : vector<32x78xf32>
    %cst_154 = arith.constant 0.000000e+00 : f32
    %cst_155 = arith.constant 6.000000e+00 : f32
    %300 = vector.broadcast %cst_154 : f32 to vector<32x78xf32>
    %301 = arith.maximumf %300, %299 : vector<32x78xf32>
    %302 = vector.broadcast %cst_155 : f32 to vector<32x78xf32>
    %303 = arith.minimumf %302, %301 : vector<32x78xf32>
    %304 = vector.extract_strided_slice %303 {offsets = [0, 0], sizes = [32, 68], strides = [1, 1]} : vector<32x78xf32> to vector<32x68xf32>
    %305 = vector.extract_strided_slice %303 {offsets = [0, 10], sizes = [32, 68], strides = [1, 1]} : vector<32x78xf32> to vector<32x68xf32>
    %306 = arith.maximumf %304, %305 : vector<32x68xf32>
    %307 = vector.extract_strided_slice %306 {offsets = [0, 0], sizes = [32, 67], strides = [1, 1]} : vector<32x68xf32> to vector<32x67xf32>
    %308 = vector.extract_strided_slice %306 {offsets = [0, 1], sizes = [32, 67], strides = [1, 1]} : vector<32x68xf32> to vector<32x67xf32>
    %309 = arith.maximumf %307, %308 : vector<32x67xf32>
    %310 = tpu.iota {dimensions = array<i32: 0>} : vector<7x4xi32>
    %311 = tpu.iota {dimensions = array<i32: 1>} : vector<7x4xi32>
    %c2_i32_156 = arith.constant 2 : i32
    %312 = vector.broadcast %c2_i32_156 : i32 to vector<7x4xi32>
    %313 = arith.muli %312, %311 : vector<7x4xi32>
    %314 = arith.cmpi eq, %310, %313 : vector<7x4xi32>
    %cst_157 = arith.constant 1.000000e+00 : f32
    %cst_158 = arith.constant 0.000000e+00 : f32
    %315 = vector.broadcast %cst_157 : f32 to vector<7x4xf32>
    %316 = vector.broadcast %cst_158 : f32 to vector<7x4xf32>
    %317 = arith.select %314, %315, %316 : vector<7x4xi1>, vector<7x4xf32>
    %318 = arith.truncf %317 : vector<7x4xf32> to vector<7x4xbf16>
    %319 = vector.extract_strided_slice %309 {offsets = [0, 0], sizes = [32, 7], strides = [1, 1]} : vector<32x67xf32> to vector<32x7xf32>
    %320 = vector.extract_strided_slice %309 {offsets = [0, 20], sizes = [32, 7], strides = [1, 1]} : vector<32x67xf32> to vector<32x7xf32>
    %321 = vector.extract_strided_slice %309 {offsets = [0, 40], sizes = [32, 7], strides = [1, 1]} : vector<32x67xf32> to vector<32x7xf32>
    %322 = vector.extract_strided_slice %309 {offsets = [0, 60], sizes = [32, 7], strides = [1, 1]} : vector<32x67xf32> to vector<32x7xf32>
    %323 = tpu.concatenate %319, %320, %321, %322 in 0 : vector<32x7xf32>, vector<32x7xf32>, vector<32x7xf32>, vector<32x7xf32> -> vector<128x7xf32>
    %324 = arith.truncf %323 : vector<128x7xf32> to vector<128x7xbf16>
    %cst_159 = arith.constant dense<0.000000e+00> : vector<128x4xf32>
    %325 = tpu.matmul %324, %318, %cst_159 {dimension_numbers = #tpu.dot_dimension_numbers<[1], [0], [0], [1], [0, 0, 1, 1], [], []>} : vector<128x7xbf16>, vector<7x4xbf16>, vector<128x4xf32> -> vector<128x4xf32>
    %326 = vector.extract_strided_slice %325 {offsets = [0, 0], sizes = [32, 4], strides = [1, 1]} : vector<128x4xf32> to vector<32x4xf32>
    %327 = arith.truncf %326 : vector<32x4xf32> to vector<32x4xbf16>
    %c0_160 = arith.constant 0 : index
    %c7 = arith.constant 7 : index
    %328 = vector.load %arg24[%c0_160, %c7] : memref<32x36xbf16, #tpu.memory_space<vmem>>, vector<32x4xbf16>
    tpu.vector_store %arg24[%c0_160, %c7], %327 {strides = array<i32>} : memref<32x36xbf16, #tpu.memory_space<vmem>>, vector<32x4xbf16>,
    %329 = vector.extract_strided_slice %325 {offsets = [32, 0], sizes = [32, 4], strides = [1, 1]} : vector<128x4xf32> to vector<32x4xf32>
    %330 = arith.truncf %329 : vector<32x4xf32> to vector<32x4xbf16>
    %c0_161 = arith.constant 0 : index
    %c13 = arith.constant 13 : index
    %331 = vector.load %arg24[%c0_161, %c13] : memref<32x36xbf16, #tpu.memory_space<vmem>>, vector<32x4xbf16>
    tpu.vector_store %arg24[%c0_161, %c13], %330 {strides = array<i32>} : memref<32x36xbf16, #tpu.memory_space<vmem>>, vector<32x4xbf16>,
    %332 = vector.extract_strided_slice %325 {offsets = [64, 0], sizes = [32, 4], strides = [1, 1]} : vector<128x4xf32> to vector<32x4xf32>
    %333 = arith.truncf %332 : vector<32x4xf32> to vector<32x4xbf16>
    %c0_162 = arith.constant 0 : index
    %c19_163 = arith.constant 19 : index
    %334 = vector.load %arg24[%c0_162, %c19_163] : memref<32x36xbf16, #tpu.memory_space<vmem>>, vector<32x4xbf16>
    tpu.vector_store %arg24[%c0_162, %c19_163], %333 {strides = array<i32>} : memref<32x36xbf16, #tpu.memory_space<vmem>>, vector<32x4xbf16>,
    %335 = vector.extract_strided_slice %325 {offsets = [96, 0], sizes = [32, 4], strides = [1, 1]} : vector<128x4xf32> to vector<32x4xf32>
    %336 = arith.truncf %335 : vector<32x4xf32> to vector<32x4xbf16>
    %c0_164 = arith.constant 0 : index
    %c25 = arith.constant 25 : index
    %337 = vector.load %arg24[%c0_164, %c25] : memref<32x36xbf16, #tpu.memory_space<vmem>>, vector<32x4xbf16>
    tpu.vector_store %arg24[%c0_164, %c25], %336 {strides = array<i32>} : memref<32x36xbf16, #tpu.memory_space<vmem>>, vector<32x4xbf16>,
    %c0_165 = arith.constant 0 : index
    %c0_166 = arith.constant 0 : index
    %338 = vector.load %arg24[%c0_165, %c0_166] : memref<32x36xbf16, #tpu.memory_space<vmem>>, vector<32x22xbf16>
    %c0_167 = arith.constant 0 : index
    %c1_168 = arith.constant 1 : index
    %339 = vector.load %arg24[%c0_167, %c1_168] : memref<32x36xbf16, #tpu.memory_space<vmem>>, vector<32x22xbf16>
    %c0_169 = arith.constant 0 : index
    %c2_170 = arith.constant 2 : index
    %340 = vector.load %arg24[%c0_169, %c2_170] : memref<32x36xbf16, #tpu.memory_space<vmem>>, vector<32x22xbf16>
    %c0_171 = arith.constant 0 : index
    %c6 = arith.constant 6 : index
    %341 = vector.load %arg24[%c0_171, %c6] : memref<32x36xbf16, #tpu.memory_space<vmem>>, vector<32x22xbf16>
    %c0_172 = arith.constant 0 : index
    %c7_173 = arith.constant 7 : index
    %342 = vector.load %arg24[%c0_172, %c7_173] : memref<32x36xbf16, #tpu.memory_space<vmem>>, vector<32x22xbf16>
    %c0_174 = arith.constant 0 : index
    %c8 = arith.constant 8 : index
    %343 = vector.load %arg24[%c0_174, %c8] : memref<32x36xbf16, #tpu.memory_space<vmem>>, vector<32x22xbf16>
    %c0_175 = arith.constant 0 : index
    %c12_176 = arith.constant 12 : index
    %344 = vector.load %arg24[%c0_175, %c12_176] : memref<32x36xbf16, #tpu.memory_space<vmem>>, vector<32x22xbf16>
    %c0_177 = arith.constant 0 : index
    %c13_178 = arith.constant 13 : index
    %345 = vector.load %arg24[%c0_177, %c13_178] : memref<32x36xbf16, #tpu.memory_space<vmem>>, vector<32x22xbf16>
    %c0_179 = arith.constant 0 : index
    %c14 = arith.constant 14 : index
    %346 = vector.load %arg24[%c0_179, %c14] : memref<32x36xbf16, #tpu.memory_space<vmem>>, vector<32x22xbf16>
    %347 = tpu.concatenate %338, %339, %340, %341, %342, %343, %344, %345, %346 in 0 : vector<32x22xbf16>, vector<32x22xbf16>, vector<32x22xbf16>, vector<32x22xbf16>, vector<32x22xbf16>, vector<32x22xbf16>, vector<32x22xbf16>, vector<32x22xbf16>, vector<32x22xbf16> -> vector<288x22xbf16>
    %c0_180 = arith.constant 0 : index
    %c0_181 = arith.constant 0 : index
    %348 = vector.load %arg8[%c0_180, %c0_181] : memref<64x288xbf16, #tpu.memory_space<vmem>>, vector<64x288xbf16>
    %cst_182 = arith.constant dense<0.000000e+00> : vector<64x22xf32>
    %349 = tpu.matmul %348, %347, %cst_182 {dimension_numbers = #tpu.dot_dimension_numbers<[1], [0], [0], [1], [0, 0, 1, 1], [], []>} : vector<64x288xbf16>, vector<288x22xbf16>, vector<64x22xf32> -> vector<64x22xf32>
    %c0_183 = arith.constant 0 : index
    %c0_184 = arith.constant 0 : index
    %350 = vector.load %arg9[%c0_183, %c0_184] : memref<64x1xf32, #tpu.memory_space<vmem>>, vector<64x1xf32>
    %351 = vector.broadcast %350 : vector<64x1xf32> to vector<64x22xf32>
    %352 = arith.addf %349, %351 : vector<64x22xf32>
    %cst_185 = arith.constant 0.000000e+00 : f32
    %cst_186 = arith.constant 6.000000e+00 : f32
    %353 = vector.broadcast %cst_185 : f32 to vector<64x22xf32>
    %354 = arith.maximumf %353, %352 : vector<64x22xf32>
    %355 = vector.broadcast %cst_186 : f32 to vector<64x22xf32>
    %356 = arith.minimumf %355, %354 : vector<64x22xf32>
    %357 = vector.extract_strided_slice %356 {offsets = [0, 0], sizes = [64, 16], strides = [1, 1]} : vector<64x22xf32> to vector<64x16xf32>
    %358 = vector.extract_strided_slice %356 {offsets = [0, 6], sizes = [64, 16], strides = [1, 1]} : vector<64x22xf32> to vector<64x16xf32>
    %359 = arith.maximumf %357, %358 : vector<64x16xf32>
    %360 = vector.extract_strided_slice %359 {offsets = [0, 0], sizes = [64, 15], strides = [1, 1]} : vector<64x16xf32> to vector<64x15xf32>
    %361 = vector.extract_strided_slice %359 {offsets = [0, 1], sizes = [64, 15], strides = [1, 1]} : vector<64x16xf32> to vector<64x15xf32>
    %362 = arith.maximumf %360, %361 : vector<64x15xf32>
    %363 = tpu.iota {dimensions = array<i32: 0>} : vector<3x2xi32>
    %364 = tpu.iota {dimensions = array<i32: 1>} : vector<3x2xi32>
    %c2_i32_187 = arith.constant 2 : i32
    %365 = vector.broadcast %c2_i32_187 : i32 to vector<3x2xi32>
    %366 = arith.muli %365, %364 : vector<3x2xi32>
    %367 = arith.cmpi eq, %363, %366 : vector<3x2xi32>
    %cst_188 = arith.constant 1.000000e+00 : f32
    %cst_189 = arith.constant 0.000000e+00 : f32
    %368 = vector.broadcast %cst_188 : f32 to vector<3x2xf32>
    %369 = vector.broadcast %cst_189 : f32 to vector<3x2xf32>
    %370 = arith.select %367, %368, %369 : vector<3x2xi1>, vector<3x2xf32>
    %371 = arith.truncf %370 : vector<3x2xf32> to vector<3x2xbf16>
    %372 = vector.extract_strided_slice %362 {offsets = [0, 0], sizes = [64, 3], strides = [1, 1]} : vector<64x15xf32> to vector<64x3xf32>
    %373 = arith.truncf %372 : vector<64x3xf32> to vector<64x3xbf16>
    %cst_190 = arith.constant dense<0.000000e+00> : vector<64x2xf32>
    %374 = tpu.matmul %373, %371, %cst_190 {dimension_numbers = #tpu.dot_dimension_numbers<[1], [0], [0], [1], [0, 0, 1, 1], [], []>} : vector<64x3xbf16>, vector<3x2xbf16>, vector<64x2xf32> -> vector<64x2xf32>
    %375 = tpu.transpose %374, [1, 0] : vector<64x2xf32> -> vector<2x64xf32>
    %376 = arith.truncf %375 : vector<2x64xf32> to vector<2x64xbf16>
    %377 = vector.shape_cast %376 : vector<2x64xbf16> to vector<1x2x64xbf16>
    %c1_191 = arith.constant 1 : index
    %c1_192 = arith.constant 1 : index
    %c0_193 = arith.constant 0 : index
    %378 = vector.load %arg25[%c1_191, %c1_192, %c0_193] : memref<4x4x64xbf16, #tpu.memory_space<vmem>>, vector<1x2x64xbf16>
    tpu.vector_store %arg25[%c1_191, %c1_192, %c0_193], %377 {strides = array<i32>} : memref<4x4x64xbf16, #tpu.memory_space<vmem>>, vector<1x2x64xbf16>,
    %379 = vector.extract_strided_slice %362 {offsets = [0, 12], sizes = [64, 3], strides = [1, 1]} : vector<64x15xf32> to vector<64x3xf32>
    %380 = arith.truncf %379 : vector<64x3xf32> to vector<64x3xbf16>
    %cst_194 = arith.constant dense<0.000000e+00> : vector<64x2xf32>
    %381 = tpu.matmul %380, %371, %cst_194 {dimension_numbers = #tpu.dot_dimension_numbers<[1], [0], [0], [1], [0, 0, 1, 1], [], []>} : vector<64x3xbf16>, vector<3x2xbf16>, vector<64x2xf32> -> vector<64x2xf32>
    %382 = tpu.transpose %381, [1, 0] : vector<64x2xf32> -> vector<2x64xf32>
    %383 = arith.truncf %382 : vector<2x64xf32> to vector<2x64xbf16>
    %384 = vector.shape_cast %383 : vector<2x64xbf16> to vector<1x2x64xbf16>
    %c2_195 = arith.constant 2 : index
    %c1_196 = arith.constant 1 : index
    %c0_197 = arith.constant 0 : index
    %385 = vector.load %arg25[%c2_195, %c1_196, %c0_197] : memref<4x4x64xbf16, #tpu.memory_space<vmem>>, vector<1x2x64xbf16>
    tpu.vector_store %arg25[%c2_195, %c1_196, %c0_197], %384 {strides = array<i32>} : memref<4x4x64xbf16, #tpu.memory_space<vmem>>, vector<1x2x64xbf16>,
    %c0_198 = arith.constant 0 : index
    %c0_199 = arith.constant 0 : index
    %c0_200 = arith.constant 0 : index
    %386 = vector.load %arg25[%c0_198, %c0_199, %c0_200] : memref<4x4x64xbf16, #tpu.memory_space<vmem>>, vector<2x2x64xbf16>
    %387 = vector.shape_cast %386 : vector<2x2x64xbf16> to vector<4x64xbf16>
    %c0_201 = arith.constant 0 : index
    %c1_202 = arith.constant 1 : index
    %c0_203 = arith.constant 0 : index
    %388 = vector.load %arg25[%c0_201, %c1_202, %c0_203] : memref<4x4x64xbf16, #tpu.memory_space<vmem>>, vector<2x2x64xbf16>
    %389 = vector.shape_cast %388 : vector<2x2x64xbf16> to vector<4x64xbf16>
    %c0_204 = arith.constant 0 : index
    %c2_205 = arith.constant 2 : index
    %c0_206 = arith.constant 0 : index
    %390 = vector.load %arg25[%c0_204, %c2_205, %c0_206] : memref<4x4x64xbf16, #tpu.memory_space<vmem>>, vector<2x2x64xbf16>
    %391 = vector.shape_cast %390 : vector<2x2x64xbf16> to vector<4x64xbf16>
    %c1_207 = arith.constant 1 : index
    %c0_208 = arith.constant 0 : index
    %c0_209 = arith.constant 0 : index
    %392 = vector.load %arg25[%c1_207, %c0_208, %c0_209] : memref<4x4x64xbf16, #tpu.memory_space<vmem>>, vector<2x2x64xbf16>
    %393 = vector.shape_cast %392 : vector<2x2x64xbf16> to vector<4x64xbf16>
    %c1_210 = arith.constant 1 : index
    %c1_211 = arith.constant 1 : index
    %c0_212 = arith.constant 0 : index
    %394 = vector.load %arg25[%c1_210, %c1_211, %c0_212] : memref<4x4x64xbf16, #tpu.memory_space<vmem>>, vector<2x2x64xbf16>
    %395 = vector.shape_cast %394 : vector<2x2x64xbf16> to vector<4x64xbf16>
    %c1_213 = arith.constant 1 : index
    %c2_214 = arith.constant 2 : index
    %c0_215 = arith.constant 0 : index
    %396 = vector.load %arg25[%c1_213, %c2_214, %c0_215] : memref<4x4x64xbf16, #tpu.memory_space<vmem>>, vector<2x2x64xbf16>
    %397 = vector.shape_cast %396 : vector<2x2x64xbf16> to vector<4x64xbf16>
    %c2_216 = arith.constant 2 : index
    %c0_217 = arith.constant 0 : index
    %c0_218 = arith.constant 0 : index
    %398 = vector.load %arg25[%c2_216, %c0_217, %c0_218] : memref<4x4x64xbf16, #tpu.memory_space<vmem>>, vector<2x2x64xbf16>
    %399 = vector.shape_cast %398 : vector<2x2x64xbf16> to vector<4x64xbf16>
    %c2_219 = arith.constant 2 : index
    %c1_220 = arith.constant 1 : index
    %c0_221 = arith.constant 0 : index
    %400 = vector.load %arg25[%c2_219, %c1_220, %c0_221] : memref<4x4x64xbf16, #tpu.memory_space<vmem>>, vector<2x2x64xbf16>
    %401 = vector.shape_cast %400 : vector<2x2x64xbf16> to vector<4x64xbf16>
    %c2_222 = arith.constant 2 : index
    %c2_223 = arith.constant 2 : index
    %c0_224 = arith.constant 0 : index
    %402 = vector.load %arg25[%c2_222, %c2_223, %c0_224] : memref<4x4x64xbf16, #tpu.memory_space<vmem>>, vector<2x2x64xbf16>
    %403 = vector.shape_cast %402 : vector<2x2x64xbf16> to vector<4x64xbf16>
    %404 = tpu.concatenate %387, %389, %391, %393, %395, %397, %399, %401, %403 in 1 : vector<4x64xbf16>, vector<4x64xbf16>, vector<4x64xbf16>, vector<4x64xbf16>, vector<4x64xbf16>, vector<4x64xbf16>, vector<4x64xbf16>, vector<4x64xbf16>, vector<4x64xbf16> -> vector<4x576xbf16>
    %c0_225 = arith.constant 0 : index
    %c0_226 = arith.constant 0 : index
    %405 = vector.load %arg10[%c0_225, %c0_226] : memref<576x128xbf16, #tpu.memory_space<vmem>>, vector<576x128xbf16>
    %cst_227 = arith.constant dense<0.000000e+00> : vector<4x128xf32>
    %406 = tpu.matmul %404, %405, %cst_227 {dimension_numbers = #tpu.dot_dimension_numbers<[1], [0], [0], [1], [0, 0, 1, 1], [], []>} : vector<4x576xbf16>, vector<576x128xbf16>, vector<4x128xf32> -> vector<4x128xf32>
    %c0_228 = arith.constant 0 : index
    %c0_229 = arith.constant 0 : index
    %407 = vector.load %arg11[%c0_228, %c0_229] : memref<1x128xf32, #tpu.memory_space<vmem>>, vector<1x128xf32>
    %408 = vector.broadcast %407 : vector<1x128xf32> to vector<4x128xf32>
    %409 = arith.addf %406, %408 : vector<4x128xf32>
    %cst_230 = arith.constant 0.000000e+00 : f32
    %cst_231 = arith.constant 6.000000e+00 : f32
    %410 = vector.broadcast %cst_230 : f32 to vector<4x128xf32>
    %411 = arith.maximumf %410, %409 : vector<4x128xf32>
    %412 = vector.broadcast %cst_231 : f32 to vector<4x128xf32>
    %413 = arith.minimumf %412, %411 : vector<4x128xf32>
    %414 = arith.truncf %413 : vector<4x128xf32> to vector<4x128xbf16>
    %415 = vector.shape_cast %414 : vector<4x128xbf16> to vector<2x2x128xbf16>
    %c1_232 = arith.constant 1 : index
    %c1_233 = arith.constant 1 : index
    %c0_234 = arith.constant 0 : index
    %416 = vector.load %arg26[%c1_232, %c1_233, %c0_234] : memref<4x4x128xbf16, #tpu.memory_space<vmem>>, vector<2x2x128xbf16>
    tpu.vector_store %arg26[%c1_232, %c1_233, %c0_234], %415 {strides = array<i32>} : memref<4x4x128xbf16, #tpu.memory_space<vmem>>, vector<2x2x128xbf16>,
    %c0_235 = arith.constant 0 : index
    %c0_236 = arith.constant 0 : index
    %c0_237 = arith.constant 0 : index
    %417 = vector.load %arg26[%c0_235, %c0_236, %c0_237] : memref<4x4x128xbf16, #tpu.memory_space<vmem>>, vector<2x2x128xbf16>
    %418 = vector.shape_cast %417 : vector<2x2x128xbf16> to vector<4x128xbf16>
    %c0_238 = arith.constant 0 : index
    %c1_239 = arith.constant 1 : index
    %c0_240 = arith.constant 0 : index
    %419 = vector.load %arg26[%c0_238, %c1_239, %c0_240] : memref<4x4x128xbf16, #tpu.memory_space<vmem>>, vector<2x2x128xbf16>
    %420 = vector.shape_cast %419 : vector<2x2x128xbf16> to vector<4x128xbf16>
    %c0_241 = arith.constant 0 : index
    %c2_242 = arith.constant 2 : index
    %c0_243 = arith.constant 0 : index
    %421 = vector.load %arg26[%c0_241, %c2_242, %c0_243] : memref<4x4x128xbf16, #tpu.memory_space<vmem>>, vector<2x2x128xbf16>
    %422 = vector.shape_cast %421 : vector<2x2x128xbf16> to vector<4x128xbf16>
    %c1_244 = arith.constant 1 : index
    %c0_245 = arith.constant 0 : index
    %c0_246 = arith.constant 0 : index
    %423 = vector.load %arg26[%c1_244, %c0_245, %c0_246] : memref<4x4x128xbf16, #tpu.memory_space<vmem>>, vector<2x2x128xbf16>
    %424 = vector.shape_cast %423 : vector<2x2x128xbf16> to vector<4x128xbf16>
    %c1_247 = arith.constant 1 : index
    %c1_248 = arith.constant 1 : index
    %c0_249 = arith.constant 0 : index
    %425 = vector.load %arg26[%c1_247, %c1_248, %c0_249] : memref<4x4x128xbf16, #tpu.memory_space<vmem>>, vector<2x2x128xbf16>
    %426 = vector.shape_cast %425 : vector<2x2x128xbf16> to vector<4x128xbf16>
    %c1_250 = arith.constant 1 : index
    %c2_251 = arith.constant 2 : index
    %c0_252 = arith.constant 0 : index
    %427 = vector.load %arg26[%c1_250, %c2_251, %c0_252] : memref<4x4x128xbf16, #tpu.memory_space<vmem>>, vector<2x2x128xbf16>
    %428 = vector.shape_cast %427 : vector<2x2x128xbf16> to vector<4x128xbf16>
    %c2_253 = arith.constant 2 : index
    %c0_254 = arith.constant 0 : index
    %c0_255 = arith.constant 0 : index
    %429 = vector.load %arg26[%c2_253, %c0_254, %c0_255] : memref<4x4x128xbf16, #tpu.memory_space<vmem>>, vector<2x2x128xbf16>
    %430 = vector.shape_cast %429 : vector<2x2x128xbf16> to vector<4x128xbf16>
    %c2_256 = arith.constant 2 : index
    %c1_257 = arith.constant 1 : index
    %c0_258 = arith.constant 0 : index
    %431 = vector.load %arg26[%c2_256, %c1_257, %c0_258] : memref<4x4x128xbf16, #tpu.memory_space<vmem>>, vector<2x2x128xbf16>
    %432 = vector.shape_cast %431 : vector<2x2x128xbf16> to vector<4x128xbf16>
    %c2_259 = arith.constant 2 : index
    %c2_260 = arith.constant 2 : index
    %c0_261 = arith.constant 0 : index
    %433 = vector.load %arg26[%c2_259, %c2_260, %c0_261] : memref<4x4x128xbf16, #tpu.memory_space<vmem>>, vector<2x2x128xbf16>
    %434 = vector.shape_cast %433 : vector<2x2x128xbf16> to vector<4x128xbf16>
    %435 = tpu.concatenate %418, %420, %422, %424, %426, %428, %430, %432, %434 in 1 : vector<4x128xbf16>, vector<4x128xbf16>, vector<4x128xbf16>, vector<4x128xbf16>, vector<4x128xbf16>, vector<4x128xbf16>, vector<4x128xbf16>, vector<4x128xbf16>, vector<4x128xbf16> -> vector<4x1152xbf16>
    %c0_262 = arith.constant 0 : index
    %c0_263 = arith.constant 0 : index
    %436 = vector.load %arg12[%c0_262, %c0_263] : memref<1152x128xbf16, #tpu.memory_space<vmem>>, vector<1152x128xbf16>
    %cst_264 = arith.constant dense<0.000000e+00> : vector<4x128xf32>
    %437 = tpu.matmul %435, %436, %cst_264 {dimension_numbers = #tpu.dot_dimension_numbers<[1], [0], [0], [1], [0, 0, 1, 1], [], []>} : vector<4x1152xbf16>, vector<1152x128xbf16>, vector<4x128xf32> -> vector<4x128xf32>
    %c0_265 = arith.constant 0 : index
    %c0_266 = arith.constant 0 : index
    %438 = vector.load %arg13[%c0_265, %c0_266] : memref<1x128xf32, #tpu.memory_space<vmem>>, vector<1x128xf32>
    %439 = vector.broadcast %438 : vector<1x128xf32> to vector<4x128xf32>
    %440 = arith.addf %437, %439 : vector<4x128xf32>
    %cst_267 = arith.constant 0.000000e+00 : f32
    %cst_268 = arith.constant 6.000000e+00 : f32
    %441 = vector.broadcast %cst_267 : f32 to vector<4x128xf32>
    %442 = arith.maximumf %441, %440 : vector<4x128xf32>
    %443 = vector.broadcast %cst_268 : f32 to vector<4x128xf32>
    %444 = arith.minimumf %443, %442 : vector<4x128xf32>
    %445 = arith.truncf %444 : vector<4x128xf32> to vector<4x128xbf16>
    %446 = vector.shape_cast %445 : vector<4x128xbf16> to vector<2x2x128xbf16>
    %c1_269 = arith.constant 1 : index
    %c1_270 = arith.constant 1 : index
    %c0_271 = arith.constant 0 : index
    %447 = vector.load %arg27[%c1_269, %c1_270, %c0_271] : memref<4x4x128xbf16, #tpu.memory_space<vmem>>, vector<2x2x128xbf16>
    tpu.vector_store %arg27[%c1_269, %c1_270, %c0_271], %446 {strides = array<i32>} : memref<4x4x128xbf16, #tpu.memory_space<vmem>>, vector<2x2x128xbf16>,
    %c0_272 = arith.constant 0 : index
    %c0_273 = arith.constant 0 : index
    %c0_274 = arith.constant 0 : index
    %448 = vector.load %arg27[%c0_272, %c0_273, %c0_274] : memref<4x4x128xbf16, #tpu.memory_space<vmem>>, vector<2x2x128xbf16>
    %449 = vector.shape_cast %448 : vector<2x2x128xbf16> to vector<4x128xbf16>
    %c0_275 = arith.constant 0 : index
    %c1_276 = arith.constant 1 : index
    %c0_277 = arith.constant 0 : index
    %450 = vector.load %arg27[%c0_275, %c1_276, %c0_277] : memref<4x4x128xbf16, #tpu.memory_space<vmem>>, vector<2x2x128xbf16>
    %451 = vector.shape_cast %450 : vector<2x2x128xbf16> to vector<4x128xbf16>
    %c0_278 = arith.constant 0 : index
    %c2_279 = arith.constant 2 : index
    %c0_280 = arith.constant 0 : index
    %452 = vector.load %arg27[%c0_278, %c2_279, %c0_280] : memref<4x4x128xbf16, #tpu.memory_space<vmem>>, vector<2x2x128xbf16>
    %453 = vector.shape_cast %452 : vector<2x2x128xbf16> to vector<4x128xbf16>
    %c1_281 = arith.constant 1 : index
    %c0_282 = arith.constant 0 : index
    %c0_283 = arith.constant 0 : index
    %454 = vector.load %arg27[%c1_281, %c0_282, %c0_283] : memref<4x4x128xbf16, #tpu.memory_space<vmem>>, vector<2x2x128xbf16>
    %455 = vector.shape_cast %454 : vector<2x2x128xbf16> to vector<4x128xbf16>
    %c1_284 = arith.constant 1 : index
    %c1_285 = arith.constant 1 : index
    %c0_286 = arith.constant 0 : index
    %456 = vector.load %arg27[%c1_284, %c1_285, %c0_286] : memref<4x4x128xbf16, #tpu.memory_space<vmem>>, vector<2x2x128xbf16>
    %457 = vector.shape_cast %456 : vector<2x2x128xbf16> to vector<4x128xbf16>
    %c1_287 = arith.constant 1 : index
    %c2_288 = arith.constant 2 : index
    %c0_289 = arith.constant 0 : index
    %458 = vector.load %arg27[%c1_287, %c2_288, %c0_289] : memref<4x4x128xbf16, #tpu.memory_space<vmem>>, vector<2x2x128xbf16>
    %459 = vector.shape_cast %458 : vector<2x2x128xbf16> to vector<4x128xbf16>
    %c2_290 = arith.constant 2 : index
    %c0_291 = arith.constant 0 : index
    %c0_292 = arith.constant 0 : index
    %460 = vector.load %arg27[%c2_290, %c0_291, %c0_292] : memref<4x4x128xbf16, #tpu.memory_space<vmem>>, vector<2x2x128xbf16>
    %461 = vector.shape_cast %460 : vector<2x2x128xbf16> to vector<4x128xbf16>
    %c2_293 = arith.constant 2 : index
    %c1_294 = arith.constant 1 : index
    %c0_295 = arith.constant 0 : index
    %462 = vector.load %arg27[%c2_293, %c1_294, %c0_295] : memref<4x4x128xbf16, #tpu.memory_space<vmem>>, vector<2x2x128xbf16>
    %463 = vector.shape_cast %462 : vector<2x2x128xbf16> to vector<4x128xbf16>
    %c2_296 = arith.constant 2 : index
    %c2_297 = arith.constant 2 : index
    %c0_298 = arith.constant 0 : index
    %464 = vector.load %arg27[%c2_296, %c2_297, %c0_298] : memref<4x4x128xbf16, #tpu.memory_space<vmem>>, vector<2x2x128xbf16>
    %465 = vector.shape_cast %464 : vector<2x2x128xbf16> to vector<4x128xbf16>
    %466 = tpu.concatenate %449, %451, %453, %455, %457, %459, %461, %463, %465 in 1 : vector<4x128xbf16>, vector<4x128xbf16>, vector<4x128xbf16>, vector<4x128xbf16>, vector<4x128xbf16>, vector<4x128xbf16>, vector<4x128xbf16>, vector<4x128xbf16>, vector<4x128xbf16> -> vector<4x1152xbf16>
    %c0_299 = arith.constant 0 : index
    %c0_300 = arith.constant 0 : index
    %467 = vector.load %arg14[%c0_299, %c0_300] : memref<1152x128xbf16, #tpu.memory_space<vmem>>, vector<1152x128xbf16>
    %cst_301 = arith.constant dense<0.000000e+00> : vector<4x128xf32>
    %468 = tpu.matmul %466, %467, %cst_301 {dimension_numbers = #tpu.dot_dimension_numbers<[1], [0], [0], [1], [0, 0, 1, 1], [], []>} : vector<4x1152xbf16>, vector<1152x128xbf16>, vector<4x128xf32> -> vector<4x128xf32>
    %c0_302 = arith.constant 0 : index
    %c0_303 = arith.constant 0 : index
    %469 = vector.load %arg15[%c0_302, %c0_303] : memref<1x128xf32, #tpu.memory_space<vmem>>, vector<1x128xf32>
    %470 = vector.broadcast %469 : vector<1x128xf32> to vector<4x128xf32>
    %471 = arith.addf %468, %470 : vector<4x128xf32>
    %cst_304 = arith.constant 0.000000e+00 : f32
    %cst_305 = arith.constant 6.000000e+00 : f32
    %472 = vector.broadcast %cst_304 : f32 to vector<4x128xf32>
    %473 = arith.maximumf %472, %471 : vector<4x128xf32>
    %474 = vector.broadcast %cst_305 : f32 to vector<4x128xf32>
    %475 = arith.minimumf %474, %473 : vector<4x128xf32>
    %476 = arith.truncf %475 : vector<4x128xf32> to vector<4x128xbf16>
    %477 = vector.shape_cast %476 : vector<4x128xbf16> to vector<2x2x128xbf16>
    %c1_306 = arith.constant 1 : index
    %c1_307 = arith.constant 1 : index
    %c0_308 = arith.constant 0 : index
    %478 = vector.load %arg28[%c1_306, %c1_307, %c0_308] : memref<4x4x128xbf16, #tpu.memory_space<vmem>>, vector<2x2x128xbf16>
    tpu.vector_store %arg28[%c1_306, %c1_307, %c0_308], %477 {strides = array<i32>} : memref<4x4x128xbf16, #tpu.memory_space<vmem>>, vector<2x2x128xbf16>,
    %c0_309 = arith.constant 0 : index
    %c0_310 = arith.constant 0 : index
    %c0_311 = arith.constant 0 : index
    %479 = vector.load %arg28[%c0_309, %c0_310, %c0_311] : memref<4x4x128xbf16, #tpu.memory_space<vmem>>, vector<2x2x128xbf16>
    %480 = vector.shape_cast %479 : vector<2x2x128xbf16> to vector<4x128xbf16>
    %c0_312 = arith.constant 0 : index
    %c1_313 = arith.constant 1 : index
    %c0_314 = arith.constant 0 : index
    %481 = vector.load %arg28[%c0_312, %c1_313, %c0_314] : memref<4x4x128xbf16, #tpu.memory_space<vmem>>, vector<2x2x128xbf16>
    %482 = vector.shape_cast %481 : vector<2x2x128xbf16> to vector<4x128xbf16>
    %c0_315 = arith.constant 0 : index
    %c2_316 = arith.constant 2 : index
    %c0_317 = arith.constant 0 : index
    %483 = vector.load %arg28[%c0_315, %c2_316, %c0_317] : memref<4x4x128xbf16, #tpu.memory_space<vmem>>, vector<2x2x128xbf16>
    %484 = vector.shape_cast %483 : vector<2x2x128xbf16> to vector<4x128xbf16>
    %c1_318 = arith.constant 1 : index
    %c0_319 = arith.constant 0 : index
    %c0_320 = arith.constant 0 : index
    %485 = vector.load %arg28[%c1_318, %c0_319, %c0_320] : memref<4x4x128xbf16, #tpu.memory_space<vmem>>, vector<2x2x128xbf16>
    %486 = vector.shape_cast %485 : vector<2x2x128xbf16> to vector<4x128xbf16>
    %c1_321 = arith.constant 1 : index
    %c1_322 = arith.constant 1 : index
    %c0_323 = arith.constant 0 : index
    %487 = vector.load %arg28[%c1_321, %c1_322, %c0_323] : memref<4x4x128xbf16, #tpu.memory_space<vmem>>, vector<2x2x128xbf16>
    %488 = vector.shape_cast %487 : vector<2x2x128xbf16> to vector<4x128xbf16>
    %c1_324 = arith.constant 1 : index
    %c2_325 = arith.constant 2 : index
    %c0_326 = arith.constant 0 : index
    %489 = vector.load %arg28[%c1_324, %c2_325, %c0_326] : memref<4x4x128xbf16, #tpu.memory_space<vmem>>, vector<2x2x128xbf16>
    %490 = vector.shape_cast %489 : vector<2x2x128xbf16> to vector<4x128xbf16>
    %c2_327 = arith.constant 2 : index
    %c0_328 = arith.constant 0 : index
    %c0_329 = arith.constant 0 : index
    %491 = vector.load %arg28[%c2_327, %c0_328, %c0_329] : memref<4x4x128xbf16, #tpu.memory_space<vmem>>, vector<2x2x128xbf16>
    %492 = vector.shape_cast %491 : vector<2x2x128xbf16> to vector<4x128xbf16>
    %c2_330 = arith.constant 2 : index
    %c1_331 = arith.constant 1 : index
    %c0_332 = arith.constant 0 : index
    %493 = vector.load %arg28[%c2_330, %c1_331, %c0_332] : memref<4x4x128xbf16, #tpu.memory_space<vmem>>, vector<2x2x128xbf16>
    %494 = vector.shape_cast %493 : vector<2x2x128xbf16> to vector<4x128xbf16>
    %c2_333 = arith.constant 2 : index
    %c2_334 = arith.constant 2 : index
    %c0_335 = arith.constant 0 : index
    %495 = vector.load %arg28[%c2_333, %c2_334, %c0_335] : memref<4x4x128xbf16, #tpu.memory_space<vmem>>, vector<2x2x128xbf16>
    %496 = vector.shape_cast %495 : vector<2x2x128xbf16> to vector<4x128xbf16>
    %497 = tpu.concatenate %480, %482, %484, %486, %488, %490, %492, %494, %496 in 1 : vector<4x128xbf16>, vector<4x128xbf16>, vector<4x128xbf16>, vector<4x128xbf16>, vector<4x128xbf16>, vector<4x128xbf16>, vector<4x128xbf16>, vector<4x128xbf16>, vector<4x128xbf16> -> vector<4x1152xbf16>
    %c0_336 = arith.constant 0 : index
    %c0_337 = arith.constant 0 : index
    %498 = vector.load %arg16[%c0_336, %c0_337] : memref<1152x128xbf16, #tpu.memory_space<vmem>>, vector<1152x128xbf16>
    %cst_338 = arith.constant dense<0.000000e+00> : vector<4x128xf32>
    %499 = tpu.matmul %497, %498, %cst_338 {dimension_numbers = #tpu.dot_dimension_numbers<[1], [0], [0], [1], [0, 0, 1, 1], [], []>} : vector<4x1152xbf16>, vector<1152x128xbf16>, vector<4x128xf32> -> vector<4x128xf32>
    %c0_339 = arith.constant 0 : index
    %c0_340 = arith.constant 0 : index
    %500 = vector.load %arg17[%c0_339, %c0_340] : memref<1x128xf32, #tpu.memory_space<vmem>>, vector<1x128xf32>
    %501 = vector.broadcast %500 : vector<1x128xf32> to vector<4x128xf32>
    %502 = arith.addf %499, %501 : vector<4x128xf32>
    %cst_341 = arith.constant 0.000000e+00 : f32
    %cst_342 = arith.constant 6.000000e+00 : f32
    %503 = vector.broadcast %cst_341 : f32 to vector<4x128xf32>
    %504 = arith.maximumf %503, %502 : vector<4x128xf32>
    %505 = vector.broadcast %cst_342 : f32 to vector<4x128xf32>
    %506 = arith.minimumf %505, %504 : vector<4x128xf32>
    %cst_343 = arith.constant dense<0.000000e+00> : vector<128xf32>
    %507 = vector.multi_reduction <add>, %506, %cst_343 [0] : vector<4x128xf32> to vector<128xf32>
    %508 = vector.shape_cast %507 : vector<128xf32> to vector<1x128xf32>
    %cst_344 = arith.constant 4.000000e+00 : f32
    %509 = vector.broadcast %cst_344 : f32 to vector<1x128xf32>
    %510 = arith.divf %508, %509 : vector<1x128xf32>
    %511 = arith.truncf %510 : vector<1x128xf32> to vector<1x128xbf16>
    %c0_345 = arith.constant 0 : index
    %c0_346 = arith.constant 0 : index
    %512 = vector.load %arg18[%c0_345, %c0_346] : memref<128x128xbf16, #tpu.memory_space<vmem>>, vector<128x128xbf16>
    %cst_347 = arith.constant dense<0.000000e+00> : vector<1x128xf32>
    %513 = tpu.matmul %511, %512, %cst_347 {dimension_numbers = #tpu.dot_dimension_numbers<[1], [0], [0], [1], [0, 0, 1, 1], [], []>} : vector<1x128xbf16>, vector<128x128xbf16>, vector<1x128xf32> -> vector<1x128xf32>
    %c0_348 = arith.constant 0 : index
    %c0_349 = arith.constant 0 : index
    %514 = vector.load %arg19[%c0_348, %c0_349] : memref<1x128xf32, #tpu.memory_space<vmem>>, vector<1x128xf32>
    %515 = arith.addf %513, %514 : vector<1x128xf32>
    %516 = vector.shape_cast %515 : vector<1x128xf32> to vector<1x1x128xf32>
    %c0_350 = arith.constant 0 : index
    %c0_351 = arith.constant 0 : index
    %c0_352 = arith.constant 0 : index
    %517 = vector.load %arg20[%c0_350, %c0_351, %c0_352] : memref<1x1x128xf32, #tpu.memory_space<vmem>>, vector<1x1x128xf32>
    tpu.vector_store %arg20[%c0_350, %c0_351, %c0_352], %516 {strides = array<i32>} : memref<1x1x128xf32, #tpu.memory_space<vmem>>, vector<1x1x128xf32>,
    return
  }
  func.func @transform_0(%arg0: i32) -> (i32, i32, i32, i32) {
    %c0_i32 = arith.constant 0 : i32
    %c0_i32_0 = arith.constant 0 : i32
    %c0_i32_1 = arith.constant 0 : i32
    %c0_i32_2 = arith.constant 0 : i32
    return %arg0, %c0_i32, %c0_i32_0, %c0_i32_1 : i32, i32, i32, i32
  }
  func.func @transform_1(%arg0: i32) -> (i32, i32) {
    %c0_i32 = arith.constant 0 : i32
    %c0_i32_0 = arith.constant 0 : i32
    %c0_i32_1 = arith.constant 0 : i32
    return %c0_i32, %c0_i32_0 : i32, i32
  }
  func.func @transform_2(%arg0: i32) -> (i32, i32) {
    %c0_i32 = arith.constant 0 : i32
    %c0_i32_0 = arith.constant 0 : i32
    %c0_i32_1 = arith.constant 0 : i32
    return %c0_i32, %c0_i32_0 : i32, i32
  }
  func.func @transform_3(%arg0: i32) -> (i32, i32) {
    %c0_i32 = arith.constant 0 : i32
    %c0_i32_0 = arith.constant 0 : i32
    %c0_i32_1 = arith.constant 0 : i32
    return %c0_i32, %c0_i32_0 : i32, i32
  }
  func.func @transform_4(%arg0: i32) -> (i32, i32) {
    %c0_i32 = arith.constant 0 : i32
    %c0_i32_0 = arith.constant 0 : i32
    %c0_i32_1 = arith.constant 0 : i32
    return %c0_i32, %c0_i32_0 : i32, i32
  }
  func.func @transform_5(%arg0: i32) -> (i32, i32) {
    %c0_i32 = arith.constant 0 : i32
    %c0_i32_0 = arith.constant 0 : i32
    %c0_i32_1 = arith.constant 0 : i32
    return %c0_i32, %c0_i32_0 : i32, i32
  }
  func.func @transform_6(%arg0: i32) -> (i32, i32) {
    %c0_i32 = arith.constant 0 : i32
    %c0_i32_0 = arith.constant 0 : i32
    %c0_i32_1 = arith.constant 0 : i32
    return %c0_i32, %c0_i32_0 : i32, i32
  }
  func.func @transform_7(%arg0: i32) -> (i32, i32) {
    %c0_i32 = arith.constant 0 : i32
    %c0_i32_0 = arith.constant 0 : i32
    %c0_i32_1 = arith.constant 0 : i32
    return %c0_i32, %c0_i32_0 : i32, i32
  }
  func.func @transform_8(%arg0: i32) -> (i32, i32) {
    %c0_i32 = arith.constant 0 : i32
    %c0_i32_0 = arith.constant 0 : i32
    %c0_i32_1 = arith.constant 0 : i32
    return %c0_i32, %c0_i32_0 : i32, i32
  }
  func.func @transform_9(%arg0: i32) -> (i32, i32) {
    %c0_i32 = arith.constant 0 : i32
    %c0_i32_0 = arith.constant 0 : i32
    %c0_i32_1 = arith.constant 0 : i32
    return %c0_i32, %c0_i32_0 : i32, i32
  }
  func.func @transform_10(%arg0: i32) -> (i32, i32) {
    %c0_i32 = arith.constant 0 : i32
    %c0_i32_0 = arith.constant 0 : i32
    %c0_i32_1 = arith.constant 0 : i32
    return %c0_i32, %c0_i32_0 : i32, i32
  }
  func.func @transform_11(%arg0: i32) -> (i32, i32) {
    %c0_i32 = arith.constant 0 : i32
    %c0_i32_0 = arith.constant 0 : i32
    %c0_i32_1 = arith.constant 0 : i32
    return %c0_i32, %c0_i32_0 : i32, i32
  }
  func.func @transform_12(%arg0: i32) -> (i32, i32) {
    %c0_i32 = arith.constant 0 : i32
    %c0_i32_0 = arith.constant 0 : i32
    %c0_i32_1 = arith.constant 0 : i32
    return %c0_i32, %c0_i32_0 : i32, i32
  }
  func.func @transform_13(%arg0: i32) -> (i32, i32) {
    %c0_i32 = arith.constant 0 : i32
    %c0_i32_0 = arith.constant 0 : i32
    %c0_i32_1 = arith.constant 0 : i32
    return %c0_i32, %c0_i32_0 : i32, i32
  }
  func.func @transform_14(%arg0: i32) -> (i32, i32) {
    %c0_i32 = arith.constant 0 : i32
    %c0_i32_0 = arith.constant 0 : i32
    %c0_i32_1 = arith.constant 0 : i32
    return %c0_i32, %c0_i32_0 : i32, i32
  }
  func.func @transform_15(%arg0: i32) -> (i32, i32) {
    %c0_i32 = arith.constant 0 : i32
    %c0_i32_0 = arith.constant 0 : i32
    %c0_i32_1 = arith.constant 0 : i32
    return %c0_i32, %c0_i32_0 : i32, i32
  }
  func.func @transform_16(%arg0: i32) -> (i32, i32) {
    %c0_i32 = arith.constant 0 : i32
    %c0_i32_0 = arith.constant 0 : i32
    %c0_i32_1 = arith.constant 0 : i32
    return %c0_i32, %c0_i32_0 : i32, i32
  }
  func.func @transform_17(%arg0: i32) -> (i32, i32) {
    %c0_i32 = arith.constant 0 : i32
    %c0_i32_0 = arith.constant 0 : i32
    %c0_i32_1 = arith.constant 0 : i32
    return %c0_i32, %c0_i32_0 : i32, i32
  }
  func.func @transform_18(%arg0: i32) -> (i32, i32) {
    %c0_i32 = arith.constant 0 : i32
    %c0_i32_0 = arith.constant 0 : i32
    %c0_i32_1 = arith.constant 0 : i32
    return %c0_i32, %c0_i32_0 : i32, i32
  }
  func.func @transform_19(%arg0: i32) -> (i32, i32, i32) {
    %c0_i32 = arith.constant 0 : i32
    %c0_i32_0 = arith.constant 0 : i32
    %c0_i32_1 = arith.constant 0 : i32
    return %arg0, %c0_i32, %c0_i32_0 : i32, i32, i32
  }
}

</mosaic_0001>

<bundles_post_ra>
// kernel: _lambda_.1
= control target key start
LH: loop header
LB: loop body
LE: loop exit
PB: predicated region body
PF: predicated region fallthrough
CT: control target
= control target key end

     0   :  { %s13443_s0 = inlined_call_operand.hbm [shape: f32[2,3,32,32], index: 0, kind: input, shape index: {}]   ;;  %s13444_s1 = inlined_call_operand.vmem [shape: bf16[8,27], index: 1, kind: input, shape index: {}]   ;;  %s13445_s2 = inlined_call_operand.vmem [shape: f32[8,1], index: 2, kind: input, shape index: {}]   ;;  %s13446_s3 = inlined_call_operand.vmem [shape: bf16[16,72], index: 3, kind: input, shape index: {}]   ;;  %s13447_s4 = inlined_call_operand.vmem [shape: f32[16,1], index: 4, kind: input, shape index: {}]   ;;  %s13448_s5 = inlined_call_operand.hbm [shape: bf16[32,144], index: 5, kind: input, shape index: {}]   ;;  %s13449_s6 = inlined_call_operand.vmem [shape: f32[32,1], index: 6, kind: input, shape index: {}]   ;;  %s13450_s7 = inlined_call_operand.vmem [shape: bf16[64,288], index: 7, kind: input, shape index: {}]   ;;  %s13451_s8 = inlined_call_operand.vmem [shape: f32[64,1], index: 8, kind: input, shape index: {}]   ;;  %s13452_s9 = inlined_call_operand.hbm [shape: bf16[576,128], index: 9, kind: input, shape index: {}]   ;;  %s13453_s10 = inlined_call_operand.vmem [shape: f32[1,128], index: 10, kind: input, shape index: {}]   ;;  %s13454_s11 = inlined_call_operand.hbm [shape: bf16[1152,128], index: 11, kind: input, shape index: {}]   ;;  %s13455_s12 = inlined_call_operand.vmem [shape: f32[1,128], index: 12, kind: input, shape index: {}]   ;;  %s13456_s13 = inlined_call_operand.hbm [shape: bf16[1152,128], index: 13, kind: input, shape index: {}]   ;;  %s13457_s14 = inlined_call_operand.vmem [shape: f32[1,128], index: 14, kind: input, shape index: {}]   ;;  %s13458_s15 = inlined_call_operand.hbm [shape: bf16[1152,128], index: 15, kind: input, shape index: {}]   ;;  %s13459_s16 = inlined_call_operand.vmem [shape: f32[1,128], index: 16, kind: input, shape index: {}]   ;;  %s13460_s17 = inlined_call_operand.hbm [shape: bf16[128,128], index: 17, kind: input, shape index: {}]   ;;  %s13461_s18 = inlined_call_operand.vmem [shape: f32[1,128], index: 18, kind: input, shape index: {}]   ;;  %s13462_s19 = inlined_call_operand.hbm [shape: f32[2,1,128], index: 19, kind: output, shape index: {}]  }
   0x1   :  { %13505 = sst [smem:[#allocation36_spill]] %s13443_s0 }
   0x2   :  { %13506 = sst [smem:[#allocation37_spill]] %s13444_s1 }
   0x3   :  { %13507 = sst [smem:[#allocation38_spill]] %s13445_s2 }
   0x4   :  { %13508 = sst [smem:[#allocation39_spill]] %s13446_s3 }
   0x5   :  { %13509 = sst [smem:[#allocation40_spill]] %s13448_s5 }
   0x6   :  { %13510 = sst [smem:[#allocation41_spill]] %s13452_s9 }
   0x7   :  { %13511 = sst [smem:[#allocation42_spill]] %s13453_s10 }
   0x8   :  { %13512 = sst [smem:[#allocation43_spill]] %s13454_s11 }
   0x9   :  { %13513 = sst [smem:[#allocation44_spill]] %s13455_s12 }
   0xa   :  { %13514 = sst [smem:[#allocation45_spill]] %s13456_s13 }
   0xb   :  { %13515 = sst [smem:[#allocation46_spill]] %s13457_s14 }
   0xc   :  { %13516 = sst [smem:[#allocation47_spill]] %s13458_s15 }
   0xd   :  { %13517 = sst [smem:[#allocation48_spill]] %s13459_s16 }
   0xe   :  { %13518 = sst [smem:[#allocation49_spill]] %s13460_s17 }
   0xf   :  { %13519 = sst [smem:[#allocation50_spill]] %s13461_s18 }
  0x10   :  { %13520 = sst [smem:[#allocation51_spill]] %s13462_s19 }
  0x11   :  { %24 = vsyncpa [#allocation11], 0 }
  0x12   :  { %26 = vsyncpa [#allocation11 + $0x1], 0 }
  0x13   :  { %27 = vsyncpa [#allocation14], 0 }
  0x14   :  { %28 = vsyncpa [#allocation17], 0 }
  0x15   :  { %29 = vsyncpa [#allocation20], 0 }
  0x16   :  { %30 = vsyncpa [#allocation12], 0 }
  0x17   :  { %32 = vsyncpa [#allocation12 + $0x1], 0  ;;  %s11320_s0 = smov 0   ;;  %s11322_s30 = smov 0  }
  0x18   :  { %s11324_s20 = smov 0   ;;  %s11326_s21 = smov 0  }
  0x19 LB: > { %s13521_s5 = sld [smem:[#allocation40_spill]]  ;;  %s11344_s23 = sadd.s32 4294967295, %s11124_s21   ;;  %s11124_s21 = sphi %s11326_s21, %s13737_s21   ;;  %s11120_s20 = sphi %s11324_s20, %s13736_s20   ;;  %s11116_s30 = sphi %s11322_s30, %s13735_s30   ;;  %s11112_s0 = sphi %s11320_s0, %s13734_s0  }
  0x1a   : > { %p8893_p0 = scmp.ge.s32.totalorder %s11124_s21, 1  ;;  %p59_p1 = scmp.eq.s32.totalorder %s11344_s23, 0 }
  0x1b   : > { %p473_p2 = scmp.lt.s32.totalorder %s11124_s21, 3  ;;  %s11126_s25 = smov [#allocation13]  }
  0x1c   : > { %s498_s3 = sshll.u32 %s11126_s25, 4  ;;  %s13524_s11 = sld [smem:[#allocation43_spill]]  ;;  %s499_s3 = int_to_ptr.vmem [resolvable:$true] %s498_s3 }
  0x1d   : > { %p11349_p3 = pnand %p8893_p0, %p473_p2  ;;  %s13465_s1 = smov 128  }
  0x1e   : > { %s13466_s22 = smov 8   ;;  %s11129_s25 = smov [#allocation16]  }
  0x1f   : > { %s496_s2 = sshll.u32 %s13521_s5, 4  ;;  %p10419_p4 = pneg %p11349_p3  ;;  %s497_s2 = int_to_ptr.hbm [resolvable:$true] %s496_s2 }
  0x20   : > { %s538_s5 = sshll.u32 %s11129_s25, 4  ;;  %s13525_s15 = sld [smem:[#allocation47_spill]]  ;;  %s539_s5 = int_to_ptr.vmem [resolvable:$true] %s538_s5 }
  0x21   : > { %p11358_p6 = pnand %p10419_p4, %p59_p1  ;;  %s11130_s27 = smov 64  }
  0x22   : > { %s536_s29 = sshll.u32 %s13524_s11, 4  ;;  %s11131_s28 = smov 4   ;;  %s537_s29 = int_to_ptr.hbm [resolvable:$true] %s536_s29 }
  0x23   : > { %10422 = dma.hbm_to_vmem [thread:$0]  (!%p11358_p6), %s497_s2, 512, %s499_s3, [#allocation14], %s13465_s1, %s13465_s1, %s13466_s22  }
  0x24   : > { %10428 = dma.hbm_to_vmem [thread:$0]  (!%p11358_p6), %s537_s29, 9216, %s539_s5, [#allocation17], %s11130_s27, %s11130_s27, %s11131_s28  }
  0x25   : > { %s13526_s9 = sld [smem:[#allocation41_spill]]  ;;  %s11132_s10 = smov [#allocation19]  }
  0x26   : > { %s570_s16 = sshll.u32 %s13525_s15, 4  ;;  %s572_s2 = sshll.u32 %s11132_s10, 4  ;;  %s571_s16 = int_to_ptr.hbm [resolvable:$true] %s570_s16  ;;  %s573_s2 = int_to_ptr.vmem [resolvable:$true] %s572_s2 }
  0x27   : > { %10434 = dma.hbm_to_vmem [thread:$0]  (!%p11358_p6), %s571_s16, 9216, %s573_s2, [#allocation20], %s11130_s27, %s11130_s27, %s11131_s28  }
  0x28   : > { %s11133_s18 = smov [#allocation15]   ;;  %s13527_s13 = sld [smem:[#allocation45_spill]] }
  0x29   : > { %s521_s19 = sshll.u32 %s11133_s18, 4  ;;  %s13528_s17 = sld [smem:[#allocation49_spill]]  ;;  %s522_s19 = int_to_ptr.vmem [resolvable:$true] %s521_s19 }
  0x2a   : > { %s11134_s16 = smov [#allocation18]   ;;  %s11135_s2 = smov [#allocation21]  }
  0x2b   : > { %s519_s12 = sshll.u32 %s13526_s9, 4  ;;  %s555_s29 = sshll.u32 %s11134_s16, 4  ;;  %s520_s12 = int_to_ptr.hbm [resolvable:$true] %s519_s12  ;;  %s556_s29 = int_to_ptr.vmem [resolvable:$true] %s555_s29 }
  0x2c   : > { %10425 = dma.hbm_to_vmem [thread:$0]  (!%p11358_p6), %s520_s12, 4608, %s522_s19, [#allocation14], %s11130_s27, %s11130_s27, %s11131_s28  }
  0x2d   : > { %s589_s12 = sshll.u32 %s11135_s2, 4  ;;  %s8892_s18 = sadd.s32 4294967294, %s11124_s21   ;;  %s590_s12 = int_to_ptr.vmem [resolvable:$true] %s589_s12 }
  0x2e   : > { %s553_s5 = sshll.u32 %s13527_s13, 4  ;;  %s11394_s19 = sadd.s32 1, %s11124_s21   ;;  %s554_s5 = int_to_ptr.hbm [resolvable:$true] %s553_s5 }
  0x2f   : > { %s587_s14 = sshll.u32 %s13528_s17, 4  ;;  %s42_s3 = ssub.s32 %s11124_s21, %s11394_s19  ;;  %s588_s14 = int_to_ptr.hbm [resolvable:$true] %s587_s14 }
  0x30   : > { %10431 = dma.hbm_to_vmem [thread:$0]  (!%p11358_p6), %s554_s5, 9216, %s556_s29, [#allocation17], %s11130_s27, %s11130_s27, %s11131_s28  }
  0x31   : > { %10437 = dma.hbm_to_vmem [thread:$0]  (!%p11358_p6), %s588_s14, 1024, %s590_s12, [#allocation20], %s11130_s27, %s11130_s27, %s11131_s28  }
  0x32   : > { %s45_s25 = sadd.s32 1, %s11120_s20  ;;  %p43_p7 = scmp.eq.s32.totalorder %s42_s3, 0 }
  0x33   : > { %p52_p8 = scmp.ne.s32.totalorder %s11120_s20, %s11116_s30  ;;  %p53_p9 = scmp.eq.s32.totalorder %s11124_s21, 0 }
  0x34   : > { %p58_p10 = scmp.ne.s32.totalorder %s11116_s30, %s11112_s0  ;;  %p460_p13 = scmp.eq.s32.totalorder %s11344_s23, 1 }
  0x35   : > { %s11405_s5 = scalar_select %p43_p7, %s11120_s20, %s45_s25  }
  0x36   : > { %p54_p11 = por %p53_p9, %p52_p8  ;;  %p11409_p12 = por %p59_p1, %p58_p10 }
  0x37   : > { %p466_p0 = scmp.eq.s32.totalorder %s8892_s18, 1  ;;  %p10452_p2 = scmp.lt.s32.totalorder %s11124_s21, 2 }
  0x38   : > { %s606_s26 = sand.u32 1, %s11120_s20   ;;  %p11416_p4 = por %p460_p13, %p52_p8 }
  0x39   : > { %p11420_p6 = por %p466_p0, %p58_p10  ;;  %s10388_s11 = smul.u32 96, %s606_s26 }
  0x3a   : > { %s10389_s14 = smul.u32 96, %s11124_s21  ;;  %p11425_p7 = pnand %p10452_p2, %p54_p11 }
  0x3b   : > { %s13533_s12 = sld [smem:[#allocation36_spill]]  ;;  %s610_s3 = scalar_lea.vmem [#allocation10], %s10388_s11 }
  0x3c   : > { %s618_s25 = sshll.u32 %s610_s3, 4  ;;  %s607_s22 = scalar_lea.sflag [#allocation11], %s606_s26  ;;  %s619_s25 = int_to_ptr.vmem [resolvable:$true] %s618_s25 }
  0x3d   : > { %p11020_p9 = pneg %p11425_p7 }
  0x41   : > { %s615_s18 = scalar_lea.hbm %s13533_s12, %s10389_s14  ;;  %s11023_s29 = scalar_lea.hbm %s13533_s12, 192 }
  0x42   : > { %s616_s1 = sshll.u32 %s615_s18, 4  ;;  %s617_s1 = int_to_ptr.hbm [resolvable:$true] %s616_s1 }
  0x43   : > { %s11016_s9 = sshra.s32 %s617_s1, 4  ;;  %s11017_s9 = int_to_ptr.hbm [resolvable:$true] %s11016_s9 }
  0x44   : > { %s11018_s13 = scalar_lea.hbm %s11017_s9, 96  ;;  %p11024_p13 = scmp.lt.s32.totalorder %s11017_s9, %s13533_s12 }
  0x45   : > { %p11019_p8 = scmp.ne.s32.totalorder %s11017_s9, %s11018_s13  ;;  %p11025_p0 = scmp.lt.s32.totalorder %s11023_s29, %s11018_s13 }
  0x47   : > { %p11021_p10 = pnand %p11020_p9, %p11019_p8  ;;  %p11026_p2 = por %p11025_p0, %p11024_p13 }
  0x49   : > { %p11022_p11 = pneg %p11021_p10 }
  0x4b   : > { %p11027_p5 = pnand %p11026_p2, %p11022_p11 }
  0x4d   : > { %11030 = shalt.err (!%p11027_p5)
}
  0x4e   : > { %s13534_s26 = smov 8   ;;  %s13535_s11 = smov 128  }
  0x4f   : > { %10441 = dma.hbm_to_vmem [thread:$0]  (!%p11425_p7), %s617_s1, 1536, %s619_s25, %s607_s22, %s13535_s11, %s13535_s11, %s13534_s26  }
  0x50   : > { %630 = sbr.rel (%p11349_p3) target bundleno = 6162 (0x1812), region = 96 }
  0x55   : > { %s11448_s15 = sand.u32 1, %s11116_s30  }
  0x56   : > { %s10390_s9 = smul.u32 96, %s11448_s15  ;;  %s633_s13 = scalar_lea.sflag [#allocation11], %s11448_s15 }
  0x58   : > { %s11452_s17 = scalar_lea.vmem [#allocation10], %s10390_s9 }
  0x59   : > { %11091 = dma.done.wait (%p11409_p12), %s633_s13, 1536  }
  0x5a   : > { %11093 = vsyncadd (%p11409_p12), %s633_s13, 4294965760 }
  0x5b   : > { %11095 = dma.done.wait (%p59_p1), [#allocation14], 5120  }
  0x5c   : > { %11097 = vsyncadd (%p59_p1), [#allocation14], 4294962176 }
  0x5d   : > { %11099 = dma.done.wait (%p59_p1), [#allocation17], 18432  }
  0x5e   : > { %11101 = vsyncadd (%p59_p1), [#allocation17], 4294948864 }
  0x5f   : > { %11103 = dma.done.wait (%p59_p1), [#allocation20], 10240  }
  0x60   : > { %11105 = vsyncadd (%p59_p1), [#allocation20], 4294957056  ;;  %v777_v0 = vld [vmem:[%s11452_s17] sm:$0xff]  ;;  %vm13482_vm0 = vcmask 1041408   ;;  %vm13471_vm1 = vcmask 1041409   ;;  %vm13470_vm2 = vcmask 1042434  }
  0x61   : > { %v781_v1 = vld [vmem:[%s11452_s17 + $0x20] sm:$0xff]  ;;  %v11473_v3 = vpack.c.bf16 %v777_v0, %v777_v0  ;;  %s11136_s24 = smov 35   ;;  %s11137_s1 = smov 69   ;;  %vm723_vm3 = vsmask.f32 1280  ;;  %vm725_vm4 = vcmask 1043458  }
  0x62   : > { %v785_v2 = vld [vmem:[%s11452_s17 + $0x40] sm:$0xff]  ;;  %v11475_v4 = vpack.c.bf16 %v781_v1, %v781_v1  ;;  %s11138_s22 = smov 103   ;;  %s11139_s10 = smov 9   ;;  %vm11556_vm5 = vmand %vm13482_vm0, %vm723_vm3  ;;  %vm726_vm6 = vsmask.f32 3328  ;;  %vm729_vm7 = vcmask 1045508  }
  0x63   : > { %v11477_v5 = vpack.c.bf16 %v785_v2, %v785_v2  ;;  %v804_v6 = vrot.slane %v11473_v3, 2  ;;  %s11140_s16 = smov 43   ;;  %s11141_s18 = smov 77   ;;  %vm727_vm8 = vmand %vm725_vm4, %vm726_vm6  ;;  %vm730_vm9 = vsmask.f32 5376  ;;  %vm733_vm11 = vcmask 1047558  }
  0x64   : > { %v805_v7 = vrot.slane %v11475_v4, 2  ;;  %s11142_s3 = smov 111   ;;  %s11143_s25 = smov 17   ;;  %vm728_vm10 = vmor %vm727_vm8, %vm11556_vm5  ;;  %vm13467_vm12 = vsmask.f32 7424 }
  0x65   : > { %v806_v8 = vrot.slane %v11477_v5, 2  ;;  %v810_v9 = vsel %vm13482_vm0, %v11473_v3, %v804_v6  ;;  %s13475_s29 = smov 51   ;;  %s11145_s2 = smov 85   ;;  %vm731_vm13 = vmand %vm729_vm7, %vm730_vm9  ;;  %vm846_vm7 = vcmask 541976   ;;  %vm878_vm9 = vcmask 820776  }
  0x66   : > { %v813_v10 = vsel %vm13482_vm0, %v11475_v4, %v805_v7  ;;  %817 = vst [vmem:[#allocation1] ss:$2 sm:$0xff] %v810_v9  ;;  %vm11564_vm14 = vmor %vm731_vm13, %vm728_vm10  ;;  %s11146_s14 = smov 119   ;;  %s13468_s26 = smov 25   ;;  %vm915_vm13 = vcmask 52226  }
  0x67   : > { %v816_v11 = vsel %vm13482_vm0, %v11477_v5, %v806_v8  ;;  %821 = vst [vmem:[#allocation1 + $0x10] ss:$2 sm:$0xff] %v813_v10  ;;  %vm11571_vm15 = vmand %vm733_vm11, %vm13467_vm12  ;;  %vm913_vm11 = vcmask 1042232   ;;  %s11148_s11 = smov 59   ;;  %s11149_s9 = smov 93  }
  0x68   : > { %825 = vst [vmem:[#allocation1 + $0x20] ss:$2 sm:$0xff] %v816_v11  ;;  %vm736_vm4 = vmor %vm11571_vm15, %vm11564_vm14  ;;  %s11150_s13 = smov 127   ;;  %vm1352_vm15 = vcmask 1017576  }
  0x69   : > { %vm847_vm8 = vmand %vm846_vm7, %vm723_vm3 }
  0x6a   : > { %vm879_vm10 = vmand %vm878_vm9, %vm723_vm3 }
  0x6b   : > { %vm11596_vm7 = vmand %vm913_vm11, %vm723_vm3  ;;  %vm949_vm11 = vcmask 328776  }
  0x6c   : > { %vm916_vm9 = vmand %vm915_vm13, %vm726_vm6 }
  0x6d   : > { %v818_v12 = vld.sshfl [vmem:[#allocation1] sm:$0xff pattern:$0x75643120]  ;;  %vm950_vm13 = vmand %vm949_vm11, %vm723_vm3  ;;  %vm1075_vm11 = vcmask 1042296  }
  0x6e   : > { %v822_v13 = vld.sshfl [vmem:[#allocation1 + $0x10] sm:$0xff pattern:$0x75643120]  ;;  %851 = vst [vmem:[#allocation1] ss:$2 sm:$0xff] %v810_v9  ;;  %v828_v15 = vunpack.c.l.b16 %v818_v12 }
  0x6f   : > { %v826_v14 = vld.sshfl [vmem:[#allocation1 + $0x20] sm:$0xff pattern:$0x75643120]  ;;  %v829_v16 = vunpack.c.l.b16 %v822_v13  ;;  %855 = vst [vmem:[#allocation1 + $0x10] ss:$2 sm:$0xff] %v813_v10 }
  0x70   : > { %v830_v17 = vunpack.c.l.b16 %v826_v14  ;;  %859 = vst [vmem:[#allocation1 + $0x20] ss:$2 sm:$0xff] %v816_v11 }
  0x71   : > { %v831_v18 = vrot.slane %v829_v16, 7 }
  0x72   : > { %v834_v19 = vrot.slane %v830_v17, 6 }
  0x73   : > { %v833_v20 = vsel %vm13471_vm1, %v831_v18, %v828_v15 }
  0x74   : > { %v836_v21 = vsel %vm13470_vm2, %v834_v19, %v833_v20 }
  0x75   : > { %v837_v22 = vpack.c.b16 %v836_v21, %v836_v21  ;;  %v852_v23 = vld.sshfl [vmem:[#allocation1] sm:$0xff pattern:$0x75643120] }
  0x76   : > { %v856_v24 = vld.sshfl [vmem:[#allocation1 + $0x10] sm:$0xff pattern:$0x75643120]  ;;  %v862_v25 = vunpack.c.l.b16 %v852_v23  ;;  %883 = vst [vmem:[#allocation1] ss:$2 sm:$0xff] %v810_v9 }
  0x77   : > { %v838_v26 = vrot.slane %v837_v22, 2  ;;  %v860_v27 = vld.sshfl [vmem:[#allocation1 + $0x20] sm:$0xff pattern:$0x75643120]  ;;  %v863_v28 = vunpack.c.l.b16 %v856_v24  ;;  %887 = vst [vmem:[#allocation1 + $0x10] ss:$2 sm:$0xff] %v813_v10 }
  0x78   : > { %v864_v29 = vunpack.c.l.b16 %v860_v27  ;;  %v865_v30 = vrot.slane %v862_v25, 1  ;;  %891 = vst [vmem:[#allocation1 + $0x20] ss:$2 sm:$0xff] %v816_v11 }
  0x79   : > { %v841_v31 = vsel %vm13482_vm0, %v837_v22, %v838_v26 }
  0x7a   : > { %843 = vrot.lane.b32.xlu0 %v841_v31, %s11136_s24  ;;  %v866_v32 = vsel %vm13471_vm1, %v863_v28, %v865_v30  ;;  %v867_v33 = vrot.slane %v864_v29, 7 }
  0x7c   : > { %v868_v34 = vsel %vm13470_vm2, %v867_v33, %v866_v32 }
  0x7d   : > { %v869_v35 = vpack.c.b16 %v868_v34, %v868_v34  ;;  %v884_v36 = vld.sshfl [vmem:[#allocation1] sm:$0xff pattern:$0x75643120] }
  0x7e   : > { %v888_v37 = vld.sshfl [vmem:[#allocation1 + $0x10] sm:$0xff pattern:$0x75643120]  ;;  %v894_v38 = vunpack.c.l.b16 %v884_v36  ;;  %921 = vst [vmem:[#allocation1] ss:$2 sm:$0xff] %v810_v9 }
  0x7f   : > { %v870_v39 = vrot.slane %v869_v35, 2  ;;  %v892_v40 = vld.sshfl [vmem:[#allocation1 + $0x20] sm:$0xff pattern:$0x75643120]  ;;  %v895_v41 = vunpack.c.l.b16 %v888_v37  ;;  %925 = vst [vmem:[#allocation1 + $0x10] ss:$2 sm:$0xff] %v813_v10 }
  0x80   : > { %v896_v42 = vunpack.c.l.b16 %v892_v40  ;;  %v897_v43 = vrot.slane %v894_v38, 2  ;;  %929 = vst [vmem:[#allocation1 + $0x20] ss:$2 sm:$0xff] %v816_v11  ;;  %v778_v40 = vld [vmem:[%s11452_s17 + $0x8] sm:$0xff] }
  0x81   : > { %v873_v44 = vsel %vm13482_vm0, %v869_v35, %v870_v39  ;;  %v898_v45 = vrot.slane %v895_v41, 1 }
  0x82   : > { %875 = vrot.lane.b32.xlu0 %v873_v44, %s11137_s1  ;;  %s11151_s1 = smov 33  }
  0x83   : > { %v899_v46 = vsel %vm13471_vm1, %v898_v45, %v897_v43 }
  0x84   : > { %v900_v47 = vsel %vm13470_vm2, %v896_v42, %v899_v46  ;;  %v11520_v46 = vpack.c.bf16 %v778_v40, %v778_v40 }
  0x85   : > { %v901_v48 = vpack.c.b16 %v900_v47, %v900_v47  ;;  %v922_v49 = vld.sshfl [vmem:[#allocation1] sm:$0xff pattern:$0x75643120] }
  0x86   : > { %v926_v50 = vld.sshfl [vmem:[#allocation1 + $0x10] sm:$0xff pattern:$0x75643120]  ;;  %v932_v51 = vunpack.c.l.b16 %v922_v49  ;;  %954 = vst.sshfl [vmem:[#allocation1] sm:$0xff pattern:$0x75643120] %v11473_v3 }
  0x87   : > { %v902_v52 = vrot.slane %v901_v48, 2  ;;  %v930_v53 = vld.sshfl [vmem:[#allocation1 + $0x20] sm:$0xff pattern:$0x75643120]  ;;  %v933_v54 = vunpack.c.l.b16 %v926_v50 }
  0x88   : > { %v934_v55 = vunpack.c.l.b16 %v930_v53  ;;  %v935_v56 = vrot.slane %v932_v51, 3  ;;  %957 = vst.sshfl [vmem:[#allocation1 + $0x10] sm:$0xff pattern:$0x75643120] %v11475_v4 }
  0x89   : > { %v905_v57 = vsel %vm13482_vm0, %v901_v48, %v902_v52  ;;  %v936_v58 = vrot.slane %v933_v54, 2  ;;  %960 = vst.sshfl [vmem:[#allocation1 + $0x20] sm:$0xff pattern:$0x75643120] %v11477_v5  ;;  %v786_v48 = vld [vmem:[%s11452_s17 + $0x48] sm:$0xff] }
  0x8a   : > { %907 = vrot.lane.b32.xlu1 %v905_v57, %s11138_s22  ;;  %v938_v59 = vrot.slane %v934_v55, 1  ;;  %v11528_v54 = vpack.c.bf16 %v786_v48, %v786_v48  ;;  %s11152_s22 = smov 67  }
  0x8b   : > { %v937_v60 = vsel %vm13471_vm1, %v936_v58, %v935_v56 }
  0x8c   : > { %v939_v61 = vsel %vm13470_vm2, %v938_v59, %v937_v60  ;;  %v1130_v60 = vrot.slane %v11528_v54, 2 }
  0x8d   : > { %v940_v62 = vpack.c.b16 %v939_v61, %v939_v61  ;;  %v956_v63 = vld [vmem:[#allocation1 + $0x1] ss:$2 sm:$0xff] }
  0x8e   : > { %963 = vst [vmem:[#allocation1] ss:$2 sm:$0xff] %v956_v63 }
  0x8f   : > { %v941_v0 = vrot.slane %v940_v62, 2  ;;  %v959_v1 = vld [vmem:[#allocation1 + $0x11] ss:$2 sm:$0xff] }
  0x90   : > { %v962_v2 = vld [vmem:[#allocation1 + $0x21] ss:$2 sm:$0xff]  ;;  %967 = vst [vmem:[#allocation1 + $0x10] ss:$2 sm:$0xff] %v959_v1  ;;  %v1139_v1 = vsel %vm13482_vm0, %v11528_v54, %v1130_v60 }
  0x91   : > { %v944_v6 = vsel %vm13482_vm0, %v940_v62, %v941_v0  ;;  %971 = vst [vmem:[#allocation1 + $0x20] ss:$2 sm:$0xff] %v962_v2  ;;  %v737_v60 = vld [vmem:[#allocation2] sm:$0xff] }
  0x92   : > { %946 = vrot.lane.b32.xlu1 %v944_v6, %s11139_s10  ;;  %s13472_s10 = smov 7  }
  0x95   : > { %v964_v7 = vld.sshfl [vmem:[#allocation1] sm:$0xff pattern:$0x75643120] }
  0x96   : > { %995 = vst.sshfl [vmem:[#allocation1] sm:$0xff pattern:$0x75643120] %v11473_v3  ;;  %v974_v13 = vunpack.c.l.b16 %v964_v7 }
  0x97   : > { %v968_v8 = vld.sshfl [vmem:[#allocation1 + $0x10] sm:$0xff pattern:$0x75643120] }
  0x98   : > { %v972_v9 = vld.sshfl [vmem:[#allocation1 + $0x20] sm:$0xff pattern:$0x75643120]  ;;  %998 = vst.sshfl [vmem:[#allocation1 + $0x10] sm:$0xff pattern:$0x75643120] %v11475_v4  ;;  %v975_v14 = vunpack.c.l.b16 %v968_v8 }
  0x99   : > { %1001 = vst.sshfl [vmem:[#allocation1 + $0x20] sm:$0xff pattern:$0x75643120] %v11477_v5  ;;  %v976_v15 = vunpack.c.l.b16 %v972_v9 }
  0x9a   : > { %v977_v17 = vrot.slane %v975_v14, 7 }
  0x9b   : > { %v979_v18 = vrot.slane %v976_v15, 6 }
  0x9c   : > { %v978_v20 = vsel %vm13471_vm1, %v977_v17, %v974_v13 }
  0x9d   : > { %v997_v10 = vld [vmem:[#allocation1 + $0x1] ss:$2 sm:$0xff]  ;;  %v980_v22 = vsel %vm13470_vm2, %v979_v18, %v978_v20 }
  0x9e   : > { %1004 = vst [vmem:[#allocation1] ss:$2 sm:$0xff] %v997_v10  ;;  %v981_v23 = vpack.c.b16 %v980_v22, %v980_v22 }
  0x9f   : > { %v1000_v11 = vld [vmem:[#allocation1 + $0x11] ss:$2 sm:$0xff] }
  0xa0   : > { %v1003_v12 = vld [vmem:[#allocation1 + $0x21] ss:$2 sm:$0xff]  ;;  %1008 = vst [vmem:[#allocation1 + $0x10] ss:$2 sm:$0xff] %v1000_v11  ;;  %v982_v24 = vrot.slane %v981_v23, 2 }
  0xa1   : > { %1012 = vst [vmem:[#allocation1 + $0x20] ss:$2 sm:$0xff] %v1003_v12 }
  0xa2   : > { %v985_v26 = vsel %vm13482_vm0, %v981_v23, %v982_v24 }
  0xa3   : > { %987 = vrot.lane.b32.xlu2 %v985_v26, %s11140_s16  ;;  %s13477_s16 = smov 41  }
  0xa5   : > { %v1005_v16 = vld.sshfl [vmem:[#allocation1] sm:$0xff pattern:$0x75643120] }
  0xa6   : > { %1036 = vst.sshfl [vmem:[#allocation1] sm:$0xff pattern:$0x75643120] %v11473_v3  ;;  %v1015_v29 = vunpack.c.l.b16 %v1005_v16 }
  0xa7   : > { %v1009_v19 = vld.sshfl [vmem:[#allocation1 + $0x10] sm:$0xff pattern:$0x75643120] }
  0xa8   : > { %v1013_v21 = vld.sshfl [vmem:[#allocation1 + $0x20] sm:$0xff pattern:$0x75643120]  ;;  %1039 = vst.sshfl [vmem:[#allocation1 + $0x10] sm:$0xff pattern:$0x75643120] %v11475_v4  ;;  %v1016_v30 = vunpack.c.l.b16 %v1009_v19 }
  0xa9   : > { %1042 = vst.sshfl [vmem:[#allocation1 + $0x20] sm:$0xff pattern:$0x75643120] %v11477_v5  ;;  %v1017_v31 = vunpack.c.l.b16 %v1013_v21  ;;  %v1018_v34 = vrot.slane %v1015_v29, 1 }
  0xab   : > { %v1020_v35 = vrot.slane %v1017_v31, 7  ;;  %v1019_v41 = vsel %vm13471_vm1, %v1016_v30, %v1018_v34 }
  0xad   : > { %v1038_v25 = vld [vmem:[#allocation1 + $0x1] ss:$2 sm:$0xff]  ;;  %v1021_v43 = vsel %vm13470_vm2, %v1020_v35, %v1019_v41 }
  0xae   : > { %1045 = vst [vmem:[#allocation1] ss:$2 sm:$0xff] %v1038_v25  ;;  %v1022_v45 = vpack.c.b16 %v1021_v43, %v1021_v43 }
  0xaf   : > { %v1041_v27 = vld [vmem:[#allocation1 + $0x11] ss:$2 sm:$0xff] }
  0xb0   : > { %v1044_v28 = vld [vmem:[#allocation1 + $0x21] ss:$2 sm:$0xff]  ;;  %1049 = vst [vmem:[#allocation1 + $0x10] ss:$2 sm:$0xff] %v1041_v27  ;;  %v1023_v49 = vrot.slane %v1022_v45, 2 }
  0xb1   : > { %1053 = vst [vmem:[#allocation1 + $0x20] ss:$2 sm:$0xff] %v1044_v28 }
  0xb5   : > { %v1046_v32 = vld.sshfl [vmem:[#allocation1] sm:$0xff pattern:$0x75643120] }
  0xb6   : > { %v1056_v33 = vunpack.c.l.b16 %v1046_v32  ;;  %1083 = vst.sshfl [vmem:[#allocation1] sm:$0xff pattern:$0x75643120] %v11473_v3  ;;  %v782_v3 = vld [vmem:[%s11452_s17 + $0x28] sm:$0xff] }
  0xb7   : > { %v1050_v36 = vld.sshfl [vmem:[#allocation1 + $0x10] sm:$0xff pattern:$0x75643120]  ;;  %v11525_v53 = vpack.c.bf16 %v782_v3, %v782_v3 }
  0xb8   : > { %v1054_v37 = vld.sshfl [vmem:[#allocation1 + $0x20] sm:$0xff pattern:$0x75643120]  ;;  %v1057_v38 = vunpack.c.l.b16 %v1050_v36  ;;  %v1059_v39 = vrot.slane %v1056_v33, 2 }
  0xb9   : > { %v1058_v42 = vunpack.c.l.b16 %v1054_v37  ;;  %1086 = vst.sshfl [vmem:[#allocation1 + $0x10] sm:$0xff pattern:$0x75643120] %v11475_v4  ;;  %v1026_v4 = vsel %vm13482_vm0, %v1022_v45, %v1023_v49  ;;  %v1129_v59 = vrot.slane %v11525_v53, 2 }
  0xba   : > { %v1060_v44 = vrot.slane %v1057_v38, 1  ;;  %1089 = vst.sshfl [vmem:[#allocation1 + $0x20] sm:$0xff pattern:$0x75643120] %v11477_v5  ;;  %v1128_v5 = vrot.slane %v11520_v46, 2  ;;  %1028 = vrot.lane.b32.xlu2 %v1026_v4, %s11141_s18  ;;  %s11155_s18 = smov 101  }
  0xbb   : > { %v1136_v0 = vsel %vm13482_vm0, %v11525_v53, %v1129_v59 }
  0xbc   : > { %v1061_v47 = vsel %vm13471_vm1, %v1060_v44, %v1059_v39  ;;  %v1133_v61 = vsel %vm13482_vm0, %v11520_v46, %v1128_v5 }
  0xbd   : > { %v1062_v50 = vsel %vm13470_vm2, %v1058_v42, %v1061_v47  ;;  %v1085_v51 = vld [vmem:[#allocation1 + $0x1] ss:$2 sm:$0xff] }
  0xbe   : > { %v1063_v52 = vpack.c.b16 %v1062_v50, %v1062_v50  ;;  %1092 = vst [vmem:[#allocation1] ss:$2 sm:$0xff] %v1085_v51 }
  0xc0   : > { %v1064_v55 = vrot.slane %v1063_v52, 2  ;;  %v1088_v56 = vld [vmem:[#allocation1 + $0x11] ss:$2 sm:$0xff] }
  0xc1   : > { %v1091_v57 = vld [vmem:[#allocation1 + $0x21] ss:$2 sm:$0xff]  ;;  %1096 = vst [vmem:[#allocation1 + $0x10] ss:$2 sm:$0xff] %v1088_v56 }
  0xc2   : > { %v1067_v58 = vsel %vm13482_vm0, %v1063_v52, %v1064_v55  ;;  %1100 = vst [vmem:[#allocation1 + $0x20] ss:$2 sm:$0xff] %v1091_v57 }
  0xc3   : > { %1069 = vrot.lane.b32.xlu0 %v1067_v58, %s11142_s3  ;;  %s11156_s3 = smov 109  }
  0xc5   : > { %v1093_v62 = vld.sshfl [vmem:[#allocation1] sm:$0xff pattern:$0x75643120] }
  0xc6   : > { %v1103_v63 = vunpack.c.l.b16 %v1093_v62  ;;  %1140 = vst [vmem:[#allocation1] ss:$2 sm:$0xff] %v1133_v61 }
  0xc8   : > { %v1097_v2 = vld.sshfl [vmem:[#allocation1 + $0x10] sm:$0xff pattern:$0x75643120]  ;;  %v1106_v8 = vrot.slane %v1103_v63, 3 }
  0xc9   : > { %v1101_v6 = vld.sshfl [vmem:[#allocation1 + $0x20] sm:$0xff pattern:$0x75643120]  ;;  %v1104_v7 = vunpack.c.l.b16 %v1097_v2  ;;  %1144 = vst [vmem:[#allocation1 + $0x10] ss:$2 sm:$0xff] %v1136_v0 }
  0xca   : > { %v1105_v9 = vunpack.c.l.b16 %v1101_v6  ;;  %1148 = vst [vmem:[#allocation1 + $0x20] ss:$2 sm:$0xff] %v1139_v1 }
  0xcb   : > { %v1107_v10 = vrot.slane %v1104_v7, 2 }
  0xcc   : > { %v1109_v11 = vrot.slane %v1105_v9, 1 }
  0xcd   : > { %v1108_v12 = vsel %vm13471_vm1, %v1107_v10, %v1106_v8  ;;  %v1141_v13 = vld.sshfl [vmem:[#allocation1] sm:$0xff pattern:$0x75643120] }
  0xce   : > { %v1110_v14 = vsel %vm13470_vm2, %v1109_v11, %v1108_v12  ;;  %1172 = vst [vmem:[#allocation1] ss:$2 sm:$0xff] %v1133_v61  ;;  %v1151_v20 = vunpack.c.l.b16 %v1141_v13 }
  0xcf   : > { %v1111_v15 = vpack.c.b16 %v1110_v14, %v1110_v14 }
  0xd0   : > { %v1145_v16 = vld.sshfl [vmem:[#allocation1 + $0x10] sm:$0xff pattern:$0x75643120] }
  0xd1   : > { %v1112_v17 = vrot.slane %v1111_v15, 2  ;;  %v1149_v18 = vld.sshfl [vmem:[#allocation1 + $0x20] sm:$0xff pattern:$0x75643120]  ;;  %1176 = vst [vmem:[#allocation1 + $0x10] ss:$2 sm:$0xff] %v1136_v0  ;;  %v1152_v21 = vunpack.c.l.b16 %v1145_v16 }
  0xd2   : > { %1180 = vst [vmem:[#allocation1 + $0x20] ss:$2 sm:$0xff] %v1139_v1  ;;  %v1153_v22 = vunpack.c.l.b16 %v1149_v18 }
  0xd3   : > { %v1115_v19 = vsel %vm13482_vm0, %v1111_v15, %v1112_v17  ;;  %v1154_v24 = vrot.slane %v1152_v21, 7 }
  0xd4   : > { %1117 = vrot.lane.b32.xlu1 %v1115_v19, %s11143_s25  ;;  %v1156_v25 = vrot.slane %v1153_v22, 6 }
  0xd5   : > { %v1173_v23 = vld.sshfl [vmem:[#allocation1] sm:$0xff pattern:$0x75643120]  ;;  %v1155_v27 = vsel %vm13471_vm1, %v1154_v24, %v1151_v20 }
  0xd6   : > { %v1183_v26 = vunpack.c.l.b16 %v1173_v23  ;;  %1204 = vst [vmem:[#allocation1] ss:$2 sm:$0xff] %v1133_v61  ;;  %v1157_v30 = vsel %vm13470_vm2, %v1156_v25, %v1155_v27 }
  0xd7   : > { %v1158_v33 = vpack.c.b16 %v1157_v30, %v1157_v30 }
  0xd8   : > { %v1177_v28 = vld.sshfl [vmem:[#allocation1 + $0x10] sm:$0xff pattern:$0x75643120]  ;;  %v1186_v29 = vrot.slane %v1183_v26, 1 }
  0xd9   : > { %v1181_v31 = vld.sshfl [vmem:[#allocation1 + $0x20] sm:$0xff pattern:$0x75643120]  ;;  %v1184_v32 = vunpack.c.l.b16 %v1177_v28  ;;  %1208 = vst [vmem:[#allocation1 + $0x10] ss:$2 sm:$0xff] %v1136_v0  ;;  %v1159_v36 = vrot.slane %v1158_v33, 2 }
  0xda   : > { %v1185_v34 = vunpack.c.l.b16 %v1181_v31  ;;  %1212 = vst [vmem:[#allocation1 + $0x20] ss:$2 sm:$0xff] %v1139_v1 }
  0xdb   : > { %v1187_v35 = vsel %vm13471_vm1, %v1184_v32, %v1186_v29  ;;  %v1162_v39 = vsel %vm13482_vm0, %v1158_v33, %v1159_v36 }
  0xdc   : > { %v1188_v37 = vrot.slane %v1185_v34, 7  ;;  %1164 = vrot.lane.b32.xlu2 %v1162_v39, %s13475_s29  ;;  %s11171_s29 = smov 60  }
  0xdd   : > { %v1205_v38 = vld.sshfl [vmem:[#allocation1] sm:$0xff pattern:$0x75643120] }
  0xde   : > { %v1189_v40 = vsel %vm13470_vm2, %v1188_v37, %v1187_v35  ;;  %v1215_v41 = vunpack.c.l.b16 %v1205_v38  ;;  %1242 = vst [vmem:[#allocation1] ss:$2 sm:$0xff] %v1133_v61 }
  0xdf   : > { %v1190_v42 = vpack.c.b16 %v1189_v40, %v1189_v40 }
  0xe0   : > { %v1209_v43 = vld.sshfl [vmem:[#allocation1 + $0x10] sm:$0xff pattern:$0x75643120]  ;;  %v1218_v44 = vrot.slane %v1215_v41, 2 }
  0xe1   : > { %v1191_v45 = vrot.slane %v1190_v42, 2  ;;  %v1213_v3 = vld.sshfl [vmem:[#allocation1 + $0x20] sm:$0xff pattern:$0x75643120]  ;;  %v1216_v47 = vunpack.c.l.b16 %v1209_v43  ;;  %1246 = vst [vmem:[#allocation1 + $0x10] ss:$2 sm:$0xff] %v1136_v0 }
  0xe2   : > { %v1217_v48 = vunpack.c.l.b16 %v1213_v3  ;;  %1250 = vst [vmem:[#allocation1 + $0x20] ss:$2 sm:$0xff] %v1139_v1  ;;  %v738_v0 = vsel %vm736_vm4, 0, %v737_v60 }
  0xe3   : > { %v1194_v49 = vsel %vm13482_vm0, %v1190_v42, %v1191_v45  ;;  %v1219_v50 = vrot.slane %v1216_v47, 1  ;;  %739 = vst [vmem:[#allocation2] sm:$0xff] %v738_v0 }
  0xe4   : > { %1196 = vrot.lane.b32.xlu0 %v1194_v49, %s11145_s2  ;;  %s11157_s2 = smov 75  }
  0xe5   : > { %v1220_v51 = vsel %vm13471_vm1, %v1219_v50, %v1218_v44  ;;  %v1243_v52 = vld.sshfl [vmem:[#allocation1] sm:$0xff pattern:$0x75643120] }
  0xe6   : > { %v1221_v4 = vsel %vm13470_vm2, %v1217_v48, %v1220_v51  ;;  %1275 = vst.sshfl [vmem:[#allocation1] sm:$0xff pattern:$0x75643120] %v11520_v46  ;;  %v1253_v1 = vunpack.c.l.b16 %v1243_v52 }
  0xe7   : > { %v1222_v55 = vpack.c.b16 %v1221_v4, %v1221_v4 }
  0xe8   : > { %v1247_v56 = vld.sshfl [vmem:[#allocation1 + $0x10] sm:$0xff pattern:$0x75643120]  ;;  %v1256_v9 = vrot.slane %v1253_v1, 3 }
  0xe9   : > { %v1223_v57 = vrot.slane %v1222_v55, 2  ;;  %v1251_v58 = vld.sshfl [vmem:[#allocation1 + $0x20] sm:$0xff pattern:$0x75643120]  ;;  %v1254_v2 = vunpack.c.l.b16 %v1247_v56 }
  0xea   : > { %1278 = vst.sshfl [vmem:[#allocation1 + $0x10] sm:$0xff pattern:$0x75643120] %v11525_v53  ;;  %v1255_v7 = vunpack.c.l.b16 %v1251_v58  ;;  %v848_v16 = vld [vmem:[#allocation2] sm:$0x3] }
  0xeb   : > { %v1226_v61 = vsel %vm13482_vm0, %v1222_v55, %v1223_v57  ;;  %1281 = vst.sshfl [vmem:[#allocation1 + $0x20] sm:$0xff pattern:$0x75643120] %v11528_v54  ;;  %v1257_v10 = vrot.slane %v1254_v2, 2 }
  0xec   : > { %1228 = vrot.lane.b32.xlu1 %v1226_v61, %s11146_s14  ;;  %v844_v11 = vpop.permute.xlu0 %843  ;;  %v1259_v12 = vrot.slane %v1255_v7, 1  ;;  %s11159_s14 = smov 49  }
  0xed   : > { %v1277_v63 = vld [vmem:[#allocation1 + $0x1] ss:$2 sm:$0xff]  ;;  %v1258_v13 = vsel %vm13471_vm1, %v1257_v10, %v1256_v9  ;;  %v849_v18 = vsel %vm847_vm8, %v844_v11, %v848_v16  ;;  %vm910_vm8 = vcmask 842752  }
  0xee   : > { %1284 = vst [vmem:[#allocation1] ss:$2 sm:$0xff] %v1277_v63  ;;  %v1260_v15 = vsel %vm13470_vm2, %v1259_v12, %v1258_v13 }
  0xef   : > { %v1261_v17 = vpack.c.b16 %v1260_v15, %v1260_v15  ;;  %850 = vst [vmem:[#allocation2] sm:$0x3] %v849_v18 }
  0xf1   : > { %v1280_v6 = vld [vmem:[#allocation1 + $0x11] ss:$2 sm:$0xff]  ;;  %v1262_v19 = vrot.slane %v1261_v17, 2 }
  0xf2   : > { %v1283_v8 = vld [vmem:[#allocation1 + $0x21] ss:$2 sm:$0xff]  ;;  %1288 = vst [vmem:[#allocation1 + $0x10] ss:$2 sm:$0xff] %v1280_v6 }
  0xf3   : > { %1292 = vst [vmem:[#allocation1 + $0x20] ss:$2 sm:$0xff] %v1283_v8  ;;  %v1265_v24 = vsel %vm13482_vm0, %v1261_v17, %v1262_v19  ;;  %v779_v8 = vld [vmem:[%s11452_s17 + $0x10] sm:$0xff] }
  0xf4   : > { %1267 = vrot.lane.b32.xlu2 %v1265_v24, %s13468_s26  ;;  %v876_v29 = vpop.permute.xlu0 %875  ;;  %v11618_v15 = vpack.c.bf16 %v779_v8, %v779_v8  ;;  %s11167_s26 = smov 65  }
  0xf5   : > { %v1285_v14 = vld.sshfl [vmem:[#allocation1] sm:$0xff pattern:$0x75643120] }
  0xf6   : > { %1316 = vst.sshfl [vmem:[#allocation1] sm:$0xff pattern:$0x75643120] %v11520_v46  ;;  %v1295_v22 = vunpack.c.l.b16 %v1285_v14  ;;  %v880_v32 = vld [vmem:[#allocation2] sm:$0x3] }
  0xf7   : > { %v881_v35 = vsel %vm879_vm10, %v876_v29, %v880_v32  ;;  %vm917_vm10 = vmor %vm916_vm9, %vm11596_vm7  ;;  %vm990_vm7 = vcmask 607576   ;;  %vm1031_vm9 = vcmask 886376  }
  0xf8   : > { %882 = vst [vmem:[#allocation2] sm:$0x3] %v881_v35 }
  0xf9   : > { %v1289_v20 = vld.sshfl [vmem:[#allocation1 + $0x10] sm:$0xff pattern:$0x75643120] }
  0xfa   : > { %v1293_v21 = vld.sshfl [vmem:[#allocation1 + $0x20] sm:$0xff pattern:$0x75643120]  ;;  %v1296_v23 = vunpack.c.l.b16 %v1289_v20  ;;  %1319 = vst.sshfl [vmem:[#allocation1 + $0x10] sm:$0xff pattern:$0x75643120] %v11525_v53 }
  0xfb   : > { %v1297_v25 = vunpack.c.l.b16 %v1293_v21  ;;  %1322 = vst.sshfl [vmem:[#allocation1 + $0x20] sm:$0xff pattern:$0x75643120] %v11528_v54  ;;  %v787_v20 = vld [vmem:[%s11452_s17 + $0x50] sm:$0xff] }
  0xfc   : > { %v1298_v26 = vrot.slane %v1296_v23, 7  ;;  %v908_v33 = vpop.permute.xlu1 %907  ;;  %v1449_v23 = vrot.slane %v11618_v15, 2 }
  0xfd   : > { %v1300_v27 = vrot.slane %v1297_v25, 6  ;;  %v1318_v28 = vld [vmem:[#allocation1 + $0x1] ss:$2 sm:$0xff]  ;;  %v909_v40 = vrot.slane %v908_v33, 6  ;;  %v988_v13 = vpop.permute.xlu2 %987 }
  0xfe   : > { %v1299_v30 = vsel %vm13471_vm1, %v1298_v26, %v1295_v22  ;;  %1325 = vst [vmem:[#allocation1] ss:$2 sm:$0xff] %v1318_v28  ;;  %v11632_v29 = vsel %vm13482_vm0, %v11618_v15, %v1449_v23 }
  0xff   : > { %v1301_v31 = vsel %vm13470_vm2, %v1300_v27, %v1299_v30  ;;  %v911_v44 = vsel %vm910_vm8, %v909_v40, %v908_v33  ;;  %v918_v3 = vld [vmem:[#allocation2] sm:$0xf]  ;;  %vm991_vm8 = vmand %vm990_vm7, %vm723_vm3 }
 0x100   : > { %v1302_v34 = vpack.c.b16 %v1301_v31, %v1301_v31  ;;  %v919_v48 = vsel %vm917_vm10, %v911_v44, %v918_v3  ;;  %vm1032_vm10 = vmand %vm1031_vm9, %vm723_vm3  ;;  %vm1072_vm9 = vcmask 908288  }
 0x101   : > { %v1321_v36 = vld [vmem:[#allocation1 + $0x11] ss:$2 sm:$0xff]  ;;  %920 = vst [vmem:[#allocation2] sm:$0xf] %v919_v48  ;;  %vm11650_vm7 = vmand %vm1075_vm11, %vm723_vm3  ;;  %vm1120_vm11 = vcmask 394376  }
 0x102   : > { %v1303_v37 = vrot.slane %v1302_v34, 2  ;;  %v1324_v38 = vld [vmem:[#allocation1 + $0x21] ss:$2 sm:$0xff]  ;;  %1329 = vst [vmem:[#allocation1 + $0x10] ss:$2 sm:$0xff] %v1321_v36 }
 0x103   : > { %1333 = vst [vmem:[#allocation1 + $0x20] ss:$2 sm:$0xff] %v1324_v38 }
 0x104   : > { %v1306_v41 = vsel %vm13482_vm0, %v1302_v34, %v1303_v37  ;;  %v947_v60 = vpop.permute.xlu1 %946 }
 0x105   : > { %1308 = vrot.lane.b32.xlu0 %v1306_v41, %s11148_s11  ;;  %v1326_v42 = vld.sshfl [vmem:[#allocation1] sm:$0xff pattern:$0x75643120] }
 0x106   : > { %v1336_v43 = vunpack.c.l.b16 %v1326_v42  ;;  %1357 = vst.sshfl [vmem:[#allocation1] sm:$0xff pattern:$0x75643120] %v11520_v46 }
 0x108   : > { %v1339_v45 = vrot.slane %v1336_v43, 1  ;;  %v951_v0 = vld [vmem:[#allocation2 + $0x2] sm:$0x3] }
 0x109   : > { %v1330_v47 = vld.sshfl [vmem:[#allocation1 + $0x10] sm:$0xff pattern:$0x75643120]  ;;  %v952_v2 = vsel %vm950_vm13, %v947_v60, %v951_v0  ;;  %vm1077_vm13 = vcmask 117762  }
 0x10a   : > { %v1334_v49 = vld.sshfl [vmem:[#allocation1 + $0x20] sm:$0xff pattern:$0x75643120]  ;;  %v1337_v50 = vunpack.c.l.b16 %v1330_v47  ;;  %1360 = vst.sshfl [vmem:[#allocation1 + $0x10] sm:$0xff pattern:$0x75643120] %v11525_v53 }
 0x10b   : > { %v1338_v51 = vunpack.c.l.b16 %v1334_v49  ;;  %1363 = vst.sshfl [vmem:[#allocation1 + $0x20] sm:$0xff pattern:$0x75643120] %v11528_v54 }
 0x10c   : > { %v1340_v52 = vsel %vm13471_vm1, %v1337_v50, %v1339_v45  ;;  %953 = vst [vmem:[#allocation2 + $0x2] sm:$0x3] %v952_v2 }
 0x10d   : > { %v1341_v4 = vrot.slane %v1338_v51, 7  ;;  %v1359_v55 = vld [vmem:[#allocation1 + $0x1] ss:$2 sm:$0xff] }
 0x10e   : > { %1366 = vst [vmem:[#allocation1] ss:$2 sm:$0xff] %v1359_v55 }
 0x10f   : > { %v1342_v56 = vsel %vm13470_vm2, %v1341_v4, %v1340_v52 }
 0x110   : > { %v1343_v57 = vpack.c.b16 %v1342_v56, %v1342_v56 }
 0x111   : > { %v1362_v58 = vld [vmem:[#allocation1 + $0x11] ss:$2 sm:$0xff] }
 0x112   : > { %v1344_v61 = vrot.slane %v1343_v57, 2  ;;  %v1365_v63 = vld [vmem:[#allocation1 + $0x21] ss:$2 sm:$0xff]  ;;  %1370 = vst [vmem:[#allocation1 + $0x10] ss:$2 sm:$0xff] %v1362_v58 }
 0x113   : > { %1374 = vst [vmem:[#allocation1 + $0x20] ss:$2 sm:$0xff] %v1365_v63  ;;  %v992_v17 = vld [vmem:[#allocation2 + $0x2] sm:$0x3] }
 0x114   : > { %v1347_v1 = vsel %vm13482_vm0, %v1343_v57, %v1344_v61  ;;  %v993_v19 = vsel %vm991_vm8, %v988_v13, %v992_v17  ;;  %v1029_v31 = vpop.permute.xlu2 %1028  ;;  %vm11655_vm8 = vmand %vm1077_vm13, %vm726_vm6 }
 0x115   : > { %1349 = vrot.lane.b32.xlu1 %v1347_v1, %s11149_s9  ;;  %v1367_v6 = vld.sshfl [vmem:[#allocation1] sm:$0xff pattern:$0x75643120]  ;;  %994 = vst [vmem:[#allocation2 + $0x2] sm:$0x3] %v993_v19  ;;  %vm1121_vm13 = vmand %vm1120_vm11, %vm723_vm3  ;;  %vm1234_vm11 = vcmask 1042360  }
 0x116   : > { %v1377_v7 = vunpack.c.l.b16 %v1367_v6  ;;  %1404 = vst.sshfl [vmem:[#allocation1] sm:$0xff pattern:$0x75643120] %v11520_v46  ;;  %v783_v46 = vld [vmem:[%s11452_s17 + $0x30] sm:$0xff] }
 0x118   : > { %v1380_v10 = vrot.slane %v1377_v7, 2 }
 0x119   : > { %v1371_v9 = vld.sshfl [vmem:[#allocation1 + $0x10] sm:$0xff pattern:$0x75643120] }
 0x11a   : > { %v1375_v11 = vld.sshfl [vmem:[#allocation1 + $0x20] sm:$0xff pattern:$0x75643120]  ;;  %v1378_v12 = vunpack.c.l.b16 %v1371_v9  ;;  %1407 = vst.sshfl [vmem:[#allocation1 + $0x10] sm:$0xff pattern:$0x75643120] %v11525_v53  ;;  %v11624_v53 = vpack.c.bf16 %v783_v46, %v783_v46 }
 0x11b   : > { %v1379_v14 = vunpack.c.l.b16 %v1375_v11  ;;  %1410 = vst.sshfl [vmem:[#allocation1 + $0x20] sm:$0xff pattern:$0x75643120] %v11528_v54  ;;  %v11627_v54 = vpack.c.bf16 %v787_v20, %v787_v20 }
 0x11c   : > { %v1381_v16 = vrot.slane %v1378_v12, 1  ;;  %v1450_v28 = vrot.slane %v11624_v53, 2  ;;  %v1033_v34 = vld [vmem:[#allocation2 + $0x2] sm:$0x3] }
 0x11d   : > { %v1406_v18 = vld [vmem:[#allocation1 + $0x1] ss:$2 sm:$0xff]  ;;  %v1451_v32 = vrot.slane %v11627_v54, 2  ;;  %v1034_v36 = vsel %vm1032_vm10, %v1029_v31, %v1033_v34  ;;  %vm1079_vm10 = vmor %vm11655_vm8, %vm11650_vm7  ;;  %vm1167_vm7 = vcmask 673176  }
 0x11e   : > { %v1382_v21 = vsel %vm13471_vm1, %v1381_v16, %v1380_v10  ;;  %1413 = vst [vmem:[#allocation1] ss:$2 sm:$0xff] %v1406_v18  ;;  %v1457_v37 = vsel %vm13482_vm0, %v11624_v53, %v1450_v28  ;;  %vm11682_vm8 = vmand %vm1167_vm7, %vm723_vm3 }
 0x11f   : > { %v1383_v22 = vsel %vm13470_vm2, %v1379_v14, %v1382_v21  ;;  %1035 = vst [vmem:[#allocation2 + $0x2] sm:$0x3] %v1034_v36  ;;  %v11643_v38 = vsel %vm13482_vm0, %v11627_v54, %v1451_v32  ;;  %vm1235_vm7 = vmand %vm1234_vm11, %vm723_vm3 }
 0x120   : > { %v1384_v24 = vpack.c.b16 %v1383_v22, %v1383_v22 }
 0x121   : > { %v1409_v25 = vld [vmem:[#allocation1 + $0x11] ss:$2 sm:$0xff] }
 0x122   : > { %v1385_v26 = vrot.slane %v1384_v24, 2  ;;  %v1412_v27 = vld [vmem:[#allocation1 + $0x21] ss:$2 sm:$0xff]  ;;  %1417 = vst [vmem:[#allocation1 + $0x10] ss:$2 sm:$0xff] %v1409_v25 }
 0x123   : > { %1421 = vst [vmem:[#allocation1 + $0x20] ss:$2 sm:$0xff] %v1412_v27 }
 0x124   : > { %v1388_v30 = vsel %vm13482_vm0, %v1384_v24, %v1385_v26 }
 0x125   : > { %1390 = vrot.lane.b32.xlu2 %v1388_v30, %s11150_s13  ;;  %v1414_v33 = vld.sshfl [vmem:[#allocation1] sm:$0xff pattern:$0x75643120] }
 0x126   : > { %v1424_v35 = vunpack.c.l.b16 %v1414_v33  ;;  %1461 = vst [vmem:[#allocation1] ss:$2 sm:$0xff] %v11632_v29  ;;  %v1080_v6 = vld [vmem:[#allocation2 + $0x2] sm:$0xf] }
 0x128   : > { %v1427_v42 = vrot.slane %v1424_v35, 3 }
 0x129   : > { %v1418_v39 = vld.sshfl [vmem:[#allocation1 + $0x10] sm:$0xff pattern:$0x75643120] }
 0x12a   : > { %v1422_v40 = vld.sshfl [vmem:[#allocation1 + $0x20] sm:$0xff pattern:$0x75643120]  ;;  %v1425_v41 = vunpack.c.l.b16 %v1418_v39  ;;  %1465 = vst [vmem:[#allocation1 + $0x10] ss:$2 sm:$0xff] %v1457_v37 }
 0x12b   : > { %v1426_v43 = vunpack.c.l.b16 %v1422_v40  ;;  %1469 = vst [vmem:[#allocation1 + $0x20] ss:$2 sm:$0xff] %v11643_v38 }
 0x12c   : > { %v1428_v44 = vrot.slane %v1425_v41, 2 }
 0x12d   : > { %v1430_v45 = vrot.slane %v1426_v43, 1  ;;  %v1462_v3 = vld.sshfl [vmem:[#allocation1] sm:$0xff pattern:$0x75643120] }
 0x12e   : > { %v1429_v47 = vsel %vm13471_vm1, %v1428_v44, %v1427_v42  ;;  %1493 = vst [vmem:[#allocation1] ss:$2 sm:$0xff] %v11632_v29  ;;  %v1472_v55 = vunpack.c.l.b16 %v1462_v3 }
 0x12f   : > { %v1431_v48 = vsel %vm13470_vm2, %v1430_v45, %v1429_v47 }
 0x130   : > { %v1432_v49 = vpack.c.b16 %v1431_v48, %v1431_v48 }
 0x131   : > { %v1466_v50 = vld.sshfl [vmem:[#allocation1 + $0x10] sm:$0xff pattern:$0x75643120] }
 0x132   : > { %v1433_v52 = vrot.slane %v1432_v49, 2  ;;  %v1470_v4 = vld.sshfl [vmem:[#allocation1 + $0x20] sm:$0xff pattern:$0x75643120]  ;;  %v1473_v56 = vunpack.c.l.b16 %v1466_v50  ;;  %1497 = vst [vmem:[#allocation1 + $0x10] ss:$2 sm:$0xff] %v1457_v37 }
 0x133   : > { %v1474_v58 = vunpack.c.l.b16 %v1470_v4  ;;  %1501 = vst [vmem:[#allocation1 + $0x20] ss:$2 sm:$0xff] %v11643_v38 }
 0x134   : > { %v1436_v60 = vsel %vm13482_vm0, %v1432_v49, %v1433_v52  ;;  %v1475_v61 = vrot.slane %v1473_v56, 7 }
 0x135   : > { %v1070_v63 = vpop.permute.xlu0 %1069  ;;  %1438 = vrot.lane.b32.xlu0 %v1436_v60, %s11151_s1  ;;  %v1477_v0 = vrot.slane %v1474_v58, 6  ;;  %v11662_v1 = vld.sshfl [vmem:[#allocation1] sm:$0xff pattern:$0x75643120] }
 0x136   : > { %v1071_v2 = vrot.slane %v1070_v63, 6  ;;  %v1476_v7 = vsel %vm13471_vm1, %v1475_v61, %v1472_v55  ;;  %1531 = vst [vmem:[#allocation1] ss:$2 sm:$0xff] %v11632_v29  ;;  %v1165_v42 = vpop.permute.xlu2 %1164 }
 0x137   : > { %v1478_v8 = vsel %vm13470_vm2, %v1477_v0, %v1476_v7 }
 0x138   : > { %v1073_v9 = vsel %vm1072_vm9, %v1071_v2, %v1070_v63  ;;  %v1479_v10 = vpack.c.b16 %v1478_v8, %v1478_v8  ;;  %vm1199_vm9 = vcmask 951976  }
 0x139   : > { %v1081_v11 = vsel %vm1079_vm10, %v1073_v9, %v1080_v6  ;;  %v1498_v12 = vld.sshfl [vmem:[#allocation1 + $0x10] sm:$0xff pattern:$0x75643120]  ;;  %vm1200_vm10 = vmand %vm1199_vm9, %vm723_vm3  ;;  %vm1231_vm9 = vcmask 973824  }
 0x13a   : > { %1082 = vst [vmem:[#allocation2 + $0x2] sm:$0xf] %v1081_v11  ;;  %v1480_v13 = vrot.slane %v1479_v10, 2  ;;  %v1502_v14 = vld.sshfl [vmem:[#allocation1 + $0x20] sm:$0xff pattern:$0x75643120]  ;;  %v1505_v39 = vunpack.c.l.b16 %v1498_v12 }
 0x13b   : > { %1535 = vst [vmem:[#allocation1 + $0x10] ss:$2 sm:$0xff] %v1457_v37  ;;  %v1506_v40 = vunpack.c.l.b16 %v1502_v14 }
 0x13c   : > { %v1483_v16 = vsel %vm13482_vm0, %v1479_v10, %v1480_v13  ;;  %1539 = vst [vmem:[#allocation1 + $0x20] ss:$2 sm:$0xff] %v11643_v38 }
 0x13d   : > { %1485 = vrot.lane.b32.xlu1 %v1483_v16, %s11152_s22  ;;  %v1532_v17 = vld.sshfl [vmem:[#allocation1] sm:$0xff pattern:$0x75643120]  ;;  %v1509_v48 = vrot.slane %v1506_v40, 7  ;;  %s11160_s22 = smov 83  }
 0x13e   : > { %1563 = vst [vmem:[#allocation1] ss:$2 sm:$0xff] %v11632_v29  ;;  %v1542_v46 = vunpack.c.l.b16 %v1532_v17 }
 0x140   : > { %v1545_v21 = vrot.slane %v1542_v46, 2 }
 0x141   : > { %v1122_v22 = vld [vmem:[#allocation2 + $0x4] sm:$0x3] }
 0x142   : > { %v1536_v18 = vld.sshfl [vmem:[#allocation1 + $0x10] sm:$0xff pattern:$0x75643120] }
 0x143   : > { %v1540_v19 = vld.sshfl [vmem:[#allocation1 + $0x20] sm:$0xff pattern:$0x75643120]  ;;  %v1543_v20 = vunpack.c.l.b16 %v1536_v18  ;;  %1567 = vst [vmem:[#allocation1 + $0x10] ss:$2 sm:$0xff] %v1457_v37 }
 0x144   : > { %v1544_v23 = vunpack.c.l.b16 %v1540_v19  ;;  %1571 = vst [vmem:[#allocation1 + $0x20] ss:$2 sm:$0xff] %v11643_v38  ;;  %v1504_v38 = vunpack.c.l.b16 %v11662_v1 }
 0x145   : > { %v1546_v24 = vrot.slane %v1543_v20, 1  ;;  %v1564_v25 = vld.sshfl [vmem:[#allocation1] sm:$0xff pattern:$0x75643120] }
 0x146   : > { %v1118_v26 = vpop.permute.xlu1 %1117  ;;  %1596 = vst.sshfl [vmem:[#allocation1] sm:$0xff pattern:$0x75643120] %v11618_v15  ;;  %v1574_v29 = vunpack.c.l.b16 %v1564_v25  ;;  %v1507_v47 = vrot.slane %v1504_v38, 1 }
 0x147   : > { %v1123_v27 = vsel %vm1121_vm13, %v1118_v26, %v1122_v22  ;;  %v1547_v28 = vsel %vm13471_vm1, %v1546_v24, %v1545_v21  ;;  %vm1236_vm13 = vcmask 183298   ;;  %v740_v22 = vld [vmem:[#allocation2 + $0x8] sm:$0xff] }
 0x148   : > { %1124 = vst [vmem:[#allocation2 + $0x4] sm:$0x3] %v1123_v27  ;;  %v1548_v30 = vsel %vm13470_vm2, %v1544_v23, %v1547_v28  ;;  %v1577_v36 = vrot.slane %v1574_v29, 3  ;;  %v1508_v4 = vsel %vm13471_vm1, %v1505_v39, %v1507_v47  ;;  %v741_v25 = vsel %vm736_vm4, 0, %v740_v22  ;;  %vm11750_vm4 = vmand %vm1352_vm15, %vm723_vm3 }
 0x149   : > { %v1549_v31 = vpack.c.b16 %v1548_v30, %v1548_v30  ;;  %v1510_v56 = vsel %vm13470_vm2, %v1509_v48, %v1508_v4  ;;  %742 = vst [vmem:[#allocation2 + $0x8] sm:$0xff] %v741_v25  ;;  %vm1488_vm15 = vcmask 804376  }
 0x14a   : > { %v1568_v32 = vld.sshfl [vmem:[#allocation1 + $0x10] sm:$0xff pattern:$0x75643120]  ;;  %v1511_v57 = vpack.c.b16 %v1510_v56, %v1510_v56 }
 0x14b   : > { %v1550_v33 = vrot.slane %v1549_v31, 2  ;;  %v1572_v34 = vld.sshfl [vmem:[#allocation1 + $0x20] sm:$0xff pattern:$0x75643120]  ;;  %v1575_v35 = vunpack.c.l.b16 %v1568_v32 }
 0x14c   : > { %v1576_v37 = vunpack.c.l.b16 %v1572_v34  ;;  %1599 = vst.sshfl [vmem:[#allocation1 + $0x10] sm:$0xff pattern:$0x75643120] %v11624_v53  ;;  %v1512_v61 = vrot.slane %v1511_v57, 2 }
 0x14d   : > { %v1553_v43 = vsel %vm13482_vm0, %v1549_v31, %v1550_v33  ;;  %v1578_v44 = vrot.slane %v1575_v35, 2  ;;  %v1598_v45 = vld [vmem:[#allocation1 + $0x1] ss:$2 sm:$0xff]  ;;  %1602 = vst.sshfl [vmem:[#allocation1 + $0x20] sm:$0xff pattern:$0x75643120] %v11627_v54 }
 0x14e   : > { %1555 = vrot.lane.b32.xlu0 %v1553_v43, %s13472_s10  ;;  %v1580_v3 = vrot.slane %v1576_v37, 1  ;;  %1605 = vst [vmem:[#allocation1] ss:$2 sm:$0xff] %v1598_v45  ;;  %v1515_v6 = vsel %vm13482_vm0, %v1511_v57, %v1512_v61  ;;  %v1268_v21 = vpop.permute.xlu2 %1267  ;;  %s11169_s10 = smov 94  }
 0x14f   : > { %v1169_v49 = vld [vmem:[#allocation2 + $0x4] sm:$0x3]  ;;  %v1579_v50 = vsel %vm13471_vm1, %v1578_v44, %v1577_v36  ;;  %1517 = vrot.lane.b32.xlu2 %v1515_v6, %s11155_s18  ;;  %s13474_s18 = smov 117  }
 0x150   : > { %v1170_v51 = vsel %vm11682_vm8, %v1165_v42, %v1169_v49  ;;  %v1581_v52 = vsel %vm13470_vm2, %v1580_v3, %v1579_v50  ;;  %vm1237_vm8 = vmand %vm1236_vm13, %vm726_vm6  ;;  %vm1396_vm13 = vcmask 1042424  }
 0x151   : > { %1171 = vst [vmem:[#allocation2 + $0x4] sm:$0x3] %v1170_v51  ;;  %v1582_v55 = vpack.c.b16 %v1581_v52, %v1581_v52  ;;  %vm1238_vm12 = vmor %vm1237_vm8, %vm1235_vm7  ;;  %vm1398_vm7 = vcmask 248834  }
 0x152   : > { %vm11762_vm8 = vmand %vm1396_vm13, %vm723_vm3  ;;  %vm1523_vm13 = vcmask 1042216  }
 0x153   : > { %v1583_v58 = vrot.slane %v1582_v55, 2  ;;  %v1601_v60 = vld [vmem:[#allocation1 + $0x11] ss:$2 sm:$0xff] }
 0x154   : > { %1609 = vst [vmem:[#allocation1 + $0x10] ss:$2 sm:$0xff] %v1601_v60  ;;  %v1604_v63 = vld [vmem:[#allocation1 + $0x21] ss:$2 sm:$0xff] }
 0x155   : > { %v1586_v0 = vsel %vm13482_vm0, %v1582_v55, %v1583_v58  ;;  %v11696_v1 = vld.sshfl [vmem:[#allocation1] sm:$0xff pattern:$0x75643120]  ;;  %1613 = vst [vmem:[#allocation1 + $0x20] ss:$2 sm:$0xff] %v1604_v63  ;;  %v780_v55 = vld [vmem:[%s11452_s17 + $0x18] sm:$0xff] }
 0x156   : > { %v1197_v2 = vpop.permute.xlu0 %1196  ;;  %1588 = vrot.lane.b32.xlu1 %v1586_v0, %s13477_s16  ;;  %1637 = vst.sshfl [vmem:[#allocation1] sm:$0xff pattern:$0x75643120] %v11618_v15  ;;  %v1616_v59 = vunpack.c.l.b16 %v11696_v1  ;;  %v11732_v58 = vpack.c.bf16 %v780_v55, %v780_v55  ;;  %v784_v1 = vld [vmem:[%s11452_s17 + $0x38] sm:$0xff]  ;;  %s11172_s16 = smov 58  }
 0x158   : > { %v1201_v7 = vld [vmem:[#allocation2 + $0x4] sm:$0x3]  ;;  %v1770_v6 = vrot.slane %v11732_v58, 2 }
 0x159   : > { %v1202_v8 = vsel %vm1200_vm10, %v1197_v2, %v1201_v7  ;;  %vm1270_vm10 = vcmask 459976   ;;  %v788_v2 = vld [vmem:[%s11452_s17 + $0x58] sm:$0xff]  ;;  %s11158_s17 = smov 15  }
 0x15a   : > { %1203 = vst [vmem:[#allocation2 + $0x4] sm:$0x3] %v1202_v8  ;;  %vm1271_vm11 = vmand %vm1270_vm10, %vm723_vm3 }
 0x15b   : > { %v1610_v9 = vld.sshfl [vmem:[#allocation1 + $0x10] sm:$0xff pattern:$0x75643120]  ;;  %vm11771_vm10 = vmand %vm1398_vm7, %vm726_vm6  ;;  %vm1525_vm7 = vcmask 35842  }
 0x15c   : > { %v1614_v10 = vld.sshfl [vmem:[#allocation1 + $0x20] sm:$0xff pattern:$0x75643120]  ;;  %1640 = vst.sshfl [vmem:[#allocation1 + $0x10] sm:$0xff pattern:$0x75643120] %v11624_v53  ;;  %v1617_v32 = vunpack.c.l.b16 %v1610_v9  ;;  %v11741_v9 = vpack.c.bf16 %v784_v1, %v784_v1 }
 0x15d   : > { %v1639_v11 = vld [vmem:[#allocation1 + $0x1] ss:$2 sm:$0xff]  ;;  %1643 = vst.sshfl [vmem:[#allocation1 + $0x20] sm:$0xff pattern:$0x75643120] %v11627_v54  ;;  %v1618_v62 = vunpack.c.l.b16 %v1614_v10 }
 0x15e   : > { %v1229_v12 = vpop.permute.xlu1 %1228  ;;  %1646 = vst [vmem:[#allocation1] ss:$2 sm:$0xff] %v1639_v11  ;;  %v1619_v35 = vrot.slane %v1617_v32, 7  ;;  %v11743_v11 = vpack.c.bf16 %v788_v2, %v788_v2 }
 0x15f   : > { %v1230_v13 = vrot.slane %v1229_v12, 6  ;;  %v1621_v36 = vrot.slane %v1618_v62, 6 }
 0x160   : > { %v1620_v38 = vsel %vm13471_vm1, %v1619_v35, %v1616_v59 }
 0x161   : > { %v1232_v14 = vsel %vm1231_vm9, %v1230_v13, %v1229_v12  ;;  %v1239_v16 = vld [vmem:[#allocation2 + $0x4] sm:$0xf]  ;;  %v1622_v40 = vsel %vm13470_vm2, %v1621_v36, %v1620_v38  ;;  %vm13485_vm9 = vcmask 1039360  }
 0x162   : > { %v1240_v17 = vsel %vm1238_vm12, %v1232_v14, %v1239_v16  ;;  %vm1311_vm12 = vcmask 738776   ;;  %v1623_v41 = vpack.c.b16 %v1622_v40, %v1622_v40 }
 0x163   : > { %1241 = vst [vmem:[#allocation2 + $0x4] sm:$0xf] %v1240_v17  ;;  %v1642_v46 = vld [vmem:[#allocation1 + $0x11] ss:$2 sm:$0xff]  ;;  %vm11721_vm14 = vmand %vm1311_vm12, %vm723_vm3  ;;  %vm1441_vm12 = vcmask 525576  }
 0x164   : > { %v1645_v18 = vld [vmem:[#allocation1 + $0x21] ss:$2 sm:$0xff]  ;;  %1650 = vst [vmem:[#allocation1 + $0x10] ss:$2 sm:$0xff] %v1642_v46  ;;  %v1624_v47 = vrot.slane %v1623_v41, 2  ;;  %v1771_v46 = vrot.slane %v11741_v9, 2 }
 0x165   : > { %v1647_v19 = vld.sshfl [vmem:[#allocation1] sm:$0xff pattern:$0x75643120]  ;;  %1654 = vst [vmem:[#allocation1 + $0x20] ss:$2 sm:$0xff] %v1645_v18 }
 0x166   : > { %v1657_v20 = vunpack.c.l.b16 %v1647_v19  ;;  %1684 = vst.sshfl [vmem:[#allocation1] sm:$0xff pattern:$0x75643120] %v11618_v15  ;;  %v1627_v51 = vsel %vm13482_vm0, %v1623_v41, %v1624_v47 }
 0x167   : > { %1629 = vrot.lane.b32.xlu2 %v1627_v51, %s11157_s2  ;;  %s11162_s2 = smov 23  }
 0x168   : > { %v1660_v24 = vrot.slane %v1657_v20, 1 }
 0x16a   : > { %v1272_v23 = vld [vmem:[#allocation2 + $0x6] sm:$0x3] }
 0x16b   : > { %v1273_v26 = vsel %vm1271_vm11, %v1268_v21, %v1272_v23  ;;  %v1651_v27 = vld.sshfl [vmem:[#allocation1 + $0x10] sm:$0xff pattern:$0x75643120]  ;;  %v1772_v21 = vrot.slane %v11743_v11, 2  ;;  %vm1400_vm11 = vmor %vm11771_vm10, %vm11762_vm8  ;;  %vm1520_vm10 = vcmask 826368  }
 0x16c   : > { %1274 = vst [vmem:[#allocation2 + $0x6] sm:$0x3] %v1273_v26  ;;  %v1655_v28 = vld.sshfl [vmem:[#allocation1 + $0x20] sm:$0xff pattern:$0x75643120]  ;;  %v1658_v29 = vunpack.c.l.b16 %v1651_v27  ;;  %v11768_v26 = vsel %vm13482_vm0, %v11741_v9, %v1771_v46  ;;  %vm11816_vm8 = vmand %vm1523_vm13, %vm723_vm3 }
 0x16d   : > { %v1659_v30 = vunpack.c.l.b16 %v1655_v28  ;;  %1687 = vst.sshfl [vmem:[#allocation1 + $0x10] sm:$0xff pattern:$0x75643120] %v11624_v53  ;;  %v1686_v31 = vld [vmem:[#allocation1 + $0x1] ss:$2 sm:$0xff]  ;;  %v11777_v28 = vsel %vm13482_vm0, %v11743_v11, %v1772_v21 }
 0x16e   : > { %v1661_v33 = vsel %vm13471_vm1, %v1658_v29, %v1660_v24  ;;  %1690 = vst.sshfl [vmem:[#allocation1 + $0x20] sm:$0xff pattern:$0x75643120] %v11627_v54 }
 0x16f   : > { %v1662_v34 = vrot.slane %v1659_v30, 7  ;;  %1693 = vst [vmem:[#allocation1] ss:$2 sm:$0xff] %v1686_v31 }
 0x171   : > { %v1663_v37 = vsel %vm13470_vm2, %v1662_v34, %v1661_v33 }
 0x172   : > { %v1664_v39 = vpack.c.b16 %v1663_v37, %v1663_v37 }
 0x173   : > { %v1313_v42 = vld [vmem:[#allocation2 + $0x6] sm:$0x3] }
 0x174   : > { %v1665_v43 = vrot.slane %v1664_v39, 2  ;;  %v1689_v44 = vld [vmem:[#allocation1 + $0x11] ss:$2 sm:$0xff] }
 0x175   : > { %v1692_v3 = vld [vmem:[#allocation1 + $0x21] ss:$2 sm:$0xff]  ;;  %1697 = vst [vmem:[#allocation1 + $0x10] ss:$2 sm:$0xff] %v1689_v44 }
 0x176   : > { %v1668_v48 = vsel %vm13482_vm0, %v1664_v39, %v1665_v43  ;;  %v1694_v49 = vld.sshfl [vmem:[#allocation1] sm:$0xff pattern:$0x75643120]  ;;  %1701 = vst [vmem:[#allocation1 + $0x20] ss:$2 sm:$0xff] %v1692_v3 }
 0x177   : > { %v1309_v50 = vpop.permute.xlu0 %1308  ;;  %1670 = vrot.lane.b32.xlu0 %v1668_v48, %s11156_s3  ;;  %1725 = vst.sshfl [vmem:[#allocation1] sm:$0xff pattern:$0x75643120] %v11618_v15  ;;  %v1704_v4 = vunpack.c.l.b16 %v1694_v49 }
 0x178   : > { %v1314_v52 = vsel %vm11721_vm14, %v1309_v50, %v1313_v42  ;;  %vm1442_vm14 = vmand %vm1441_vm12, %vm723_vm3 }
 0x179   : > { %1315 = vst [vmem:[#allocation2 + $0x6] sm:$0x3] %v1314_v52  ;;  %v1707_v57 = vrot.slane %v1704_v4, 2 }
 0x17c   : > { %v1698_v56 = vld.sshfl [vmem:[#allocation1 + $0x10] sm:$0xff pattern:$0x75643120] }
 0x17d   : > { %v1702_v60 = vld.sshfl [vmem:[#allocation1 + $0x20] sm:$0xff pattern:$0x75643120]  ;;  %v1705_v61 = vunpack.c.l.b16 %v1698_v56  ;;  %1728 = vst.sshfl [vmem:[#allocation1 + $0x10] sm:$0xff pattern:$0x75643120] %v11624_v53 }
 0x17e   : > { %v1706_v15 = vunpack.c.l.b16 %v1702_v60  ;;  %1731 = vst.sshfl [vmem:[#allocation1 + $0x20] sm:$0xff pattern:$0x75643120] %v11627_v54  ;;  %v1727_v63 = vld [vmem:[#allocation1 + $0x1] ss:$2 sm:$0xff]  ;;  %v11747_v54 = vsel %vm13482_vm0, %v11732_v58, %v1770_v6 }
 0x17f   : > { %v1708_v0 = vrot.slane %v1705_v61, 1  ;;  %1734 = vst [vmem:[#allocation1] ss:$2 sm:$0xff] %v1727_v63  ;;  %v1391_v19 = vpop.permute.xlu2 %1390 }
 0x180   : > { %v1354_v53 = vld [vmem:[#allocation2 + $0x6] sm:$0x3]  ;;  %v1392_v25 = vrot.slane %v1391_v19, 6 }
 0x181   : > { %v1709_v7 = vsel %vm13471_vm1, %v1708_v0, %v1707_v57 }
 0x182   : > { %v1710_v8 = vsel %vm13470_vm2, %v1706_v15, %v1709_v7  ;;  %v1394_v33 = vsel %vm13485_vm9, %v1392_v25, %v1391_v19 }
 0x183   : > { %v1711_v10 = vpack.c.b16 %v1710_v8, %v1710_v8 }
 0x184   : > { %v1730_v12 = vld [vmem:[#allocation1 + $0x11] ss:$2 sm:$0xff] }
 0x185   : > { %v1712_v14 = vrot.slane %v1711_v10, 2  ;;  %v1733_v16 = vld [vmem:[#allocation1 + $0x21] ss:$2 sm:$0xff]  ;;  %1738 = vst [vmem:[#allocation1 + $0x10] ss:$2 sm:$0xff] %v1730_v12 }
 0x186   : > { %v1735_v17 = vld.sshfl [vmem:[#allocation1] sm:$0xff pattern:$0x75643120]  ;;  %1742 = vst [vmem:[#allocation1 + $0x20] ss:$2 sm:$0xff] %v1733_v16 }
 0x187   : > { %v1350_v18 = vpop.permute.xlu1 %1349  ;;  %v1715_v20 = vsel %vm13482_vm0, %v1711_v10, %v1712_v14  ;;  %1782 = vst [vmem:[#allocation1] ss:$2 sm:$0xff] %v11747_v54  ;;  %v1745_v23 = vunpack.c.l.b16 %v1735_v17 }
 0x188   : > { %v1355_v22 = vsel %vm11750_vm4, %v1350_v18, %v1354_v53  ;;  %1717 = vrot.lane.b32.xlu1 %v1715_v20, %s11158_s17  ;;  %vm1489_vm4 = vmand %vm1488_vm15, %vm723_vm3 }
 0x189   : > { %1356 = vst [vmem:[#allocation2 + $0x6] sm:$0x3] %v1355_v22  ;;  %v1748_v32 = vrot.slane %v1745_v23, 3 }
 0x18c   : > { %v1739_v29 = vld.sshfl [vmem:[#allocation1 + $0x10] sm:$0xff pattern:$0x75643120] }
 0x18d   : > { %v1743_v30 = vld.sshfl [vmem:[#allocation1 + $0x20] sm:$0xff pattern:$0x75643120]  ;;  %1786 = vst [vmem:[#allocation1 + $0x10] ss:$2 sm:$0xff] %v11768_v26  ;;  %v1746_v31 = vunpack.c.l.b16 %v1739_v29 }
 0x18e   : > { %v1783_v62 = vld.sshfl [vmem:[#allocation1] sm:$0xff pattern:$0x75643120]  ;;  %1790 = vst [vmem:[#allocation1 + $0x20] ss:$2 sm:$0xff] %v11777_v28  ;;  %v1747_v34 = vunpack.c.l.b16 %v1743_v30 }
 0x18f   : > { %1814 = vst [vmem:[#allocation1] ss:$2 sm:$0xff] %v11747_v54  ;;  %v1749_v59 = vrot.slane %v1746_v31, 2  ;;  %v1793_v43 = vunpack.c.l.b16 %v1783_v62 }
 0x190   : > { %v1401_v35 = vld [vmem:[#allocation2 + $0x6] sm:$0xf]  ;;  %v1751_v36 = vrot.slane %v1747_v34, 1 }
 0x191   : > { %v1402_v37 = vsel %vm1400_vm11, %v1394_v33, %v1401_v35  ;;  %v1750_v38 = vsel %vm13471_vm1, %v1749_v59, %v1748_v32  ;;  %vm1526_vm11 = vmand %vm1525_vm7, %vm726_vm6  ;;  %vm1632_vm7 = vcmask 869976  }
 0x192   : > { %1403 = vst [vmem:[#allocation2 + $0x6] sm:$0xf] %v1402_v37  ;;  %v1752_v39 = vsel %vm13470_vm2, %v1751_v36, %v1750_v38  ;;  %vm1527_vm12 = vmor %vm1526_vm11, %vm11816_vm8  ;;  %vm1678_vm11 = vcmask 101378  }
 0x193   : > { %v1753_v40 = vpack.c.b16 %v1752_v39, %v1752_v39  ;;  %vm1633_vm8 = vmand %vm1632_vm7, %vm723_vm3 }
 0x194   : > { %v1787_v41 = vld.sshfl [vmem:[#allocation1 + $0x10] sm:$0xff pattern:$0x75643120] }
 0x195   : > { %v1791_v42 = vld.sshfl [vmem:[#allocation1 + $0x20] sm:$0xff pattern:$0x75643120]  ;;  %v1794_v44 = vunpack.c.l.b16 %v1787_v41  ;;  %1818 = vst [vmem:[#allocation1 + $0x10] ss:$2 sm:$0xff] %v11768_v26  ;;  %v1754_v45 = vrot.slane %v1753_v40, 2 }
 0x196   : > { %v1795_v3 = vunpack.c.l.b16 %v1791_v42  ;;  %1822 = vst [vmem:[#allocation1 + $0x20] ss:$2 sm:$0xff] %v11777_v28  ;;  %v1815_v47 = vld.sshfl [vmem:[#allocation1] sm:$0xff pattern:$0x75643120] }
 0x197   : > { %v1796_v48 = vrot.slane %v1794_v44, 7  ;;  %v1825_v49 = vunpack.c.l.b16 %v1815_v47  ;;  %1852 = vst [vmem:[#allocation1] ss:$2 sm:$0xff] %v11747_v54  ;;  %v1757_v50 = vsel %vm13482_vm0, %v1753_v40, %v1754_v45 }
 0x198   : > { %v1798_v51 = vrot.slane %v1795_v3, 6  ;;  %1759 = vrot.lane.b32.xlu2 %v1757_v50, %s11159_s14  ;;  %s11163_s14 = smov 57  }
 0x199   : > { %v1797_v52 = vsel %vm13471_vm1, %v1796_v48, %v1793_v43  ;;  %v1828_v56 = vrot.slane %v1825_v49, 1  ;;  %v1443_v12 = vld [vmem:[#allocation2 + $0x8] sm:$0x3] }
 0x19a   : > { %v1799_v4 = vsel %vm13470_vm2, %v1798_v51, %v1797_v52 }
 0x19b   : > { %v1800_v55 = vpack.c.b16 %v1799_v4, %v1799_v4 }
 0x19c   : > { %v1819_v57 = vld.sshfl [vmem:[#allocation1 + $0x10] sm:$0xff pattern:$0x75643120] }
 0x19d   : > { %v1801_v60 = vrot.slane %v1800_v55, 2  ;;  %v1823_v61 = vld.sshfl [vmem:[#allocation1 + $0x20] sm:$0xff pattern:$0x75643120]  ;;  %v1826_v15 = vunpack.c.l.b16 %v1819_v57  ;;  %1856 = vst [vmem:[#allocation1 + $0x10] ss:$2 sm:$0xff] %v11768_v26 }
 0x19e   : > { %v1827_v63 = vunpack.c.l.b16 %v1823_v61  ;;  %v1853_v0 = vld.sshfl [vmem:[#allocation1] sm:$0xff pattern:$0x75643120]  ;;  %1860 = vst [vmem:[#allocation1 + $0x20] ss:$2 sm:$0xff] %v11777_v28 }
 0x19f   : > { %v1804_v1 = vsel %vm13482_vm0, %v1800_v55, %v1801_v60  ;;  %v1829_v2 = vsel %vm13471_vm1, %v1826_v15, %v1828_v56  ;;  %1884 = vst [vmem:[#allocation1] ss:$2 sm:$0xff] %v11747_v54  ;;  %v1863_v10 = vunpack.c.l.b16 %v1853_v0 }
 0x1a0   : > { %1806 = vrot.lane.b32.xlu0 %v1804_v1, %s11160_s22  ;;  %v1830_v6 = vrot.slane %v1827_v63, 7  ;;  %s11164_s22 = smov 91  }
 0x1a1   : > { %v1866_v46 = vrot.slane %v1863_v10, 2 }
 0x1a2   : > { %v1831_v7 = vsel %vm13470_vm2, %v1830_v6, %v1829_v2 }
 0x1a3   : > { %v1832_v8 = vpack.c.b16 %v1831_v7, %v1831_v7 }
 0x1a4   : > { %v1857_v53 = vld.sshfl [vmem:[#allocation1 + $0x10] sm:$0xff pattern:$0x75643120] }
 0x1a5   : > { %v1833_v13 = vrot.slane %v1832_v8, 2  ;;  %v1861_v14 = vld.sshfl [vmem:[#allocation1 + $0x20] sm:$0xff pattern:$0x75643120]  ;;  %1888 = vst [vmem:[#allocation1 + $0x10] ss:$2 sm:$0xff] %v11768_v26  ;;  %v1864_v16 = vunpack.c.l.b16 %v1857_v53 }
 0x1a6   : > { %1892 = vst [vmem:[#allocation1 + $0x20] ss:$2 sm:$0xff] %v11777_v28  ;;  %v1885_v54 = vld.sshfl [vmem:[#allocation1] sm:$0xff pattern:$0x75643120]  ;;  %v1865_v17 = vunpack.c.l.b16 %v1861_v14 }
 0x1a7   : > { %v1836_v18 = vsel %vm13482_vm0, %v1832_v8, %v1833_v13  ;;  %1917 = vst.sshfl [vmem:[#allocation1] sm:$0xff pattern:$0x75643120] %v11732_v58  ;;  %v1439_v19 = vpop.permute.xlu0 %1438  ;;  %v1867_v20 = vrot.slane %v1864_v16, 1  ;;  %v1895_v21 = vunpack.c.l.b16 %v1885_v54 }
 0x1a8   : > { %1838 = vrot.lane.b32.xlu1 %v1836_v18, %s13474_s18  ;;  %v1444_v22 = vsel %vm1442_vm14, %v1439_v19, %v1443_v12  ;;  %vm1558_vm14 = vcmask 312376   ;;  %s11170_s18 = smov 92  }
 0x1a9   : > { %1445 = vst [vmem:[#allocation2 + $0x8] sm:$0x3] %v1444_v22  ;;  %v1868_v23 = vsel %vm13471_vm1, %v1867_v20, %v1866_v46  ;;  %v1898_v27 = vrot.slane %v1895_v21, 3  ;;  %v1518_v38 = vpop.permute.xlu2 %1517  ;;  %vm1559_vm15 = vmand %vm1558_vm14, %vm723_vm3 }
 0x1aa   : > { %v1869_v24 = vsel %vm13470_vm2, %v1865_v17, %v1868_v23  ;;  %v1519_v42 = vrot.slane %v1518_v38, 6  ;;  %vm11853_vm14 = vmand %vm1678_vm11, %vm726_vm6  ;;  %vm1809_vm11 = vcmask 935576  }
 0x1ab   : > { %v1870_v25 = vpack.c.b16 %v1869_v24, %v1869_v24 }
 0x1ac   : > { %v1889_v26 = vld.sshfl [vmem:[#allocation1 + $0x10] sm:$0xff pattern:$0x75643120]  ;;  %v1521_v48 = vsel %vm1520_vm10, %v1519_v42, %v1518_v38  ;;  %vm1676_vm10 = vcmask 1042280  }
 0x1ad   : > { %v1893_v28 = vld.sshfl [vmem:[#allocation1 + $0x20] sm:$0xff pattern:$0x75643120]  ;;  %v1896_v29 = vunpack.c.l.b16 %v1889_v26  ;;  %1920 = vst.sshfl [vmem:[#allocation1 + $0x10] sm:$0xff pattern:$0x75643120] %v11741_v9 }
 0x1ae   : > { %v1897_v30 = vunpack.c.l.b16 %v1893_v28  ;;  %v1919_v31 = vld [vmem:[#allocation1 + $0x1] ss:$2 sm:$0xff]  ;;  %1923 = vst.sshfl [vmem:[#allocation1 + $0x20] sm:$0xff pattern:$0x75643120] %v11743_v11  ;;  %v1871_v32 = vrot.slane %v1870_v25, 2 }
 0x1af   : > { %v1899_v33 = vrot.slane %v1896_v29, 2  ;;  %1926 = vst [vmem:[#allocation1] ss:$2 sm:$0xff] %v1919_v31  ;;  %v1486_v62 = vpop.permute.xlu1 %1485 }
 0x1b0   : > { %v1901_v34 = vrot.slane %v1897_v30, 1  ;;  %v1874_v59 = vsel %vm13482_vm0, %v1870_v25, %v1871_v32  ;;  %v1490_v35 = vld [vmem:[#allocation2 + $0x8] sm:$0x3] }
 0x1b1   : > { %v1900_v36 = vsel %vm13471_vm1, %v1899_v33, %v1898_v27  ;;  %1876 = vrot.lane.b32.xlu2 %v1874_v59, %s11162_s2  ;;  %v1491_v37 = vsel %vm1489_vm4, %v1486_v62, %v1490_v35  ;;  %vm1591_vm4 = vcmask 591176   ;;  %s11165_s2 = smov 125  }
 0x1b2   : > { %v1902_v39 = vsel %vm13470_vm2, %v1901_v34, %v1900_v36  ;;  %1492 = vst [vmem:[#allocation2 + $0x8] sm:$0x3] %v1491_v37  ;;  %vm1592_vm13 = vmand %vm1591_vm4, %vm723_vm3 }
 0x1b3   : > { %v1903_v40 = vpack.c.b16 %v1902_v39, %v1902_v39 }
 0x1b4   : > { %v1922_v43 = vld [vmem:[#allocation1 + $0x11] ss:$2 sm:$0xff] }
 0x1b5   : > { %v1904_v44 = vrot.slane %v1903_v40, 2  ;;  %1930 = vst [vmem:[#allocation1 + $0x10] ss:$2 sm:$0xff] %v1922_v43  ;;  %v1925_v45 = vld [vmem:[#allocation1 + $0x21] ss:$2 sm:$0xff] }
 0x1b6   : > { %v1927_v3 = vld.sshfl [vmem:[#allocation1] sm:$0xff pattern:$0x75643120]  ;;  %1934 = vst [vmem:[#allocation1 + $0x20] ss:$2 sm:$0xff] %v1925_v45 }
 0x1b7   : > { %v1907_v47 = vsel %vm13482_vm0, %v1903_v40, %v1904_v44  ;;  %1958 = vst.sshfl [vmem:[#allocation1] sm:$0xff pattern:$0x75643120] %v11732_v58  ;;  %v1937_v4 = vunpack.c.l.b16 %v1927_v3 }
 0x1b8   : > { %1909 = vrot.lane.b32.xlu0 %v1907_v47, %s11163_s14  ;;  %s13499_s14 = smov 31  }
 0x1b9   : > { %v1528_v49 = vld [vmem:[#allocation2 + $0x8] sm:$0xf] }
 0x1ba   : > { %v1529_v50 = vsel %vm1527_vm12, %v1521_v48, %v1528_v49  ;;  %vm11847_vm12 = vmand %vm1676_vm10, %vm723_vm3 }
 0x1bb   : > { %1530 = vst [vmem:[#allocation2 + $0x8] sm:$0xf] %v1529_v50  ;;  %vm1680_vm4 = vmor %vm11853_vm14, %vm11847_vm12  ;;  %vm1844_vm14 = vcmask 1042344  }
 0x1bc   : > { %v1931_v51 = vld.sshfl [vmem:[#allocation1 + $0x10] sm:$0xff pattern:$0x75643120]  ;;  %vm1810_vm12 = vmand %vm1809_vm11, %vm723_vm3 }
 0x1bd   : > { %v1935_v52 = vld.sshfl [vmem:[#allocation1 + $0x20] sm:$0xff pattern:$0x75643120]  ;;  %v1938_v55 = vunpack.c.l.b16 %v1931_v51  ;;  %1961 = vst.sshfl [vmem:[#allocation1 + $0x10] sm:$0xff pattern:$0x75643120] %v11741_v9 }
 0x1be   : > { %v1939_v56 = vunpack.c.l.b16 %v1935_v52  ;;  %1964 = vst.sshfl [vmem:[#allocation1 + $0x20] sm:$0xff pattern:$0x75643120] %v11743_v11  ;;  %v1960_v57 = vld [vmem:[#allocation1 + $0x1] ss:$2 sm:$0xff] }
 0x1bf   : > { %v1940_v60 = vrot.slane %v1938_v55, 7  ;;  %1967 = vst [vmem:[#allocation1] ss:$2 sm:$0xff] %v1960_v57  ;;  %v11862_v51 = vld [vmem:[#allocation2] sm:$0xff] }
 0x1c0   : > { %v1942_v61 = vrot.slane %v1939_v56, 6  ;;  %v1556_v15 = vpop.permute.xlu0 %1555 }
 0x1c1   : > { %v1941_v63 = vsel %vm13471_vm1, %v1940_v60, %v1937_v4  ;;  %v1630_v29 = vpop.permute.xlu2 %1629 }
 0x1c2   : > { %v1943_v0 = vsel %vm13470_vm2, %v1942_v61, %v1941_v63  ;;  %v1560_v1 = vld [vmem:[#allocation2 + $0xa] sm:$0x3] }
 0x1c3   : > { %v1944_v2 = vpack.c.b16 %v1943_v0, %v1943_v0  ;;  %v1561_v6 = vsel %vm1559_vm15, %v1556_v15, %v1560_v1  ;;  %vm13483_vm15 = vcmask 891904  }
 0x1c4   : > { %1562 = vst [vmem:[#allocation2 + $0xa] sm:$0x3] %v1561_v6  ;;  %v1963_v7 = vld [vmem:[#allocation1 + $0x11] ss:$2 sm:$0xff] }
 0x1c5   : > { %v1945_v8 = vrot.slane %v1944_v2, 2  ;;  %v1966_v10 = vld [vmem:[#allocation1 + $0x21] ss:$2 sm:$0xff]  ;;  %1971 = vst [vmem:[#allocation1 + $0x10] ss:$2 sm:$0xff] %v1963_v7 }
 0x1c6   : > { %v1968_v53 = vld.sshfl [vmem:[#allocation1] sm:$0xff pattern:$0x75643120]  ;;  %1975 = vst [vmem:[#allocation1 + $0x20] ss:$2 sm:$0xff] %v1966_v10 }
 0x1c7   : > { %v1948_v12 = vsel %vm13482_vm0, %v1944_v2, %v1945_v8  ;;  %v1978_v13 = vunpack.c.l.b16 %v1968_v53  ;;  %2005 = vst.sshfl [vmem:[#allocation1] sm:$0xff pattern:$0x75643120] %v11732_v58 }
 0x1c8   : > { %1950 = vrot.lane.b32.xlu1 %v1948_v12, %s11164_s22  ;;  %v1589_v14 = vpop.permute.xlu1 %1588 }
 0x1c9   : > { %v1981_v16 = vrot.slane %v1978_v13, 1 }
 0x1cb   : > { %v1593_v54 = vld [vmem:[#allocation2 + $0xa] sm:$0x3] }
 0x1cc   : > { %v1972_v17 = vld.sshfl [vmem:[#allocation1 + $0x10] sm:$0xff pattern:$0x75643120]  ;;  %v1594_v19 = vsel %vm1592_vm13, %v1589_v14, %v1593_v54  ;;  %vm1720_vm13 = vcmask 377976  }
 0x1cd   : > { %v1976_v46 = vld.sshfl [vmem:[#allocation1 + $0x20] sm:$0xff pattern:$0x75643120]  ;;  %v1979_v18 = vunpack.c.l.b16 %v1972_v17  ;;  %2008 = vst.sshfl [vmem:[#allocation1 + $0x10] sm:$0xff pattern:$0x75643120] %v11741_v9  ;;  %vm1721_vm7 = vmand %vm1720_vm13, %vm723_vm3 }
 0x1ce   : > { %v1980_v20 = vunpack.c.l.b16 %v1976_v46  ;;  %2011 = vst.sshfl [vmem:[#allocation1 + $0x20] sm:$0xff pattern:$0x75643120] %v11743_v11  ;;  %v2007_v21 = vld [vmem:[#allocation1 + $0x1] ss:$2 sm:$0xff]  ;;  %vm1845_vm13 = vmand %vm1844_vm14, %vm723_vm3 }
 0x1cf   : > { %v1982_v22 = vsel %vm13471_vm1, %v1979_v18, %v1981_v16  ;;  %2014 = vst [vmem:[#allocation1] ss:$2 sm:$0xff] %v2007_v21  ;;  %v746_v18 = vld [vmem:[#allocation2 + $0x10] sm:$0xf] }
 0x1d0   : > { %v1983_v23 = vrot.slane %v1980_v20, 7  ;;  %1595 = vst [vmem:[#allocation2 + $0xa] sm:$0x3] %v1594_v19 }
 0x1d2   : > { %v1984_v24 = vsel %vm13470_vm2, %v1983_v23, %v1982_v22 }
 0x1d3   : > { %v1985_v25 = vpack.c.b16 %v1984_v24, %v1984_v24 }
 0x1d4   : > { %v2010_v26 = vld [vmem:[#allocation1 + $0x11] ss:$2 sm:$0xff] }
 0x1d5   : > { %v1986_v27 = vrot.slane %v1985_v25, 2  ;;  %v2013_v28 = vld [vmem:[#allocation1 + $0x21] ss:$2 sm:$0xff]  ;;  %2018 = vst [vmem:[#allocation1 + $0x10] ss:$2 sm:$0xff] %v2010_v26 }
 0x1d6   : > { %v2015_v30 = vld.sshfl [vmem:[#allocation1] sm:$0xff pattern:$0x75643120]  ;;  %2022 = vst [vmem:[#allocation1 + $0x20] ss:$2 sm:$0xff] %v2013_v28 }
 0x1d7   : > { %v1989_v31 = vsel %vm13482_vm0, %v1985_v25, %v1986_v27  ;;  %2046 = vst.sshfl [vmem:[#allocation1] sm:$0xff pattern:$0x75643120] %v11732_v58  ;;  %v1634_v32 = vld [vmem:[#allocation2 + $0xa] sm:$0x3]  ;;  %v2025_v33 = vunpack.c.l.b16 %v2015_v30 }
 0x1d8   : > { %1991 = vrot.lane.b32.xlu2 %v1989_v31, %s11165_s2  ;;  %v1635_v62 = vsel %vm1633_vm8, %v1630_v29, %v1634_v32  ;;  %vm1762_vm8 = vcmask 656776  }
 0x1d9   : > { %1636 = vst [vmem:[#allocation2 + $0xa] sm:$0x3] %v1635_v62  ;;  %v2028_v59 = vrot.slane %v2025_v33, 2  ;;  %vm1763_vm10 = vmand %vm1762_vm8, %vm723_vm3 }
 0x1dc   : > { %v2019_v34 = vld.sshfl [vmem:[#allocation1 + $0x10] sm:$0xff pattern:$0x75643120] }
 0x1dd   : > { %v2023_v35 = vld.sshfl [vmem:[#allocation1 + $0x20] sm:$0xff pattern:$0x75643120]  ;;  %v2026_v36 = vunpack.c.l.b16 %v2019_v34  ;;  %2049 = vst.sshfl [vmem:[#allocation1 + $0x10] sm:$0xff pattern:$0x75643120] %v11741_v9 }
 0x1de   : > { %v2027_v37 = vunpack.c.l.b16 %v2023_v35  ;;  %v2048_v38 = vld [vmem:[#allocation1 + $0x1] ss:$2 sm:$0xff]  ;;  %2052 = vst.sshfl [vmem:[#allocation1 + $0x20] sm:$0xff pattern:$0x75643120] %v11743_v11 }
 0x1df   : > { %v2029_v39 = vrot.slane %v2026_v36, 1  ;;  %2055 = vst [vmem:[#allocation1] ss:$2 sm:$0xff] %v2048_v38 }
 0x1e0   : > { %v1681_v50 = vld [vmem:[#allocation2 + $0xa] sm:$0xf] }
 0x1e1   : > { %v2030_v58 = vsel %vm13471_vm1, %v2029_v39, %v2028_v59 }
 0x1e2   : > { %v2031_v40 = vsel %vm13470_vm2, %v2027_v37, %v2030_v58 }
 0x1e3   : > { %v2032_v41 = vpack.c.b16 %v2031_v40, %v2031_v40 }
 0x1e4   : > { %v2051_v42 = vld [vmem:[#allocation1 + $0x11] ss:$2 sm:$0xff] }
 0x1e5   : > { %v2033_v43 = vrot.slane %v2032_v41, 2  ;;  %v2054_v44 = vld [vmem:[#allocation1 + $0x21] ss:$2 sm:$0xff]  ;;  %2059 = vst [vmem:[#allocation1 + $0x10] ss:$2 sm:$0xff] %v2051_v42 }
 0x1e6   : > { %2063 = vst [vmem:[#allocation1 + $0x20] ss:$2 sm:$0xff] %v2054_v44  ;;  %v2056_v45 = vld.sshfl [vmem:[#allocation1] sm:$0xff pattern:$0x75643120] }
 0x1e7   : > { %v2036_v11 = vsel %vm13482_vm0, %v2032_v41, %v2033_v43  ;;  %v2066_v47 = vunpack.c.l.b16 %v2056_v45 }
 0x1e8   : > { %2038 = vrot.lane.b32.xlu0 %v2036_v11, %s13499_s14  ;;  %s11189_s14 = smov 4  }
 0x1e9   : > { %v1671_v48 = vpop.permute.xlu0 %1670  ;;  %v2069_v57 = vrot.slane %v2066_v47, 3 }
 0x1ea   : > { %v1672_v49 = vrot.slane %v1671_v48, 6 }
 0x1ec   : > { %v2060_v52 = vld.sshfl [vmem:[#allocation1 + $0x10] sm:$0xff pattern:$0x75643120]  ;;  %v1674_v4 = vsel %vm13483_vm15, %v1672_v49, %v1671_v48  ;;  %vm2926_vm15 = vcmask 1040384  }
 0x1ed   : > { %v2064_v55 = vld.sshfl [vmem:[#allocation1 + $0x20] sm:$0xff pattern:$0x75643120]  ;;  %v2067_v56 = vunpack.c.l.b16 %v2060_v52  ;;  %2093 = vst [vmem:[#allocation1] ss:$4 sm:$0xff] %v11862_v51  ;;  %v1682_v60 = vsel %vm1680_vm4, %v1674_v4, %v1681_v50  ;;  %vm1846_vm4 = vcmask 166914  }
 0x1ee   : > { %v2068_v61 = vunpack.c.l.b16 %v2064_v55  ;;  %1683 = vst [vmem:[#allocation2 + $0xa] sm:$0xf] %v1682_v60 }
 0x1ef   : > { %v2070_v15 = vrot.slane %v2067_v56, 2 }
 0x1f0   : > { %v2072_v63 = vrot.slane %v2068_v61, 1 }
 0x1f1   : > { %v2071_v0 = vsel %vm13471_vm1, %v2070_v15, %v2069_v57  ;;  %vm1841_vm1 = vcmask 957440  }
 0x1f2   : > { %v2073_v1 = vsel %vm13470_vm2, %v2072_v63, %v2071_v0  ;;  %v1760_v12 = vpop.permute.xlu2 %1759  ;;  %vm743_vm2 = vcmask 27650  }
 0x1f3   : > { %v2074_v2 = vpack.c.b16 %v2073_v1, %v2073_v1  ;;  %vm744_vm8 = vmand %vm743_vm2, %vm726_vm6  ;;  %vm1912_vm2 = vcmask 722376  }
 0x1f5   : > { %v2075_v6 = vrot.slane %v2074_v2, 2  ;;  %v1722_v8 = vld [vmem:[#allocation2 + $0xc] sm:$0x3] }
 0x1f7   : > { %v2078_v7 = vsel %vm13482_vm0, %v2074_v2, %v2075_v6  ;;  %vm2746_vm0 = vcmask 482304  }
 0x1f8   : > { %2080 = vrot.lane.b32.xlu1 %v2078_v7, %s11167_s26  ;;  %s11168_s26 = smov 126  }
 0x1fa   : > { %v1718_v10 = vpop.permute.xlu1 %1717 }
 0x1fb   : > { %v1723_v53 = vsel %vm1721_vm7, %v1718_v10, %v1722_v8  ;;  %vm1847_vm7 = vmand %vm1846_vm4, %vm726_vm6 }
 0x1fc   : > { %1724 = vst [vmem:[#allocation2 + $0xc] sm:$0x3] %v1723_v53  ;;  %vm1848_vm11 = vmor %vm1847_vm7, %vm1845_vm13  ;;  %vm1953_vm13 = vcmask 1001176  }
 0x1fd   : > { %vm1913_vm4 = vmand %vm1912_vm2, %vm723_vm3  ;;  %vm2041_vm2 = vcmask 509176  }
 0x1fe   : > { %vm1954_vm7 = vmand %vm1953_vm13, %vm723_vm3 }
 0x203   : > { %v1764_v13 = vld [vmem:[#allocation2 + $0xc] sm:$0x3] }
 0x204   : > { %v1765_v14 = vsel %vm1763_vm10, %v1760_v12, %v1764_v13  ;;  %vm745_vm10 = vmor %vm744_vm8, %vm11556_vm5  ;;  %vm1999_vm8 = vcmask 232450   ;;  %v11915_v12 = vld.sshfl [vmem:[#allocation1] sm:$0xff pattern:$0x73625140] }
 0x205   : > { %1766 = vst [vmem:[#allocation2 + $0xc] sm:$0x3] %v1765_v14  ;;  %v747_v21 = vsel %vm745_vm10, 0, %v746_v18  ;;  %v11917_v13 = vld.sshfl [vmem:[#allocation1 + $0x8] sm:$0xff pattern:$0x73625140] }
 0x206   : > { %748 = vst [vmem:[#allocation2 + $0x10] sm:$0xf] %v747_v21 }
 0x20b   : > { %v1877_v24 = vpop.permute.xlu2 %1876 }
 0x20c   : > { %v1811_v16 = vld [vmem:[#allocation2 + $0xc] sm:$0x3] }
 0x212   : > { %v1807_v54 = vpop.permute.xlu0 %1806 }
 0x213   : > { %v1812_v17 = vsel %vm1810_vm12, %v1807_v54, %v1811_v16  ;;  %vm1879_vm12 = vcmask 443576   ;;  %v11919_v54 = vld.sshfl [vmem:[#allocation1 + $0x10] sm:$0xff pattern:$0x73625140] }
 0x214   : > { %1813 = vst [vmem:[#allocation2 + $0xc] sm:$0x3] %v1812_v17  ;;  %vm1880_vm14 = vmand %vm1879_vm12, %vm723_vm3  ;;  %v11921_v17 = vld.sshfl [vmem:[#allocation1 + $0x18] sm:$0xff pattern:$0x73625140] }
 0x215   : > { %vm2000_vm12 = vmand %vm1999_vm8, %vm726_vm6  ;;  %vm2551_vm8 = vcmask 752640  }
 0x216   : > { %vm2042_vm6 = vmand %vm2041_vm2, %vm723_vm3  ;;  %vm2867_vm2 = vsmask.f32 4352 }
 0x21a   : > { %v1839_v46 = vpop.permute.xlu1 %1838 }
 0x21b   : > { %v1840_v19 = vrot.slane %v1839_v46, 6  ;;  %v1849_v20 = vld [vmem:[#allocation2 + $0xc] sm:$0xf] }
 0x21d   : > { %v1842_v22 = vsel %vm1841_vm1, %v1840_v19, %v1839_v46  ;;  %vm1997_vm1 = vcmask 1042408  }
 0x21e   : > { %v1850_v23 = vsel %vm1848_vm11, %v1842_v22, %v1849_v20  ;;  %vm1998_vm10 = vmand %vm1997_vm1, %vm723_vm3  ;;  %vm13484_vm11 = vcmask 1022976   ;;  %vm2380_vm1 = vcmask 769024  }
 0x21f   : > { %1851 = vst [vmem:[#allocation2 + $0xc] sm:$0xf] %v1850_v23 }
 0x226   : > { %v1881_v25 = vld [vmem:[#allocation2 + $0xe] sm:$0x3] }
 0x227   : > { %v1882_v26 = vsel %vm1880_vm14, %v1877_v24, %v1881_v25  ;;  %vm2001_vm14 = vmor %vm2000_vm12, %vm1998_vm10  ;;  %vm13494_vm10 = vcmask 1042432   ;;  %vm2866_vm12 = vcmask 1044480  }
 0x228   : > { %1883 = vst [vmem:[#allocation2 + $0xe] sm:$0x3] %v1882_v26 }
 0x22a   : > { %v1910_v27 = vpop.permute.xlu0 %1909 }
 0x22f   : > { %v1914_v28 = vld [vmem:[#allocation2 + $0xe] sm:$0x3] }
 0x230   : > { %v1915_v29 = vsel %vm1913_vm4, %v1910_v27, %v1914_v28  ;;  %vm2083_vm4 = vcmask 787976  }
 0x231   : > { %1916 = vst [vmem:[#allocation2 + $0xe] sm:$0x3] %v1915_v29  ;;  %vm2084_vm13 = vmand %vm2083_vm4, %vm723_vm3  ;;  %vm13481_vm3 = vcmask 517120   ;;  %vm13490_vm4 = vcmask 490496  }
 0x232   : > { %v1992_v32 = vpop.permute.xlu2 %1991 }
 0x233   : > { %v1993_v62 = vrot.slane %v1992_v32, 6 }
 0x235   : > { %v1995_v34 = vsel %vm13484_vm11, %v1993_v62, %v1992_v32  ;;  %vm2810_vm11 = vcmask 474112  }
 0x238   : > { %v1955_v30 = vld [vmem:[#allocation2 + $0xe] sm:$0x3] }
 0x23a   : > { %v1951_v31 = vpop.permute.xlu1 %1950 }
 0x23b   : > { %v1956_v33 = vsel %vm1954_vm7, %v1951_v31, %v1955_v30  ;;  %vm13493_vm7 = vcmask 1031168  }
 0x23c   : > { %1957 = vst [vmem:[#allocation2 + $0xe] sm:$0x3] %v1956_v33 }
 0x243   : > { %v2002_v59 = vld [vmem:[#allocation2 + $0xe] sm:$0xf] }
 0x244   : > { %v2003_v35 = vsel %vm2001_vm14, %v1995_v34, %v2002_v59  ;;  %vm2439_vm14 = vcmask 760832  }
 0x245   : > { %2004 = vst [vmem:[#allocation2 + $0xe] sm:$0xf] %v2003_v35 }
 0x24c   : > { %v11883_v36 = vld [vmem:[#allocation2 + $0x8] sm:$0xff]  ;;  %v2043_v41 = vld [vmem:[#allocation2 + $0x10] sm:$0x3] }
 0x24d   : > { %2096 = vst [vmem:[#allocation1 + $0x20] ss:$4 sm:$0xff] %v11883_v36 }
 0x254   : > { %v11886_v37 = vld.sshfl [vmem:[#allocation1 + $0x20] sm:$0xff pattern:$0x73625140]  ;;  %v11888_v38 = vld.sshfl [vmem:[#allocation1 + $0x28] sm:$0xff pattern:$0x73625140] }
 0x255   : > { %13564 = vst [vmem:[#allocation28_spill] sm:$0xff] %v11888_v38  ;;  %v11890_v39 = vld.sshfl [vmem:[#allocation1 + $0x30] sm:$0xff pattern:$0x73625140] }
 0x256   : > { %13565 = vst [vmem:[#allocation29_spill] sm:$0xff] %v11890_v39  ;;  %v11892_v58 = vld.sshfl [vmem:[#allocation1 + $0x38] sm:$0xff pattern:$0x73625140]  ;;  %v13486_v39 = vmov 65535  }
 0x257   : > { %13566 = vst [vmem:[#allocation30_spill] sm:$0xff] %v11892_v58 }
 0x258   : > { %2119 = vst [vmem:[#allocation1 + $0x20] ss:$4 sm:$0xff] %v11883_v36 }
 0x25a   : > { %v2039_v40 = vpop.permute.xlu0 %2038 }
 0x25b   : > { %v2044_v42 = vsel %vm2042_vm6, %v2039_v40, %v2043_v41  ;;  %vm2878_vm6 = vcmask 1045504  }
 0x25c   : > { %2045 = vst [vmem:[#allocation2 + $0x10] sm:$0x3] %v2044_v42 }
 0x25f   : > { %v2124_v43 = vld.sshfl [vmem:[#allocation1 + $0x20] sm:$0xff pattern:$0x73625140]  ;;  %v2125_v44 = vld.sshfl [vmem:[#allocation1 + $0x28] sm:$0xff pattern:$0x73625140] }
 0x260   : > { %v11896_v45 = vld.sshfl [vmem:[#allocation1 + $0x30] sm:$0xff pattern:$0x73625140]  ;;  %v11898_v9 = vld.sshfl [vmem:[#allocation1 + $0x38] sm:$0xff pattern:$0x73625140] }
 0x261   : > { %2230 = vst [vmem:[#allocation1 + $0x20] ss:$4 sm:$0xff] %v11883_v36  ;;  %v2158_v11 = vshrl.u32 %v2124_v43, 16  ;;  %v2161_v3 = vshll.u32 %v2124_v43, 16  ;;  %v2165_v49 = vshrl.u32 %v2125_v44, 16  ;;  %v2168_v50 = vshll.u32 %v2125_v44, 16 }
 0x263   : > { %v2160_v47 = vrot.slane %v2158_v11, 6  ;;  %v2163_v48 = vrot.slane %v2161_v3, 7  ;;  %v2167_v4 = vrot.slane %v2165_v49, 6  ;;  %v2170_v55 = vrot.slane %v2168_v50, 7  ;;  %v2085_v0 = vld [vmem:[#allocation2 + $0x10] sm:$0x3] }
 0x265   : > { %v2164_v52 = vor.u32 %v2163_v48, %v2160_v47  ;;  %v2171_v2 = vor.u32 %v2170_v55, %v2167_v4 }
 0x267   : > { %2201 = vrot.lane.b32.xlu1 %v2164_v52, %s11150_s13 }
 0x268   : > { %v2239_v56 = vld.sshfl [vmem:[#allocation1 + $0x20] sm:$0xff pattern:$0x73625140]  ;;  %v2241_v57 = vld.sshfl [vmem:[#allocation1 + $0x28] sm:$0xff pattern:$0x73625140] }
 0x269   : > { %v11902_v60 = vld.sshfl [vmem:[#allocation1 + $0x30] sm:$0xff pattern:$0x73625140]  ;;  %v11904_v61 = vld.sshfl [vmem:[#allocation1 + $0x38] sm:$0xff pattern:$0x73625140] }
 0x26a   : > { %2288 = vst [vmem:[#allocation1 + $0x20] ss:$4 sm:$0xff] %v11883_v36  ;;  %v2254_v15 = vrot.slane %v2239_v56, 5  ;;  %v2081_v63 = vpop.permute.xlu1 %2080  ;;  %v2255_v6 = vrot.slane %v2241_v57, 5 }
 0x26b   : > { %v2086_v1 = vsel %vm2084_vm13, %v2081_v63, %v2085_v0  ;;  %vm13495_vm13 = vcmask 1047552  }
 0x26c   : > { %2267 = vrot.lane.b32.xlu2 %v2254_v15, %s11168_s26  ;;  %2087 = vst [vmem:[#allocation2 + $0x10] sm:$0x3] %v2086_v1 }
 0x26f   : > { %2203 = vrot.lane.b32.xlu1 %v2171_v2, %s11150_s13 }
 0x271   : > { %v2293_v7 = vld.sshfl [vmem:[#allocation1 + $0x20] sm:$0xff pattern:$0x73625140]  ;;  %v2294_v8 = vld.sshfl [vmem:[#allocation1 + $0x28] sm:$0xff pattern:$0x73625140] }
 0x272   : > { %v11910_v10 = vld.sshfl [vmem:[#allocation1 + $0x30] sm:$0xff pattern:$0x73625140]  ;;  %v11912_v53 = vld.sshfl [vmem:[#allocation1 + $0x38] sm:$0xff pattern:$0x73625140] }
 0x273   : > { %2401 = vst [vmem:[#allocation1 + $0x23] ss:$4 sm:$0xff] %v11883_v36  ;;  %v2327_v14 = vshrl.u32 %v2293_v7, 16  ;;  %v2330_v16 = vshll.u32 %v2293_v7, 16  ;;  %v11924_v46 = vld [vmem:[#allocation2 + $0x10] sm:$0x3] }
 0x274   : > { %2269 = vrot.lane.b32.xlu2 %v2255_v6, %s11168_s26  ;;  %v2334_v20 = vshrl.u32 %v2294_v8, 16  ;;  %v2337_v21 = vshll.u32 %v2294_v8, 16  ;;  %2106 = vst [vmem:[#allocation1] ss:$4 sm:$0xff] %v11924_v46 }
 0x275   : > { %v2329_v18 = vrot.slane %v2327_v14, 3  ;;  %v2332_v19 = vrot.slane %v2330_v16, 4 }
 0x276   : > { %v2336_v23 = vrot.slane %v2334_v20, 3  ;;  %v2339_v24 = vrot.slane %v2337_v21, 4 }
 0x277   : > { %v2333_v22 = vor.u32 %v2332_v19, %v2329_v18 }
 0x278   : > { %v2340_v30 = vor.u32 %v2339_v24, %v2336_v23 }
 0x279   : > { %2370 = vrot.lane.b32.xlu0 %v2333_v22, %s11169_s10 }
 0x27a   : > { %v2410_v25 = vld.sshfl [vmem:[#allocation1 + $0x20] sm:$0xff pattern:$0x73625140]  ;;  %v2412_v26 = vld.sshfl [vmem:[#allocation1 + $0x28] sm:$0xff pattern:$0x73625140] }
 0x27b   : > { %v11928_v27 = vld.sshfl [vmem:[#allocation1 + $0x30] sm:$0xff pattern:$0x73625140]  ;;  %v11930_v28 = vld.sshfl [vmem:[#allocation1 + $0x38] sm:$0xff pattern:$0x73625140]  ;;  %2429 = vrot.lane.b32.xlu1 %v2410_v25, %s11149_s9 }
 0x27c   : > { %2450 = vst [vmem:[#allocation1 + $0x20] ss:$4 sm:$0xff] %v11883_v36  ;;  %v11934_v29 = vld.sshfl [vmem:[#allocation1] sm:$0xff pattern:$0x73625140] }
 0x27d   : > { %13567 = vst [vmem:[#allocation31_spill] sm:$0xff] %v11934_v29 }
 0x27e   : > { %2117 = vst [vmem:[#allocation1] ss:$4 sm:$0xff] %v11862_v51 }
 0x281   : > { %2372 = vrot.lane.b32.xlu0 %v2340_v30, %s11169_s10 }
 0x283   : > { %v2455_v31 = vld.sshfl [vmem:[#allocation1 + $0x20] sm:$0xff pattern:$0x73625140]  ;;  %v11938_v32 = vld.sshfl [vmem:[#allocation1 + $0x28] sm:$0xff pattern:$0x73625140]  ;;  %2431 = vrot.lane.b32.xlu1 %v2412_v26, %s11149_s9 }
 0x284   : > { %v11941_v33 = vld.sshfl [vmem:[#allocation1 + $0x30] sm:$0xff pattern:$0x73625140]  ;;  %v11943_v62 = vld.sshfl [vmem:[#allocation1 + $0x38] sm:$0xff pattern:$0x73625140] }
 0x285   : > { %2579 = vst [vmem:[#allocation1 + $0x20] ss:$4 sm:$0xff] %v11883_v36  ;;  %v2120_v34 = vld.sshfl [vmem:[#allocation1] sm:$0xff pattern:$0x73625140]  ;;  %v2473_v55 = vshll.u32 %v2455_v31, 16 }
 0x286   : > { %v2121_v59 = vld.sshfl [vmem:[#allocation1 + $0x8] sm:$0xff pattern:$0x73625140]  ;;  %v2122_v35 = vld.sshfl [vmem:[#allocation1 + $0x10] sm:$0xff pattern:$0x73625140] }
 0x287   : > { %v2123_v40 = vld.sshfl [vmem:[#allocation1 + $0x18] sm:$0xff pattern:$0x73625140]  ;;  %v2144_v41 = vshrl.u32 %v2122_v35, 16  ;;  %v2147_v42 = vshll.u32 %v2122_v35, 16  ;;  %v2130_v43 = vshrl.u32 %v2120_v34, 16 }
 0x288   : > { %2128 = vst [vmem:[#allocation1] ss:$4 sm:$0xff] %v11924_v46  ;;  %v2151_v44 = vshrl.u32 %v2123_v40, 16  ;;  %v2154_v11 = vshll.u32 %v2123_v40, 16  ;;  %v2133_v3 = vshll.u32 %v2120_v34, 16  ;;  %v2476_v57 = vshll.u32 %v11938_v32, 16 }
 0x289   : > { %v2146_v47 = vrot.slane %v2144_v41, 6  ;;  %v2149_v48 = vrot.slane %v2147_v42, 7  ;;  %v2132_v49 = vrot.slane %v2130_v43, 6  ;;  %v2137_v15 = vshrl.u32 %v2121_v59, 16 }
 0x28a   : > { %v2153_v50 = vrot.slane %v2151_v44, 6  ;;  %v2156_v52 = vrot.slane %v2154_v11, 7  ;;  %v2135_v4 = vrot.slane %v2133_v3, 7  ;;  %v2140_v63 = vshll.u32 %v2121_v59, 16 }
 0x28b   : > { %v2150_v56 = vor.u32 %v2149_v48, %v2146_v47  ;;  %v2139_v16 = vrot.slane %v2137_v15, 6  ;;  %v2475_v19 = vrot.slane %v2473_v55, 1  ;;  %v2478_v20 = vrot.slane %v2476_v57, 1 }
 0x28c   : > { %v2588_v0 = vld.sshfl [vmem:[#allocation1 + $0x20] sm:$0xff pattern:$0x73625140]  ;;  %v2590_v1 = vld.sshfl [vmem:[#allocation1 + $0x28] sm:$0xff pattern:$0x73625140]  ;;  %v2157_v2 = vor.u32 %v2156_v52, %v2153_v50  ;;  %v2136_v6 = vor.u32 %v2135_v4, %v2132_v49 }
 0x28d   : > { %v11948_v7 = vld.sshfl [vmem:[#allocation1 + $0x30] sm:$0xff pattern:$0x73625140]  ;;  %v11950_v8 = vld.sshfl [vmem:[#allocation1 + $0x38] sm:$0xff pattern:$0x73625140]  ;;  %2197 = vrot.lane.b32.xlu1 %v2150_v56, %s11150_s13  ;;  %v10586_v24 = vpack.i.bf16 %v2478_v20, %v2475_v19 }
 0x28e   : > { %2644 = vst [vmem:[#allocation1 + $0x20] ss:$4 sm:$0xff] %v11883_v36  ;;  %2199 = vrot.lane.b32.xlu2 %v2157_v2, %s11150_s13  ;;  %2193 = vrot.lane.b32.xlu0 %v2136_v6, %s11150_s13  ;;  %v2142_v18 = vrot.slane %v2140_v63, 7  ;;  %v2500_v21 = vshrl.u32 %v2455_v31, 16  ;;  %v2479_v23 = vshll.u32 %v11941_v33, 16  ;;  %v2506_v43 = vshrl.u32 %v11941_v33, 16 }
 0x28f   : > { %v11956_v14 = vld.sshfl [vmem:[#allocation1] sm:$0xff pattern:$0x73625140]  ;;  %v2503_v44 = vshrl.u32 %v11938_v32, 16  ;;  %v2606_v11 = vrot.slane %v2588_v0, 7  ;;  %v2607_v48 = vrot.slane %v2590_v1, 7 }
 0x290   : > { %2228 = vst [vmem:[#allocation1] ss:$4 sm:$0xff] %v11862_v51  ;;  %v2143_v22 = vor.u32 %v2142_v18, %v2139_v16  ;;  %v2502_v25 = vor.u32 %v2500_v21, %v2475_v19  ;;  %v11968_v35 = vrot.slane %v2479_v23, 1 }
 0x291   : > { %v2505_v47 = vor.u32 %v2503_v44, %v2478_v20 }
 0x292   : > { %v2508_v3 = vor.u32 %v2506_v43, %v11968_v35 }
 0x295   : > { %v2649_v26 = vld.sshfl [vmem:[#allocation1 + $0x20] sm:$0xff pattern:$0x73625140]  ;;  %v2650_v30 = vld.sshfl [vmem:[#allocation1 + $0x28] sm:$0xff pattern:$0x73625140]  ;;  %2195 = vrot.lane.b32.xlu1 %v2143_v22, %s11150_s13 }
 0x296   : > { %v11961_v34 = vld.sshfl [vmem:[#allocation1 + $0x30] sm:$0xff pattern:$0x73625140]  ;;  %v11963_v59 = vld.sshfl [vmem:[#allocation1 + $0x38] sm:$0xff pattern:$0x73625140]  ;;  %10587 = vrot.lane.b32.xlu2 %v10586_v24, %s11170_s18  ;;  %2541 = vrot.lane.b32.xlu0 %v2502_v25, %s11170_s18 }
 0x297   : > { %2768 = vst [vmem:[#allocation1 + $0x22] ss:$4 sm:$0xff] %v11883_v36  ;;  %v2231_v31 = vld.sshfl [vmem:[#allocation1] sm:$0xff pattern:$0x73625140]  ;;  %v2684_v50 = vshrl.u32 %v2649_v26, 16 }
 0x298   : > { %v2233_v40 = vld.sshfl [vmem:[#allocation1 + $0x8] sm:$0xff pattern:$0x73625140]  ;;  %v2235_v41 = vld.sshfl [vmem:[#allocation1 + $0x10] sm:$0xff pattern:$0x73625140] }
 0x299   : > { %v2237_v42 = vld.sshfl [vmem:[#allocation1 + $0x18] sm:$0xff pattern:$0x73625140]  ;;  %v2252_v49 = vrot.slane %v2235_v41, 5  ;;  %v2250_v33 = vrot.slane %v2231_v31, 5  ;;  %v2687_v32 = vshll.u32 %v2649_v26, 16 }
 0x29a   : > { %2247 = vst [vmem:[#allocation1] ss:$4 sm:$0xff] %v11924_v46  ;;  %v2686_v52 = vrot.slane %v2684_v50, 5  ;;  %v2253_v63 = vrot.slane %v2237_v42, 5  ;;  %v2251_v2 = vrot.slane %v2233_v40, 5  ;;  %v2691_v16 = vshrl.u32 %v2650_v30, 16 }
 0x29b   : > { %v2689_v4 = vrot.slane %v2687_v32, 6  ;;  %v2694_v18 = vshll.u32 %v2650_v30, 16 }
 0x29c   : > { %v2693_v21 = vrot.slane %v2691_v16, 5 }
 0x29d   : > { %2620 = vrot.lane.b32.xlu1 %v2606_v11, %s11171_s29  ;;  %v2690_v6 = vor.u32 %v2689_v4, %v2686_v52  ;;  %v2696_v22 = vrot.slane %v2694_v18, 6 }
 0x29e   : > { %2545 = vrot.lane.b32.xlu2 %v2508_v3, %s11170_s18  ;;  %2543 = vrot.lane.b32.xlu0 %v2505_v47, %s11170_s18  ;;  %v2777_v40 = vld.sshfl [vmem:[#allocation1 + $0x20] sm:$0xff pattern:$0x73625140]  ;;  %v2779_v50 = vld.sshfl [vmem:[#allocation1 + $0x28] sm:$0xff pattern:$0x73625140] }
 0x29f   : > { %v2697_v25 = vor.u32 %v2696_v22, %v2693_v21 }
 0x2a1   : > { %v11977_v36 = vld.sshfl [vmem:[#allocation1] sm:$0xff pattern:$0x73625140] }
 0x2a2   : > { %2286 = vst [vmem:[#allocation1] ss:$4 sm:$0xff] %v11862_v51 }
 0x2a5   : > { %2622 = vrot.lane.b32.xlu1 %v2607_v48, %s11171_s29 }
 0x2a6   : > { %2263 = vrot.lane.b32.xlu0 %v2252_v49, %s11168_s26  ;;  %2259 = vrot.lane.b32.xlu2 %v2250_v33, %s11168_s26 }
 0x2a9   : > { %v2289_v55 = vld.sshfl [vmem:[#allocation1] sm:$0xff pattern:$0x73625140]  ;;  %v2290_v56 = vld.sshfl [vmem:[#allocation1 + $0x8] sm:$0xff pattern:$0x73625140] }
 0x2aa   : > { %v2291_v57 = vld.sshfl [vmem:[#allocation1 + $0x10] sm:$0xff pattern:$0x73625140]  ;;  %v2292_v15 = vld.sshfl [vmem:[#allocation1 + $0x18] sm:$0xff pattern:$0x73625140] }
 0x2ab   : > { %2297 = vst [vmem:[#allocation1] ss:$4 sm:$0xff] %v11924_v46  ;;  %v2299_v0 = vshrl.u32 %v2289_v55, 16  ;;  %v2302_v1 = vshll.u32 %v2289_v55, 16  ;;  %v2313_v26 = vshrl.u32 %v2291_v57, 16  ;;  %v2316_v31 = vshll.u32 %v2291_v57, 16 }
 0x2ac   : > { %v2320_v42 = vshrl.u32 %v2292_v15, 16  ;;  %v2323_v48 = vshll.u32 %v2292_v15, 16  ;;  %v2306_v49 = vshrl.u32 %v2290_v56, 16  ;;  %v2309_v33 = vshll.u32 %v2290_v56, 16 }
 0x2ad   : > { %2265 = vrot.lane.b32.xlu1 %v2253_v63, %s11168_s26  ;;  %v2301_v19 = vrot.slane %v2299_v0, 3  ;;  %v2304_v20 = vrot.slane %v2302_v1, 4  ;;  %v2315_v30 = vrot.slane %v2313_v26, 3  ;;  %v2318_v41 = vrot.slane %v2316_v31, 4 }
 0x2ae   : > { %2261 = vrot.lane.b32.xlu0 %v2251_v2, %s11168_s26  ;;  %2734 = vrot.lane.b32.xlu2 %v2690_v6, %s11148_s11  ;;  %v2322_v32 = vrot.slane %v2320_v42, 3  ;;  %v2325_v52 = vrot.slane %v2323_v48, 4  ;;  %v2308_v4 = vrot.slane %v2306_v49, 3  ;;  %v2311_v55 = vrot.slane %v2309_v33, 4 }
 0x2af   : > { %v2305_v24 = vor.u32 %v2304_v20, %v2301_v19  ;;  %v2319_v47 = vor.u32 %v2318_v41, %v2315_v30  ;;  %v12013_v41 = vld [vmem:[#allocation2 + $0x10] sm:$0xf] }
 0x2b0   : > { %v2326_v63 = vor.u32 %v2325_v52, %v2322_v32  ;;  %v2312_v0 = vor.u32 %v2311_v55, %v2308_v4 }
 0x2b2   : > { %v11987_v23 = vld.sshfl [vmem:[#allocation1] sm:$0xff pattern:$0x73625140] }
 0x2b3   : > { %2399 = vst [vmem:[#allocation1 + $0x3] ss:$4 sm:$0xff] %v11862_v51 }
 0x2b5   : > { %2362 = vrot.lane.b32.xlu1 %v2305_v24, %s11169_s10 }
 0x2b6   : > { %2798 = vrot.lane.b32.xlu0 %v2777_v40, %s11172_s16  ;;  %2736 = vrot.lane.b32.xlu2 %v2697_v25, %s11148_s11 }
 0x2ba   : > { %v2402_v43 = vld.sshfl [vmem:[#allocation1] sm:$0xff pattern:$0x73625140]  ;;  %v2404_v44 = vld.sshfl [vmem:[#allocation1 + $0x8] sm:$0xff pattern:$0x73625140] }
 0x2bb   : > { %v2406_v11 = vld.sshfl [vmem:[#allocation1 + $0x10] sm:$0xff pattern:$0x73625140]  ;;  %v2408_v3 = vld.sshfl [vmem:[#allocation1 + $0x18] sm:$0xff pattern:$0x73625140] }
 0x2bc   : > { %2418 = vst [vmem:[#allocation1 + $0x3] ss:$4 sm:$0xff] %v11924_v46 }
 0x2bd   : > { %2423 = vrot.lane.b32.xlu1 %v2404_v44, %s11149_s9 }
 0x2be   : > { %2800 = vrot.lane.b32.xlu0 %v2779_v50, %s11172_s16  ;;  %2366 = vrot.lane.b32.xlu2 %v2319_v47, %s11169_s10 }
 0x2c3   : > { %v11997_v57 = vld.sshfl [vmem:[#allocation1] sm:$0xff pattern:$0x73625140] }
 0x2c4   : > { %2448 = vst [vmem:[#allocation1] ss:$4 sm:$0xff] %v11862_v51 }
 0x2c6   : > { %2368 = vrot.lane.b32.xlu0 %v2326_v63, %s11169_s10  ;;  %2364 = vrot.lane.b32.xlu2 %v2312_v0, %s11169_s10 }
 0x2cb   : > { %v2451_v56 = vld.sshfl [vmem:[#allocation1] sm:$0xff pattern:$0x73625140]  ;;  %v2452_v15 = vld.sshfl [vmem:[#allocation1 + $0x8] sm:$0xff pattern:$0x73625140] }
 0x2cc   : > { %v2453_v1 = vld.sshfl [vmem:[#allocation1 + $0x10] sm:$0xff pattern:$0x73625140]  ;;  %v2454_v2 = vld.sshfl [vmem:[#allocation1 + $0x18] sm:$0xff pattern:$0x73625140] }
 0x2cd   : > { %2459 = vst [vmem:[#allocation1] ss:$4 sm:$0xff] %v11924_v46  ;;  %v2461_v6 = vshll.u32 %v2451_v56, 16  ;;  %v2464_v16 = vshll.u32 %v2452_v15, 16  ;;  %v2488_v19 = vshrl.u32 %v2451_v56, 16  ;;  %v2467_v25 = vshll.u32 %v2453_v1, 16  ;;  %v12009_v46 = vpop.permute.xlu2 %2267 }
 0x2ce   : > { %2427 = vrot.lane.b32.xlu0 %v2408_v3, %s11149_s9  ;;  %2425 = vrot.lane.b32.xlu2 %v2406_v11, %s11149_s9  ;;  %v2470_v26 = vshll.u32 %v2454_v2, 16  ;;  %v2494_v30 = vshrl.u32 %v2453_v1, 16  ;;  %v2497_v33 = vshrl.u32 %v2454_v2, 16  ;;  %v2491_v50 = vshrl.u32 %v2452_v15, 16 }
 0x2cf   : > { %v2463_v18 = vrot.slane %v2461_v6, 1  ;;  %v2466_v20 = vrot.slane %v2464_v16, 1  ;;  %v2469_v31 = vrot.slane %v2467_v25, 1  ;;  %v13479_v15 = vmov 0  }
 0x2d0   : > { %v2472_v40 = vrot.slane %v2470_v26, 1  ;;  %761 = vst.msk [vmem:[#allocation6] sm:$0x3] %vm13481_vm3, %v13479_v15  ;;  %10648 = vset.pattern.permute.xlu0 %v13479_v15  ;;  %10606 = vset.pattern.permute.xlu1 %v13479_v15 }
 0x2d1   : > { %v2490_v21 = vor.u32 %v2488_v19, %v2463_v18  ;;  %v10596_v24 = vpack.i.bf16 %v2466_v20, %v2463_v18  ;;  %v2496_v3 = vor.u32 %v2494_v30, %v2469_v31  ;;  %v2493_v52 = vor.u32 %v2491_v50, %v2466_v20  ;;  %749 = vst [vmem:[#allocation3] sm:$0xff] %v13479_v15 }
 0x2d2   : > { %v10591_v11 = vpack.i.bf16 %v2472_v40, %v2469_v31  ;;  %v2499_v32 = vor.u32 %v2497_v33, %v2472_v40  ;;  %10647 = vset.pattern.permute.xlu2 %v13479_v15  ;;  %762 = vst.msk [vmem:[#allocation6 + $0x2] sm:$0x3] %vm13481_vm3, %v13479_v15 }
 0x2d3   : > { %2533 = vrot.lane.b32.xlu1 %v2490_v21, %s11170_s18  ;;  %763 = vst.msk [vmem:[#allocation6 + $0x4] sm:$0x3] %vm13481_vm3, %v13479_v15 }
 0x2d4   : > { %v12006_v22 = vld.sshfl [vmem:[#allocation1] sm:$0xff pattern:$0x73625140]  ;;  %764 = vst.msk [vmem:[#allocation6 + $0x6] sm:$0x3] %vm13481_vm3, %v13479_v15 }
 0x2d5   : > { %2577 = vst [vmem:[#allocation1] ss:$4 sm:$0xff] %v11862_v51  ;;  %vm2964_vm3 = vsmask.f32 2304 }
 0x2d6   : > { %2421 = vrot.lane.b32.xlu0 %v2402_v43, %s11149_s9  ;;  %10597 = vrot.lane.b32.xlu2 %v10596_v24, %s11170_s18  ;;  %v12018_v43 = vpop.permute.xlu2 %2269  ;;  %765 = vst [vmem:[#allocation7] sm:$0x3] %v13479_v15 }
 0x2d7   : > { %13568 = vst [vmem:[#allocation32_spill] sm:$0xff] %v12018_v43 }
 0x2d8   : > { %766 = vst [vmem:[#allocation7 + $0x2] sm:$0x3] %v13479_v15 }
 0x2d9   : > { %v12025_v63 = vpop.permute.xlu1 %2201  ;;  %767 = vst [vmem:[#allocation7 + $0x4] sm:$0x3] %v13479_v15 }
 0x2da   : > { %768 = vst [vmem:[#allocation7 + $0x6] sm:$0x3] %v13479_v15 }
 0x2db   : > { %769 = vst [vmem:[#allocation8] sm:$0x3] %v13479_v15 }
 0x2dc   : > { %v2580_v42 = vld.sshfl [vmem:[#allocation1] sm:$0xff pattern:$0x73625140]  ;;  %v2582_v44 = vld.sshfl [vmem:[#allocation1 + $0x8] sm:$0xff pattern:$0x73625140] }
 0x2dd   : > { %v2584_v47 = vld.sshfl [vmem:[#allocation1 + $0x10] sm:$0xff pattern:$0x73625140]  ;;  %v2586_v48 = vld.sshfl [vmem:[#allocation1 + $0x18] sm:$0xff pattern:$0x73625140] }
 0x2de   : > { %2597 = vst [vmem:[#allocation1] ss:$4 sm:$0xff] %v12013_v41  ;;  %v2604_v49 = vrot.slane %v2584_v47, 7  ;;  %10592 = vrot.lane.b32.xlu0 %v10591_v11, %s11170_s18  ;;  %2537 = vrot.lane.b32.xlu2 %v2496_v3, %s11170_s18  ;;  %v2603_v0 = vrot.slane %v2582_v44, 7  ;;  %v2605_v1 = vrot.slane %v2586_v48, 7  ;;  %v2602_v2 = vrot.slane %v2580_v42, 7 }
 0x2df   : > { %770 = vst [vmem:[#allocation8 + $0x2] sm:$0x3] %v13479_v15 }
 0x2e0   : > { %2616 = vrot.lane.b32.xlu1 %v2604_v49, %s11171_s29  ;;  %771 = vst [vmem:[#allocation8 + $0x4] sm:$0x3] %v13479_v15 }
 0x2e1   : > { %v12050_v21 = vpop.permute.xlu1 %2203  ;;  %772 = vst [vmem:[#allocation8 + $0x6] sm:$0x3] %v13479_v15 }
 0x2e2   : > { %13569 = vst [vmem:[#allocation33_spill] sm:$0xff] %v12050_v21 }
 0x2e3   : > { %773 = vst [vmem:[#allocation9] sm:$0x3] %v13479_v15 }
 0x2e4   : > { %774 = vst [vmem:[#allocation9 + $0x2] sm:$0x3] %v13479_v15 }
 0x2e5   : > { %v12021_v4 = vld.sshfl [vmem:[#allocation1] sm:$0xff pattern:$0x73625140]  ;;  %v12023_v55 = vld.sshfl [vmem:[#allocation1 + $0x8] sm:$0xff pattern:$0x73625140] }
 0x2e6   : > { %2642 = vst [vmem:[#allocation1] ss:$4 sm:$0xff] %v11862_v51  ;;  %2539 = vrot.lane.b32.xlu0 %v2499_v32, %s11170_s18  ;;  %2535 = vrot.lane.b32.xlu2 %v2493_v52, %s11170_s18 }
 0x2e7   : > { %775 = vst [vmem:[#allocation9 + $0x4] sm:$0x3] %v13479_v15 }
 0x2e8   : > { %2614 = vrot.lane.b32.xlu1 %v2603_v0, %s11171_s29  ;;  %v12031_v56 = vpop.permute.xlu2 %2199  ;;  %776 = vst [vmem:[#allocation9 + $0x6] sm:$0x3] %v13479_v15 }
 0x2eb   : > { %v12045_v20 = vpop.permute.xlu0 %2370 }
 0x2ed   : > { %v2645_v6 = vld.sshfl [vmem:[#allocation1] sm:$0xff pattern:$0x73625140]  ;;  %v2646_v16 = vld.sshfl [vmem:[#allocation1 + $0x8] sm:$0xff pattern:$0x73625140] }
 0x2ee   : > { %v2647_v18 = vld.sshfl [vmem:[#allocation1 + $0x10] sm:$0xff pattern:$0x73625140]  ;;  %v2648_v19 = vld.sshfl [vmem:[#allocation1 + $0x18] sm:$0xff pattern:$0x73625140]  ;;  %2618 = vrot.lane.b32.xlu2 %v2605_v1, %s11171_s29  ;;  %2612 = vrot.lane.b32.xlu0 %v2602_v2, %s11171_s29 }
 0x2ef   : > { %2653 = vst [vmem:[#allocation1] ss:$4 sm:$0xff] %v12013_v41  ;;  %v2677_v24 = vshrl.u32 %v2648_v19, 16  ;;  %v2680_v25 = vshll.u32 %v2648_v19, 16  ;;  %v2670_v26 = vshrl.u32 %v2647_v18, 16  ;;  %v2673_v31 = vshll.u32 %v2647_v18, 16 }
 0x2f0   : > { %v12052_v40 = vpop.permute.xlu2 %10587  ;;  %v2663_v30 = vshrl.u32 %v2646_v16, 16  ;;  %v2666_v42 = vshll.u32 %v2646_v16, 16  ;;  %v2656_v50 = vshrl.u32 %v2645_v6, 16  ;;  %v2659_v32 = vshll.u32 %v2645_v6, 16  ;;  %v12067_v6 = vpop.permute.xlu1 %2429 }
 0x2f1   : > { %v2679_v44 = vrot.slane %v2677_v24, 5  ;;  %v2682_v11 = vrot.slane %v2680_v25, 6  ;;  %v2672_v3 = vrot.slane %v2670_v26, 5  ;;  %v2675_v47 = vrot.slane %v2673_v31, 6 }
 0x2f2   : > { %v2665_v48 = vrot.slane %v2663_v30, 5  ;;  %v2668_v49 = vrot.slane %v2666_v42, 6  ;;  %v2658_v16 = vrot.slane %v2656_v50, 5  ;;  %v2661_v18 = vrot.slane %v2659_v32, 6 }
 0x2f3   : > { %v2683_v33 = vor.u32 %v2682_v11, %v2679_v44  ;;  %v2676_v52 = vor.u32 %v2675_v47, %v2672_v3  ;;  %v12069_v19 = vpop.permute.xlu0 %2372  ;;  %v2698_v3 = vshrl.u32 %v11961_v34, 16  ;;  %v2701_v47 = vshll.u32 %v11961_v34, 16 }
 0x2f4   : > { %v2669_v0 = vor.u32 %v2668_v49, %v2665_v48  ;;  %13570 = vst [vmem:[#allocation34_spill] sm:$0xff] %v12069_v19  ;;  %v2662_v25 = vor.u32 %v2661_v18, %v2658_v16  ;;  %v5155_v48 = vld [vmem:[#allocation6] sm:$0x2]  ;;  %v2172_v49 = vshrl.u32 %v11896_v45, 16 }
 0x2f5   : > { %2732 = vrot.lane.b32.xlu1 %v2683_v33, %s11148_s11  ;;  %v2175_v33 = vshll.u32 %v11896_v45, 16  ;;  %v2700_v50 = vrot.slane %v2698_v3, 5  ;;  %v2703_v32 = vrot.slane %v2701_v47, 6 }
 0x2f6   : > { %v12060_v1 = vld.sshfl [vmem:[#allocation1] sm:$0xff pattern:$0x73625140]  ;;  %v12062_v2 = vld.sshfl [vmem:[#allocation1 + $0x8] sm:$0xff pattern:$0x73625140]  ;;  %2730 = vrot.lane.b32.xlu0 %v2676_v52, %s11148_s11  ;;  %2728 = vrot.lane.b32.xlu2 %v2669_v0, %s11148_s11 }
 0x2f7   : > { %2766 = vst [vmem:[#allocation1 + $0x2] ss:$4 sm:$0xff] %v11862_v51  ;;  %v2177_v18 = vrot.slane %v2175_v33, 7 }
 0x2f8   : > { %v12071_v24 = vpop.permute.xlu2 %2545  ;;  %v12087_v11 = vpop.permute.xlu1 %2431 }
 0x2f9   : > { %13571 = vst [vmem:[#allocation35_spill] sm:$0xff] %v12087_v11 }
 0x2fd   : > { %2726 = vrot.lane.b32.xlu1 %v2662_v25, %s11148_s11  ;;  %v2704_v25 = vor.u32 %v2703_v32, %v2700_v50  ;;  %v2485_v50 = vshll.u32 %v12006_v22, 16 }
 0x2fe   : > { %v2769_v51 = vld.sshfl [vmem:[#allocation1] sm:$0xff pattern:$0x73625140]  ;;  %v2771_v26 = vld.sshfl [vmem:[#allocation1 + $0x8] sm:$0xff pattern:$0x73625140] }
 0x2ff   : > { %v2773_v31 = vld.sshfl [vmem:[#allocation1 + $0x10] sm:$0xff pattern:$0x73625140]  ;;  %v2775_v30 = vld.sshfl [vmem:[#allocation1 + $0x18] sm:$0xff pattern:$0x73625140] }
 0x300   : > { %2785 = vst [vmem:[#allocation1 + $0x2] ss:$4 sm:$0xff] %v12013_v41  ;;  %2796 = vrot.lane.b32.xlu0 %v2775_v30, %s11172_s16  ;;  %2794 = vrot.lane.b32.xlu2 %v2773_v31, %s11172_s16  ;;  %v12083_v42 = vpop.permute.xlu0 %2193  ;;  %v12085_v44 = vpop.permute.xlu2 %2259  ;;  %v2608_v41 = vrot.slane %v11948_v7, 7  ;;  %v2174_v7 = vrot.slane %v2172_v49, 6  ;;  %v2344_v31 = vshll.u32 %v11910_v10, 16  ;;  %v2256_v49 = vrot.slane %v11902_v60, 5 }
 0x301   : > { %v12104_v16 = vpop.permute.xlu1 %2197  ;;  %v2781_v30 = vld.sshfl [vmem:[#allocation1 + $0x30] sm:$0xff pattern:$0x73625140]  ;;  %v2509_v60 = vshrl.u32 %v11943_v62, 16 }
 0x302   : > { %v2178_v45 = vor.u32 %v2177_v18, %v2174_v7 }
 0x305   : > { %2790 = vrot.lane.b32.xlu1 %v2769_v51, %s11172_s16  ;;  %v2341_v51 = vshrl.u32 %v11910_v10, 16  ;;  %v2482_v10 = vshll.u32 %v11943_v62, 16 }
 0x307   : > { %v12096_v52 = vld.sshfl [vmem:[#allocation1] sm:$0xff pattern:$0x73625140]  ;;  %v2343_v47 = vrot.slane %v2341_v51, 3  ;;  %v12128_v18 = vrot.slane %v2482_v10, 1  ;;  %v2715_v10 = vshll.u32 %v12060_v1, 16 }
 0x308   : > { %2624 = vrot.lane.b32.xlu0 %v2608_v41, %s11171_s29  ;;  %2792 = vrot.lane.b32.xlu2 %v2771_v26, %s11172_s16  ;;  %v12100_v0 = vpop.permute.xlu0 %2541  ;;  %v12102_v34 = vpop.permute.xlu2 %2734  ;;  %5158 = vst [vmem:[#allocation1] sm:$0xff] %v5155_v48  ;;  %v2346_v48 = vrot.slane %v2344_v31, 4 }
 0x309   : > { %v12115_v41 = vpop.permute.xlu1 %2195 }
 0x30a   : > { %v2347_v33 = vor.u32 %v2346_v48, %v2343_v47  ;;  %v2708_v47 = vshll.u32 %v11963_v59, 16 }
 0x30d   : > { %2738 = vrot.lane.b32.xlu1 %v2704_v25, %s11148_s11  ;;  %v12130_v25 = vrot.slane %v2485_v50, 1 }
 0x310   : > { %2205 = vrot.lane.b32.xlu0 %v2178_v45, %s11150_s13  ;;  %2802 = vrot.lane.b32.xlu2 %v2781_v30, %s11172_s16  ;;  %v12111_v26 = vpop.permute.xlu0 %2543  ;;  %v12113_v3 = vpop.permute.xlu2 %2736  ;;  %v2512_v45 = vshrl.u32 %v12006_v22, 16  ;;  %v2705_v30 = vshrl.u32 %v11963_v59, 16  ;;  %v2610_v59 = vrot.slane %v12021_v4, 7  ;;  %v2257_v4 = vrot.slane %v11904_v61, 5 }
 0x311   : > { %v12134_v51 = vpop.permute.xlu1 %2620 }
 0x312   : > { %v2514_v31 = vor.u32 %v2512_v45, %v12130_v25  ;;  %v2707_v48 = vrot.slane %v2705_v30, 5 }
 0x315   : > { %2271 = vrot.lane.b32.xlu1 %v2256_v49, %s11168_s26  ;;  %v2710_v49 = vrot.slane %v2708_v47, 6  ;;  %v2182_v47 = vshll.u32 %v11898_v9, 16 }
 0x317   : > { %v2711_v50 = vor.u32 %v2710_v49, %v2707_v48  ;;  %v2355_v48 = vshrl.u32 %v11987_v23, 16  ;;  %v2358_v49 = vshll.u32 %v11987_v23, 16 }
 0x318   : > { %2433 = vrot.lane.b32.xlu0 %v11928_v27, %s11149_s9  ;;  %2374 = vrot.lane.b32.xlu2 %v2347_v33, %s11169_s10  ;;  %v12124_v32 = vpop.permute.xlu0 %2263  ;;  %v12126_v7 = vpop.permute.xlu2 %2366  ;;  %v2511_v27 = vor.u32 %v2509_v60, %v12128_v18  ;;  %v2712_v33 = vshrl.u32 %v12060_v1, 16  ;;  %v2179_v1 = vshrl.u32 %v11898_v9, 16 }
 0x319   : > { %v12153_v60 = vpop.permute.xlu1 %2622 }
 0x31a   : > { %v2714_v45 = vrot.slane %v2712_v33, 5  ;;  %v2189_v33 = vshll.u32 %v11956_v14, 16 }
 0x31c   : > { %v2191_v15 = vrot.slane %v2189_v33, 7 }
 0x31d   : > { %2527 = vrot.lane.b32.xlu1 %v11968_v35, %s11170_s18  ;;  %v2609_v35 = vrot.slane %v11950_v8, 7 }
 0x320   : > { %2547 = vrot.lane.b32.xlu2 %v2511_v27, %s11170_s18  ;;  %2549 = vrot.lane.b32.xlu0 %v2514_v31, %s11170_s18  ;;  %v12144_v62 = vpop.permute.xlu0 %2261  ;;  %v12146_v22 = vpop.permute.xlu2 %2364  ;;  %v2717_v27 = vrot.slane %v2715_v10, 6  ;;  %v2783_v10 = vld.sshfl [vmem:[#allocation1 + $0x38] sm:$0xff pattern:$0x73625140] }
 0x321   : > { %v12175_v61 = vpop.permute.xlu1 %2265 }
 0x322   : > { %v2718_v30 = vor.u32 %v2717_v27, %v2714_v45  ;;  %v2357_v27 = vrot.slane %v2355_v48, 3 }
 0x325   : > { %2626 = vrot.lane.b32.xlu1 %v2609_v35, %s11171_s29  ;;  %v2186_v35 = vshrl.u32 %v11956_v14, 16 }
 0x327   : > { %v2188_v23 = vrot.slane %v2186_v35, 6 }
 0x328   : > { %2628 = vrot.lane.b32.xlu2 %v2610_v59, %s11171_s29  ;;  %2740 = vrot.lane.b32.xlu0 %v2711_v50, %s11148_s11  ;;  %v12157_v31 = vpop.permute.xlu0 %2798  ;;  %v12159_v8 = vpop.permute.xlu2 %2425  ;;  %v2181_v59 = vrot.slane %v2179_v1, 6  ;;  %v2184_v50 = vrot.slane %v2182_v47, 7  ;;  %v2348_v47 = vshrl.u32 %v11912_v53, 16 }
 0x329   : > { %v2192_v1 = vor.u32 %v2191_v15, %v2188_v23  ;;  %v12186_v35 = vpop.permute.xlu1 %2362 }
 0x32a   : > { %v2185_v29 = vor.u32 %v2184_v50, %v2181_v59  ;;  %v2350_v48 = vrot.slane %v2348_v47, 3  ;;  %v2719_v50 = vshrl.u32 %v12062_v2, 16 }
 0x32c   : > { %v2721_v23 = vrot.slane %v2719_v50, 5 }
 0x32d   : > { %2742 = vrot.lane.b32.xlu1 %v2718_v30, %s11148_s11  ;;  %v2360_v30 = vrot.slane %v2358_v49, 4 }
 0x32f   : > { %v2361_v14 = vor.u32 %v2360_v30, %v2357_v27  ;;  %v2722_v27 = vshll.u32 %v12062_v2, 16 }
 0x330   : > { %2804 = vrot.lane.b32.xlu2 %v2783_v10, %s11172_s16  ;;  %2273 = vrot.lane.b32.xlu0 %v2257_v4, %s11168_s26  ;;  %v12171_v9 = vpop.permute.xlu0 %2800  ;;  %v12173_v45 = vpop.permute.xlu2 %10597  ;;  %v2351_v10 = vshll.u32 %v11912_v53, 16 }
 0x331   : > { %v12197_v59 = vpop.permute.xlu1 %2423 }
 0x332   : > { %v2353_v49 = vrot.slane %v2351_v10, 4 }
 0x334   : > { %v2354_v15 = vor.u32 %v2353_v49, %v2350_v48 }
 0x335   : > { %2207 = vrot.lane.b32.xlu1 %v2185_v29, %s11150_s13  ;;  %v2258_v29 = vrot.slane %v11977_v36, 5  ;;  %v10601_v36 = vpack.i.bf16 %v12130_v25, %v12128_v18  ;;  %v2788_v25 = vld.sshfl [vmem:[#allocation1 + $0x8] sm:$0xff pattern:$0x73625140] }
 0x338   : > { %2378 = vrot.lane.b32.xlu0 %v2361_v14, %s11169_s10  ;;  %2209 = vrot.lane.b32.xlu2 %v2192_v1, %s11150_s13  ;;  %v12182_v4 = vpop.permute.xlu0 %2368  ;;  %v12184_v58 = vpop.permute.xlu2 %2537  ;;  %v2724_v14 = vrot.slane %v2722_v27, 6  ;;  %v2213_v27 = vsel %vm13485_vm9, %v12104_v16, %v12031_v56 }
 0x33a   : > { %v2725_v18 = vor.u32 %v2724_v14, %v2721_v23  ;;  %v2212_v23 = vsel %vm13485_vm9, %v12115_v41, %v12104_v16  ;;  %v2211_v16 = vsel %vm13485_vm9, %v12083_v42, %v12115_v41  ;;  %v2637_v42 = vsel %vm13490_vm4, %v12134_v51, %v12153_v60 }
 0x33b   : > { %v2279_v41 = vsel %vm13493_vm7, %v12144_v62, %v12124_v32 }
 0x33d   : > { %2275 = vrot.lane.b32.xlu1 %v2258_v29, %s11168_s26  ;;  %v12235_v29 = vsel %vm13485_vm9, %v12025_v63, %v12050_v21 }
 0x340   : > { %2806 = vrot.lane.b32.xlu0 %v12096_v52, %s11172_s16  ;;  %2376 = vrot.lane.b32.xlu2 %v2354_v15, %s11169_s10  ;;  %v12193_v53 = vpop.permute.xlu0 %2427  ;;  %v12195_v33 = vpop.permute.xlu2 %2535  ;;  %v12240_v15 = vsel %vm13493_vm7, %v12009_v46, %v12018_v43 }
 0x341   : > { %v2561_v50 = vsel %vm2551_vm8, %v12195_v33, %v12184_v58 }
 0x345   : > { %2435 = vrot.lane.b32.xlu1 %v11930_v28, %s11149_s9  ;;  %v2611_v28 = vrot.slane %v12023_v55, 7  ;;  %v12213_v1 = vpop.permute.xlu1 %2533 }
 0x348   : > { %10602 = vrot.lane.b32.xlu0 %v10601_v36, %s11170_s18  ;;  %2437 = vrot.lane.b32.xlu2 %v11997_v57, %s11149_s9  ;;  %v12208_v52 = vpop.permute.xlu0 %2421  ;;  %v12210_v30 = vpop.permute.xlu2 %2618  ;;  %v2214_v36 = vsel %vm13485_vm9, %v12031_v56, %v12025_v63  ;;  %v12264_v56 = vsel %vm2380_vm1, %v12045_v20, %v12069_v19  ;;  %vm12294_vm9 = vmand %vm13494_vm10, %vm2964_vm3  ;;  %s11177_s9 = smov 52  }
 0x349   : > { %v2823_v63 = vsel %vm11556_vm5, %v11921_v17, %v2214_v36  ;;  %v2822_v17 = vsel %vm11556_vm5, %v11919_v54, %v2213_v27  ;;  %v2821_v36 = vsel %vm11556_vm5, %v11917_v13, %v2212_v23  ;;  %v3015_v54 = vsel %vm2866_vm12, 4294967295, %v13486_v39  ;;  %vm12346_vm3 = vmand %vm2866_vm12, %vm2867_vm2 }
 0x34a   : > { %v12315_v19 = vsel %vm2878_vm6, %v3015_v54, 0  ;;  %v2836_v11 = vsel %vm13494_vm10, %v2821_v36, %v2279_v41  ;;  %vm13578_vm12 = vsmask.f32 7424 }
 0x34b   : > { %vm12373_vm2 = vmand %vm13495_vm13, %vm13578_vm12  ;;  %vm13596_vm13 = vcmask 1042432  }
 0x34d   : > { %2630 = vrot.lane.b32.xlu1 %v2611_v28, %s11171_s29 }
 0x350   : > { %2808 = vrot.lane.b32.xlu0 %v2788_v25, %s11172_s16  ;;  %2744 = vrot.lane.b32.xlu2 %v2725_v18, %s11148_s11  ;;  %v12218_v2 = vpop.permute.xlu0 %10592  ;;  %v12220_v57 = vpop.permute.xlu2 %2728  ;;  %s13574_s16 = sld [smem:[#allocation38_spill]]  ;;  %s11176_s11 = smov 112  }
 0x352   : > { %v12222_v47 = vpop.permute.xlu1 %2616 }
 0x356   : > { %v3004_v39 = vld [vmem:[%s13574_s16] sm:$0xff]  ;;  %s13583_s16 = sld [smem:[#allocation37_spill]] }
 0x357   : > { %3007 = vperm.xlu1 %10606, %v3004_v39   ;;  %v10600_v39 = vunpack.i.h.bf16 %v12173_v45 }
 0x358   : > { %v12224_v10 = vpop.permute.xlu0 %2539 }
 0x359   : > { %v2562_v54 = vsel %vm2551_vm8, %v12184_v58, %v12224_v10 }
 0x35a   : > { %v12226_v48 = vpop.permute.xlu2 %2794  ;;  %v12228_v55 = vpop.permute.xlu1 %2614 }
 0x35b   : > { %v2634_v18 = vsel %vm13490_vm4, %v12228_v55, %v12222_v47  ;;  %vm2975_vm4 = vcmask 1043456  }
 0x35c   : > { %v2933_v27 = vsel %vm2926_vm15, %v2561_v50, %v2634_v18  ;;  %v2280_v50 = vsel %vm13493_vm7, %v12124_v32, %v12175_v61  ;;  %v2281_v18 = vsel %vm13493_vm7, %v12175_v61, %v12009_v46  ;;  %v2820_v32 = vsel %vm11556_vm5, %v11915_v12, %v2211_v16 }
 0x35d   : > { %v2278_v46 = vsel %vm13493_vm7, %v12085_v44, %v12144_v62  ;;  %v2840_v12 = vsel %vm13494_vm10, %v2822_v17, %v2280_v50  ;;  %v13577_v44 = vunpack.i.l.bf16 %v12218_v2  ;;  %v2844_v36 = vsel %vm13494_vm10, %v2823_v63, %v2281_v18 }
 0x35e   : > { %v2563_v17 = vsel %vm2551_vm8, %v12224_v10, %v12100_v0  ;;  %vm13581_vm7 = vcmask 490496  }
 0x35f   : > { %v2553_v62 = vsel %vm2551_vm8, %v10600_v39, %v13577_v44 }
 0x360   : > { %v12230_v49 = vpop.permute.xlu0 %2612 }
 0x362   : > { %v12258_v14 = vpop.permute.xlu2 %2792 }
 0x363   : > { %v2812_v43 = vsel %vm2810_vm11, %v12258_v14, %v12226_v48 }
 0x367   : > { %v2733_v25 = vpop.permute.xlu1 %2732 }
 0x368   : > { %v2731_v28 = vpop.permute.xlu0 %2730 }
 0x369   : > { %v2748_v13 = vsel %vm2746_vm0, %v12220_v57, %v2731_v28  ;;  %v2749_v63 = vsel %vm2746_vm0, %v2731_v28, %v2733_v25  ;;  %v10595_v28 = vunpack.i.h.bf16 %v12218_v2 }
 0x36a   : > { %v2967_v38 = vsel %vm12294_vm9, %v2933_v27, %v2748_v13  ;;  %v2382_v13 = vsel %vm2380_vm1, %v12146_v22, %v12126_v7  ;;  %v12362_v41 = vpop.permute.xlu2 %2802 }
 0x36b   : > { %v2981_v21 = vsel %vm2975_vm4, %v2967_v38, %v2812_v43  ;;  %v2564_v38 = vsel %vm2551_vm8, %v12100_v0, %v12111_v26  ;;  %v2441_v43 = vsel %vm2439_vm14, %v12197_v59, %v12159_v8  ;;  %v2870_v50 = vsel %vm12346_vm3, %v2836_v11, %v2382_v13 }
 0x36c   : > { %v3019_v27 = vand.u32 %v12315_v19, %v2981_v21  ;;  %v12338_v21 = vsel %vm2746_vm0, %v12102_v34, %v12113_v3  ;;  %v12341_v61 = vsel %vm2926_vm15, %v2564_v38, %v2637_v42  ;;  %v2750_v38 = vsel %vm2746_vm0, %v2733_v25, %v12102_v34 }
 0x36d   : > { %v2885_v18 = vsel %vm2878_vm6, %v2870_v50, %v2441_v43  ;;  %v2381_v0 = vsel %vm2380_vm1, %v12186_v35, %v12146_v22  ;;  %v2636_v11 = vsel %vm13581_vm7, %v12210_v30, %v12134_v51  ;;  %v12394_v22 = vld [vmem:[%s13583_s16] sm:$0xf]  ;;  %s11179_s16 = smov 44  }
 0x36e   : > { %3054 = vmatpush.bf16.msra.mxu1 %v3019_v27  ;;  %v2832_v27 = vsel %vm13494_vm10, %v2820_v32, %v2278_v46  ;;  %vm13582_vm10 = vmmov %vm13581_vm7  ;;  %v2918_v10 = vsel %vm12373_vm2, %v2885_v18, %v2553_v62  ;;  %v2941_v32 = vsel %vm2926_vm15, %v2563_v17, %v2636_v11  ;;  %vm13496_vm7 = vcmask 220160  }
 0x36f   : > { %v2727_v42 = vpop.permute.xlu1 %2726  ;;  %v2635_v34 = vsel %vm13582_vm10, %v12222_v47, %v12210_v30  ;;  %v2969_v47 = vsel %vm12294_vm9, %v2941_v32, %v2750_v38  ;;  %v2383_v46 = vsel %vm2380_vm1, %v12126_v7, %v12182_v4  ;;  %v2633_v43 = vsel %vm13582_vm10, %v12230_v49, %v12228_v55  ;;  %vm13586_vm12 = vmmov %vm13582_vm10 }
 0x370   : > { %v2937_v13 = vsel %vm2926_vm15, %v2562_v54, %v2635_v34  ;;  %v2384_v62 = vsel %vm2380_vm1, %v12182_v4, %v12045_v20  ;;  %v2747_v54 = vsel %vm2746_vm0, %v2727_v42, %v12220_v57  ;;  %v2815_v7 = vsel %vm2810_vm11, %v12157_v31, %v12171_v9 }
 0x371   : > { %v2968_v35 = vsel %vm12294_vm9, %v2937_v13, %v2749_v63  ;;  %v2442_v55 = vsel %vm2439_vm14, %v12159_v8, %v12193_v53  ;;  %v2443_v20 = vsel %vm2439_vm14, %v12193_v53, %v12067_v6  ;;  %v2560_v4 = vsel %vm2551_vm8, %v12213_v1, %v12195_v33 }
 0x372   : > { %v2797_v25 = vpop.permute.xlu0 %2796  ;;  %3055 = vmatpush.bf16.msra.mxu1 %v2918_v10  ;;  %v2929_v57 = vsel %vm2926_vm15, %v2560_v4, %v2633_v43  ;;  %v13584_v42 = vunpack.i.l.bf16 %v12218_v2  ;;  %v13585_v38 = vunpack.i.l.bf16 %v12052_v40  ;;  %v2871_v33 = vsel %vm12346_vm3, %v2840_v12, %v2383_v46  ;;  %v12451_v18 = vpop.permute.xlu2 %2374 }
 0x373   : > { %v2813_v51 = vsel %vm2810_vm11, %v12226_v48, %v2797_v25  ;;  %v2814_v30 = vsel %vm2810_vm11, %v2797_v25, %v12157_v31  ;;  %v2966_v63 = vsel %vm12294_vm9, %v2929_v57, %v2747_v54  ;;  %v2872_v1 = vsel %vm12346_vm3, %v2844_v36, %v2384_v62  ;;  %v13591_v54 = vld [vmem:[#allocation33_spill] sm:$0xff] }
 0x374   : > { %v2984_v44 = vsel %vm2975_vm4, %v2968_v35, %v2813_v51  ;;  %v2987_v48 = vsel %vm2975_vm4, %v2969_v47, %v2814_v30  ;;  %v2554_v31 = vsel %vm2551_vm8, %v13584_v42, %v10595_v28  ;;  %v2555_v8 = vsel %vm2551_vm8, %v10595_v28, %v13585_v38  ;;  %v13597_v42 = vld [vmem:[#allocation34_spill] sm:$0xff] }
 0x375   : > { %v3021_v17 = vand.u32 %v12315_v19, %v2984_v44  ;;  %v3023_v50 = vand.u32 %v12315_v19, %v2987_v48  ;;  %8910 = vmatmul.msk.bf16.vlgmr.msra.gmra.mxu1 %vm13496_vm7, %v12394_v22  ;;  %v2440_v2 = vsel %vm2439_vm14, %v12208_v52, %v12197_v59  ;;  %v2889_v34 = vsel %vm2878_vm6, %v2871_v33, %v2442_v55 }
 0x376   : > { %v10599_v10 = vunpack.i.l.bf16 %v12173_v45  ;;  %v2919_v36 = vsel %vm12373_vm2, %v2889_v34, %v2554_v31  ;;  %v2869_v59 = vsel %vm12346_vm3, %v2832_v27, %v2381_v0  ;;  %v2970_v13 = vsel %vm12294_vm9, %v12341_v61, %v12338_v21  ;;  %v13589_v61 = vld [vmem:[#allocation35_spill] sm:$0xff] }
 0x377   : > { %v2791_v49 = vpop.permute.xlu1 %2790  ;;  %3067 = vmatpush.bf16.msra.mxu2 %v3021_v17  ;;  %3080 = vmatpush.bf16.msra.mxu3 %v3023_v50  ;;  %v2881_v32 = vsel %vm2878_vm6, %v2869_v59, %v2440_v2  ;;  %v2990_v51 = vsel %vm2975_vm4, %v2970_v13, %v2815_v7  ;;  %v13587_v27 = vsel %vm11556_vm5, %v11886_v37, %v12235_v29  ;;  %vm13588_vm10 = vcmask 1042432   ;;  %v13593_v50 = vld [vmem:[#allocation28_spill] sm:$0xff] }
 0x378   : > { %v2811_v53 = vsel %vm2810_vm11, %v2791_v49, %v12258_v14  ;;  %v2893_v14 = vsel %vm2878_vm6, %v2872_v1, %v2443_v20  ;;  %v2565_v0 = vsel %vm2551_vm8, %v12111_v26, %v12071_v24  ;;  %v2444_v35 = vsel %vm2439_vm14, %v12067_v6, %v13589_v61  ;;  %v13594_v20 = vld [vmem:[#allocation32_spill] sm:$0xff] }
 0x379   : > { %v2978_v11 = vsel %vm2975_vm4, %v2966_v63, %v2811_v53  ;;  %v2920_v25 = vsel %vm12373_vm2, %v2893_v14, %v2555_v8  ;;  %v2552_v37 = vsel %vm2551_vm8, %v10599_v10, %v10600_v39  ;;  %v10590_v26 = vunpack.i.h.bf16 %v12052_v40 }
 0x37a   : > { %v3017_v28 = vand.u32 %v12315_v19, %v2978_v11  ;;  %v2625_v12 = vpop.permute.xlu0 %2624  ;;  %v3025_v6 = vand.u32 %v12315_v19, %v2990_v51  ;;  %v2816_v45 = vsel %vm2810_vm11, %v12171_v9, %v12362_v41  ;;  %v2548_v44 = vpop.permute.xlu2 %2547  ;;  %v2386_v31 = vsel %vm2380_vm1, %v13597_v42, %v12451_v18 }
 0x37b   : > { %v2638_v52 = vsel %vm13586_vm12, %v12153_v60, %v2625_v12  ;;  %3068 = vmatpush.bf16.msra.mxu2 %v2919_v36  ;;  %3081 = vmatpush.bf16.msra.mxu3 %v2920_v25  ;;  %v2848_v60 = vsel %vm13588_vm10, %v13587_v27, %v12240_v15  ;;  %v2917_v15 = vsel %vm12373_vm2, %v2881_v32, %v2552_v37  ;;  %vm13592_vm12 = vcmask 1039360  }
 0x37c   : > { %3041 = vmatpush.bf16.msra.mxu0 %v3017_v28  ;;  %v2873_v21 = vsel %vm12346_vm3, %v2848_v60, %v12264_v56  ;;  %v2949_v30 = vsel %vm2926_vm15, %v2565_v0, %v2638_v52  ;;  %vm13595_vm10 = vcmask 1031168   ;;  %v2566_v10 = vsel %vm2551_vm8, %v12071_v24, %v2548_v44 }
 0x37d   : > { %v2897_v39 = vsel %vm2878_vm6, %v2873_v21, %v2444_v35 }
 0x37e   : > { %8911 = vmatmul.msk.bf16.vlgmr.msra.gmra.mxu2 %vm13496_vm7, %v12394_v22  ;;  %8912 = vmatmul.msk.bf16.vlgmr.msra.gmra.mxu3 %vm13496_vm7, %v12394_v22 }
 0x37f   : > { %v2739_v29 = vpop.permute.xlu1 %2738 }
 0x380   : > { %v2752_v56 = vsel %vm2746_vm0, %v12113_v3, %v2739_v29  ;;  %3042 = vmatpush.bf16.msra.mxu0 %v2917_v15  ;;  %v13590_v3 = vmov %v13585_v38 }
 0x381   : > { %v2971_v47 = vsel %vm12294_vm9, %v2949_v30, %v2752_v56  ;;  %v2556_v48 = vsel %vm2551_vm8, %v13590_v3, %v10590_v26 }
 0x382   : > { %v2993_v46 = vsel %vm2975_vm4, %v2971_v47, %v2816_v45  ;;  %v2206_v43 = vpop.permute.xlu0 %2205  ;;  %v2921_v9 = vsel %vm12373_vm2, %v2897_v39, %v2556_v48  ;;  %v12530_v38 = vpop.permute.xlu2 %2628  ;;  %v13602_v47 = vld [vmem:[#allocation29_spill] sm:$0xff]  ;;  %v13605_v48 = vld [vmem:[#allocation30_spill] sm:$0xff] }
 0x383   : > { %8909 = vmatmul.msk.bf16.vlgmr.msra.gmra.mxu0 %vm13496_vm7, %v12394_v22  ;;  %v3027_v62 = vand.u32 %v12315_v19, %v2993_v46  ;;  %v2216_v17 = vsel %vm13592_vm12, %v13591_v54, %v2206_v43 }
 0x384   : > { %3093 = vmatpush.bf16.msrb.mxu0 %v3025_v6  ;;  %v2825_v7 = vsel %vm11556_vm5, %v13593_v50, %v2216_v17 }
 0x385   : > { %3106 = vmatpush.bf16.msrb.mxu1 %v3027_v62 }
 0x387   : > { %v2272_v55 = vpop.permute.xlu1 %2271 }
 0x388   : > { %3094 = vmatpush.bf16.msrb.mxu0 %v2921_v9  ;;  %v2283_v40 = vsel %vm13595_vm10, %v13594_v20, %v2272_v55  ;;  %vm13600_vm10 = vcmask 1039360  }
 0x389   : > { %v2852_v4 = vsel %vm13596_vm13, %v2825_v7, %v2283_v40  ;;  %vm13598_vm13 = vcmask 490496  }
 0x38a   : > { %v2434_v57 = vpop.permute.xlu0 %2433  ;;  %v2874_v8 = vsel %vm12346_vm3, %v2852_v4, %v2386_v31  ;;  %v2805_v11 = vpop.permute.xlu2 %2804  ;;  %vm13599_vm12 = vmmov %vm13598_vm13 }
 0x38b   : > { %v2445_v49 = vsel %vm2439_vm14, %v13589_v61, %v2434_v57  ;;  %v2817_v59 = vsel %vm2810_vm11, %v12362_v41, %v2805_v11 }
 0x38c   : > { %v2901_v53 = vsel %vm2878_vm6, %v2874_v8, %v2445_v49 }
 0x38f   : > { %v2528_v63 = vpop.permute.xlu1 %2527 }
 0x390   : > { %v2557_v33 = vsel %vm2551_vm8, %v10590_v26, %v2528_v63 }
 0x391   : > { %v2922_v1 = vsel %vm12373_vm2, %v2901_v53, %v2557_v33 }
 0x392   : > { %3107 = vmatpush.bf16.msrb.mxu1 %v2922_v1  ;;  %v12538_v2 = vpop.permute.xlu0 %2549 }
 0x393   : > { %8913 = vmatmul.msk.bf16.vlgmr.msrb.gmra.mxu0 %vm13496_vm7, %v12394_v22  ;;  %v2567_v41 = vsel %vm2551_vm8, %v2548_v44, %v12538_v2 }
 0x395   : > { %8914 = vmatmul.msk.bf16.vlgmr.msrb.gmra.mxu1 %vm13496_vm7, %v12394_v22 }
 0x397   : > { %v2627_v34 = vpop.permute.xlu1 %2626 }
 0x398   : > { %v2639_v14 = vsel %vm13598_vm13, %v2625_v12, %v2627_v34  ;;  %v2210_v12 = vpop.permute.xlu2 %2209  ;;  %v2640_v21 = vsel %vm13599_vm12, %v2627_v34, %v12530_v38  ;;  %vm13601_vm13 = vmmov %vm13600_vm10  ;;  %vm13603_vm12 = vcmask 1031168  }
 0x399   : > { %v2953_v36 = vsel %vm2926_vm15, %v2566_v10, %v2639_v14  ;;  %v2957_v30 = vsel %vm2926_vm15, %v2567_v41, %v2640_v21  ;;  %vm13604_vm7 = vmmov %vm13603_vm12  ;;  %v13609_v14 = vld [vmem:[#allocation31_spill] sm:$0xff] }
 0x39a   : > { %v2741_v28 = vpop.permute.xlu0 %2740  ;;  %v2828_v10 = vsel %vm11556_vm5, %v13609_v14, %v2210_v12 }
 0x39b   : > { %v2753_v25 = vsel %vm2746_vm0, %v2739_v29, %v2741_v28 }
 0x39c   : > { %v2972_v52 = vsel %vm12294_vm9, %v2953_v36, %v2753_v25 }
 0x39d   : > { %v2996_v13 = vsel %vm2975_vm4, %v2972_v52, %v2817_v59 }
 0x39e   : > { %v3029_v32 = vand.u32 %v12315_v19, %v2996_v13 }
 0x39f   : > { %v2743_v51 = vpop.permute.xlu1 %2742 }
 0x3a0   : > { %3119 = vmatpush.bf16.msrb.mxu2 %v3029_v32  ;;  %v2377_v0 = vpop.permute.xlu2 %2376  ;;  %v2754_v35 = vsel %vm2746_vm0, %v2741_v28, %v2743_v51 }
 0x3a1   : > { %v2973_v15 = vsel %vm12294_vm9, %v2957_v30, %v2754_v35 }
 0x3a2   : > { %v2274_v27 = vpop.permute.xlu0 %2273 }
 0x3a3   : > { %v2284_v44 = vsel %vm13603_vm12, %v2272_v55, %v2274_v27  ;;  %v2387_v55 = vsel %vm2380_vm1, %v12451_v18, %v2377_v0 }
 0x3a7   : > { %v2208_v24 = vpop.permute.xlu1 %2207 }
 0x3a8   : > { %v2217_v26 = vsel %vm13600_vm10, %v2206_v43, %v2208_v24  ;;  %v2218_v56 = vsel %vm13601_vm13, %v2208_v24, %v2210_v12  ;;  %v2438_v45 = vpop.permute.xlu2 %2437  ;;  %vm13606_vm10 = vcmask 1042432  }
 0x3a9   : > { %v2826_v46 = vsel %vm11556_vm5, %v13602_v47, %v2217_v26  ;;  %v2827_v62 = vsel %vm11556_vm5, %v13605_v48, %v2218_v56  ;;  %vm13607_vm13 = vmmov %vm13606_vm10  ;;  %vm13613_vm5 = vcmask 1039360  }
 0x3aa   : > { %v2379_v60 = vpop.permute.xlu0 %2378  ;;  %v2856_v9 = vsel %vm13606_vm10, %v2826_v46, %v2284_v44 }
 0x3ab   : > { %v2388_v54 = vsel %vm2380_vm1, %v2377_v0, %v2379_v60  ;;  %v2875_v49 = vsel %vm12346_vm3, %v2856_v9, %v2387_v55 }
 0x3af   : > { %v2276_v61 = vpop.permute.xlu1 %2275 }
 0x3b0   : > { %v2285_v43 = vsel %vm13604_vm7, %v2274_v27, %v2276_v61  ;;  %v2745_v1 = vpop.permute.xlu2 %2744  ;;  %vm13610_vm7 = vcmask 220160   ;;  %v2864_v25 = vsel %vm13606_vm10, %v2828_v10, %v2276_v61  ;;  %vm3374_vm10 = vcmask 252928  }
 0x3b1   : > { %v2860_v17 = vsel %vm13607_vm13, %v2827_v62, %v2285_v43  ;;  %v2755_v28 = vsel %vm2746_vm0, %v2743_v51, %v2745_v1  ;;  %vm13611_vm12 = vmmov %vm13610_vm7  ;;  %v2877_v52 = vsel %vm12346_vm3, %v2864_v25, %v2379_v60 }
 0x3b2   : > { %v2807_v37 = vpop.permute.xlu0 %2806  ;;  %v2876_v42 = vsel %vm12346_vm3, %v2860_v17, %v2388_v54  ;;  %v2913_v13 = vsel %vm2878_vm6, %v2877_v52, %v2438_v45  ;;  %vm13612_vm0 = vmmov %vm13610_vm7  ;;  %vm3399_vm3 = vcmask 1046528  }
 0x3b3   : > { %v2818_v29 = vsel %vm2810_vm11, %v2805_v11, %v2807_v37 }
 0x3b4   : > { %v2999_v6 = vsel %vm2975_vm4, %v2973_v15, %v2818_v29 }
 0x3b5   : > { %v3031_v39 = vand.u32 %v12315_v19, %v2999_v6 }
 0x3b7   : > { %v2436_v3 = vpop.permute.xlu1 %2435  ;;  %3132 = vmatpush.bf16.msrb.mxu3 %v3031_v39 }
 0x3b8   : > { %v2446_v50 = vsel %vm2439_vm14, %v2434_v57, %v2436_v3  ;;  %v2447_v7 = vsel %vm2439_vm14, %v2436_v3, %v2438_v45  ;;  %vm13608_vm14 = vcmask 490496  }
 0x3b9   : > { %v2905_v8 = vsel %vm2878_vm6, %v2875_v49, %v2446_v50  ;;  %v2909_v53 = vsel %vm2878_vm6, %v2876_v42, %v2447_v7  ;;  %vm13616_vm6 = vmmov %vm13613_vm5 }
 0x3ba   : > { %v10603_v20 = vpop.permute.xlu0 %10602 }
 0x3bb   : > { %v10605_v40 = vunpack.i.h.bf16 %v10603_v20  ;;  %v10604_v4 = vunpack.i.l.bf16 %v10603_v20 }
 0x3bd   : > { %v2558_v31 = vsel %vm2551_vm8, %v2528_v63, %v10604_v4  ;;  %v2559_v57 = vsel %vm2551_vm8, %v10604_v4, %v10605_v40  ;;  %v2925_v32 = vsel %vm12373_vm2, %v2913_v13, %v10605_v40 }
 0x3be   : > { %v2923_v33 = vsel %vm12373_vm2, %v2905_v8, %v2558_v31  ;;  %v2924_v18 = vsel %vm12373_vm2, %v2909_v53, %v2559_v57 }
 0x3bf   : > { %v2631_v11 = vpop.permute.xlu1 %2630  ;;  %3120 = vmatpush.bf16.msrb.mxu2 %v2923_v33  ;;  %3133 = vmatpush.bf16.msrb.mxu3 %v2924_v18 }
 0x3c0   : > { %v2641_v34 = vsel %vm13608_vm14, %v12530_v38, %v2631_v11 }
 0x3c1   : > { %v2961_v63 = vsel %vm2926_vm15, %v12538_v2, %v2641_v34 }
 0x3c2   : > { %v2809_v36 = vpop.permute.xlu0 %2808  ;;  %8915 = vmatmul.msk.bf16.vlgmr.msrb.gmra.mxu2 %vm13610_vm7, %v12394_v22  ;;  %8916 = vmatmul.msk.bf16.vlgmr.msrb.gmra.mxu3 %vm13611_vm12, %v12394_v22  ;;  %v2974_v2 = vsel %vm12294_vm9, %v2961_v63, %v2755_v28  ;;  %vm13614_vm9 = vmmov %vm13613_vm5 }
 0x3c3   : > { %v2819_v38 = vsel %vm2810_vm11, %v2807_v37, %v2809_v36  ;;  %vm13615_vm11 = vmmov %vm13613_vm5 }
 0x3c4   : > { %v3002_v59 = vsel %vm2975_vm4, %v2974_v2, %v2819_v38 }
 0x3c5   : > { %v3033_v5 = vand.u32 %v12315_v19, %v3002_v59 }
 0x3c7   : > { %3145 = vmatpush.bf16.msra.mxu0 %v3033_v5 }
 0x3c9   : > { %v3008_v23 = vpop.permute.xlu1 %3007 }
 0x3cb   : > { %3146 = vmatpush.bf16.msra.mxu0 %v2925_v32 }
 0x3ce   : > { %8917 = vmatmul.msk.bf16.vlgmr.msra.gmra.mxu0 %vm13612_vm0, %v12394_v22  ;;  %vm13619_vm0 = vmmov %vm13613_vm5 }
 0x3f2   : > { %v3057_v51 = vpop.f32.mrf.mxu1 }
 0x3f3   : > { %v3058_v27 = vadd.f32 %v3057_v51, %v3008_v23 }
 0x3f5   : > { %v3153_v24 = vmax.f32 %v3058_v27, 0.0 }
 0x3f7   : > { %v3162_v35 = vmin.f32 %v3153_v24, 6.0 }
 0x3fa   : > { %v3059_v12 = vpop.f32.mrf.mxu1 }
 0x400   : > { %v3044_v0 = vpop.f32.mrf.mxu0 }
 0x401   : > { %v3070_v19 = vpop.f32.mrf.mxu2  ;;  %v3083_v21 = vpop.f32.mrf.mxu3  ;;  %v3045_v16 = vadd.f32 %v3044_v0, %v3008_v23 }
 0x402   : > { %v3071_v60 = vadd.f32 %v3070_v19, %v3008_v23  ;;  %v3084_v41 = vadd.f32 %v3083_v21, %v3008_v23 }
 0x403   : > { %v3152_v61 = vmax.f32 %v3045_v16, 0.0 }
 0x404   : > { %v3154_v30 = vmax.f32 %v3071_v60, 0.0  ;;  %v3155_v58 = vmax.f32 %v3084_v41, 0.0 }
 0x405   : > { %v3161_v37 = vmin.f32 %v3152_v61, 6.0 }
 0x406   : > { %v3163_v26 = vmin.f32 %v3154_v30, 6.0  ;;  %v3164_v29 = vmin.f32 %v3155_v58, 6.0 }
 0x407   : > { %v10607_v15 = vpack.i.bf16 %v3162_v35, %v3161_v37 }
 0x408   : > { %v3046_v22 = vpop.f32.mrf.mxu0  ;;  %3185 = vrot.lane.b32.xlu1 %v3164_v29, %s11169_s10  ;;  %3183 = vrot.lane.b32.xlu0 %v3163_v26, %s11169_s10 }
 0x409   : > { %10608 = vrot.lane.b32.xlu2 %v10607_v15, %s11169_s10  ;;  %v3072_v6 = vpop.f32.mrf.mxu2  ;;  %v3085_v56 = vpop.f32.mrf.mxu3 }
 0x410   : > { %v3096_v45 = vpop.f32.mrf.mxu0 }
 0x411   : > { %v3097_v39 = vadd.f32 %v3096_v45, %v3008_v23 }
 0x412   : > { %v3109_v47 = vpop.f32.mrf.mxu1 }
 0x413   : > { %v3156_v46 = vmax.f32 %v3097_v39, 0.0  ;;  %v3110_v44 = vadd.f32 %v3109_v47, %v3008_v23 }
 0x415   : > { %v3165_v43 = vmin.f32 %v3156_v46, 6.0  ;;  %v3157_v3 = vmax.f32 %v3110_v44, 0.0 }
 0x417   : > { %v12623_v48 = vmin.f32 %v3157_v3, 6.0  ;;  %3187 = vrot.lane.b32.xlu2 %v3165_v43, %s11169_s10  ;;  %v3278_v3 = vlaneseq }
 0x418   : > { %v3098_v62 = vpop.f32.mrf.mxu0 }
 0x419   : > { %3189 = vrot.lane.b32.xlu1 %v12623_v48, %s11169_s10  ;;  %v3284_v62 = vand.u32 127, %v3278_v3 }
 0x41a   : > { %v3111_v9 = vpop.f32.mrf.mxu1 }
 0x41b   : > { %v13617_v9 = vmov 65535  }
 0x445   : > { %v3122_v54 = vpop.f32.mrf.mxu2  ;;  %v3135_v17 = vpop.f32.mrf.mxu3 }
 0x446   : > { %v3123_v8 = vadd.f32 %v3122_v54, %v3008_v23  ;;  %v3136_v57 = vadd.f32 %v3135_v17, %v3008_v23  ;;  %v3401_v54 = vsel %vm3399_vm3, 4294967295, %v13617_v9  ;;  %vm3341_vm3 = vcmask 162816  }
 0x448   : > { %v3158_v36 = vmax.f32 %v3123_v8, 0.0  ;;  %v3159_v25 = vmax.f32 %v3136_v57, 0.0 }
 0x44a   : > { %v3167_v59 = vmin.f32 %v3158_v36, 6.0  ;;  %v3168_v5 = vmin.f32 %v3159_v25, 6.0 }
 0x44b   : > { %v3148_v50 = vpop.f32.mrf.mxu0 }
 0x44c   : > { %v3149_v18 = vadd.f32 %v3148_v50, %v3008_v23  ;;  %v10617_v13 = vpack.i.bf16 %v3168_v5, %v3167_v59 }
 0x44d   : > { %v3124_v7 = vpop.f32.mrf.mxu2  ;;  %v3137_v20 = vpop.f32.mrf.mxu3 }
 0x44e   : > { %v3160_v2 = vmax.f32 %v3149_v18, 0.0  ;;  %v3285_v7 = vmul.u32 2, %v3284_v62 }
 0x450   : > { %v3169_v52 = vmin.f32 %v3160_v2, 6.0 }
 0x453   : > { %v3150_v55 = vpop.f32.mrf.mxu0 }
 0x463   : > { %v10609_v40 = vpop.permute.xlu2 %10608 }
 0x464   : > { %v10611_v4 = vunpack.i.h.bf16 %v10609_v40  ;;  %v10610_v49 = vunpack.i.l.bf16 %v10609_v40  ;;  %v11181_v40 = vmov 0.0  }
 0x466   : > { %v3198_v31 = vsel %vm2380_vm1, %v10610_v49, %v10611_v4 }
 0x467   : > { %v3215_v28 = vmax.f32 %v3161_v37, %v3198_v31 }
 0x471   : > { %v3188_v42 = vpop.permute.xlu2 %3187 }
 0x47a   : > { %v3186_v53 = vpop.permute.xlu1 %3185  ;;  %v3184_v33 = vpop.permute.xlu0 %3183 }
 0x47b   : > { %v3201_v1 = vsel %vm2380_vm1, %v3186_v53, %v3188_v42  ;;  %v3199_v11 = vsel %vm2380_vm1, %v10611_v4, %v3184_v33  ;;  %v3200_v34 = vsel %vm2380_vm1, %v3184_v33, %v3186_v53  ;;  %v11182_v33 = vmov 1.0|1.0  }
 0x47c   : > { %v3216_v63 = vmax.f32 %v3162_v35, %v3199_v11  ;;  %v3217_v14 = vmax.f32 %v3163_v26, %v3200_v34  ;;  %v3218_v10 = vmax.f32 %v3164_v29, %v3201_v1 }
 0x47e   : > { %3237 = vrot.lane.b32.xlu2 %v3217_v14, %s11150_s13  ;;  %3239 = vrot.lane.b32.xlu1 %v3218_v10, %s11150_s13  ;;  %v10612_v38 = vpack.i.bf16 %v3216_v63, %v3215_v28 }
 0x480   : > { %10613 = vrot.lane.b32.xlu0 %v10612_v38, %s11150_s13 }
 0x486   : > { %3195 = vrot.lane.b32.xlu2 %v3169_v52, %s11169_s10 }
 0x488   : > { %10618 = vrot.lane.b32.xlu0 %v10617_v13, %s11169_s10  ;;  %s13497_s10 = smov 120  }
 0x48b   : > { %v3190_v32 = vpop.permute.xlu1 %3189 }
 0x48c   : > { %v3202_v51 = vsel %vm2380_vm1, %v3188_v42, %v3190_v32 }
 0x48d   : > { %v12638_v23 = vmax.f32 %v3165_v43, %v3202_v51 }
 0x48f   : > { %3241 = vrot.lane.b32.xlu1 %v12638_v23, %s11150_s13 }
 0x4d8   : > { %v3238_v0 = vpop.permute.xlu2 %3237 }
 0x4e0   : > { %v3196_v39 = vpop.permute.xlu2 %3195 }
 0x4e1   : > { %v12664_v43 = vmax.f32 %v3169_v52, %v3196_v39 }
 0x4f0   : > { %v3240_v41 = vpop.permute.xlu1 %3239 }
 0x4f1   : > { %v3254_v35 = vsel %vm13615_vm11, %v3238_v0, %v3240_v41  ;;  %vm13622_vm11 = vmmov %vm13619_vm0 }
 0x4f2   : > { %v10614_v12 = vpop.permute.xlu0 %10613  ;;  %v3271_v29 = vmax.f32 %v3217_v14, %v3254_v35 }
 0x4f3   : > { %v10616_v27 = vunpack.i.h.bf16 %v10614_v12  ;;  %v10615_v24 = vunpack.i.l.bf16 %v10614_v12 }
 0x4f5   : > { %v3253_v19 = vsel %vm13613_vm5, %v10616_v27, %v3238_v0  ;;  %v3252_v21 = vsel %vm13614_vm9, %v10615_v24, %v10616_v27  ;;  %vm13620_vm5 = vmmov %vm13619_vm0 }
 0x4f6   : > { %v3270_v16 = vmax.f32 %v3216_v63, %v3253_v19  ;;  %v12644_v60 = vmax.f32 %v3215_v28, %v3252_v21  ;;  %vm13621_vm9 = vmmov %vm13619_vm0 }
 0x4f8   : > { %3301 = vrot.lane.b32.xlu2 %v3270_v16, %s13497_s10  ;;  %3297 = vrot.lane.b32.xlu0 %v12644_v60, %s11171_s29  ;;  %s11178_s29 = smov 104   ;;  %s13501_s10 = smov 88  }
 0x4fa   : > { %v10619_v61 = vpop.permute.xlu0 %10618 }
 0x4fb   : > { %v10621_v30 = vunpack.i.h.bf16 %v10619_v61  ;;  %v10620_v58 = vunpack.i.l.bf16 %v10619_v61 }
 0x4fd   : > { %v3203_v37 = vsel %vm2380_vm1, %v3190_v32, %v10620_v58  ;;  %v3204_v26 = vsel %vm2380_vm1, %v10620_v58, %v10621_v30  ;;  %v3205_v47 = vsel %vm2380_vm1, %v10621_v30, %v3196_v39  ;;  %vm13618_vm1 = vcmask 1047552  }
 0x4fe   : > { %v3220_v15 = vmax.f32 %v12623_v48, %v3203_v37  ;;  %v12653_v22 = vmax.f32 %v3167_v59, %v3204_v26  ;;  %v12660_v44 = vmax.f32 %v3168_v5, %v3205_v47  ;;  %v3279_v48 = vshrl.u32 %v3278_v3, 7 }
 0x4ff   : > { %v12670_v55 = vsel %vm13618_vm1, %v3401_v54, 0  ;;  %vm3352_vm1 = vcmask 97280  }
 0x500   : > { %3308 = vrot.lane.b32.xlu2 %v3271_v29, %s11176_s11  ;;  %3304 = vrot.lane.b32.xlu0 %v3270_v16, %s11177_s9  ;;  %v10622_v6 = vpack.i.bf16 %v12653_v22, %v3220_v15  ;;  %s11180_s9 = smov 36   ;;  %v3281_v17 = vadd.s32 16, %v3279_v48  ;;  %v3282_v50 = vadd.s32 24, %v3279_v48  ;;  %v3280_v20 = vadd.s32 8, %v3279_v48 }
 0x501   : > { %v3242_v56 = vpop.permute.xlu1 %3241  ;;  %vm3286_vm14 = vcmp.eq.s32.totalorder %v3279_v48, %v3285_v7 }
 0x502   : > { %10623 = vrot.lane.b32.xlu1 %v10622_v6, %s11150_s13  ;;  %v3255_v45 = vsel %vm13616_vm6, %v3240_v41, %v3242_v56  ;;  %vm3288_vm2 = vcmp.eq.s32.totalorder %v3281_v17, %v3285_v7  ;;  %vm3289_vm13 = vcmp.eq.s32.totalorder %v3282_v50, %v3285_v7  ;;  %vm3287_vm7 = vcmp.eq.s32.totalorder %v3280_v20, %v3285_v7 }
 0x503   : > { %v3272_v46 = vmax.f32 %v3218_v10, %v3255_v45  ;;  %v3292_v4 = vsel %vm3288_vm2, 1.0, %v11181_v40  ;;  %v3293_v49 = vsel %vm3289_vm13, 1.0, %v11181_v40  ;;  %v12672_v42 = vsel %vm3286_vm14, 1.0, %v11181_v40  ;;  %vm8918_vm12 = vmpackc.low %vm3287_vm7, %vm3286_vm14 }
 0x504   : > { %v12674_v31 = vsel %vm3287_vm7, 1.0, %v11181_v40  ;;  %v3295_v8 = vpack.c.bf16 %v3293_v49, %v3292_v4  ;;  %vm3330_vm6 = vcmask 228352   ;;  %vm3363_vm2 = vcmask 31744  }
 0x505   : > { %v3294_v57 = vpack.c.bf16 %v12674_v31, %v12672_v42  ;;  %vm3460_vm13 = vcmask 281752   ;;  %vm3467_vm14 = vcmask 429352   ;;  %vm3474_vm7 = vcmask 576952  }
 0x506   : > { %v3404_v53 = vand.u32 %v12670_v55, %v3295_v8 }
 0x508   : > { %3315 = vrot.lane.b32.xlu2 %v3272_v46, %s11178_s29  ;;  %3311 = vrot.lane.b32.xlu0 %v3271_v29, %s11179_s16  ;;  %s11183_s29 = smov 96   ;;  %s11184_s16 = smov 28  }
 0x509   : > { %3412 = vmatpush.bf16.msra.mxu1 %v3404_v53 }
 0x50a   : > { %3247 = vrot.lane.b32.xlu1 %v12660_v44, %s11150_s13 }
 0x50d   : > { %8919 = vmatpush.bf16.msk.msra.mxu1 %vm8918_vm12, %v11182_v33  ;;  %vm3481_vm12 = vcmask 724552  }
 0x510   : > { %3318 = vrot.lane.b32.xlu0 %v3272_v46, %s11180_s9  ;;  %s11185_s9 = smov 20  }
 0x512   : > { %3249 = vrot.lane.b32.xlu1 %v12664_v43, %s11150_s13 }
 0x552   : > { %v3302_v38 = vpop.permute.xlu2 %3301 }
 0x55a   : > { %v3309_v19 = vpop.permute.xlu2 %3308 }
 0x562   : > { %v3316_v41 = vpop.permute.xlu2 %3315 }
 0x56a   : > { %v3298_v18 = vpop.permute.xlu0 %3297 }
 0x56b   : > { %v3366_v1 = vpack.c.bf16 %v3298_v18, %v12644_v60 }
 0x56d   : > { %8920 = vmatmul.msk.bf16.vlgmr.msra.gmra.mxu1 %vm3374_vm10, %v3366_v1 }
 0x572   : > { %v3305_v28 = vpop.permute.xlu0 %3304 }
 0x573   : > { %v3367_v59 = vpack.c.bf16 %v3305_v28, %v3302_v38 }
 0x574   : > { %v10624_v11 = vpop.permute.xlu1 %10623 }
 0x575   : > { %v10626_v34 = vunpack.i.h.bf16 %v10624_v11  ;;  %v10625_v63 = vunpack.i.l.bf16 %v10624_v11 }
 0x577   : > { %v3257_v14 = vsel %vm13619_vm0, %v10625_v63, %v10626_v34  ;;  %v3256_v10 = vsel %vm13620_vm5, %v3242_v56, %v10625_v63  ;;  %vm3504_vm0 = vcmask 1044472   ;;  %vm3505_vm5 = vcmask 121860  }
 0x578   : > { %v3273_v36 = vmax.f32 %v12638_v23, %v3256_v10  ;;  %v3274_v25 = vmax.f32 %v3220_v15, %v3257_v14 }
 0x57a   : > { %3322 = vrot.lane.b32.xlu0 %v3273_v36, %s11183_s29  ;;  %v10627_v2 = vpack.i.bf16 %v3274_v25, %v3273_v36  ;;  %v3312_v24 = vpop.permute.xlu0 %3311  ;;  %s11187_s29 = smov 80  }
 0x57b   : > { %v3368_v16 = vpack.c.bf16 %v3312_v24, %v3309_v19 }
 0x57c   : > { %v3248_v5 = vpop.permute.xlu1 %3247  ;;  %10628 = vrot.lane.b32.xlu2 %v10627_v2, %s11184_s16  ;;  %s11188_s16 = smov 12  }
 0x57d   : > { %v3258_v52 = vsel %vm13621_vm9, %v10626_v34, %v3248_v5  ;;  %8921 = vmatmul.msk.bf16.gmra.mxu1 %vm3374_vm10, %v3367_v59  ;;  %vm3495_vm9 = vcmask 1019752  }
 0x57e   : > { %v3275_v13 = vmax.f32 %v12653_v22, %v3258_v52 }
 0x580   : > { %v10632_v32 = vpack.i.bf16 %v3275_v13, %v3274_v25 }
 0x582   : > { %10633 = vrot.lane.b32.xlu1 %v10632_v32, %s11185_s9  ;;  %v3319_v60 = vpop.permute.xlu0 %3318 }
 0x583   : > { %v3369_v61 = vpack.c.bf16 %v3319_v60, %v3316_v41 }
 0x584   : > { %v3250_v51 = vpop.permute.xlu1 %3249  ;;  %3333 = vrot.lane.b32.xlu2 %v3274_v25, %s13501_s10  ;;  %s11190_s10 = smov 72  }
 0x585   : > { %v3259_v23 = vsel %vm13622_vm11, %v3248_v5, %v3250_v51  ;;  %v3277_v27 = vmax.f32 %v12664_v43, %v3250_v51  ;;  %vm3506_vm11 = vmor %vm3505_vm5, %vm3504_vm0  ;;  %vm3557_vm0 = vcmask 1044456   ;;  %vm3558_vm5 = vcmask 105476  }
 0x586   : > { %v3276_v12 = vmax.f32 %v12660_v44, %v3259_v23 }
 0x588   : > { %v10637_v0 = vpack.i.bf16 %v3276_v12, %v3275_v13  ;;  %v10642_v21 = vpack.i.bf16 %v3277_v27, %v3276_v12 }
 0x58a   : > { %3344 = vrot.lane.b32.xlu1 %v3275_v13, %s11187_s29  ;;  %10638 = vrot.lane.b32.xlu0 %v10637_v0, %s11188_s16  ;;  %s13503_s29 = smov 19   ;;  %s11193_s16 = smov 55  }
 0x58c   : > { %10643 = vrot.lane.b32.xlu2 %v10642_v21, %s11189_s14 }
 0x58d   : > { %8922 = vmatmul.msk.bf16.gmra.mxu1 %vm3374_vm10, %v3368_v16 }
 0x592   : > { %3355 = vrot.lane.b32.xlu0 %v3276_v12, %s11190_s10  ;;  %s11192_s10 = smov 37  }
 0x59d   : > { %8923 = vmatmul.msk.bf16.gmra.mxu1 %vm3374_vm10, %v3369_v61 }
 0x5d6   : > { %v10629_v35 = vpop.permute.xlu2 %10628 }
 0x5d7   : > { %v10631_v30 = vunpack.i.h.bf16 %v10629_v35  ;;  %v10630_v58 = vunpack.i.l.bf16 %v10629_v35 }
 0x5d9   : > { %v3331_v29 = vsel %vm3330_vm6, %v10630_v58, %v10631_v30  ;;  %vm3513_vm6 = vcmask 265352  }
 0x5de   : > { %v3334_v3 = vpop.permute.xlu2 %3333 }
 0x5e6   : > { %v10644_v18 = vpop.permute.xlu2 %10643 }
 0x5e7   : > { %v10646_v1 = vunpack.i.h.bf16 %v10644_v18  ;;  %v10645_v11 = vunpack.i.l.bf16 %v10644_v18 }
 0x5e9   : > { %v3364_v10 = vsel %vm3363_vm2, %v10645_v11, %v10646_v1 }
 0x5ea   : > { %v3415_v37 = vpop.f32.mrf.mxu1 }
 0x5eb   : > { %v3455_v26 = vpack.c.bf16 %v3415_v37, %v3415_v37 }
 0x5ec   : > { %v3323_v15 = vpop.permute.xlu0 %3322 }
 0x5ed   : > { %v3370_v22 = vpack.c.bf16 %v3331_v29, %v3323_v15  ;;  %3457 = vrot.lane.b32.xlu1 %v3455_v26, %s13503_s29  ;;  %s11194_s29 = smov 73  }
 0x5ef   : > { %8924 = vmatmul.msk.bf16.gmra.mxu1 %vm3374_vm10, %v3370_v22 }
 0x5f2   : > { %v3417_v6 = vpop.f32.mrf.mxu1 }
 0x5f3   : > { %v3462_v56 = vpack.c.bf16 %v3417_v6, %v3417_v6 }
 0x5f4   : > { %v10634_v45 = vpop.permute.xlu1 %10633 }
 0x5f5   : > { %3464 = vrot.lane.b32.xlu2 %v3462_v56, %s11192_s10  ;;  %v10636_v39 = vunpack.i.h.bf16 %v10634_v45  ;;  %v10635_v47 = vunpack.i.l.bf16 %v10634_v45  ;;  %s11198_s10 = smov 107   ;;  %v13624_v45 = vmov 0  }
 0x5f7   : > { %v3342_v44 = vsel %vm3341_vm3, %v10635_v47, %v10636_v39  ;;  %vm13623_vm3 = vcmask 1039360  }
 0x5f8   : > { %v3371_v48 = vpack.c.bf16 %v3342_v44, %v3334_v3 }
 0x5fa   : > { %v3420_v46 = vpop.f32.mrf.mxu1 }
 0x5fb   : > { %v3469_v43 = vpack.c.bf16 %v3420_v46, %v3420_v46 }
 0x5fc   : > { %v10639_v54 = vpop.permute.xlu0 %10638  ;;  %v3345_v49 = vpop.permute.xlu1 %3344 }
 0x5fd   : > { %3471 = vrot.lane.b32.xlu0 %v3469_v43, %s11193_s16  ;;  %v10641_v50 = vunpack.i.h.bf16 %v10639_v54  ;;  %v10640_v7 = vunpack.i.l.bf16 %v10639_v54  ;;  %s11204_s16 = smov 40  }
 0x5ff   : > { %8925 = vmatmul.msk.bf16.gmra.mxu1 %vm3374_vm10, %v3371_v48  ;;  %v3353_v40 = vsel %vm3352_vm1, %v10640_v7, %v10641_v50  ;;  %vm3520_vm1 = vcmask 412952  }
 0x600   : > { %v3372_v8 = vpack.c.bf16 %v3353_v40, %v3345_v49 }
 0x602   : > { %v3422_v62 = vpop.f32.mrf.mxu1 }
 0x603   : > { %v3476_v17 = vpack.c.bf16 %v3422_v62, %v3422_v62 }
 0x604   : > { %v3356_v34 = vpop.permute.xlu0 %3355 }
 0x605   : > { %3478 = vrot.lane.b32.xlu1 %v3476_v17, %s11194_s29  ;;  %v3373_v28 = vpack.c.bf16 %v3364_v10, %v3356_v34  ;;  %s11195_s29 = smov 53  }
 0x60a   : > { %v3425_v20 = vpop.f32.mrf.mxu1 }
 0x60b   : > { %v3483_v4 = vpack.c.bf16 %v3425_v20, %v3425_v20 }
 0x60d   : > { %3485 = vrot.lane.b32.xlu0 %v3483_v4, %s11164_s22 }
 0x60f   : > { %8926 = vmatmul.msk.bf16.gmra.mxu1 %vm3374_vm10, %v3372_v8 }
 0x612   : > { %v3427_v53 = vpop.f32.mrf.mxu1 }
 0x613   : > { %v3490_v33 = vpack.c.bf16 %v3427_v53, %v3427_v53 }
 0x615   : > { %3492 = vrot.lane.b32.xlu1 %v3490_v33, %s11156_s3 }
 0x61a   : > { %v3430_v63 = vpop.f32.mrf.mxu1 }
 0x61b   : > { %v3497_v14 = vpack.c.bf16 %v3430_v63, %v3430_v63 }
 0x61d   : > { %3499 = vrot.lane.b32.xlu2 %v3497_v14, %s11150_s13 }
 0x61f   : > { %8927 = vmatmul.msk.bf16.gmra.mxu1 %vm3374_vm10, %v3373_v28  ;;  %vm3488_vm10 = vcmask 872152  }
 0x622   : > { %v3432_v36 = vpop.f32.mrf.mxu1 }
 0x623   : > { %v3508_v25 = vpack.c.bf16 %v3432_v36, %v3432_v36 }
 0x625   : > { %3510 = vrot.lane.b32.xlu2 %v3508_v25, %s11143_s25  ;;  %s11196_s25 = smov 71  }
 0x64f   : > { %v3465_v2 = vpop.permute.xlu2 %3464 }
 0x65f   : > { %v3458_v38 = vpop.permute.xlu1 %3457 }
 0x660   : > { %3461 = vst.msk [vmem:[#allocation3] sm:$0xf] %vm3460_vm13, %v3458_v38  ;;  %vm3527_vm13 = vcmask 560552  }
 0x661   : > { %3468 = vst.msk [vmem:[#allocation3] sm:$0xf] %vm3467_vm14, %v3465_v2  ;;  %vm3534_vm14 = vcmask 708152  }
 0x66c   : > { %v3435_v59 = vpop.f32.mrf.mxu1 }
 0x66d   : > { %v3515_v5 = vpack.c.bf16 %v3435_v59, %v3435_v59 }
 0x66f   : > { %3517 = vrot.lane.b32.xlu0 %v3515_v5, %s11136_s24  ;;  %v3472_v52 = vpop.permute.xlu0 %3471  ;;  %s11197_s24 = smov 89  }
 0x670   : > { %3475 = vst.msk [vmem:[#allocation3] sm:$0xf] %vm3474_vm7, %v3472_v52  ;;  %vm750_vm7 = vcmask 551936  }
 0x671   : > { %751 = vst.msk [vmem:[#allocation3 + $0x8] sm:$0xf] %vm750_vm7, %v13624_v45  ;;  %vm13626_vm7 = vcmask 891904  }
 0x674   : > { %v3437_v13 = vpop.f32.mrf.mxu1 }
 0x675   : > { %v3522_v32 = vpack.c.bf16 %v3437_v13, %v3437_v13 }
 0x677   : > { %v3479_v51 = vpop.permute.xlu1 %3478  ;;  %3524 = vrot.lane.b32.xlu1 %v3522_v32, %s11195_s29  ;;  %v3500_v27 = vpop.permute.xlu2 %3499  ;;  %s13639_s29 = smov 51  }
 0x678   : > { %3482 = vst.msk [vmem:[#allocation3] sm:$0xf] %vm3481_vm12, %v3479_v51  ;;  %v3501_v0 = vrot.slane %v3500_v27, 4  ;;  %vm3541_vm12 = vcmask 855752  }
 0x67a   : > { %v3502_v60 = vsel %vm13623_vm3, %v3501_v0, %v3500_v27  ;;  %vm3573_vm3 = vcmask 396552  }
 0x67c   : > { %v3440_v23 = vpop.f32.mrf.mxu1 }
 0x67d   : > { %v3529_v12 = vpack.c.bf16 %v3440_v23, %v3440_v23 }
 0x67f   : > { %3531 = vrot.lane.b32.xlu2 %v3529_v12, %s11196_s25  ;;  %v3486_v24 = vpop.permute.xlu0 %3485  ;;  %v3511_v41 = vpop.permute.xlu2 %3510 }
 0x680   : > { %3489 = vst.msk [vmem:[#allocation3] sm:$0xf] %vm3488_vm10, %v3486_v24  ;;  %vm3548_vm10 = vcmask 1003352  }
 0x684   : > { %v3442_v19 = vpop.f32.mrf.mxu1 }
 0x685   : > { %v3536_v21 = vpack.c.bf16 %v3442_v19, %v3442_v19 }
 0x687   : > { %v3493_v16 = vpop.permute.xlu1 %3492  ;;  %3538 = vrot.lane.b32.xlu1 %v3536_v21, %s11197_s24  ;;  %s11207_s24 = smov 61  }
 0x688   : > { %3496 = vst.msk [vmem:[#allocation3] sm:$0xf] %vm3495_vm9, %v3493_v16  ;;  %vm3559_vm9 = vmor %vm3558_vm5, %vm3557_vm0  ;;  %vm13629_vm0 = vcmask 1039360   ;;  %vm3720_vm5 = vcmask 588800  }
 0x689   : > { %3507 = vst.msk [vmem:[#allocation3] sm:$0xff] %vm3506_vm11, %v3502_v60  ;;  %vm13625_vm11 = vcmask 1022976  }
 0x68a   : > { %3514 = vst.msk [vmem:[#allocation3 + $0x4] sm:$0xf] %vm3513_vm6, %v3511_v41  ;;  %vm3566_vm6 = vcmask 248952   ;;  %v3704_v41 = vld [vmem:[%s13447_s4 + $0x8] sm:$0xff] }
 0x68c   : > { %v3445_v61 = vpop.f32.mrf.mxu1 }
 0x68d   : > { %v3543_v35 = vpack.c.bf16 %v3445_v61, %v3445_v61  ;;  %v3703_v61 = vld [vmem:[%s13447_s4] sm:$0xff] }
 0x68f   : > { %3545 = vrot.lane.b32.xlu2 %v3543_v35, %s11198_s10 }
 0x694   : > { %v3447_v30 = vpop.f32.mrf.mxu1 }
 0x695   : > { %v3550_v58 = vpack.c.bf16 %v3447_v30, %v3447_v30 }
 0x697   : > { %3552 = vrot.lane.b32.xlu0 %v3550_v58, %s11165_s2  ;;  %s11203_s2 = smov 76  }
 0x69c   : > { %v3450_v37 = vpop.f32.mrf.mxu1 }
 0x69d   : > { %v3561_v26 = vpack.c.bf16 %v3450_v37, %v3450_v37 }
 0x69f   : > { %3563 = vrot.lane.b32.xlu0 %v3561_v26, %s11158_s17  ;;  %s11200_s17 = smov 108  }
 0x6a4   : > { %v3452_v29 = vpop.f32.mrf.mxu1 }
 0x6a5   : > { %v3568_v15 = vpack.c.bf16 %v3452_v29, %v3452_v29 }
 0x6a7   : > { %3570 = vrot.lane.b32.xlu1 %v3568_v15, %s11151_s1  ;;  %s11199_s1 = smov 90  }
 0x6d9   : > { %v3532_v56 = vpop.permute.xlu2 %3531 }
 0x6e1   : > { %v3518_v22 = vpop.permute.xlu0 %3517 }
 0x6e2   : > { %3521 = vst.msk [vmem:[#allocation3 + $0x4] sm:$0xf] %vm3520_vm1, %v3518_v22  ;;  %vm3650_vm1 = vcmask 736256  }
 0x6e9   : > { %v3525_v6 = vpop.permute.xlu1 %3524  ;;  %v3546_v47 = vpop.permute.xlu2 %3545 }
 0x6ea   : > { %3528 = vst.msk [vmem:[#allocation3 + $0x4] sm:$0xf] %vm3527_vm13, %v3525_v6  ;;  %vm3641_vm13 = vcmask 744448  }
 0x6eb   : > { %3535 = vst.msk [vmem:[#allocation3 + $0x4] sm:$0xf] %vm3534_vm14, %v3532_v56  ;;  %vm3624_vm14 = vcmask 883712  }
 0x6f9   : > { %v3539_v39 = vpop.permute.xlu1 %3538 }
 0x6fa   : > { %3542 = vst.msk [vmem:[#allocation3 + $0x4] sm:$0xf] %vm3541_vm12, %v3539_v39  ;;  %vm3607_vm12 = vcmask 900096  }
 0x6fb   : > { %3549 = vst.msk [vmem:[#allocation3 + $0x4] sm:$0xf] %vm3548_vm10, %v3546_v47  ;;  %vm13628_vm10 = vcmask 1031168  }
 0x709   : > { %v3553_v46 = vpop.permute.xlu0 %3552 }
 0x70a   : > { %v3554_v44 = vrot.slane %v3553_v46, 4 }
 0x70c   : > { %v3555_v43 = vsel %vm13625_vm11, %v3554_v44, %v3553_v46  ;;  %vm13632_vm11 = vmmov %vm13629_vm0 }
 0x70d   : > { %3560 = vst.msk [vmem:[#allocation3 + $0x4] sm:$0xff] %vm3559_vm9, %v3555_v43  ;;  %vm13631_vm9 = vmmov %vm13628_vm10 }
 0x711   : > { %v3564_v3 = vpop.permute.xlu0 %3563 }
 0x712   : > { %3567 = vst.msk [vmem:[#allocation3 + $0x8] sm:$0xf] %vm3566_vm6, %v3564_v3  ;;  %vm13633_vm6 = vmmov %vm13629_vm0 }
 0x714   : > { %v3575_v48 = vld [vmem:[#allocation3] sm:$0xff] }
 0x715   : > { %v3579_v62 = vunpack.c.l.b16 %v3575_v48  ;;  %v3580_v54 = vunpack.c.h.b16 %v3575_v48 }
 0x717   : > { %v12714_v17 = vpack.c.b16 %v3579_v62, %v3579_v62  ;;  %v12716_v50 = vpack.c.b16 %v3580_v54, %v3580_v54 }
 0x719   : > { %3644 = vrot.lane.b32.xlu2 %v12714_v17, %s11199_s1  ;;  %3646 = vrot.lane.b32.xlu0 %v12716_v50, %s11199_s1  ;;  %v3571_v7 = vpop.permute.xlu1 %3570 }
 0x71a   : > { %3574 = vst.msk [vmem:[#allocation3 + $0x8] sm:$0xf] %vm3573_vm3, %v3571_v7  ;;  %vm13634_vm3 = vmmov %vm13629_vm0 }
 0x721   : > { %v3576_v20 = vld [vmem:[#allocation3 + $0x8] sm:$0xf]  ;;  %3627 = vrot.lane.b32.xlu2 %v12714_v17, %s11170_s18  ;;  %3629 = vrot.lane.b32.xlu0 %v12716_v50, %s11170_s18 }
 0x722   : > { %v3581_v40 = vunpack.c.l.b16 %v3576_v20 }
 0x724   : > { %v12724_v4 = vpack.c.b16 %v3581_v40, %v3581_v40 }
 0x726   : > { %3648 = vrot.lane.b32.xlu1 %v12724_v4, %s11199_s1  ;;  %s11208_s1 = smov 81  }
 0x729   : > { %3635 = vrot.lane.b32.xlu2 %v12714_v17, %s11164_s22  ;;  %3637 = vrot.lane.b32.xlu0 %v12716_v50, %s11164_s22 }
 0x72e   : > { %3631 = vrot.lane.b32.xlu1 %v12724_v4, %s11170_s18 }
 0x731   : > { %3610 = vrot.lane.b32.xlu2 %v12714_v17, %s11156_s3  ;;  %3612 = vrot.lane.b32.xlu0 %v12716_v50, %s11156_s3 }
 0x736   : > { %3639 = vrot.lane.b32.xlu1 %v12724_v4, %s11164_s22  ;;  %s11201_s22 = smov 110  }
 0x739   : > { %3618 = vrot.lane.b32.xlu2 %v12714_v17, %s11200_s17  ;;  %3620 = vrot.lane.b32.xlu0 %v12716_v50, %s11200_s17 }
 0x73e   : > { %3614 = vrot.lane.b32.xlu1 %v12724_v4, %s11156_s3  ;;  %s13630_s3 = sld [smem:[#allocation39_spill]] }
 0x741   : > { %3593 = vrot.lane.b32.xlu2 %v12714_v17, %s11168_s26  ;;  %3595 = vrot.lane.b32.xlu0 %v12716_v50, %s11168_s26 }
 0x744   : > { %v10108_v3 = vld [vmem:[%s13630_s3] sm:$0xff]  ;;  %s11210_s3 = smov 118  }
 0x746   : > { %3622 = vrot.lane.b32.xlu1 %v12724_v4, %s11200_s17 }
 0x749   : > { %3601 = vrot.lane.b32.xlu2 %v12714_v17, %s11201_s22  ;;  %3603 = vrot.lane.b32.xlu0 %v12716_v50, %s11201_s22 }
 0x74e   : > { %3597 = vrot.lane.b32.xlu1 %v12724_v4, %s11168_s26 }
 0x751   : > { %3585 = vrot.lane.b32.xlu2 %v12714_v17, %s11150_s13  ;;  %3587 = vrot.lane.b32.xlu0 %v12716_v50, %s11150_s13 }
 0x756   : > { %3605 = vrot.lane.b32.xlu1 %v12724_v4, %s11201_s22 }
 0x759   : > { %3712 = vperm.xlu0 %10648, %v3704_v41   ;;  %3707 = vperm.xlu2 %10647, %v3703_v61  }
 0x75e   : > { %3589 = vrot.lane.b32.xlu1 %v12724_v4, %s11150_s13 }
 0x773   : > { %v3645_v49 = vpop.permute.xlu2 %3644 }
 0x77b   : > { %v3628_v8 = vpop.permute.xlu2 %3627 }
 0x783   : > { %v3636_v1 = vpop.permute.xlu2 %3635 }
 0x78b   : > { %v3647_v53 = vpop.permute.xlu0 %3646  ;;  %v3611_v28 = vpop.permute.xlu2 %3610 }
 0x78c   : > { %v3651_v33 = vsel %vm3650_vm1, %v3645_v49, %v3647_v53 }
 0x78d   : > { %v3725_v18 = vsel %vm2975_vm4, %v3651_v33, 0 }
 0x78e   : > { %3736 = vmatpush.bf16.msra.mxu2 %v3725_v18 }
 0x793   : > { %v3630_v11 = vpop.permute.xlu0 %3629  ;;  %v3619_v52 = vpop.permute.xlu2 %3618 }
 0x794   : > { %v3633_v25 = vsel %vm2551_vm8, %v3628_v8, %v3630_v11 }
 0x798   : > { %v3649_v34 = vpop.permute.xlu1 %3648 }
 0x799   : > { %v3652_v63 = vsel %vm3650_vm1, %v3647_v53, %v3649_v34  ;;  %v3731_v14 = vsel %vm2975_vm4, %v3649_v34, 0  ;;  %vm13635_vm1 = vmmov %vm13629_vm0 }
 0x79a   : > { %v3728_v10 = vsel %vm2975_vm4, %v3652_v63, 0  ;;  %3764 = vmatpush.bf16.msrb.mxu0 %v3731_v14 }
 0x79b   : > { %v3638_v36 = vpop.permute.xlu0 %3637  ;;  %3750 = vmatpush.bf16.msra.mxu3 %v3728_v10  ;;  %v3594_v21 = vpop.permute.xlu2 %3593 }
 0x79c   : > { %v3642_v38 = vsel %vm3641_vm13, %v3636_v1, %v3638_v36 }
 0x79d   : > { %v3691_v2 = vsel %vm2975_vm4, %v3633_v25, %v3642_v38 }
 0x79e   : > { %3737 = vmatpush.bf16.msra.mxu2 %v3691_v2 }
 0x7a0   : > { %v3632_v59 = vpop.permute.xlu1 %3631 }
 0x7a1   : > { %v3634_v32 = vsel %vm2551_vm8, %v3630_v11, %v3632_v59  ;;  %vm13627_vm8 = vmmov %vm13626_vm7 }
 0x7a3   : > { %v3613_v5 = vpop.permute.xlu0 %3612  ;;  %v3602_v30 = vpop.permute.xlu2 %3601 }
 0x7a4   : > { %v3616_v24 = vsel %vm13626_vm7, %v3611_v28, %v3613_v5  ;;  %vm752_vm7 = vcmask 814080  }
 0x7a5   : > { %754 = vst.msk [vmem:[#allocation4 + $0x4] sm:$0xf] %vm752_vm7, %v13624_v45 }
 0x7a6   : > { %753 = vst.msk [vmem:[#allocation4] sm:$0xf] %vm752_vm7, %v13624_v45  ;;  %vm4443_vm7 = vcmask 134248  }
 0x7a8   : > { %v3640_v13 = vpop.permute.xlu1 %3639 }
 0x7a9   : > { %v3643_v51 = vsel %vm3641_vm13, %v3638_v36, %v3640_v13  ;;  %v3699_v23 = vsel %vm2975_vm4, %v3632_v59, %v3640_v13  ;;  %vm13636_vm13 = vmmov %vm13629_vm0 }
 0x7aa   : > { %3765 = vmatpush.bf16.msrb.mxu0 %v3699_v23  ;;  %v3695_v12 = vsel %vm2975_vm4, %v3634_v32, %v3643_v51 }
 0x7ab   : > { %v3621_v27 = vpop.permute.xlu0 %3620  ;;  %3751 = vmatpush.bf16.msra.mxu3 %v3695_v12  ;;  %v3586_v47 = vpop.permute.xlu2 %3585 }
 0x7ac   : > { %v3625_v0 = vsel %vm3624_vm14, %v3619_v52, %v3621_v27 }
 0x7ad   : > { %v3679_v19 = vsel %vm2975_vm4, %v3616_v24, %v3625_v0 }
 0x7ae   : > { %3738 = vmatpush.bf16.msra.mxu2 %v3679_v19 }
 0x7b0   : > { %v3615_v16 = vpop.permute.xlu1 %3614 }
 0x7b1   : > { %v3617_v58 = vsel %vm13627_vm8, %v3613_v5, %v3615_v16  ;;  %vm4005_vm8 = vcmask 150616  }
 0x7b3   : > { %v3596_v60 = vpop.permute.xlu0 %3595  ;;  %v3708_v33 = vpop.permute.xlu2 %3707 }
 0x7b4   : > { %v3599_v22 = vsel %vm13628_vm10, %v3594_v21, %v3596_v60  ;;  %vm4044_vm10 = vcmask 396616  }
 0x7b8   : > { %v3623_v35 = vpop.permute.xlu1 %3622 }
 0x7b9   : > { %v3626_v37 = vsel %vm3624_vm14, %v3621_v27, %v3623_v35  ;;  %v3687_v26 = vsel %vm2975_vm4, %v3615_v16, %v3623_v35  ;;  %vm3918_vm14 = vcmask 121856  }
 0x7ba   : > { %3766 = vmatpush.bf16.msrb.mxu0 %v3687_v26  ;;  %v3683_v29 = vsel %vm2975_vm4, %v3617_v58, %v3626_v37 }
 0x7bb   : > { %v3604_v15 = vpop.permute.xlu0 %3603  ;;  %3752 = vmatpush.bf16.msra.mxu3 %v3683_v29 }
 0x7bc   : > { %v3608_v6 = vsel %vm3607_vm12, %v3602_v30, %v3604_v15 }
 0x7bd   : > { %v3667_v56 = vsel %vm2975_vm4, %v3599_v22, %v3608_v6 }
 0x7be   : > { %3739 = vmatpush.bf16.msra.mxu2 %v3667_v56 }
 0x7c0   : > { %v3598_v39 = vpop.permute.xlu1 %3597 }
 0x7c1   : > { %v3600_v62 = vsel %vm13631_vm9, %v3596_v60, %v3598_v39  ;;  %vm4083_vm9 = vcmask 642616  }
 0x7c3   : > { %v3588_v46 = vpop.permute.xlu0 %3587 }
 0x7c4   : > { %v3591_v44 = vsel %vm13629_vm0, %v3586_v47, %v3588_v46  ;;  %vm4057_vm0 = vcmask 478616  }
 0x7c5   : > { %v3655_v43 = vsel %vm2975_vm4, %v12714_v17, %v3591_v44 }
 0x7c6   : > { %3740 = vmatpush.bf16.msra.mxu2 %v3655_v43 }
 0x7c8   : > { %v3606_v48 = vpop.permute.xlu1 %3605 }
 0x7c9   : > { %v3609_v54 = vsel %vm3607_vm12, %v3604_v15, %v3606_v48  ;;  %8932 = vmatmul.msk.bf16.vlgmr.msra.gmra.mxu2 %vm3720_vm5, %v10108_v3  ;;  %v3675_v7 = vsel %vm2975_vm4, %v3598_v39, %v3606_v48 }
 0x7ca   : > { %3767 = vmatpush.bf16.msrb.mxu0 %v3675_v7  ;;  %v3671_v20 = vsel %vm2975_vm4, %v3600_v62, %v3609_v54  ;;  %v3944_v54 = vand.u32 %v12670_v55, %v3294_v57 }
 0x7cb   : > { %3753 = vmatpush.bf16.msra.mxu3 %v3671_v20  ;;  %v3713_v1 = vpop.permute.xlu0 %3712 }
 0x7cc   : > { %3953 = vmatpush.bf16.msrb.mxu2 %v3944_v54 }
 0x7d0   : > { %v3590_v17 = vpop.permute.xlu1 %3589 }
 0x7d1   : > { %v3592_v40 = vsel %vm13632_vm11, %v3588_v46, %v3590_v17  ;;  %v3663_v49 = vsel %vm2975_vm4, %v12724_v4, %v3590_v17  ;;  %vm4096_vm11 = vcmask 724616  }
 0x7d2   : > { %3768 = vmatpush.bf16.msrb.mxu0 %v3663_v49  ;;  %v3659_v8 = vsel %vm2975_vm4, %v12716_v50, %v3592_v40 }
 0x7d3   : > { %3754 = vmatpush.bf16.msra.mxu3 %v3659_v8 }
 0x7d5   : > { %8934 = vmatmul.msk.bf16.vlgmr.msrb.gmra.mxu0 %vm3720_vm5, %v10108_v3 }
 0x7d6   : > { %8933 = vmatmul.msk.bf16.vlgmr.msra.gmra.mxu3 %vm3720_vm5, %v10108_v3  ;;  %vm4070_vm5 = vcmask 560616  }
 0x84c   : > { %v3742_v53 = vpop.f32.mrf.mxu2 }
 0x84d   : > { %v3743_v34 = vadd.f32 %v3742_v53, %v3708_v33 }
 0x84f   : > { %v3775_v36 = vmax.f32 %v3743_v34, 0.0 }
 0x851   : > { %v3781_v5 = vmin.f32 %v3775_v36, 6.0 }
 0x852   : > { %v3770_v18 = vpop.f32.mrf.mxu0 }
 0x853   : > { %v3771_v11 = vadd.f32 %v3770_v18, %v3708_v33 }
 0x854   : > { %v3744_v63 = vpop.f32.mrf.mxu2 }
 0x855   : > { %v3777_v14 = vmax.f32 %v3771_v11, 0.0  ;;  %v3745_v10 = vadd.f32 %v3744_v63, %v3713_v1 }
 0x857   : > { %v3783_v28 = vmin.f32 %v3777_v14, 6.0  ;;  %v3778_v4 = vmax.f32 %v3745_v10, 0.0 }
 0x859   : > { %v3784_v25 = vmin.f32 %v3778_v4, 6.0  ;;  %v3756_v38 = vpop.f32.mrf.mxu3 }
 0x85a   : > { %v3757_v50 = vadd.f32 %v3756_v38, %v3708_v33  ;;  %v3772_v59 = vpop.f32.mrf.mxu0 }
 0x85b   : > { %v10649_v2 = vpack.i.bf16 %v3784_v25, %v3783_v28  ;;  %v3773_v32 = vadd.f32 %v3772_v59, %v3713_v1 }
 0x85c   : > { %v3776_v52 = vmax.f32 %v3757_v50, 0.0 }
 0x85d   : > { %10650 = vrot.lane.b32.xlu2 %v10649_v2, %s11201_s22  ;;  %v3780_v12 = vmax.f32 %v3773_v32, 0.0 }
 0x85e   : > { %v3782_v13 = vmin.f32 %v3776_v52, 6.0 }
 0x85f   : > { %v3786_v0 = vmin.f32 %v3780_v12, 6.0 }
 0x860   : > { %v10654_v51 = vpack.i.bf16 %v3782_v13, %v3781_v5 }
 0x861   : > { %v3758_v23 = vpop.f32.mrf.mxu3 }
 0x862   : > { %v3759_v27 = vadd.f32 %v3758_v23, %v3713_v1  ;;  %10655 = vrot.lane.b32.xlu1 %v10654_v51, %s11201_s22 }
 0x864   : > { %v3779_v24 = vmax.f32 %v3759_v27, 0.0 }
 0x866   : > { %v3785_v19 = vmin.f32 %v3779_v24, 6.0 }
 0x868   : > { %v10659_v21 = vpack.i.bf16 %v3786_v0, %v3785_v19 }
 0x86a   : > { %10660 = vrot.lane.b32.xlu1 %v10659_v21, %s11201_s22  ;;  %s11202_s22 = smov 56  }
 0x8b7   : > { %v10651_v16 = vpop.permute.xlu2 %10650 }
 0x8b8   : > { %v10652_v41 = vunpack.i.l.bf16 %v10651_v16  ;;  %v10653_v22 = vunpack.i.h.bf16 %v10651_v16 }
 0x8ba   : > { %v3818_v39 = vmax.f32 %v3783_v28, %v10652_v41 }
 0x8d4   : > { %v10656_v60 = vpop.permute.xlu1 %10655 }
 0x8d5   : > { %v10658_v61 = vunpack.i.h.bf16 %v10656_v60  ;;  %v10657_v35 = vunpack.i.l.bf16 %v10656_v60 }
 0x8d7   : > { %v3807_v30 = vsel %vm3607_vm12, %v10658_v61, %v10652_v41  ;;  %v3806_v58 = vsel %vm3607_vm12, %v10657_v35, %v10658_v61 }
 0x8d8   : > { %v3817_v37 = vmax.f32 %v3782_v13, %v3807_v30  ;;  %v3816_v26 = vmax.f32 %v3781_v5, %v3806_v58 }
 0x8da   : > { %v10664_v29 = vpack.i.bf16 %v3817_v37, %v3816_v26 }
 0x8dc   : > { %v10661_v15 = vpop.permute.xlu1 %10660  ;;  %10665 = vrot.lane.b32.xlu2 %v10664_v29, %s11150_s13 }
 0x8dd   : > { %v10663_v6 = vunpack.i.h.bf16 %v10661_v15  ;;  %v10662_v56 = vunpack.i.l.bf16 %v10661_v15 }
 0x8df   : > { %v3821_v47 = vmax.f32 %v3786_v0, %v10663_v6  ;;  %v3808_v46 = vsel %vm3607_vm12, %v10653_v22, %v10662_v56  ;;  %v3809_v44 = vsel %vm3607_vm12, %v10662_v56, %v10663_v6  ;;  %vm4031_vm12 = vcmask 314616  }
 0x8e0   : > { %v3819_v43 = vmax.f32 %v3784_v25, %v3808_v46  ;;  %v3820_v3 = vmax.f32 %v3785_v19, %v3809_v44 }
 0x8e1   : > { %v10679_v48 = vpack.i.bf16 %v3821_v47, %v3818_v39 }
 0x8e2   : > { %v10669_v62 = vpack.i.bf16 %v3820_v3, %v3819_v43 }
 0x8e4   : > { %10670 = vrot.lane.b32.xlu0 %v10669_v62, %s11150_s13  ;;  %10680 = vrot.lane.b32.xlu2 %v10679_v48, %s11150_s13 }
 0x936   : > { %v10666_v7 = vpop.permute.xlu2 %10665 }
 0x937   : > { %v10668_v17 = vunpack.i.h.bf16 %v10666_v7  ;;  %v10667_v40 = vunpack.i.l.bf16 %v10666_v7 }
 0x939   : > { %v3840_v8 = vsel %vm13633_vm6, %v10667_v40, %v10668_v17  ;;  %vm4177_vm6 = vcmask 130048  }
 0x93a   : > { %v3850_v63 = vmax.f32 %v3816_v26, %v3840_v8 }
 0x93e   : > { %v10681_v20 = vpop.permute.xlu2 %10680 }
 0x93f   : > { %v10682_v49 = vunpack.i.l.bf16 %v10681_v20  ;;  %v10683_v33 = vunpack.i.h.bf16 %v10681_v20 }
 0x941   : > { %v3841_v18 = vsel %vm13634_vm3, %v10668_v17, %v10682_v49  ;;  %v3852_v36 = vmax.f32 %v3818_v39, %v10682_v49  ;;  %v3855_v38 = vmax.f32 %v3821_v47, %v10683_v33  ;;  %vm13641_vm3 = vcmask 1042432  }
 0x942   : > { %v3851_v55 = vmax.f32 %v3817_v37, %v3841_v18 }
 0x944   : > { %v10709_v25 = vpack.i.bf16 %v3852_v36, %v3851_v55 }
 0x956   : > { %v10671_v53 = vpop.permute.xlu0 %10670 }
 0x957   : > { %v10673_v1 = vunpack.i.h.bf16 %v10671_v53  ;;  %v10672_v11 = vunpack.i.l.bf16 %v10671_v53 }
 0x959   : > { %v3842_v34 = vsel %vm13635_vm1, %v10672_v11, %v10673_v1  ;;  %v3843_v31 = vsel %vm13636_vm13, %v10673_v1, %v10683_v33  ;;  %vm4319_vm1 = vcmask 56320   ;;  %vm755_vm13 = vcmask 289792  }
 0x95a   : > { %v3853_v57 = vmax.f32 %v3819_v43, %v3842_v34  ;;  %v3854_v14 = vmax.f32 %v3820_v3, %v3843_v31  ;;  %756 = vst.msk [vmem:[#allocation5] sm:$0xf] %vm755_vm13, %v13624_v45 }
 0x95b   : > { %757 = vst.msk [vmem:[#allocation5 + $0x4] sm:$0xf] %vm755_vm13, %v13624_v45 }
 0x95c   : > { %v10694_v10 = vpack.i.bf16 %v3854_v14, %v3851_v55  ;;  %v10684_v28 = vpack.i.bf16 %v3853_v57, %v3850_v63  ;;  %v3910_v4 = vpack.c.bf16 %v3853_v57, %v3850_v63  ;;  %v10714_v50 = vpack.i.bf16 %v3855_v38, %v3854_v14  ;;  %758 = vst.msk [vmem:[#allocation5 + $0x8] sm:$0xf] %vm755_vm13, %v13624_v45 }
 0x95d   : > { %759 = vst.msk [vmem:[#allocation5 + $0xc] sm:$0xf] %vm755_vm13, %v13624_v45  ;;  %vm5125_vm13 = vsmask.f32 1284 }
 0x95e   : > { %10695 = vrot.lane.b32.xlu2 %v10694_v10, %s11176_s11  ;;  %10685 = vrot.lane.b32.xlu0 %v10684_v28, %s11202_s22  ;;  %s13637_s11 = smov 31   ;;  %s13640_s22 = smov 117  }
 0x95f   : > { %10675 = vrot.lane.b32.xlu1 %v10684_v28, %s11170_s18  ;;  %8935 = vmatmul.msk.bf16.vlgmr.msrb.gmra.mxu2 %vm3918_vm14, %v3910_v4  ;;  %s11205_s18 = smov 11  }
 0x966   : > { %10710 = vrot.lane.b32.xlu2 %v10709_v25, %s11189_s14  ;;  %10700 = vrot.lane.b32.xlu0 %v10694_v10, %s11203_s2  ;;  %s13644_s2 = smov 19  }
 0x967   : > { %10690 = vrot.lane.b32.xlu1 %v10684_v28, %s11185_s9  ;;  %s13638_s9 = smov 41  }
 0x96e   : > { %10715 = vrot.lane.b32.xlu0 %v10714_v50, %s11189_s14  ;;  %s11206_s14 = smov 21  }
 0x96f   : > { %10705 = vrot.lane.b32.xlu1 %v10694_v10, %s11204_s16  ;;  %s13645_s16 = smov 25  }
 0x9b8   : > { %v10696_v41 = vpop.permute.xlu2 %10695 }
 0x9b9   : > { %v10698_v61 = vunpack.i.h.bf16 %v10696_v41  ;;  %v10697_v35 = vunpack.i.l.bf16 %v10696_v41 }
 0x9bb   : > { %v3914_v30 = vpack.c.bf16 %v10698_v61, %v10697_v35 }
 0x9c0   : > { %v10711_v47 = vpop.permute.xlu2 %10710 }
 0x9c1   : > { %v10713_v43 = vunpack.i.h.bf16 %v10711_v47  ;;  %v10712_v3 = vunpack.i.l.bf16 %v10711_v47 }
 0x9c3   : > { %v3906_v62 = vsel %vm3363_vm2, %v10712_v3, %v10713_v43  ;;  %v10110_v43 = vld [vmem:[#allocation13 + $0x4] sm:$0xf]  ;;  %v8951_v3 = vld [vmem:[#allocation13 + $0x8] sm:$0xf0] }
 0x9d0   : > { %v10686_v13 = vpop.permute.xlu0 %10685 }
 0x9d1   : > { %v10676_v2 = vpop.permute.xlu1 %10675  ;;  %v10688_v32 = vunpack.i.h.bf16 %v10686_v13  ;;  %v10687_v51 = vunpack.i.l.bf16 %v10686_v13 }
 0x9d2   : > { %v10678_v59 = vunpack.i.h.bf16 %v10676_v2  ;;  %v10677_v5 = vunpack.i.l.bf16 %v10676_v2 }
 0x9d3   : > { %v3912_v27 = vpack.c.bf16 %v10688_v32, %v10687_v51 }
 0x9d4   : > { %v3911_v52 = vpack.c.bf16 %v10678_v59, %v10677_v5 }
 0x9d6   : > { %8936 = vmatmul.msk.bf16.gmra.mxu2 %vm3918_vm14, %v3911_v52 }
 0x9d8   : > { %v10701_v58 = vpop.permute.xlu0 %10700 }
 0x9d9   : > { %v10691_v19 = vpop.permute.xlu1 %10690  ;;  %v10703_v37 = vunpack.i.h.bf16 %v10701_v58  ;;  %v10702_v26 = vunpack.i.l.bf16 %v10701_v58 }
 0x9da   : > { %v10693_v21 = vunpack.i.h.bf16 %v10691_v19  ;;  %v10692_v16 = vunpack.i.l.bf16 %v10691_v19 }
 0x9db   : > { %v3915_v29 = vpack.c.bf16 %v10703_v37, %v10702_v26 }
 0x9dc   : > { %v3913_v60 = vpack.c.bf16 %v10693_v21, %v10692_v16 }
 0x9e0   : > { %v10716_v39 = vpop.permute.xlu0 %10715 }
 0x9e1   : > { %v10706_v15 = vpop.permute.xlu1 %10705  ;;  %v10718_v46 = vunpack.i.h.bf16 %v10716_v39  ;;  %v10717_v44 = vunpack.i.l.bf16 %v10716_v39 }
 0x9e2   : > { %v3955_v23 = vpop.f32.mrf.mxu2  ;;  %v10708_v22 = vunpack.i.h.bf16 %v10706_v15  ;;  %v10707_v6 = vunpack.i.l.bf16 %v10706_v15  ;;  %v4138_v15 = vld [vmem:[%s13449_s6 + $0x18] sm:$0xff] }
 0x9e3   : > { %v3995_v12 = vpack.c.bf16 %v3955_v23, %v3955_v23  ;;  %v3907_v48 = vsel %vm3363_vm2, %v10717_v44, %v10718_v46  ;;  %vm4018_vm2 = vcmask 232616  }
 0x9e4   : > { %v3916_v56 = vpack.c.bf16 %v10708_v22, %v10707_v6  ;;  %v3917_v54 = vpack.c.bf16 %v3907_v48, %v3906_v62  ;;  %v4137_v22 = vld [vmem:[%s13449_s6 + $0x10] sm:$0xff]  ;;  %v4136_v6 = vld [vmem:[%s13449_s6 + $0x8] sm:$0xff] }
 0x9e5   : > { %3999 = vrot.lane.b32.xlu1 %v3995_v12, %s11205_s18 }
 0x9e6   : > { %8937 = vmatmul.msk.bf16.gmra.mxu2 %vm3918_vm14, %v3912_v27 }
 0x9ea   : > { %v3957_v24 = vpop.f32.mrf.mxu2 }
 0x9eb   : > { %v3996_v0 = vpack.c.bf16 %v3957_v24, %v3957_v24 }
 0x9ed   : > { %4001 = vrot.lane.b32.xlu2 %v3996_v0, %s11205_s18  ;;  %s11211_s18 = smov 106  }
 0x9f6   : > { %8938 = vmatmul.msk.bf16.gmra.mxu2 %vm3918_vm14, %v3913_v60 }
 0xa06   : > { %8939 = vmatmul.msk.bf16.gmra.mxu2 %vm3918_vm14, %v3914_v30 }
 0xa16   : > { %8940 = vmatmul.msk.bf16.gmra.mxu2 %vm3918_vm14, %v3915_v29  ;;  %v4135_v29 = vld [vmem:[%s13449_s6] sm:$0xff] }
 0xa26   : > { %8941 = vmatmul.msk.bf16.gmra.mxu2 %vm3918_vm14, %v3916_v56 }
 0xa36   : > { %8942 = vmatmul.msk.bf16.gmra.mxu2 %vm3918_vm14, %v3917_v54  ;;  %v8954_v54 = vor.u32 %v10110_v43, %v8951_v3  ;;  %vm4418_vm14 = vcmask 85048  }
 0xa47   : > { %v4002_v7 = vpop.permute.xlu2 %4001 }
 0xa48   : > { %4007 = vst.msk [vmem:[#allocation4 + $0x4] sm:$0xf] %vm4005_vm8, %v4002_v7 }
 0xa57   : > { %v4000_v20 = vpop.permute.xlu1 %3999 }
 0xa58   : > { %4006 = vst.msk [vmem:[#allocation4] sm:$0xf] %vm4005_vm8, %v4000_v20  ;;  %v8949_v20 = vld [vmem:[#allocation13] sm:$0xf]  ;;  %vm4468_vm8 = vcmask 183448  }
 0xa59   : > { %v3960_v17 = vpop.f32.mrf.mxu2 }
 0xa5a   : > { %v4008_v40 = vpack.c.bf16 %v3960_v17, %v3960_v17  ;;  %v10111_v17 = vld [vmem:[#allocation13 + $0x4] sm:$0xf0] }
 0xa5c   : > { %4012 = vrot.lane.b32.xlu0 %v4008_v40, %s11206_s14  ;;  %v8950_v40 = vor.u32 %v10111_v17, %v8949_v20 }
 0xa61   : > { %v3962_v49 = vpop.f32.mrf.mxu2 }
 0xa62   : > { %v4009_v8 = vpack.c.bf16 %v3962_v49, %v3962_v49  ;;  %v10112_v49 = vld [vmem:[#allocation13 + $0x14] sm:$0xf] }
 0xa64   : > { %4014 = vrot.lane.b32.xlu1 %v4009_v8, %s11206_s14  ;;  %v8959_v8 = vld [vmem:[#allocation13 + $0x18] sm:$0xf0]  ;;  %s11215_s14 = smov 115  }
 0xa69   : > { %v3965_v53 = vpop.f32.mrf.mxu2 }
 0xa6a   : > { %v4021_v33 = vpack.c.bf16 %v3965_v53, %v3965_v53  ;;  %v8962_v53 = vor.u32 %v10112_v49, %v8959_v8 }
 0xa6c   : > { %4025 = vrot.lane.b32.xlu2 %v4021_v33, %s13637_s11  ;;  %v8957_v33 = vld [vmem:[#allocation13 + $0x10] sm:$0xf] }
 0xa71   : > { %v3967_v18 = vpop.f32.mrf.mxu2 }
 0xa72   : > { %v4022_v1 = vpack.c.bf16 %v3967_v18, %v3967_v18  ;;  %v10113_v18 = vld [vmem:[#allocation13 + $0x14] sm:$0xf0] }
 0xa74   : > { %4027 = vrot.lane.b32.xlu0 %v4022_v1, %s13637_s11  ;;  %v8958_v1 = vor.u32 %v10113_v18, %v8957_v33  ;;  %s13646_s11 = smov 120  }
 0xa79   : > { %v3970_v11 = vpop.f32.mrf.mxu2 }
 0xa7a   : > { %v4034_v34 = vpack.c.bf16 %v3970_v11, %v3970_v11 }
 0xa7c   : > { %4038 = vrot.lane.b32.xlu1 %v4034_v34, %s13638_s9 }
 0xa81   : > { %v3972_v31 = vpop.f32.mrf.mxu2 }
 0xa82   : > { %v4035_v63 = vpack.c.bf16 %v3972_v31, %v3972_v31 }
 0xa84   : > { %4040 = vrot.lane.b32.xlu2 %v4035_v63, %s13638_s9  ;;  %s13670_s9 = sld [smem:[#allocation42_spill]] }
 0xa89   : > { %v3975_v55 = vpop.f32.mrf.mxu2 }
 0xa8a   : > { %v4047_v57 = vpack.c.bf16 %v3975_v55, %v3975_v55 }
 0xa8c   : > { %4051 = vrot.lane.b32.xlu0 %v4047_v57, %s13639_s29 }
 0xa91   : > { %v3977_v14 = vpop.f32.mrf.mxu2 }
 0xa92   : > { %v4048_v10 = vpack.c.bf16 %v3977_v14, %v3977_v14 }
 0xa94   : > { %4053 = vrot.lane.b32.xlu1 %v4048_v10, %s13639_s29  ;;  %s11217_s29 = smov 121  }
 0xa99   : > { %v3980_v28 = vpop.f32.mrf.mxu2 }
 0xa9a   : > { %v4060_v4 = vpack.c.bf16 %v3980_v28, %v3980_v28 }
 0xa9c   : > { %4064 = vrot.lane.b32.xlu2 %v4060_v4, %s11207_s24 }
 0xaa1   : > { %v3982_v36 = vpop.f32.mrf.mxu2 }
 0xaa2   : > { %v4061_v25 = vpack.c.bf16 %v3982_v36, %v3982_v36 }
 0xaa4   : > { %4066 = vrot.lane.b32.xlu0 %v4061_v25, %s11207_s24  ;;  %s13691_s24 = sld [smem:[#allocation44_spill]] }
 0xaa9   : > { %v3985_v38 = vpop.f32.mrf.mxu2 }
 0xaaa   : > { %v4073_v50 = vpack.c.bf16 %v3985_v38, %v3985_v38 }
 0xaac   : > { %4077 = vrot.lane.b32.xlu1 %v4073_v50, %s11196_s25 }
 0xab1   : > { %v3987_v2 = vpop.f32.mrf.mxu2 }
 0xab2   : > { %v4074_v59 = vpack.c.bf16 %v3987_v2, %v3987_v2 }
 0xab4   : > { %4079 = vrot.lane.b32.xlu2 %v4074_v59, %s11196_s25  ;;  %s11209_s25 = smov 116  }
 0xab9   : > { %v3990_v5 = vpop.f32.mrf.mxu2 }
 0xaba   : > { %v4086_v52 = vpack.c.bf16 %v3990_v5, %v3990_v5 }
 0xabc   : > { %4090 = vrot.lane.b32.xlu0 %v4086_v52, %s11208_s1 }
 0xac1   : > { %v3992_v13 = vpop.f32.mrf.mxu2 }
 0xac2   : > { %v4087_v32 = vpack.c.bf16 %v3992_v13, %v3992_v13 }
 0xac4   : > { %4092 = vrot.lane.b32.xlu1 %v4087_v32, %s11208_s1  ;;  %s13642_s1 = smov 88  }
 0xac6   : > { %v4026_v23 = vpop.permute.xlu2 %4025 }
 0xace   : > { %v4013_v51 = vpop.permute.xlu0 %4012 }
 0xacf   : > { %4019 = vst.msk [vmem:[#allocation4] sm:$0xf] %vm4018_vm2, %v4013_v51 }
 0xad0   : > { %4032 = vst.msk [vmem:[#allocation4] sm:$0xf] %vm4031_vm12, %v4026_v23 }
 0xad6   : > { %v4015_v12 = vpop.permute.xlu1 %4014 }
 0xad7   : > { %4020 = vst.msk [vmem:[#allocation4 + $0x4] sm:$0xf] %vm4018_vm2, %v4015_v12  ;;  %vm4493_vm2 = vcmask 232648  }
 0xade   : > { %v4041_v24 = vpop.permute.xlu2 %4040 }
 0xae6   : > { %v4028_v27 = vpop.permute.xlu0 %4027 }
 0xae7   : > { %4033 = vst.msk [vmem:[#allocation4 + $0x4] sm:$0xf] %vm4031_vm12, %v4028_v27  ;;  %vm4686_vm12 = vcmask 261120  }
 0xae8   : > { %4046 = vst.msk [vmem:[#allocation4 + $0x4] sm:$0xf] %vm4044_vm10, %v4041_v24 }
 0xaee   : > { %v4039_v0 = vpop.permute.xlu1 %4038 }
 0xaef   : > { %4045 = vst.msk [vmem:[#allocation4] sm:$0xf] %vm4044_vm10, %v4039_v0  ;;  %vm13647_vm10 = vcmask 1041408  }
 0xaf6   : > { %v4065_v21 = vpop.permute.xlu2 %4064 }
 0xafe   : > { %v4052_v19 = vpop.permute.xlu0 %4051 }
 0xaff   : > { %4058 = vst.msk [vmem:[#allocation4] sm:$0xf] %vm4057_vm0, %v4052_v19 }
 0xb00   : > { %4071 = vst.msk [vmem:[#allocation4] sm:$0xf] %vm4070_vm5, %v4065_v21 }
 0xb06   : > { %v4054_v16 = vpop.permute.xlu1 %4053 }
 0xb07   : > { %4059 = vst.msk [vmem:[#allocation4 + $0x4] sm:$0xf] %vm4057_vm0, %v4054_v16  ;;  %vm4886_vm0 = vcmask 23552  }
 0xb0e   : > { %v4080_v41 = vpop.permute.xlu2 %4079 }
 0xb16   : > { %v4067_v60 = vpop.permute.xlu0 %4066 }
 0xb17   : > { %4072 = vst.msk [vmem:[#allocation4 + $0x4] sm:$0xf] %vm4070_vm5, %v4067_v60  ;;  %vm13648_vm5 = vmmov %vm13647_vm10 }
 0xb18   : > { %4085 = vst.msk [vmem:[#allocation4 + $0x4] sm:$0xf] %vm4083_vm9, %v4080_v41 }
 0xb1e   : > { %v4078_v61 = vpop.permute.xlu1 %4077 }
 0xb1f   : > { %4084 = vst.msk [vmem:[#allocation4] sm:$0xf] %vm4083_vm9, %v4078_v61  ;;  %vm13649_vm9 = vmmov %vm13648_vm5 }
 0xb2e   : > { %v4091_v35 = vpop.permute.xlu0 %4090 }
 0xb2f   : > { %4097 = vst.msk [vmem:[#allocation4] sm:$0xf] %vm4096_vm11, %v4091_v35 }
 0xb36   : > { %v4093_v30 = vpop.permute.xlu1 %4092  ;;  %v8945_v58 = vld [vmem:[#allocation4] sm:$0xf] }
 0xb37   : > { %4098 = vst.msk [vmem:[#allocation4 + $0x4] sm:$0xf] %vm4096_vm11, %v4093_v30  ;;  %vm4979_vm11 = vsmask.f32 1282 }
 0xb3e   : > { %v10109_v37 = vld [vmem:[#allocation4] sm:$0xf0] }
 0xb3f   : > { %v8946_v26 = vor.u32 %v10109_v37, %v8945_v58 }
 0xb41   : > { %4119 = vrot.lane.b32.xlu1 %v8946_v26, %s11209_s25  ;;  %4122 = vrot.lane.b32.xlu0 %v8946_v26, %s11200_s17 }
 0xb42   : > { %4125 = vrot.lane.b32.xlu2 %v8946_v26, %s11198_s10  ;;  %s11216_s10 = smov 114  }
 0xb49   : > { %4110 = vrot.lane.b32.xlu1 %v8946_v26, %s11168_s26  ;;  %4113 = vrot.lane.b32.xlu0 %v8946_v26, %s11210_s3 }
 0xb4a   : > { %4116 = vrot.lane.b32.xlu2 %v8946_v26, %s13640_s22  ;;  %s13643_s22 = smov 7  }
 0xb51   : > { %4141 = vperm.xlu1 %10606, %v4135_v29   ;;  %4128 = vrot.lane.b32.xlu0 %v8946_v26, %s11211_s18  ;;  %s11214_s18 = smov 122  }
 0xb52   : > { %4107 = vrot.lane.b32.xlu2 %v8946_v26, %s11150_s13 }
 0xb59   : > { %4156 = vperm.xlu1 %10606, %v4138_v15   ;;  %4151 = vperm.xlu0 %10648, %v4137_v22  }
 0xb5a   : > { %4146 = vperm.xlu2 %10647, %v4136_v6  }
 0xb9c   : > { %v4126_v56 = vpop.permute.xlu2 %4125 }
 0xb9d   : > { %4184 = vmatpush.bf16.msrb.mxu3 %v4126_v56 }
 0xba4   : > { %v4117_v46 = vpop.permute.xlu2 %4116 }
 0xbac   : > { %v4108_v7 = vpop.permute.xlu2 %4107 }
 0xbb3   : > { %v4123_v39 = vpop.permute.xlu0 %4122  ;;  %v4120_v47 = vpop.permute.xlu1 %4119 }
 0xbb4   : > { %4185 = vmatpush.bf16.msrb.mxu3 %v4123_v39  ;;  %v4147_v14 = vpop.permute.xlu2 %4146  ;;  %v12875_v39 = vpack.c.bf16 %v12672_v42, %v12672_v42 }
 0xbb8   : > { %4186 = vmatpush.bf16.msrb.mxu3 %v4120_v47  ;;  %v4344_v47 = vsel %vm13641_vm3, 4294967295, %v13617_v9 }
 0xbbb   : > { %v4114_v44 = vpop.permute.xlu0 %4113  ;;  %v4111_v48 = vpop.permute.xlu1 %4110 }
 0xbbc   : > { %4187 = vmatpush.bf16.msrb.mxu3 %v4117_v46  ;;  %v4345_v46 = vsel %vm2975_vm4, %v4344_v47, 0 }
 0xbc0   : > { %4188 = vmatpush.bf16.msrb.mxu3 %v4114_v44  ;;  %v4347_v44 = vand.u32 %v4345_v46, %v12875_v39 }
 0xbc3   : > { %v4129_v62 = vpop.permute.xlu0 %4128  ;;  %v4142_v31 = vpop.permute.xlu1 %4141 }
 0xbc4   : > { %4189 = vmatpush.bf16.msrb.mxu3 %v4111_v48  ;;  %4210 = vmatpush.bf16.msra.mxu0 %v4129_v62 }
 0xbc7   : > { %8963 = vmatmul.msk.bf16.vlgmr.msra.gmra.mxu0 %vm4177_vm6, %v8954_v54 }
 0xbc8   : > { %4190 = vmatpush.bf16.msrb.mxu3 %v4108_v7  ;;  %4356 = vmatpush.bf16.msrb.mxu0 %v4347_v44 }
 0xbcb   : > { %v4152_v52 = vpop.permute.xlu0 %4151  ;;  %v4157_v51 = vpop.permute.xlu1 %4156 }
 0xbcc   : > { %4191 = vmatpush.bf16.msrb.mxu3 %v8946_v26 }
 0xbcf   : > { %4192 = vmatmul.bf16.vlgmr.msrb.gmra.mxu3 %v8950_v40 }
 0xbd7   : > { %8964 = vmatmul.msk.bf16.gmra.mxu0 %vm4177_vm6, %v8962_v53  ;;  %vm13650_vm6 = vcmask 517120  }
 0xbd8   : > { %vm4980_vm3 = vmand %vm13650_vm6, %vm4979_vm11 }
 0xbdf   : > { %4197 = vmatmul.bf16.gmra.mxu3 %v8958_v1 }
 0xc44   : > { %v4212_v11 = vpop.f32.mrf.mxu0 }
 0xc4c   : > { %v4214_v55 = vpop.f32.mrf.mxu0 }
 0xc52   : > { %v4193_v34 = vpop.f32.mrf.mxu3 }
 0xc53   : > { %v4194_v63 = vadd.f32 %v4193_v34, %v4142_v31 }
 0xc54   : > { %v4217_v2 = vpop.f32.mrf.mxu0 }
 0xc55   : > { %v4213_v57 = vadd.f32 %v4212_v11, %v4194_v63 }
 0xc57   : > { %v4222_v4 = vmax.f32 %v4213_v57, 0.0 }
 0xc59   : > { %v4226_v38 = vmin.f32 %v4222_v4, 6.0 }
 0xc5a   : > { %v4195_v10 = vpop.f32.mrf.mxu3 }
 0xc5b   : > { %v4196_v28 = vadd.f32 %v4195_v10, %v4147_v14 }
 0xc5c   : > { %v4219_v27 = vpop.f32.mrf.mxu0 }
 0xc5d   : > { %v4215_v36 = vadd.f32 %v4214_v55, %v4196_v28 }
 0xc5f   : > { %v4223_v25 = vmax.f32 %v4215_v36, 0.0 }
 0xc61   : > { %v4227_v50 = vmin.f32 %v4223_v25, 6.0 }
 0xc62   : > { %v4198_v59 = vpop.f32.mrf.mxu3 }
 0xc63   : > { %v10719_v5 = vpack.i.bf16 %v4227_v50, %v4226_v38  ;;  %v4199_v13 = vadd.f32 %v4198_v59, %v4152_v52 }
 0xc65   : > { %10720 = vrot.lane.b32.xlu2 %v10719_v5, %s11210_s3  ;;  %v4218_v32 = vadd.f32 %v4217_v2, %v4199_v13 }
 0xc67   : > { %v4224_v24 = vmax.f32 %v4218_v32, 0.0 }
 0xc69   : > { %v4228_v21 = vmin.f32 %v4224_v24, 6.0 }
 0xc6a   : > { %v4200_v23 = vpop.f32.mrf.mxu3 }
 0xc6b   : > { %v4201_v12 = vadd.f32 %v4200_v23, %v4157_v51 }
 0xc6d   : > { %v4220_v0 = vadd.f32 %v4219_v27, %v4201_v12 }
 0xc6f   : > { %v4225_v19 = vmax.f32 %v4220_v0, 0.0 }
 0xc71   : > { %v4229_v16 = vmin.f32 %v4225_v19, 6.0 }
 0xc73   : > { %v10724_v60 = vpack.i.bf16 %v4229_v16, %v4228_v21 }
 0xc75   : > { %10725 = vrot.lane.b32.xlu0 %v10724_v60, %s11210_s3  ;;  %s11212_s3 = smov 68  }
 0xcbf   : > { %v10721_v41 = vpop.permute.xlu2 %10720 }
 0xcc0   : > { %v10723_v61 = vunpack.i.h.bf16 %v10721_v41  ;;  %v10722_v35 = vunpack.i.l.bf16 %v10721_v41 }
 0xcc2   : > { %v4247_v30 = vmax.f32 %v4227_v50, %v10723_v61  ;;  %v4246_v58 = vmax.f32 %v4226_v38, %v10722_v35 }
 0xcc4   : > { %v10729_v37 = vpack.i.bf16 %v4247_v30, %v4246_v58 }
 0xcc6   : > { %10730 = vrot.lane.b32.xlu1 %v10729_v37, %s11150_s13 }
 0xce7   : > { %v10726_v26 = vpop.permute.xlu0 %10725 }
 0xce8   : > { %v10728_v29 = vunpack.i.h.bf16 %v10726_v26  ;;  %v10727_v15 = vunpack.i.l.bf16 %v10726_v26 }
 0xcea   : > { %v4249_v22 = vmax.f32 %v4229_v16, %v10728_v29  ;;  %v4248_v6 = vmax.f32 %v4228_v21, %v10727_v15 }
 0xcec   : > { %v10734_v56 = vpack.i.bf16 %v4249_v22, %v4248_v6 }
 0xcee   : > { %10735 = vrot.lane.b32.xlu2 %v10734_v56, %s11150_s13 }
 0xd38   : > { %v10731_v43 = vpop.permute.xlu1 %10730 }
 0xd39   : > { %v10733_v3 = vunpack.i.h.bf16 %v10731_v43  ;;  %v10732_v48 = vunpack.i.l.bf16 %v10731_v43 }
 0xd3b   : > { %v4267_v62 = vmax.f32 %v4247_v30, %v10733_v3  ;;  %v4266_v54 = vmax.f32 %v4246_v58, %v10732_v48 }
 0xd3d   : > { %v4311_v7 = vpack.c.bf16 %v4267_v62, %v4266_v54  ;;  %v10749_v20 = vpack.i.bf16 %v4267_v62, %v4266_v54 }
 0xd3f   : > { %10750 = vrot.lane.b32.xlu2 %v10749_v20, %s13642_s1  ;;  %10740 = vrot.lane.b32.xlu0 %v10749_v20, %s11200_s17 }
 0xd40   : > { %8965 = vmatmul.msk.bf16.vlgmr.msrb.gmra.mxu0 %vm4319_vm1, %v4311_v7 }
 0xd48   : > { %v10736_v42 = vpop.permute.xlu2 %10735 }
 0xd49   : > { %v10738_v17 = vunpack.i.h.bf16 %v10736_v42  ;;  %v10737_v40 = vunpack.i.l.bf16 %v10736_v42 }
 0xd4b   : > { %v4269_v49 = vmax.f32 %v4249_v22, %v10738_v17  ;;  %v4268_v8 = vmax.f32 %v4248_v6, %v10737_v40 }
 0xd4d   : > { %v10744_v53 = vpack.i.bf16 %v4269_v49, %v4268_v8  ;;  %v4312_v33 = vpack.c.bf16 %v4269_v49, %v4268_v8 }
 0xd4f   : > { %10745 = vrot.lane.b32.xlu1 %v10744_v53, %s11200_s17  ;;  %10765 = vrot.lane.b32.xlu2 %v10744_v53, %s11212_s3  ;;  %s11213_s17 = smov 13  }
 0xd50   : > { %10755 = vrot.lane.b32.xlu0 %v10744_v53, %s13642_s1  ;;  %8966 = vmatmul.msk.bf16.gmra.mxu0 %vm4319_vm1, %v4312_v33  ;;  %s8757_s1 = scalar_lea.sflag [#allocation12], %s11448_s15 }
 0xd57   : > { %10760 = vrot.lane.b32.xlu1 %v10749_v20, %s11212_s3 }
 0xd99   : > { %v10751_v36 = vpop.permute.xlu2 %10750 }
 0xd9a   : > { %v10753_v50 = vunpack.i.h.bf16 %v10751_v36  ;;  %v10752_v2 = vunpack.i.l.bf16 %v10751_v36 }
 0xd9c   : > { %v4315_v59 = vpack.c.bf16 %v10753_v50, %v10752_v2  ;;  %v4579_v2 = vld [vmem:[%s13451_s8 + $0x8] sm:$0xff] }
 0xda9   : > { %v10766_v19 = vpop.permute.xlu2 %10765 }
 0xdaa   : > { %v10768_v21 = vunpack.i.h.bf16 %v10766_v19  ;;  %v10767_v16 = vunpack.i.l.bf16 %v10766_v19 }
 0xdac   : > { %v4318_v60 = vpack.c.bf16 %v10768_v21, %v10767_v16 }
 0xdb1   : > { %v10741_v18 = vpop.permute.xlu0 %10740 }
 0xdb2   : > { %v10743_v1 = vunpack.i.h.bf16 %v10741_v18  ;;  %v10742_v11 = vunpack.i.l.bf16 %v10741_v18 }
 0xdb4   : > { %v4313_v34 = vpack.c.bf16 %v10743_v1, %v10742_v11 }
 0xdb6   : > { %8967 = vmatmul.msk.bf16.gmra.mxu0 %vm4319_vm1, %v4313_v34 }
 0xdbd   : > { %v4358_v31 = vpop.f32.mrf.mxu0 }
 0xdbe   : > { %v4398_v63 = vpack.c.bf16 %v4358_v31, %v4358_v31 }
 0xdc0   : > { %4406 = vrot.lane.b32.xlu2 %v4398_v63, %s13643_s22 }
 0xdc1   : > { %v10746_v55 = vpop.permute.xlu1 %10745 }
 0xdc2   : > { %v10748_v57 = vunpack.i.h.bf16 %v10746_v55  ;;  %v10747_v14 = vunpack.i.l.bf16 %v10746_v55  ;;  %v10756_v13 = vpop.permute.xlu0 %10755 }
 0xdc3   : > { %v10758_v32 = vunpack.i.h.bf16 %v10756_v13  ;;  %v10757_v51 = vunpack.i.l.bf16 %v10756_v13  ;;  %v4585_v13 = vld [vmem:[%s13451_s8 + $0x38] sm:$0xff] }
 0xdc4   : > { %v4314_v10 = vpack.c.bf16 %v10748_v57, %v10747_v14 }
 0xdc5   : > { %v4360_v28 = vpop.f32.mrf.mxu0  ;;  %v4316_v23 = vpack.c.bf16 %v10758_v32, %v10757_v51  ;;  %v4583_v32 = vld [vmem:[%s13451_s8 + $0x28] sm:$0xff]  ;;  %v4581_v51 = vld [vmem:[%s13451_s8 + $0x18] sm:$0xff] }
 0xdc6   : > { %v4399_v4 = vpack.c.bf16 %v4360_v28, %v4360_v28  ;;  %8968 = vmatmul.msk.bf16.gmra.mxu0 %vm4319_vm1, %v4314_v10 }
 0xdc8   : > { %4408 = vrot.lane.b32.xlu0 %v4399_v4, %s13643_s22 }
 0xdc9   : > { %v10761_v12 = vpop.permute.xlu1 %10760 }
 0xdca   : > { %v10763_v27 = vunpack.i.h.bf16 %v10761_v12  ;;  %v10762_v24 = vunpack.i.l.bf16 %v10761_v12 }
 0xdcc   : > { %v4317_v0 = vpack.c.bf16 %v10763_v27, %v10762_v24 }
 0xdcd   : > { %v4363_v25 = vpop.f32.mrf.mxu0 }
 0xdce   : > { %v4400_v38 = vpack.c.bf16 %v4363_v25, %v4363_v25 }
 0xdd0   : > { %4410 = vrot.lane.b32.xlu0 %v4400_v38, %s13643_s22 }
 0xdd5   : > { %v4365_v5 = vpop.f32.mrf.mxu0 }
 0xdd6   : > { %v4401_v52 = vpack.c.bf16 %v4365_v5, %v4365_v5  ;;  %8969 = vmatmul.msk.bf16.gmra.mxu0 %vm4319_vm1, %v4315_v59  ;;  %v4582_v59 = vld [vmem:[%s13451_s8 + $0x20] sm:$0xff]  ;;  %v4580_v5 = vld [vmem:[%s13451_s8 + $0x10] sm:$0xff] }
 0xdd8   : > { %4412 = vrot.lane.b32.xlu1 %v4401_v52, %s13643_s22  ;;  %v4578_v52 = vld [vmem:[%s13451_s8] sm:$0xff]  ;;  %s13710_s22 = sld [smem:[#allocation46_spill]] }
 0xde6   : > { %8970 = vmatmul.msk.bf16.gmra.mxu0 %vm4319_vm1, %v4316_v23  ;;  %v4584_v23 = vld [vmem:[%s13451_s8 + $0x30] sm:$0xff] }
 0xdf6   : > { %8971 = vmatmul.msk.bf16.gmra.mxu0 %vm4319_vm1, %v4317_v0 }
 0xe06   : > { %8972 = vmatmul.msk.bf16.gmra.mxu0 %vm4319_vm1, %v4318_v60  ;;  %vm5124_vm1 = vsmask.f32 256 }
 0xe1a   : > { %v4407_v41 = vpop.permute.xlu2 %4406 }
 0xe1b   : > { %4419 = vst.msk [vmem:[#allocation5] sm:$0xf] %vm4418_vm14, %v4407_v41 }
 0xe33   : > { %v4368_v61 = vpop.f32.mrf.mxu0 }
 0xe34   : > { %v4423_v35 = vpack.c.bf16 %v4368_v61, %v4368_v61 }
 0xe36   : > { %4431 = vrot.lane.b32.xlu1 %v4423_v35, %s11213_s17  ;;  %v8983_v35 = vld [vmem:[%s13450_s7] sm:$0xf] }
 0xe3a   : > { %v4409_v45 = vpop.permute.xlu0 %4408 }
 0xe3b   : > { %4420 = vst.msk [vmem:[#allocation5 + $0x4] sm:$0xf] %vm4418_vm14, %v4409_v45  ;;  %v4370_v30 = vpop.f32.mrf.mxu0  ;;  %v10117_v45 = vld [vmem:[%s13450_s7 + $0x8] sm:$0xf0] }
 0xe3c   : > { %v4424_v58 = vpack.c.bf16 %v4370_v30, %v4370_v30 }
 0xe3e   : > { %4433 = vrot.lane.b32.xlu2 %v4424_v58, %s11213_s17  ;;  %v8984_v58 = vor.u32 %v10117_v45, %v8983_v35 }
 0xe42   : > { %v4411_v37 = vpop.permute.xlu0 %4410 }
 0xe43   : > { %4421 = vst.msk [vmem:[#allocation5 + $0x8] sm:$0xf] %vm4418_vm14, %v4411_v37  ;;  %v4373_v26 = vpop.f32.mrf.mxu0 }
 0xe44   : > { %v4425_v29 = vpack.c.bf16 %v4373_v26, %v4373_v26 }
 0xe46   : > { %4435 = vrot.lane.b32.xlu2 %v4425_v29, %s11213_s17 }
 0xe4a   : > { %v4413_v15 = vpop.permute.xlu1 %4412 }
 0xe4b   : > { %4422 = vst.msk [vmem:[#allocation5 + $0xc] sm:$0xf] %vm4418_vm14, %v4413_v15  ;;  %v4375_v22 = vpop.f32.mrf.mxu0  ;;  %vm5126_vm14 = vmor %vm5124_vm1, %vm5125_vm13  ;;  %vm5133_vm13 = vsmask.f32 5396 }
 0xe4c   : > { %v4426_v6 = vpack.c.bf16 %v4375_v22, %v4375_v22  ;;  %v8995_v22 = vld [vmem:[%s13450_s7 + $0x18] sm:$0xf] }
 0xe4e   : > { %4437 = vrot.lane.b32.xlu0 %v4426_v6, %s11213_s17  ;;  %v10120_v6 = vld [vmem:[%s13450_s7 + $0x20] sm:$0xf0] }
 0xe53   : > { %v4378_v56 = vpop.f32.mrf.mxu0 }
 0xe54   : > { %v4448_v47 = vpack.c.bf16 %v4378_v56, %v4378_v56  ;;  %v10116_v56 = vld [vmem:[%s13450_s7 + $0x4] sm:$0xf] }
 0xe56   : > { %4456 = vrot.lane.b32.xlu0 %v4448_v47, %s13644_s2  ;;  %v8985_v47 = vld [vmem:[%s13450_s7 + $0xc] sm:$0xf0] }
 0xe5b   : > { %v4380_v46 = vpop.f32.mrf.mxu0 }
 0xe5c   : > { %v4449_v8 = vpack.c.bf16 %v4380_v46, %v4380_v46  ;;  %v8996_v46 = vor.u32 %v10120_v6, %v8995_v22 }
 0xe63   : > { %v4383_v44 = vpop.f32.mrf.mxu0 }
 0xe64   : > { %v4450_v43 = vpack.c.bf16 %v4383_v44, %v4383_v44 }
 0xe66   : > { %4460 = vrot.lane.b32.xlu1 %v4450_v43, %s13644_s2  ;;  %v8988_v43 = vor.u32 %v10116_v56, %v8985_v47 }
 0xe6b   : > { %v4385_v3 = vpop.f32.mrf.mxu0 }
 0xe6c   : > { %v4451_v48 = vpack.c.bf16 %v4385_v3, %v4385_v3  ;;  %v9007_v3 = vld [vmem:[%s13450_s7 + $0x30] sm:$0xf] }
 0xe6e   : > { %4462 = vrot.lane.b32.xlu2 %v4451_v48, %s13644_s2  ;;  %v10123_v48 = vld [vmem:[%s13450_s7 + $0x38] sm:$0xf0] }
 0xe73   : > { %v4388_v62 = vpop.f32.mrf.mxu0 }
 0xe74   : > { %v4473_v54 = vpack.c.bf16 %v4388_v62, %v4388_v62  ;;  %v10119_v62 = vld [vmem:[%s13450_s7 + $0x1c] sm:$0xf] }
 0xe76   : > { %4481 = vrot.lane.b32.xlu2 %v4473_v54, %s13645_s16  ;;  %v8997_v54 = vld [vmem:[%s13450_s7 + $0x24] sm:$0xf0] }
 0xe7b   : > { %v4390_v7 = vpop.f32.mrf.mxu0 }
 0xe7c   : > { %v4474_v40 = vpack.c.bf16 %v4390_v7, %v4390_v7  ;;  %v9008_v7 = vor.u32 %v10123_v48, %v9007_v3 }
 0xe83   : > { %v4393_v20 = vpop.f32.mrf.mxu0 }
 0xe84   : > { %v4475_v42 = vpack.c.bf16 %v4393_v20, %v4393_v20  ;;  %v9000_v20 = vor.u32 %v10119_v62, %v8997_v54 }
 0xe86   : > { %4485 = vrot.lane.b32.xlu0 %v4475_v42, %s13645_s16  ;;  %v9019_v42 = vld [vmem:[%s13450_s7 + $0x48] sm:$0xf] }
 0xe8b   : > { %v4395_v17 = vpop.f32.mrf.mxu0 }
 0xe8c   : > { %v4476_v49 = vpack.c.bf16 %v4395_v17, %v4395_v17  ;;  %v10126_v17 = vld [vmem:[%s13450_s7 + $0x50] sm:$0xf0] }
 0xe8e   : > { %4483 = vrot.lane.b32.xlu0 %v4474_v40, %s13645_s16  ;;  %4487 = vrot.lane.b32.xlu1 %v4476_v49, %s13645_s16  ;;  %v10122_v40 = vld [vmem:[%s13450_s7 + $0x34] sm:$0xf]  ;;  %v9009_v49 = vld [vmem:[%s13450_s7 + $0x3c] sm:$0xf0]  ;;  %s13730_s16 = sld [smem:[#allocation48_spill]] }
 0xe96   : > { %4458 = vrot.lane.b32.xlu1 %v4449_v8, %s13644_s2  ;;  %v9020_v8 = vor.u32 %v10126_v17, %v9019_v42 }
 0xe98   : > { %v4434_v53 = vpop.permute.xlu2 %4433 }
 0xe99   : > { %4445 = vst.msk [vmem:[#allocation5 + $0x4] sm:$0xf] %vm4443_vm7, %v4434_v53  ;;  %v9012_v53 = vor.u32 %v10122_v40, %v9009_v49 }
 0xea0   : > { %v4436_v33 = vpop.permute.xlu2 %4435 }
 0xea1   : > { %4446 = vst.msk [vmem:[#allocation5 + $0x8] sm:$0xf] %vm4443_vm7, %v4436_v33  ;;  %v8991_v33 = vld [vmem:[%s13450_s7 + $0x8] sm:$0xf] }
 0xea8   : > { %v4432_v18 = vpop.permute.xlu1 %4431 }
 0xea9   : > { %4444 = vst.msk [vmem:[#allocation5] sm:$0xf] %vm4443_vm7, %v4432_v18  ;;  %v10118_v18 = vld [vmem:[%s13450_s7 + $0x10] sm:$0xf0] }
 0xec0   : > { %v4438_v1 = vpop.permute.xlu0 %4437 }
 0xec1   : > { %4447 = vst.msk [vmem:[#allocation5 + $0xc] sm:$0xf] %vm4443_vm7, %v4438_v1  ;;  %v10125_v1 = vld [vmem:[%s13450_s7 + $0x4c] sm:$0xf]  ;;  %vm5127_vm7 = vsmask.f32 2312 }
 0xec8   : > { %v4457_v11 = vpop.permute.xlu0 %4456  ;;  %v4463_v34 = vpop.permute.xlu2 %4462 }
 0xec9   : > { %4469 = vst.msk [vmem:[#allocation5] sm:$0xf] %vm4468_vm8, %v4457_v11  ;;  %v9021_v11 = vld [vmem:[%s13450_s7 + $0x54] sm:$0xf0] }
 0xeca   : > { %4472 = vst.msk [vmem:[#allocation5 + $0xc] sm:$0xf] %vm4468_vm8, %v4463_v34  ;;  %v8992_v34 = vor.u32 %v10118_v18, %v8991_v33 }
 0xed0   : > { %v4482_v31 = vpop.permute.xlu2 %4481 }
 0xed1   : > { %4494 = vst.msk [vmem:[#allocation5] sm:$0xf] %vm4493_vm2, %v4482_v31  ;;  %v9024_v31 = vor.u32 %v10125_v1, %v9021_v11 }
 0xed8   : > { %v4461_v63 = vpop.permute.xlu1 %4460  ;;  %v8975_v25 = vld [vmem:[#allocation5] sm:$0xf] }
 0xed9   : > { %4471 = vst.msk [vmem:[#allocation5 + $0x8] sm:$0xf] %vm4468_vm8, %v4461_v63  ;;  %v9003_v63 = vld [vmem:[%s13450_s7 + $0x20] sm:$0xf] }
 0xef8   : > { %v4486_v55 = vpop.permute.xlu0 %4485 }
 0xef9   : > { %4496 = vst.msk [vmem:[#allocation5 + $0x8] sm:$0xf] %vm4493_vm2, %v4486_v55  ;;  %v10121_v55 = vld [vmem:[%s13450_s7 + $0x28] sm:$0xf0] }
 0xf00   : > { %v4488_v57 = vpop.permute.xlu1 %4487  ;;  %v8979_v14 = vld [vmem:[#allocation5 + $0x8] sm:$0xf]  ;;  %v4484_v4 = vpop.permute.xlu0 %4483 }
 0xf01   : > { %4497 = vst.msk [vmem:[#allocation5 + $0xc] sm:$0xf] %vm4493_vm2, %v4488_v57  ;;  %v9004_v57 = vor.u32 %v10121_v55, %v9003_v63 }
 0xf08   : > { %v10115_v10 = vld [vmem:[#allocation5 + $0x8] sm:$0xf0]  ;;  %v4459_v28 = vpop.permute.xlu1 %4458 }
 0xf09   : > { %v8980_v36 = vor.u32 %v10115_v10, %v8979_v14  ;;  %4470 = vst.msk [vmem:[#allocation5 + $0x4] sm:$0xf] %vm4468_vm8, %v4459_v28  ;;  %v9015_v14 = vld [vmem:[%s13450_s7 + $0x38] sm:$0xf]  ;;  %v10124_v10 = vld [vmem:[%s13450_s7 + $0x40] sm:$0xf0]  ;;  %vm5128_vm8 = vmor %vm5126_vm14, %vm5127_vm7 }
 0xf0a   : > { %4495 = vst.msk [vmem:[#allocation5 + $0x4] sm:$0xf] %vm4493_vm2, %v4484_v4  ;;  %v9016_v28 = vor.u32 %v10124_v10, %v9015_v14  ;;  %v9027_v4 = vld [vmem:[%s13450_s7 + $0x50] sm:$0xf]  ;;  %vm5129_vm2 = vsmask.f32 3340 }
 0xf0b   : > { %4522 = vrot.lane.b32.xlu0 %v8980_v36, %s11168_s26  ;;  %4528 = vrot.lane.b32.xlu1 %v8980_v36, %s11214_s18  ;;  %vm13654_vm14 = vcmask 1041408  }
 0xf11   : > { %v10114_v38 = vld [vmem:[#allocation5] sm:$0xf0] }
 0xf12   : > { %v8976_v50 = vor.u32 %v10114_v38, %v8975_v25 }
 0xf14   : > { %4514 = vrot.lane.b32.xlu0 %v8976_v50, %s11150_s13  ;;  %4520 = vrot.lane.b32.xlu1 %v8976_v50, %s11168_s26  ;;  %s720_s26 = scalar_lea.vmem [#allocation22], %s11448_s15 }
 0xf15   : > { %4526 = vrot.lane.b32.xlu2 %v8976_v50, %s11214_s18 }
 0xf1c   : > { %4546 = vrot.lane.b32.xlu0 %v8980_v36, %s11209_s25  ;;  %4552 = vrot.lane.b32.xlu1 %v8980_v36, %s11215_s14 }
 0xf1d   : > { %4516 = vrot.lane.b32.xlu2 %v8980_v36, %s11150_s13 }
 0xf24   : > { %4538 = vrot.lane.b32.xlu0 %v8976_v50, %s13646_s11  ;;  %4544 = vrot.lane.b32.xlu1 %v8976_v50, %s11209_s25 }
 0xf25   : > { %4550 = vrot.lane.b32.xlu2 %v8976_v50, %s11215_s14 }
 0xf2c   : > { %4556 = vrot.lane.b32.xlu0 %v8976_v50, %s11216_s10  ;;  %4558 = vrot.lane.b32.xlu1 %v8980_v36, %s11216_s10  ;;  %s13731_s10 = sld [smem:[#allocation51_spill]] }
 0xf2d   : > { %4540 = vrot.lane.b32.xlu2 %v8980_v36, %s13646_s11 }
 0xf32   : > { %s11066_s2 = scalar_lea.hbm %s13731_s10, 2 }
 0xf34   : > { %4593 = vperm.xlu0 %10648, %v4579_v2   ;;  %4532 = vrot.lane.b32.xlu1 %v8976_v50, %s11217_s29 }
 0xf35   : > { %4534 = vrot.lane.b32.xlu2 %v8980_v36, %s11217_s29  ;;  %s8767_s29 = sshll.u32 %s720_s26, 4  ;;  %s8768_s29 = int_to_ptr.vmem [resolvable:$true] %s8767_s29 }
 0xf3c   : > { %4608 = vperm.xlu0 %10648, %v4582_v59   ;;  %4598 = vperm.xlu1 %10606, %v4580_v5  }
 0xf3d   : > { %4588 = vperm.xlu2 %10647, %v4578_v52  }
 0xf44   : > { %4623 = vperm.xlu0 %10648, %v4585_v13   ;;  %4613 = vperm.xlu1 %10606, %v4583_v32  }
 0xf45   : > { %4603 = vperm.xlu2 %10647, %v4581_v51  }
 0xf4d   : > { %4618 = vperm.xlu2 %10647, %v4584_v23  }
 0xf6f   : > { %v4527_v24 = vpop.permute.xlu2 %4526 }
 0xf77   : > { %v4517_v21 = vpop.permute.xlu2 %4516 }
 0xf7d   : > { %v4523_v12 = vpop.permute.xlu0 %4522  ;;  %v4529_v27 = vpop.permute.xlu1 %4528 }
 0xf7e   : > { %4699 = vmatpush.bf16.msra.mxu3 %v4529_v27 }
 0xf7f   : > { %v4551_v41 = vpop.permute.xlu2 %4550 }
 0xf82   : > { %4700 = vmatpush.bf16.msra.mxu3 %v4527_v24 }
 0xf86   : > { %v4515_v0 = vpop.permute.xlu0 %4514  ;;  %4701 = vmatpush.bf16.msra.mxu3 %v4523_v12  ;;  %v4521_v19 = vpop.permute.xlu1 %4520 }
 0xf87   : > { %v4541_v37 = vpop.permute.xlu2 %4540 }
 0xf8a   : > { %4702 = vmatpush.bf16.msra.mxu3 %v4521_v19 }
 0xf8e   : > { %v4547_v16 = vpop.permute.xlu0 %4546  ;;  %4703 = vmatpush.bf16.msra.mxu3 %v4517_v21  ;;  %v4553_v60 = vpop.permute.xlu1 %4552 }
 0xf8f   : > { %4728 = vmatpush.bf16.msrb.mxu1 %v4553_v60  ;;  %v4535_v15 = vpop.permute.xlu2 %4534 }
 0xf92   : > { %4704 = vmatpush.bf16.msra.mxu3 %v4515_v0 }
 0xf93   : > { %4729 = vmatpush.bf16.msrb.mxu1 %v4551_v41 }
 0xf96   : > { %4705 = vmatpush.bf16.msra.mxu3 %v8980_v36  ;;  %v4545_v61 = vpop.permute.xlu1 %4544  ;;  %v4539_v30 = vpop.permute.xlu0 %4538  ;;  %v10127_v36 = vld [vmem:[%s13450_s7 + $0x58] sm:$0xf0] }
 0xf97   : > { %4730 = vmatpush.bf16.msrb.mxu1 %v4547_v16  ;;  %v9028_v25 = vor.u32 %v10127_v36, %v9027_v4  ;;  %v4589_v12 = vpop.permute.xlu2 %4588 }
 0xf9a   : > { %4706 = vmatpush.bf16.msra.mxu3 %v8976_v50 }
 0xf9b   : > { %4731 = vmatpush.bf16.msrb.mxu1 %v4545_v61 }
 0xf9d   : > { %4707 = vmatmul.bf16.vlgmr.msra.gmra.mxu3 %v8984_v58 }
 0xf9e   : > { %v4559_v26 = vpop.permute.xlu1 %4558  ;;  %v4557_v29 = vpop.permute.xlu0 %4556 }
 0xf9f   : > { %4732 = vmatpush.bf16.msrb.mxu1 %v4541_v37  ;;  %4763 = vmatpush.bf16.msrb.mxu3 %v4559_v26  ;;  %v4604_v47 = vpop.permute.xlu2 %4603 }
 0xfa3   : > { %4733 = vmatpush.bf16.msrb.mxu1 %v4539_v30  ;;  %4764 = vmatpush.bf16.msrb.mxu3 %v4557_v29 }
 0xfa6   : > { %v4533_v44 = vpop.permute.xlu1 %4532  ;;  %v4594_v21 = vpop.permute.xlu0 %4593 }
 0xfa7   : > { %4734 = vmatpush.bf16.msrb.mxu1 %v4535_v15  ;;  %v4619_v36 = vpop.permute.xlu2 %4618 }
 0xfab   : > { %4735 = vmatpush.bf16.msrb.mxu1 %v4533_v44 }
 0xfad   : > { %4712 = vmatmul.bf16.gmra.mxu3 %v8996_v46 }
 0xfae   : > { %4736 = vmatmul.bf16.vlgmr.msrb.gmra.mxu1 %v8988_v43  ;;  %v4599_v15 = vpop.permute.xlu1 %4598  ;;  %v4609_v17 = vpop.permute.xlu0 %4608 }
 0xfb6   : > { %v4614_v18 = vpop.permute.xlu1 %4613 }
 0xfbd   : > { %4717 = vmatmul.bf16.gmra.mxu3 %v9008_v7 }
 0xfbe   : > { %4741 = vmatmul.bf16.gmra.mxu1 %v9000_v20 }
 0xfcd   : > { %4722 = vmatmul.bf16.gmra.mxu3 %v9020_v8 }
 0xfce   : > { %4746 = vmatmul.bf16.gmra.mxu1 %v9012_v53 }
 0xfdd   : > { %9029 = vmatmul.msk.bf16.vlgmr.msrb.gmra.mxu3 %vm4686_vm12, %v8992_v34 }
 0xfde   : > { %4751 = vmatmul.bf16.gmra.mxu1 %v9024_v31 }
 0xfed   : > { %9030 = vmatmul.msk.bf16.gmra.mxu3 %vm4686_vm12, %v9004_v57 }
 0xffd   : > { %9031 = vmatmul.msk.bf16.gmra.mxu3 %vm4686_vm12, %v9016_v28 }
0x100d   : > { %9032 = vmatmul.msk.bf16.gmra.mxu3 %vm4686_vm12, %v9028_v25  ;;  %vm5106_vm12 = vcmask 1043459  }
0x1020   : > { %v4708_v38 = vpop.f32.mrf.mxu3 }
0x1021   : > { %v4709_v24 = vadd.f32 %v4708_v38, %v4589_v12 }
0x1028   : > { %v4710_v50 = vpop.f32.mrf.mxu3 }
0x1029   : > { %v4711_v16 = vadd.f32 %v4710_v50, %v4594_v21 }
0x102b   : > { %v4737_v13 = vpop.f32.mrf.mxu1 }
0x102c   : > { %v4738_v19 = vadd.f32 %v4737_v13, %v4709_v24 }
0x1030   : > { %v4713_v2 = vpop.f32.mrf.mxu3 }
0x1031   : > { %v4714_v6 = vadd.f32 %v4713_v2, %v4599_v15  ;;  %v4624_v2 = vpop.permute.xlu0 %4623 }
0x1033   : > { %v4739_v51 = vpop.f32.mrf.mxu1 }
0x1034   : > { %v4740_v41 = vadd.f32 %v4739_v51, %v4711_v16 }
0x1038   : > { %v4715_v59 = vpop.f32.mrf.mxu3 }
0x1039   : > { %v4716_v46 = vadd.f32 %v4715_v59, %v4604_v47 }
0x103b   : > { %v4742_v0 = vpop.f32.mrf.mxu1 }
0x103c   : > { %v4743_v56 = vadd.f32 %v4742_v0, %v4714_v6 }
0x1040   : > { %v4718_v5 = vpop.f32.mrf.mxu3 }
0x1041   : > { %v4719_v53 = vadd.f32 %v4718_v5, %v4609_v17 }
0x1043   : > { %v4744_v58 = vpop.f32.mrf.mxu1 }
0x1044   : > { %v4745_v3 = vadd.f32 %v4744_v58, %v4716_v46 }
0x1048   : > { %v4720_v52 = vpop.f32.mrf.mxu3 }
0x1049   : > { %v4721_v1 = vadd.f32 %v4720_v52, %v4614_v18 }
0x104b   : > { %v4747_v43 = vpop.f32.mrf.mxu1 }
0x104c   : > { %v4748_v33 = vadd.f32 %v4747_v43, %v4719_v53 }
0x1050   : > { %v4723_v32 = vpop.f32.mrf.mxu3 }
0x1051   : > { %v4724_v38 = vadd.f32 %v4723_v32, %v4619_v36 }
0x1053   : > { %v4749_v49 = vpop.f32.mrf.mxu1 }
0x1054   : > { %v4750_v34 = vadd.f32 %v4749_v49, %v4721_v1 }
0x1058   : > { %v4725_v23 = vpop.f32.mrf.mxu3 }
0x1059   : > { %v4726_v5 = vadd.f32 %v4725_v23, %v4624_v2 }
0x105b   : > { %v4752_v57 = vpop.f32.mrf.mxu1 }
0x105c   : > { %v4753_v50 = vadd.f32 %v4752_v57, %v4724_v38 }
0x1060   : > { %v4766_v27 = vpop.f32.mrf.mxu3 }
0x1061   : > { %v4767_v60 = vadd.f32 %v4766_v27, %v4738_v19 }
0x1063   : > { %v4786_v35 = vmax.f32 %v4767_v60, 0.0  ;;  %v4754_v59 = vpop.f32.mrf.mxu1 }
0x1064   : > { %v4755_v13 = vadd.f32 %v4754_v59, %v4726_v5 }
0x1065   : > { %v13023_v37 = vmin.f32 %v4786_v35, 6.0 }
0x1068   : > { %v4768_v61 = vpop.f32.mrf.mxu3 }
0x1069   : > { %v4769_v45 = vadd.f32 %v4768_v61, %v4740_v41 }
0x106b   : > { %v4787_v30 = vmax.f32 %v4769_v45, 0.0 }
0x106d   : > { %v13025_v26 = vmin.f32 %v4787_v30, 6.0 }
0x106f   : > { %v10769_v29 = vpack.i.bf16 %v13025_v26, %v13023_v37 }
0x1070   : > { %v4771_v22 = vpop.f32.mrf.mxu3 }
0x1071   : > { %10770 = vrot.lane.b32.xlu1 %v10769_v29, %s11214_s18  ;;  %v4772_v44 = vadd.f32 %v4771_v22, %v4743_v56 }
0x1073   : > { %v4788_v62 = vmax.f32 %v4772_v44, 0.0 }
0x1075   : > { %v4796_v20 = vmin.f32 %v4788_v62, 6.0 }
0x1078   : > { %v4773_v48 = vpop.f32.mrf.mxu3 }
0x1079   : > { %v4774_v54 = vadd.f32 %v4773_v48, %v4745_v3 }
0x107b   : > { %v4789_v7 = vmax.f32 %v4774_v54, 0.0 }
0x107d   : > { %v4797_v42 = vmin.f32 %v4789_v7, 6.0 }
0x107f   : > { %v10774_v40 = vpack.i.bf16 %v4797_v42, %v4796_v20 }
0x1080   : > { %v4776_v8 = vpop.f32.mrf.mxu3 }
0x1081   : > { %10775 = vrot.lane.b32.xlu2 %v10774_v40, %s11214_s18  ;;  %v4777_v11 = vadd.f32 %v4776_v8, %v4748_v33 }
0x1083   : > { %v4790_v63 = vmax.f32 %v4777_v11, 0.0 }
0x1085   : > { %v4798_v10 = vmin.f32 %v4790_v63, 6.0 }
0x1088   : > { %v4778_v31 = vpop.f32.mrf.mxu3 }
0x1089   : > { %v4779_v55 = vadd.f32 %v4778_v31, %v4750_v34 }
0x108b   : > { %v4791_v14 = vmax.f32 %v4779_v55, 0.0 }
0x108d   : > { %v4799_v28 = vmin.f32 %v4791_v14, 6.0 }
0x108f   : > { %v10779_v4 = vpack.i.bf16 %v4799_v28, %v4798_v10 }
0x1090   : > { %v4781_v25 = vpop.f32.mrf.mxu3 }
0x1091   : > { %10780 = vrot.lane.b32.xlu0 %v10779_v4, %s11214_s18  ;;  %v4782_v52 = vadd.f32 %v4781_v25, %v4753_v50 }
0x1093   : > { %v4792_v12 = vmax.f32 %v4782_v52, 0.0 }
0x1095   : > { %v4800_v0 = vmin.f32 %v4792_v12, 6.0 }
0x1098   : > { %v4783_v51 = vpop.f32.mrf.mxu3 }
0x1099   : > { %v4784_v27 = vadd.f32 %v4783_v51, %v4755_v13 }
0x109b   : > { %v4793_v24 = vmax.f32 %v4784_v27, 0.0 }
0x109d   : > { %v4801_v19 = vmin.f32 %v4793_v24, 6.0 }
0x109f   : > { %v10789_v21 = vpack.i.bf16 %v4801_v19, %v4800_v0 }
0x10a1   : > { %10790 = vrot.lane.b32.xlu2 %v10789_v21, %s11214_s18 }
0x10db   : > { %v10776_v16 = vpop.permute.xlu2 %10775 }
0x10dc   : > { %v10778_v60 = vunpack.i.h.bf16 %v10776_v16  ;;  %v10777_v32 = vunpack.i.l.bf16 %v10776_v16 }
0x10de   : > { %v4837_v41 = vmax.f32 %v4797_v42, %v10778_v60  ;;  %v4836_v61 = vmax.f32 %v4796_v20, %v10777_v32 }
0x10e0   : > { %v10794_v35 = vpack.i.bf16 %v4837_v41, %v4836_v61 }
0x10e2   : > { %10795 = vrot.lane.b32.xlu0 %v10794_v35, %s11150_s13 }
0x10e3   : > { %v10771_v23 = vpop.permute.xlu1 %10770 }
0x10e4   : > { %v10773_v45 = vunpack.i.h.bf16 %v10771_v23  ;;  %v10772_v30 = vunpack.i.l.bf16 %v10771_v23 }
0x10e6   : > { %v4835_v58 = vmax.f32 %v13025_v26, %v10773_v45  ;;  %v4834_v29 = vmax.f32 %v13023_v37, %v10772_v30  ;;  %v4899_v37 = vsel %vm2926_vm15, 4294967295, %v13617_v9 }
0x10e7   : > { %v4900_v26 = vsel %vm13647_vm10, %v4899_v37, 0  ;;  %vm13651_vm10 = vcmask 1041409  }
0x10e8   : > { %v10784_v15 = vpack.i.bf16 %v4835_v58, %v4834_v29  ;;  %v4901_v20 = vand.u32 %v4900_v26, %v12875_v39  ;;  %vm13652_vm6 = vmmov %vm13651_vm10 }
0x10ea   : > { %10785 = vrot.lane.b32.xlu1 %v10784_v15, %s11150_s13  ;;  %4910 = vmatpush.bf16.msra.mxu2 %v4901_v20 }
0x10eb   : > { %5015 = vmatpush.bf16.msra.mxu1 %v4901_v20 }
0x10fb   : > { %v10791_v22 = vpop.permute.xlu2 %10790 }
0x10fc   : > { %v10793_v6 = vunpack.i.h.bf16 %v10791_v22  ;;  %v10792_v56 = vunpack.i.l.bf16 %v10791_v22 }
0x10fe   : > { %v4841_v47 = vmax.f32 %v4801_v19, %v10793_v6  ;;  %v4840_v46 = vmax.f32 %v4800_v0, %v10792_v56 }
0x1100   : > { %v10804_v44 = vpack.i.bf16 %v4841_v47, %v4840_v46 }
0x1102   : > { %10805 = vrot.lane.b32.xlu0 %v10804_v44, %s11150_s13 }
0x1103   : > { %v10781_v43 = vpop.permute.xlu0 %10780 }
0x1104   : > { %v10783_v3 = vunpack.i.h.bf16 %v10781_v43  ;;  %v10782_v48 = vunpack.i.l.bf16 %v10781_v43 }
0x1106   : > { %v4839_v62 = vmax.f32 %v4799_v28, %v10783_v3  ;;  %v4838_v54 = vmax.f32 %v4798_v10, %v10782_v48 }
0x1108   : > { %v10799_v7 = vpack.i.bf16 %v4839_v62, %v4838_v54 }
0x110a   : > { %10800 = vrot.lane.b32.xlu1 %v10799_v7, %s11150_s13  ;;  %s11218_s13 = smov 64  }
0x1154   : > { %v10796_v42 = vpop.permute.xlu0 %10795 }
0x1155   : > { %v10798_v17 = vunpack.i.h.bf16 %v10796_v42  ;;  %v10797_v40 = vunpack.i.l.bf16 %v10796_v42 }
0x1157   : > { %v4877_v49 = vmax.f32 %v4837_v41, %v10798_v17  ;;  %v4876_v8 = vmax.f32 %v4836_v61, %v10797_v40 }
0x1159   : > { %v4883_v53 = vpack.c.bf16 %v4877_v49, %v4876_v8  ;;  %v4981_v49 = vld [vmem:[#allocation6 + $0x2] sm:$0x3]  ;;  %v5083_v8 = vld [vmem:[#allocation6 + $0x4] sm:$0x3] }
0x115b   : > { %4990 = vrot.lane.b32.xlu1 %v4883_v53, %s11209_s25 }
0x115c   : > { %v10786_v33 = vpop.permute.xlu1 %10785 }
0x115d   : > { %v10788_v18 = vunpack.i.h.bf16 %v10786_v33  ;;  %v10787_v1 = vunpack.i.l.bf16 %v10786_v33 }
0x115f   : > { %v4875_v11 = vmax.f32 %v4835_v58, %v10788_v18  ;;  %v4874_v34 = vmax.f32 %v4834_v29, %v10787_v1 }
0x1161   : > { %v4882_v9 = vpack.c.bf16 %v4875_v11, %v4874_v34  ;;  %v13059_v34 = vld [vmem:[#allocation1 + $0x1] ss:$2 sm:$0xff] }
0x1163   : > { %4988 = vrot.lane.b32.xlu2 %v4882_v9, %s11209_s25  ;;  %9033 = vmatmul.msk.bf16.vlgmr.msra.gmra.mxu2 %vm4886_vm0, %v4882_v9 }
0x1173   : > { %9034 = vmatmul.msk.bf16.gmra.mxu2 %vm4886_vm0, %v4883_v53 }
0x1174   : > { %v10806_v39 = vpop.permute.xlu0 %10805 }
0x1175   : > { %v10808_v31 = vunpack.i.h.bf16 %v10806_v39  ;;  %v10807_v63 = vunpack.i.l.bf16 %v10806_v39 }
0x1177   : > { %v4881_v55 = vmax.f32 %v4841_v47, %v10808_v31  ;;  %v4880_v57 = vmax.f32 %v4840_v46, %v10807_v63  ;;  %v5088_v63 = vld [vmem:[#allocation6] sm:$0x3] }
0x1179   : > { %v4885_v14 = vpack.c.bf16 %v4881_v55, %v4880_v57 }
0x117b   : > { %4994 = vrot.lane.b32.xlu0 %v4885_v14, %s11209_s25 }
0x117c   : > { %v10801_v10 = vpop.permute.xlu1 %10800 }
0x117d   : > { %v10803_v28 = vunpack.i.h.bf16 %v10801_v10  ;;  %v10802_v4 = vunpack.i.l.bf16 %v10801_v10  ;;  %v5093_v10 = vrot.slane %v5088_v63, 2 }
0x117f   : > { %v4879_v36 = vmax.f32 %v4839_v62, %v10803_v28  ;;  %v4878_v25 = vmax.f32 %v4838_v54, %v10802_v4  ;;  %v5094_v28 = vrot.slane %v5088_v63, 3 }
0x1181   : > { %v4884_v38 = vpack.c.bf16 %v4879_v36, %v4878_v25  ;;  %v5280_v36 = vld [vmem:[#allocation6 + $0x6] sm:$0x2] }
0x1183   : > { %4992 = vrot.lane.b32.xlu2 %v4884_v38, %s11209_s25  ;;  %9035 = vmatmul.msk.bf16.gmra.mxu2 %vm4886_vm0, %v4884_v38 }
0x1193   : > { %9036 = vmatmul.msk.bf16.gmra.mxu2 %vm4886_vm0, %v4885_v14  ;;  %v5092_v14 = vrot.slane %v5088_v63, 1 }
0x11bd   : > { %v4989_v50 = vpop.permute.xlu2 %4988 }
0x11be   : > { %9037 = vmatmul.msk.bf16.vlgmr.msra.gmra.mxu1 %vm4886_vm0, %v4989_v50 }
0x11cd   : > { %v4991_v2 = vpop.permute.xlu1 %4990 }
0x11ce   : > { %9038 = vmatmul.msk.bf16.gmra.mxu1 %vm4886_vm0, %v4991_v2 }
0x11dd   : > { %v4993_v59 = vpop.permute.xlu2 %4992 }
0x11de   : > { %9039 = vmatmul.msk.bf16.gmra.mxu1 %vm4886_vm0, %v4993_v59  ;;  %v5105_v59 = vsel %vm13651_vm10, %v5088_v63, %v5092_v14 }
0x11e6   : > { %v4912_v52 = vpop.f32.mrf.mxu2 }
0x11ed   : > { %v4995_v5 = vpop.permute.xlu0 %4994 }
0x11ee   : > { %9040 = vmatmul.msk.bf16.gmra.mxu1 %vm4886_vm0, %v4995_v5  ;;  %v4914_v13 = vpop.f32.mrf.mxu2  ;;  %v5107_v5 = vsel %vm5106_vm12, %v5093_v10, %v5094_v28  ;;  %vm5130_vm0 = vmor %vm5128_vm8, %vm5129_vm2  ;;  %vm5135_vm8 = vsmask.f32 6424 }
0x11f6   : > { %v4917_v27 = vpop.f32.mrf.mxu2 }
0x11fe   : > { %v4919_v19 = vpop.f32.mrf.mxu2 }
0x1206   : > { %v4922_v41 = vpop.f32.mrf.mxu2 }
0x120e   : > { %v4924_v23 = vpop.f32.mrf.mxu2 }
0x1216   : > { %v4927_v58 = vpop.f32.mrf.mxu2 }
0x121e   : > { %v4929_v22 = vpop.f32.mrf.mxu2 }
0x123b   : > { %v5017_v51 = vpop.f32.mrf.mxu1 }
0x123c   : > { %v10809_v12 = vpack.i.bf16 %v5017_v51, %v4912_v52 }
0x123e   : > { %10810 = vxpose.xlu1.b32.start [1/8] (short) (narrow) %v10809_v12, 8  ;;  %v5100_v12 = vsel %vm2926_vm15, %v5088_v63, %v5092_v14 }
0x1243   : > { %v5019_v24 = vpop.f32.mrf.mxu1 }
0x1244   : > { %v10811_v0 = vpack.i.bf16 %v5019_v24, %v4914_v13  ;;  %v5086_v24 = vld [vmem:[#allocation6] sm:$0x1] }
0x1246   : > { %10812 = vxpose.xlu1.b32.cont [2/8] (short) (narrow) %v10811_v0, 8 }
0x124b   : > { %v5022_v21 = vpop.f32.mrf.mxu1 }
0x124c   : > { %v10813_v16 = vpack.i.bf16 %v5022_v21, %v4917_v27 }
0x124e   : > { %10814 = vxpose.xlu1.b32.cont [3/8] (short) (narrow) %v10813_v16, 8 }
0x1253   : > { %v5024_v60 = vpop.f32.mrf.mxu1 }
0x1254   : > { %v10815_v32 = vpack.i.bf16 %v5024_v60, %v4919_v19 }
0x1256   : > { %10816 = vxpose.xlu1.b32.cont [4/8] (short) (narrow) %v10815_v32, 8 }
0x125b   : > { %v5027_v61 = vpop.f32.mrf.mxu1 }
0x125c   : > { %v10817_v35 = vpack.i.bf16 %v5027_v61, %v4922_v41 }
0x125e   : > { %10818 = vxpose.xlu1.b32.cont [5/8] (short) (narrow) %v10817_v35, 8 }
0x1263   : > { %v5029_v45 = vpop.f32.mrf.mxu1 }
0x1264   : > { %v10819_v30 = vpack.i.bf16 %v5029_v45, %v4924_v23 }
0x1266   : > { %10820 = vxpose.xlu1.b32.cont [6/8] (short) (narrow) %v10819_v30, 8 }
0x126b   : > { %v5032_v29 = vpop.f32.mrf.mxu1 }
0x126c   : > { %v10821_v15 = vpack.i.bf16 %v5032_v29, %v4927_v58  ;;  %v10386_v58 = vld [vmem:[#allocation21 + $0x30] sm:$0xff] }
0x126e   : > { %10822 = vxpose.xlu1.b32.cont [7/8] (short) (narrow) %v10821_v15, 8 }
0x1273   : > { %v5034_v6 = vpop.f32.mrf.mxu1 }
0x1274   : > { %v10823_v56 = vpack.i.bf16 %v5034_v6, %v4929_v22 }
0x1276   : > { %10824 = vxpose.xlu1.b32.end [8/8] (short) (narrow) %v10823_v56, 8 }
0x12e2   : > { %v10825_v47 = vpop.trf.xlu1 }
0x12e3   : > { %v10829_v46 = vunpack.i.h.bf16 %v10825_v47  ;;  %v10826_v44 = vunpack.i.l.bf16 %v10825_v47 }
0x12e5   : > { %v5069_v43 = vpack.c.bf16 %v10829_v46, %v10829_v46  ;;  %v4964_v3 = vpack.c.bf16 %v10826_v44, %v10826_v44 }
0x12e7   : > { %v5071_v48 = vrot.slane %v5069_v43, 2  ;;  %v4966_v62 = vrot.slane %v4964_v3, 2 }
0x12e9   : > { %v5074_v54 = vsel %vm13648_vm5, %v5069_v43, %v5071_v48  ;;  %v4969_v7 = vsel %vm13649_vm9, %v4964_v3, %v4966_v62  ;;  %vm5131_vm5 = vsmask.f32 4368  ;;  %vm5108_vm9 = vcmask 1042433  }
0x12ea   : > { %v5075_v37 = vshrl.u32 %v5074_v54, 16  ;;  %v4970_v26 = vshrl.u32 %v4969_v7, 16  ;;  %v5078_v42 = vshll.u32 %v5074_v54, 16  ;;  %v4973_v40 = vshll.u32 %v4969_v7, 16  ;;  %vm5132_vm1 = vmor %vm5130_vm0, %vm5131_vm5 }
0x12eb   : > { %v5109_v52 = vsel %vm5108_vm9, %v5105_v59, %v5107_v5  ;;  %vm5134_vm7 = vmor %vm5132_vm1, %vm5133_vm13  ;;  %vm5137_vm0 = vsmask.f32 7452  ;;  %v10143_v59 = vld [vmem:[#allocation15 + $0x78] sm:$0xff] }
0x12ec   : > { %v5077_v20 = vrot.slane %v5075_v37, 7  ;;  %v4972_v17 = vrot.slane %v4970_v26, 7  ;;  %v5111_v0 = vrot.slane %v5109_v52, 1  ;;  %vm5136_vm10 = vmor %vm5134_vm7, %vm5135_vm8  ;;  %5669 = vmatpush.bf16.msra.mxu3 %v10143_v59  ;;  %v10157_v59 = vld [vmem:[#allocation15 + $0xe8] sm:$0xff] }
0x12ed   : > { %vm13656_vm5 = vmmov %vm13654_vm14 }
0x12ee   : > { %v5080_v53 = vor.u32 %v5078_v42, %v5077_v20  ;;  %v4975_v33 = vor.u32 %v4973_v40, %v4972_v17  ;;  %v5144_v45 = vshll.u32 %v5111_v0, 16  ;;  %vm13663_vm7 = vmmov %vm13656_vm5 }
0x12ef   : > { %vm13664_vm8 = vmmov %vm13656_vm5 }
0x12f0   : > { %v5084_v18 = vsel %vm4980_vm3, %v5080_v53, %v5083_v8  ;;  %v4982_v1 = vsel %vm4980_vm3, %v4975_v33, %v4981_v49  ;;  %vm13653_vm3 = vcmask 1042434  }
0x12f1   : > { %5085 = vst [vmem:[#allocation6 + $0x4] sm:$0x3] %v5084_v18  ;;  %v5103_v27 = vsel %vm13653_vm3, %v5093_v10, %v5094_v28  ;;  %vm13655_vm2 = vmmov %vm13653_vm3  ;;  %vm13659_vm3 = vcmask 1041409  }
0x12f2   : > { %4983 = vst [vmem:[#allocation6 + $0x2] sm:$0x3] %v4982_v1  ;;  %v5104_v21 = vsel %vm13654_vm14, %v5100_v12, %v5103_v27  ;;  %vm13660_vm1 = vmmov %vm13659_vm3  ;;  %v10134_v12 = vld [vmem:[#allocation15 + $0x30] sm:$0xff]  ;;  %v10151_v27 = vld [vmem:[#allocation15 + $0xb8] sm:$0xff] }
0x12f3   : > { %v5139_v23 = vshrl.u32 %v5104_v21, 16  ;;  %vm13661_vm13 = vmmov %vm13655_vm2  ;;  %5682 = vmatpush.bf16.msrb.mxu2 %v10151_v27  ;;  %v10154_v27 = vld [vmem:[#allocation15 + $0xd0] sm:$0xff] }
0x12f4   : > { %vm13662_vm14 = vmmov %vm13655_vm2 }
0x12f8   : > { %v5218_v39 = vld [vmem:[#allocation6 + $0x4] sm:$0x2]  ;;  %v5166_v53 = vld [vmem:[#allocation6 + $0x4] sm:$0x1] }
0x12f9   : > { %v5156_v11 = vld [vmem:[#allocation6 + $0x2] sm:$0x2]  ;;  %v5279_v55 = vld [vmem:[#allocation6 + $0x4] sm:$0x2]  ;;  %v5087_v32 = vld [vmem:[#allocation6 + $0x2] sm:$0x1] }
0x12fa   : > { %5162 = vst [vmem:[#allocation1 + $0x10] sm:$0xff] %v5156_v11  ;;  %v5217_v9 = vld [vmem:[#allocation6 + $0x2] sm:$0x2]  ;;  %v5168_v47 = vld [vmem:[#allocation6 + $0x4] sm:$0x3] }
0x12fb   : > { %5220 = vst [vmem:[#allocation1] sm:$0xff] %v5217_v9  ;;  %v5089_v4 = vld [vmem:[#allocation6 + $0x2] sm:$0x3]  ;;  %v5174_v44 = vrot.slane %v5168_v47, 1  ;;  %v5175_v43 = vrot.slane %v5168_v47, 2  ;;  %v5176_v3 = vrot.slane %v5168_v47, 3 }
0x12fc   : > { %v5095_v25 = vrot.slane %v5089_v4, 1  ;;  %v5096_v38 = vrot.slane %v5089_v4, 2  ;;  %v5097_v50 = vrot.slane %v5089_v4, 3  ;;  %v5167_v46 = vld [vmem:[#allocation6 + $0x2] sm:$0x3] }
0x12fd   : > { %v5171_v62 = vrot.slane %v5167_v46, 1  ;;  %v5172_v54 = vrot.slane %v5167_v46, 2  ;;  %v5173_v7 = vrot.slane %v5167_v46, 3  ;;  %v5196_v37 = vsel %vm13659_vm3, %v5168_v47, %v5174_v44  ;;  %v5165_v49 = vld [vmem:[#allocation6 + $0x2] sm:$0x1] }
0x12fe   : > { %v5119_v13 = vsel %vm13652_vm6, %v5089_v4, %v5095_v25  ;;  %v5120_v51 = vsel %vm5106_vm12, %v5096_v38, %v5097_v50  ;;  %v5114_v41 = vsel %vm2926_vm15, %v5089_v4, %v5095_v25  ;;  %v5117_v61 = vsel %vm13655_vm2, %v5096_v38, %v5097_v50  ;;  %vm13083_vm6 = vmor %vm5136_vm10, %vm5137_vm0  ;;  %v5230_v25 = vld [vmem:[#allocation6 + $0x6] sm:$0x3]  ;;  %v5229_v38 = vld [vmem:[#allocation6 + $0x4] sm:$0x3] }
0x12ff   : > { %v5121_v19 = vsel %vm5108_vm9, %v5119_v13, %v5120_v51  ;;  %v5118_v30 = vsel %vm13656_vm5, %v5114_v41, %v5117_v61  ;;  %v5146_v15 = vsel %vm13083_vm6, %v5139_v23, %v5144_v45  ;;  %v5197_v26 = vsel %vm5106_vm12, %v5175_v43, %v5176_v3  ;;  %v10135_v50 = vld [vmem:[#allocation15 + $0x38] sm:$0xff]  ;;  %v10142_v51 = vld [vmem:[#allocation15 + $0x70] sm:$0xff]  ;;  %vm13665_vm2 = vmmov %vm13660_vm1 }
0x1300   : > { %v5123_v35 = vrot.slane %v5121_v19, 1  ;;  %v5147_v22 = vshrl.u32 %v5118_v30, 16  ;;  %v5184_v20 = vsel %vm13660_vm1, %v5167_v46, %v5171_v62  ;;  %v5185_v42 = vsel %vm5106_vm12, %v5172_v54, %v5173_v7  ;;  %5656 = vmatpush.bf16.msra.mxu0 %v10135_v50  ;;  %5670 = vmatpush.bf16.msra.mxu3 %v10142_v51  ;;  %v10133_v23 = vld [vmem:[#allocation15 + $0x28] sm:$0xff]  ;;  %vm13666_vm10 = vmmov %vm13660_vm1  ;;  %v10158_v50 = vld [vmem:[#allocation15 + $0xf0] sm:$0xff] }
0x1301   : > { %v13061_v31 = vld [vmem:[#allocation1 + $0x11] ss:$2 sm:$0xff]  ;;  %v5198_v17 = vsel %vm5108_vm9, %v5196_v37, %v5197_v26  ;;  %v5186_v40 = vsel %vm5108_vm9, %v5184_v20, %v5185_v42  ;;  %v5191_v33 = vsel %vm2926_vm15, %v5168_v47, %v5174_v44  ;;  %v5194_v18 = vsel %vm13661_vm13, %v5175_v43, %v5176_v3  ;;  %vm13667_vm0 = vmmov %vm13661_vm13  ;;  %v10132_v47 = vld [vmem:[#allocation15 + $0x20] sm:$0xff] }
0x1302   : > { %5224 = vst [vmem:[#allocation1 + $0x10] sm:$0xff] %v5218_v39  ;;  %v13063_v57 = vld [vmem:[#allocation1 + $0x1] ss:$2 sm:$0xff]  ;;  %v5152_v29 = vshll.u32 %v5123_v35, 16  ;;  %v5200_v1 = vrot.slane %v5198_v17, 1  ;;  %v5179_v11 = vsel %vm2926_vm15, %v5167_v46, %v5171_v62  ;;  %v5188_v9 = vrot.slane %v5186_v40, 1  ;;  %vm13668_vm3 = vmmov %vm13667_vm0 }
0x1303   : > { %5282 = vst [vmem:[#allocation1] sm:$0xff] %v5279_v55  ;;  %v5195_v39 = vsel %vm13663_vm7, %v5191_v33, %v5194_v18  ;;  %v5236_v5 = vrot.slane %v5230_v25, 1  ;;  %v5237_v52 = vrot.slane %v5230_v25, 2  ;;  %v5238_v13 = vrot.slane %v5230_v25, 3  ;;  %v10141_v35 = vld [vmem:[#allocation15 + $0x68] sm:$0xff]  ;;  %v10139_v26 = vld [vmem:[#allocation15 + $0x58] sm:$0xff]  ;;  %vm13669_vm1 = vmmov %vm13656_vm5 }
0x1304   : > { %v5154_v56 = vsel %vm13083_vm6, %v5147_v22, %v5152_v29  ;;  %v5206_v55 = vshll.u32 %v5188_v9, 16  ;;  %v5209_v14 = vshrl.u32 %v5195_v39, 16  ;;  %v5234_v0 = vrot.slane %v5229_v38, 2  ;;  %5657 = vmatpush.bf16.msra.mxu0 %v10134_v12  ;;  %v10149_v29 = vld [vmem:[#allocation15 + $0xa8] sm:$0xff]  ;;  %5671 = vmatpush.bf16.msra.mxu3 %v10141_v35  ;;  %v5228_v46 = vld [vmem:[#allocation6 + $0x6] sm:$0x1]  ;;  %vm13672_vm7 = vmmov %vm13669_vm1 }
0x1305   : > { %v5235_v19 = vrot.slane %v5229_v38, 3  ;;  %v5258_v41 = vsel %vm13665_vm2, %v5230_v25, %v5236_v5  ;;  %v5259_v61 = vsel %vm5106_vm12, %v5237_v52, %v5238_v13  ;;  %v5227_v43 = vld [vmem:[#allocation6 + $0x4] sm:$0x1]  ;;  %v10131_v20 = vld [vmem:[#allocation15 + $0x18] sm:$0xff]  ;;  %v10130_v33 = vld [vmem:[#allocation15 + $0x10] sm:$0xff]  ;;  %vm5349_vm13 = vcmask 523264  }
0x1306   : > { %v10137_v9 = vld [vmem:[#allocation15 + $0x48] sm:$0xff]  ;;  %v10136_v39 = vld [vmem:[#allocation15 + $0x40] sm:$0xff]  ;;  %v10155_v51 = vld [vmem:[#allocation15 + $0xd8] sm:$0xff] }
0x1307   : > { %v5247_v30 = vsel %vm5106_vm12, %v5234_v0, %v5235_v19 }
0x1308   : > { %5658 = vmatpush.bf16.msra.mxu0 %v10133_v23 }
0x1309   : > { %v13065_v2 = vld [vmem:[#allocation1 + $0x11] ss:$2 sm:$0xff] }
0x130a   : > { %5286 = vst [vmem:[#allocation1 + $0x10] sm:$0xff] %v5280_v36  ;;  %v13078_v60 = vld [vmem:[#allocation1 + $0x1] ss:$2 sm:$0xff] }
0x130c   : > { %5659 = vmatpush.bf16.msra.mxu0 %v10132_v47 }
0x1310   : > { %5660 = vmatpush.bf16.msra.mxu0 %v10131_v20 }
0x1311   : > { %v13076_v16 = vld [vmem:[#allocation1 + $0x11] ss:$2 sm:$0xff] }
0x1312   : > { %5290 = vst [vmem:[#allocation1] ss:$9 sm:$0xff] %v5086_v24  ;;  %v5233_v24 = vrot.slane %v5229_v38, 1 }
0x1313   : > { %5293 = vst [vmem:[#allocation1 + $0x1] ss:$9 sm:$0xff] %v5087_v32  ;;  %v10150_v32 = vld [vmem:[#allocation15 + $0xb0] sm:$0xff] }
0x1314   : > { %v5246_v45 = vsel %vm13666_vm10, %v5229_v38, %v5233_v24  ;;  %5683 = vmatpush.bf16.msrb.mxu2 %v10150_v32  ;;  %5661 = vmatpush.bf16.msra.mxu0 %v10130_v33  ;;  %v10179_v33 = vld [vmem:[#allocation16 + $0x78] sm:$0xff]  ;;  %vm13676_vm10 = vmmov %vm13667_vm0 }
0x1315   : > { %v5248_v22 = vsel %vm5108_vm9, %v5246_v45, %v5247_v30 }
0x1316   : > { %v5250_v37 = vrot.slane %v5248_v22, 1  ;;  %v10830_v22 = vld [vmem:[%s13670_s9] ss:$0 sm:$0xff]  ;;  %s13732_s9 = sld [smem:[#allocation50_spill]] }
0x1318   : > { %5684 = vmatpush.bf16.msrb.mxu2 %v10149_v29 }
0x131a   : > { %v13089_v6 = vld [vmem:[#allocation1] sm:$0xff] }
0x131b   : > { %5296 = vst [vmem:[#allocation1] ss:$9 sm:$0xff] %v5146_v15  ;;  %v5253_v15 = vsel %vm2926_vm15, %v5230_v25, %v5236_v5  ;;  %v10161_v25 = vld [vmem:[#allocation15 + $0x108] sm:$0xff]  ;;  %v10156_v5 = vld [vmem:[#allocation15 + $0xe0] sm:$0xff] }
0x131c   : > { %5299 = vst [vmem:[#allocation1 + $0x1] ss:$9 sm:$0xff] %v5154_v56  ;;  %v10140_v56 = vld [vmem:[#allocation15 + $0x60] sm:$0xff] }
0x131d   : > { %5672 = vmatpush.bf16.msra.mxu3 %v10140_v56 }
0x1321   : > { %5673 = vmatpush.bf16.msra.mxu3 %v10139_v26 }
0x1323   : > { %v5300_v48 = vld [vmem:[#allocation1] sm:$0xff] }
0x1324   : > { %5302 = vrot.lane.b32.xlu0 %v5300_v48, %s11218_s13  ;;  %5304 = vst [vmem:[#allocation1] ss:$9 sm:$0xff] %v13059_v34  ;;  %v5182_v34 = vsel %vm13662_vm14, %v5172_v54, %v5173_v7  ;;  %v10148_v48 = vld [vmem:[#allocation15 + $0xa0] sm:$0xff]  ;;  %v5241_v54 = vsel %vm2926_vm15, %v5229_v38, %v5233_v24  ;;  %v5244_v7 = vsel %vm13668_vm3, %v5234_v0, %v5235_v19  ;;  %v10153_v0 = vld [vmem:[#allocation15 + $0xc8] sm:$0xff]  ;;  %vm13671_vm14 = vmmov %vm13665_vm2 }
0x1325   : > { %5306 = vst [vmem:[#allocation1 + $0x1] ss:$9 sm:$0xff] %v13061_v31  ;;  %v5214_v31 = vshll.u32 %v5200_v1, 16  ;;  %v5183_v63 = vsel %vm13664_vm8, %v5179_v11, %v5182_v34  ;;  %v5245_v40 = vsel %vm13669_vm1, %v5241_v54, %v5244_v7  ;;  %5685 = vmatpush.bf16.msrb.mxu2 %v10148_v48  ;;  %v10144_v38 = vld [vmem:[#allocation15 + $0x80] sm:$0xff]  ;;  %vm13157_vm8 = vmand %vm13672_vm7, %vm4979_vm11 }
0x1326   : > { %v5201_v10 = vshrl.u32 %v5183_v63, 16  ;;  %v5263_v18 = vshrl.u32 %v5245_v40, 16  ;;  %v10129_v63 = vld [vmem:[#allocation15 + $0x8] sm:$0xff]  ;;  %v10152_v19 = vld [vmem:[#allocation15 + $0xc0] sm:$0xff]  ;;  %vm13675_vm11 = vmmov %vm13665_vm2 }
0x1327   : > { %v5216_v28 = vsel %vm13083_vm6, %v5209_v14, %v5214_v31  ;;  %v10163_v14 = vld [vmem:[#allocation15 + $0x118] sm:$0xff]  ;;  %5662 = vmatpush.bf16.msra.mxu0 %v10129_v63  ;;  %v5812_v40 = vld [vmem:[#allocation7] sm:$0x2]  ;;  %v10308_v63 = vld [vmem:[#allocation19] sm:$0xff] }
0x1328   : > { %v5208_v36 = vsel %vm13083_vm6, %v5201_v10, %v5206_v55  ;;  %v10147_v55 = vld [vmem:[#allocation15 + $0x98] sm:$0xff]  ;;  %v10128_v10 = vld [vmem:[#allocation15] sm:$0xff] }
0x1329   : > { %5686 = vmatpush.bf16.msrb.mxu2 %v10147_v55  ;;  %v5754_v55 = vld [vmem:[#allocation7 + $0x2] sm:$0x3] }
0x132b   : > { %5663 = vmatpush.bf16.msra.mxu0 %v10128_v10 }
0x132c   : > { %v13102_v8 = vld [vmem:[#allocation1] sm:$0xff] }
0x132d   : > { %5309 = vst [vmem:[#allocation1] ss:$9 sm:$0xff] %v5165_v49  ;;  %v5268_v49 = vshll.u32 %v5250_v37, 16  ;;  %v10171_v37 = vld [vmem:[#allocation16 + $0x38] sm:$0xff] }
0x132e   : > { %5312 = vst [vmem:[#allocation1 + $0x1] ss:$9 sm:$0xff] %v5166_v53  ;;  %v10138_v53 = vld [vmem:[#allocation15 + $0x50] sm:$0xff] }
0x132f   : > { %v5270_v11 = vsel %vm13083_vm6, %v5263_v18, %v5268_v49  ;;  %5674 = vmatpush.bf16.msra.mxu3 %v10138_v53  ;;  %v10169_v49 = vld [vmem:[#allocation16 + $0x28] sm:$0xff] }
0x1333   : > { %5675 = vmatpush.bf16.msra.mxu3 %v10137_v9 }
0x1335   : > { %v5313_v4 = vld [vmem:[#allocation1] sm:$0xff] }
0x1336   : > { %5315 = vrot.lane.b32.xlu2 %v5313_v4, %s11218_s13  ;;  %5321 = vst [vmem:[#allocation1 + $0x1] ss:$9 sm:$0xff] %v5216_v28  ;;  %v10146_v28 = vld [vmem:[#allocation15 + $0x90] sm:$0xff] }
0x1337   : > { %5318 = vst [vmem:[#allocation1] ss:$9 sm:$0xff] %v5208_v36  ;;  %5676 = vmatpush.bf16.msra.mxu3 %v10136_v39  ;;  %v10162_v4 = vld [vmem:[#allocation15 + $0x110] sm:$0xff]  ;;  %5687 = vmatpush.bf16.msrb.mxu2 %v10146_v28  ;;  %v10145_v36 = vld [vmem:[#allocation15 + $0x88] sm:$0xff]  ;;  %v10168_v39 = vld [vmem:[#allocation16 + $0x20] sm:$0xff] }
0x133b   : > { %5712 = vmatpush.bf16.msrb.mxu3 %v10163_v14  ;;  %5688 = vmatpush.bf16.msrb.mxu2 %v10145_v36 }
0x133e   : > { %v13115_v21 = vld [vmem:[#allocation1] sm:$0xff] }
0x133f   : > { %5323 = vst [vmem:[#allocation1] ss:$9 sm:$0xff] %v13063_v57  ;;  %v5260_v57 = vsel %vm5108_vm9, %v5258_v41, %v5259_v61  ;;  %5713 = vmatpush.bf16.msrb.mxu3 %v10162_v4  ;;  %5689 = vmatpush.bf16.msrb.mxu2 %v10144_v38  ;;  %v5757_v4 = vld [vmem:[#allocation7 + $0x4] sm:$0x3]  ;;  %v10167_v38 = vld [vmem:[#allocation16 + $0x18] sm:$0xff] }
0x1340   : > { %5325 = vst [vmem:[#allocation1 + $0x1] ss:$9 sm:$0xff] %v13065_v2  ;;  %v5256_v2 = vsel %vm13667_vm0, %v5237_v52, %v5238_v13  ;;  %v5262_v44 = vrot.slane %v5260_v57, 1  ;;  %vm13677_vm0 = vmmov %vm13669_vm1 }
0x1341   : > { %v5257_v62 = vsel %vm13656_vm5, %v5253_v15, %v5256_v2  ;;  %vm13678_vm5 = vmmov %vm13668_vm3 }
0x1342   : > { %v5271_v42 = vshrl.u32 %v5257_v62, 16  ;;  %v5276_v17 = vshll.u32 %v5262_v44, 16  ;;  %vm13679_vm3 = vmmov %vm13677_vm0 }
0x1343   : > { %5714 = vmatpush.bf16.msrb.mxu3 %v10161_v25  ;;  %6584 = vmatpush.bf16.msra.mxu2 %v10171_v37  ;;  %v10181_v37 = vld [vmem:[#allocation16 + $0x88] sm:$0xff]  ;;  %vm13680_vm1 = vmmov %vm13665_vm2 }
0x1344   : > { %v5278_v1 = vsel %vm13083_vm6, %v5271_v42, %v5276_v17  ;;  %v10170_v17 = vld [vmem:[#allocation16 + $0x30] sm:$0xff]  ;;  %vm13683_vm7 = vmmov %vm13678_vm5 }
0x1347   : > { %v5326_v3 = vld [vmem:[#allocation1] sm:$0xff]  ;;  %6585 = vmatpush.bf16.msra.mxu2 %v10170_v17 }
0x1348   : > { %5328 = vrot.lane.b32.xlu2 %v5326_v3, %s11218_s13  ;;  %5331 = vst [vmem:[#allocation1] ss:$9 sm:$0xff] %v5227_v43 }
0x1349   : > { %5334 = vst [vmem:[#allocation1 + $0x1] ss:$9 sm:$0xff] %v5228_v46 }
0x134b   : > { %6586 = vmatpush.bf16.msra.mxu2 %v10169_v49  ;;  %v10210_v49 = vld [vmem:[#allocation16 + $0x170] sm:$0xff] }
0x134f   : > { %6587 = vmatpush.bf16.msra.mxu2 %v10168_v39 }
0x1350   : > { %v13136_v34 = vld [vmem:[#allocation1] sm:$0xff] }
0x1351   : > { %5337 = vst [vmem:[#allocation1] ss:$9 sm:$0xff] %v5270_v11 }
0x1352   : > { %5340 = vst [vmem:[#allocation1 + $0x1] ss:$9 sm:$0xff] %v5278_v1 }
0x1353   : > { %6588 = vmatpush.bf16.msra.mxu2 %v10167_v38 }
0x1359   : > { %v5341_v31 = vld [vmem:[#allocation1] sm:$0xff] }
0x135a   : > { %5343 = vrot.lane.b32.xlu0 %v5341_v31, %s11218_s13  ;;  %5345 = vst [vmem:[#allocation1] ss:$9 sm:$0xff] %v13078_v60  ;;  %v10160_v60 = vld [vmem:[#allocation15 + $0x100] sm:$0xff]  ;;  %v10178_v31 = vld [vmem:[#allocation16 + $0x70] sm:$0xff]  ;;  %s8765_s13 = scalar_lea.hbm %s13731_s10, %s11344_s23 }
0x135b   : > { %5347 = vst [vmem:[#allocation1 + $0x1] ss:$9 sm:$0xff] %v13076_v16  ;;  %5715 = vmatpush.bf16.msrb.mxu3 %v10160_v60  ;;  %v10159_v16 = vld [vmem:[#allocation15 + $0xf8] sm:$0xff]  ;;  %v10177_v60 = vld [vmem:[#allocation16 + $0x68] sm:$0xff] }
0x135c   : > { %5695 = vmatpush.bf16.msrb.mxu0 %v10159_v16  ;;  %v10187_v16 = vld [vmem:[#allocation16 + $0xb8] sm:$0xff] }
0x135d   : > { %6610 = vmatpush.bf16.msrb.mxu1 %v10187_v16 }
0x1360   : > { %5696 = vmatpush.bf16.msrb.mxu0 %v10158_v50 }
0x1362   : > { %v5348_v32 = vld [vmem:[#allocation1] sm:$0xff] }
0x1364   : > { %5697 = vmatpush.bf16.msrb.mxu0 %v10157_v59  ;;  %v10166_v59 = vld [vmem:[#allocation16 + $0x10] sm:$0xff] }
0x1365   : > { %6589 = vmatpush.bf16.msra.mxu2 %v10166_v59  ;;  %v10208_v59 = vld [vmem:[#allocation16 + $0x160] sm:$0xff] }
0x1368   : > { %5698 = vmatpush.bf16.msrb.mxu0 %v10156_v5  ;;  %v10186_v5 = vld [vmem:[#allocation16 + $0xb0] sm:$0xff] }
0x1369   : > { %6611 = vmatpush.bf16.msrb.mxu1 %v10186_v5 }
0x136c   : > { %5699 = vmatpush.bf16.msrb.mxu0 %v10155_v51  ;;  %v10194_v51 = vld [vmem:[#allocation16 + $0xf0] sm:$0xff] }
0x1370   : > { %5700 = vmatpush.bf16.msrb.mxu0 %v10154_v27  ;;  %v10185_v27 = vld [vmem:[#allocation16 + $0xa8] sm:$0xff] }
0x1371   : > { %6612 = vmatpush.bf16.msrb.mxu1 %v10185_v27 }
0x1374   : > { %5701 = vmatpush.bf16.msrb.mxu0 %v10153_v0 }
0x1378   : > { %5702 = vmatpush.bf16.msrb.mxu0 %v10152_v19  ;;  %v10164_v19 = vld [vmem:[#allocation16] sm:$0xff] }
0x1390   : > { %v5316_v52 = vpop.permute.xlu2 %5315 }
0x1391   : > { %v5354_v13 = vsel %vm5349_vm13, %v13102_v8, %v5316_v52  ;;  %v10176_v52 = vld [vmem:[#allocation16 + $0x60] sm:$0xff] }
0x1392   : > { %5677 = vmatmul.bf16.vlgmr.msra.gmra.mxu3 %v5354_v13  ;;  %v10195_v13 = vld [vmem:[#allocation16 + $0xf8] sm:$0xff] }
0x1393   : > { %6597 = vmatpush.bf16.msra.mxu3 %v10179_v33 }
0x1396   : > { %v5303_v12 = vpop.permute.xlu0 %5302 }
0x1397   : > { %v5351_v24 = vsel %vm5349_vm13, %v13089_v6, %v5303_v12  ;;  %6598 = vmatpush.bf16.msra.mxu3 %v10178_v31  ;;  %v10165_v12 = vld [vmem:[#allocation16 + $0x8] sm:$0xff] }
0x1398   : > { %5664 = vmatmul.bf16.vlgmr.msra.gmra.mxu0 %v5351_v24  ;;  %v10175_v24 = vld [vmem:[#allocation16 + $0x58] sm:$0xff]  ;;  %6590 = vmatpush.bf16.msra.mxu2 %v10165_v12 }
0x1399   : > { %6623 = vmatpush.bf16.msra.mxu0 %v10195_v13  ;;  %v10218_v13 = vld [vmem:[#allocation16 + $0x1b0] sm:$0xff] }
0x139b   : > { %6599 = vmatpush.bf16.msra.mxu3 %v10177_v60 }
0x139c   : > { %6591 = vmatpush.bf16.msra.mxu2 %v10164_v19 }
0x139d   : > { %6624 = vmatpush.bf16.msra.mxu0 %v10194_v51 }
0x139f   : > { %6600 = vmatpush.bf16.msra.mxu3 %v10176_v52  ;;  %v10198_v52 = vld [vmem:[#allocation16 + $0x110] sm:$0xff] }
0x13a2   : > { %v5329_v41 = vpop.permute.xlu2 %5328  ;;  %9191 = vmatmul.msk.bf16.vlgmr.msrb.gmra.mxu3 %vm5349_vm13, %v5348_v32  ;;  %v10184_v32 = vld [vmem:[#allocation16 + $0xa0] sm:$0xff] }
0x13a3   : > { %v5357_v8 = vsel %vm5349_vm13, %v13115_v21, %v5329_v41  ;;  %6601 = vmatpush.bf16.msra.mxu3 %v10175_v24  ;;  %6613 = vmatpush.bf16.msrb.mxu1 %v10184_v32 }
0x13a4   : > { %5690 = vmatmul.bf16.vlgmr.msrb.gmra.mxu2 %v5357_v8  ;;  %v10174_v8 = vld [vmem:[#allocation16 + $0x50] sm:$0xff] }
0x13a7   : > { %6602 = vmatpush.bf16.msra.mxu3 %v10174_v8  ;;  %v10207_v8 = vld [vmem:[#allocation16 + $0x158] sm:$0xff] }
0x13cc   : > { %v5344_v61 = vpop.permute.xlu0 %5343 }
0x13cd   : > { %v5360_v35 = vsel %vm5349_vm13, %v13136_v34, %v5344_v61  ;;  %vm13681_vm13 = vmmov %vm13680_vm1 }
0x13ce   : > { %5703 = vmatmul.bf16.vlgmr.msrb.gmra.mxu0 %v5360_v35  ;;  %v10183_v35 = vld [vmem:[#allocation16 + $0x98] sm:$0xff] }
0x13cf   : > { %6614 = vmatpush.bf16.msrb.mxu1 %v10183_v35  ;;  %v10217_v35 = vld [vmem:[#allocation16 + $0x1a8] sm:$0xff] }
0x1415   : > { %v5678_v6 = vpop.f32.mrf.mxu3  ;;  %v5665_v23 = vpop.f32.mrf.mxu0 }
0x1416   : > { %v5666_v56 = vadd.f32 %v10830_v22, %v5665_v23  ;;  %v10203_v23 = vld [vmem:[#allocation16 + $0x138] sm:$0xff]  ;;  %v10182_v22 = vld [vmem:[#allocation16 + $0x90] sm:$0xff] }
0x1417   : > { %6636 = vmatpush.bf16.msrb.mxu2 %v10203_v23  ;;  %6615 = vmatpush.bf16.msrb.mxu1 %v10182_v22  ;;  %v10227_v23 = vld [vmem:[#allocation16 + $0x1f8] sm:$0xff] }
0x1418   : > { %v5679_v21 = vadd.f32 %v5678_v6, %v5666_v56  ;;  %v10193_v6 = vld [vmem:[#allocation16 + $0xe8] sm:$0xff] }
0x1419   : > { %6625 = vmatpush.bf16.msra.mxu0 %v10193_v6 }
0x141b   : > { %6616 = vmatpush.bf16.msrb.mxu1 %v10181_v37 }
0x141d   : > { %v5680_v45 = vpop.f32.mrf.mxu3  ;;  %v5667_v30 = vpop.f32.mrf.mxu0 }
0x141e   : > { %v10173_v45 = vld [vmem:[#allocation16 + $0x48] sm:$0xff] }
0x141f   : > { %6603 = vmatpush.bf16.msra.mxu3 %v10173_v45 }
0x1425   : > { %v5717_v29 = vpop.f32.mrf.mxu3 }
0x1427   : > { %v5691_v57 = vpop.f32.mrf.mxu2 }
0x1428   : > { %v5692_v47 = vadd.f32 %v5691_v57, %v5679_v21  ;;  %v10192_v57 = vld [vmem:[#allocation16 + $0xe0] sm:$0xff] }
0x1429   : > { %v10172_v21 = vld [vmem:[#allocation16 + $0x40] sm:$0xff]  ;;  %6626 = vmatpush.bf16.msra.mxu0 %v10192_v57 }
0x142a   : > { %6604 = vmatpush.bf16.msra.mxu3 %v10172_v21 }
0x142d   : > { %v5719_v15 = vpop.f32.mrf.mxu3 }
0x142e   : > { %v10202_v15 = vld [vmem:[#allocation16 + $0x130] sm:$0xff] }
0x142f   : > { %v5693_v2 = vpop.f32.mrf.mxu2  ;;  %6637 = vmatpush.bf16.msrb.mxu2 %v10202_v15  ;;  %v10196_v15 = vld [vmem:[#allocation16 + $0x100] sm:$0xff] }
0x1430   : > { %v5762_v2 = vld [vmem:[#allocation7] sm:$0x3] }
0x144b   : > { %v5704_v46 = vpop.f32.mrf.mxu0 }
0x144c   : > { %v5705_v44 = vadd.f32 %v5704_v46, %v5692_v47 }
0x144e   : > { %v5718_v43 = vadd.f32 %v5717_v29, %v5705_v44  ;;  %v10191_v44 = vld [vmem:[#allocation16 + $0xd8] sm:$0xff] }
0x144f   : > { %6627 = vmatpush.bf16.msra.mxu0 %v10191_v44  ;;  %v10215_v44 = vld [vmem:[#allocation16 + $0x198] sm:$0xff] }
0x1450   : > { %v5721_v3 = vmax.f32 %v5718_v43, 0.0  ;;  %v5766_v43 = vrot.slane %v5762_v2, 1 }
0x1452   : > { %v5722_v48 = vmin.f32 %v5721_v3, 6.0  ;;  %v5767_v3 = vrot.slane %v5762_v2, 2  ;;  %v5774_v39 = vsel %vm2926_vm15, %v5762_v2, %v5766_v43 }
0x1453   : > { %v5706_v62 = vpop.f32.mrf.mxu0 }
0x1454   : > { %v5723_v54 = vpack.c.bf16 %v5722_v48, %v5722_v48  ;;  %v5768_v48 = vrot.slane %v5762_v2, 3  ;;  %v10201_v62 = vld [vmem:[#allocation16 + $0x128] sm:$0xff] }
0x1455   : > { %6638 = vmatpush.bf16.msrb.mxu2 %v10201_v62  ;;  %v10204_v62 = vld [vmem:[#allocation16 + $0x140] sm:$0xff] }
0x1456   : > { %v5725_v7 = vrot.slane %v5723_v54, 3  ;;  %v5780_v33 = vsel %vm5106_vm12, %v5767_v3, %v5768_v48  ;;  %v5777_v31 = vsel %vm13676_vm10, %v5767_v3, %v5768_v48  ;;  %v10235_v48 = vld [vmem:[#allocation16 + $0x238] sm:$0xff]  ;;  %vm13686_vm10 = vmmov %vm13680_vm1 }
0x1457   : > { %v5778_v16 = vsel %vm13677_vm0, %v5774_v39, %v5777_v31  ;;  %v10223_v39 = vld [vmem:[#allocation16 + $0x1d8] sm:$0xff]  ;;  %v10233_v31 = vld [vmem:[#allocation16 + $0x228] sm:$0xff] }
0x1458   : > { %v5728_v26 = vsel %vm2926_vm15, %v5723_v54, %v5725_v7  ;;  %v5729_v20 = vsel %vm13671_vm14, %v5723_v54, %v5725_v7  ;;  %v10211_v54 = vld [vmem:[#allocation16 + $0x178] sm:$0xff]  ;;  %v5938_v7 = vld [vmem:[#allocation7 + $0x6] sm:$0x2]  ;;  %v5796_v24 = vshrl.u32 %v5778_v16, 16  ;;  %vm13682_vm14 = vmmov %vm13678_vm5 }
0x1459   : > { %v5731_v42 = vrot.slane %v5729_v20, 1  ;;  %5732 = vst [vmem:[#allocation1] ss:$2 sm:$0xff] %v5728_v26  ;;  %6649 = vmatpush.bf16.msrb.mxu3 %v10211_v54  ;;  %v10214_v54 = vld [vmem:[#allocation16 + $0x190] sm:$0xff] }
0x145b   : > { %5736 = vst [vmem:[#allocation1 + $0x10] ss:$2 sm:$0xff] %v5731_v42 }
0x145d   : > { %6650 = vmatpush.bf16.msrb.mxu3 %v10210_v49 }
0x1460   : > { %v5733_v53 = vld [vmem:[#allocation1] sm:$0xff] }
0x1461   : > { %v5738_v18 = vshrl.u32 %v5733_v53, 16  ;;  %5815 = vst [vmem:[#allocation1] sm:$0xff] %v5812_v40  ;;  %v5741_v34 = vshll.u32 %v5733_v53, 16  ;;  %v10190_v40 = vld [vmem:[#allocation16 + $0xd0] sm:$0xff]  ;;  %v5779_v53 = vsel %vm13675_vm11, %v5762_v2, %v5766_v43  ;;  %v10216_v2 = vld [vmem:[#allocation16 + $0x1a0] sm:$0xff]  ;;  %v10225_v43 = vld [vmem:[#allocation16 + $0x1e8] sm:$0xff] }
0x1462   : > { %v5737_v1 = vld [vmem:[#allocation1 + $0x10] sm:$0xff]  ;;  %6628 = vmatpush.bf16.msra.mxu0 %v10190_v40  ;;  %vm13684_vm11 = vmmov %vm13677_vm0 }
0x1463   : > { %v5740_v11 = vrot.slane %v5738_v18, 7  ;;  %v5744_v9 = vshrl.u32 %v5737_v1, 16  ;;  %v5747_v28 = vshll.u32 %v5737_v1, 16  ;;  %v10200_v18 = vld [vmem:[#allocation16 + $0x120] sm:$0xff]  ;;  %v10234_v40 = vld [vmem:[#allocation16 + $0x230] sm:$0xff] }
0x1464   : > { %v10180_v1 = vld [vmem:[#allocation16 + $0x80] sm:$0xff]  ;;  %6639 = vmatpush.bf16.msrb.mxu2 %v10200_v18 }
0x1465   : > { %v5743_v14 = vor.u32 %v5741_v34, %v5740_v11  ;;  %v5746_v10 = vrot.slane %v5744_v9, 7  ;;  %v5781_v9 = vsel %vm5108_vm9, %v5779_v53, %v5780_v33  ;;  %6617 = vmatpush.bf16.msrb.mxu1 %v10180_v1 }
0x1467   : > { %v5749_v36 = vor.u32 %v5747_v28, %v5746_v10  ;;  %v5755_v25 = vsel %vm13157_vm8, %v5743_v14, %v5754_v55  ;;  %v10189_v55 = vld [vmem:[#allocation16 + $0xc8] sm:$0xff]  ;;  %v10199_v14 = vld [vmem:[#allocation16 + $0x118] sm:$0xff] }
0x1468   : > { %5756 = vst [vmem:[#allocation7 + $0x2] sm:$0x3] %v5755_v25  ;;  %v13165_v61 = vld [vmem:[#allocation1 + $0x1] ss:$2 sm:$0xff]  ;;  %v5760_v28 = vld [vmem:[#allocation7] sm:$0x1]  ;;  %6629 = vmatpush.bf16.msra.mxu0 %v10189_v55  ;;  %6640 = vmatpush.bf16.msrb.mxu2 %v10199_v14 }
0x1469   : > { %v5758_v50 = vsel %vm13157_vm8, %v5749_v36, %v5757_v4  ;;  %v10209_v10 = vld [vmem:[#allocation16 + $0x168] sm:$0xff]  ;;  %v10219_v4 = vld [vmem:[#allocation16 + $0x1b8] sm:$0xff]  ;;  %v5783_v25 = vrot.slane %v5781_v9, 1  ;;  %v10222_v14 = vld [vmem:[#allocation16 + $0x1d0] sm:$0xff] }
0x146a   : > { %5759 = vst [vmem:[#allocation7 + $0x4] sm:$0x3] %v5758_v50  ;;  %6651 = vmatpush.bf16.msrb.mxu3 %v10209_v10  ;;  %v10188_v50 = vld [vmem:[#allocation16 + $0xc0] sm:$0xff]  ;;  %6662 = vmatpush.bf16.msra.mxu1 %v10219_v4  ;;  %v10213_v9 = vld [vmem:[#allocation16 + $0x188] sm:$0xff] }
0x146b   : > { %v10232_v4 = vld [vmem:[#allocation16 + $0x220] sm:$0xff] }
0x146c   : > { %6630 = vmatpush.bf16.msra.mxu0 %v10188_v50  ;;  %6641 = vmatpush.bf16.msrb.mxu2 %v10198_v52 }
0x146e   : > { %6652 = vmatpush.bf16.msrb.mxu3 %v10208_v59  ;;  %6663 = vmatpush.bf16.msra.mxu1 %v10218_v13 }
0x146f   : > { %v5813_v0 = vld [vmem:[#allocation7 + $0x2] sm:$0x2]  ;;  %v5761_v5 = vld [vmem:[#allocation7 + $0x2] sm:$0x1] }
0x1470   : > { %5819 = vst [vmem:[#allocation1 + $0x10] sm:$0xff] %v5813_v0  ;;  %v5874_v41 = vld [vmem:[#allocation7 + $0x2] sm:$0x2]  ;;  %v5801_v0 = vshll.u32 %v5783_v25, 16  ;;  %6675 = vmatpush.bf16.msrb.mxu0 %v10227_v23  ;;  %v5822_v10 = vld [vmem:[#allocation7 + $0x2] sm:$0x1] }
0x1471   : > { %5877 = vst [vmem:[#allocation1] sm:$0xff] %v5874_v41  ;;  %v5875_v29 = vld [vmem:[#allocation7 + $0x4] sm:$0x2]  ;;  %v13169_v56 = vld [vmem:[#allocation7 + $0x2] sm:$0x3] }
0x1472   : > { %v5937_v47 = vld [vmem:[#allocation7 + $0x4] sm:$0x2]  ;;  %v5769_v26 = vrot.slane %v13169_v56, 1  ;;  %v5770_v20 = vrot.slane %v13169_v56, 2  ;;  %v5771_v42 = vrot.slane %v13169_v56, 3  ;;  %v5803_v6 = vsel %vm13083_vm6, %v5796_v24, %v5801_v0  ;;  %6653 = vmatpush.bf16.msrb.mxu3 %v10207_v8  ;;  %6664 = vmatpush.bf16.msra.mxu1 %v10217_v35  ;;  %v10231_v24 = vld [vmem:[#allocation16 + $0x218] sm:$0xff] }
0x1473   : > { %v10197_v41 = vld [vmem:[#allocation16 + $0x108] sm:$0xff]  ;;  %v10230_v8 = vld [vmem:[#allocation16 + $0x210] sm:$0xff] }
0x1474   : > { %v5791_v11 = vsel %vm13665_vm2, %v13169_v56, %v5769_v26  ;;  %v5792_v34 = vsel %vm5106_vm12, %v5770_v20, %v5771_v42  ;;  %v5786_v51 = vsel %vm2926_vm15, %v13169_v56, %v5769_v26  ;;  %v5789_v12 = vsel %vm13678_vm5, %v5770_v20, %v5771_v42  ;;  %6642 = vmatpush.bf16.msrb.mxu2 %v10197_v41  ;;  %v10226_v56 = vld [vmem:[#allocation16 + $0x1f0] sm:$0xff]  ;;  %v5824_v21 = vld [vmem:[#allocation7 + $0x2] sm:$0x3]  ;;  %v5825_v3 = vld [vmem:[#allocation7 + $0x4] sm:$0x3] }
0x1475   : > { %v5793_v36 = vsel %vm5108_vm9, %v5791_v11, %v5792_v34  ;;  %v5790_v19 = vsel %vm13679_vm3, %v5786_v51, %v5789_v12  ;;  %6676 = vmatpush.bf16.msrb.mxu0 %v10226_v56  ;;  %v5829_v37 = vrot.slane %v5824_v21, 2  ;;  %v5830_v26 = vrot.slane %v5824_v21, 3  ;;  %v10224_v42 = vld [vmem:[#allocation16 + $0x1e0] sm:$0xff]  ;;  %vm13685_vm2 = vmmov %vm13677_vm0 }
0x1476   : > { %v5795_v27 = vrot.slane %v5793_v36, 1  ;;  %v5804_v45 = vshrl.u32 %v5790_v19, 16  ;;  %6665 = vmatpush.bf16.msra.mxu1 %v10216_v2  ;;  %v5831_v49 = vrot.slane %v5825_v3, 1  ;;  %v5832_v53 = vrot.slane %v5825_v3, 2  ;;  %v5823_v36 = vld [vmem:[#allocation7 + $0x4] sm:$0x1]  ;;  %vm13687_vm0 = vmmov %vm13680_vm1 }
0x1477   : > { %v13167_v30 = vld [vmem:[#allocation1 + $0x11] ss:$2 sm:$0xff]  ;;  %v5833_v33 = vrot.slane %v5825_v3, 3  ;;  %v5842_v1 = vsel %vm5106_vm12, %v5829_v37, %v5830_v26  ;;  %v5839_v16 = vsel %vm13682_vm14, %v5829_v37, %v5830_v26  ;;  %vm13688_vm3 = vmmov %vm13678_vm5 }
0x1478   : > { %5881 = vst [vmem:[#allocation1 + $0x10] sm:$0xff] %v5875_v29  ;;  %v13171_v46 = vld [vmem:[#allocation1 + $0x1] ss:$2 sm:$0xff]  ;;  %v5809_v32 = vshll.u32 %v5795_v27, 16  ;;  %v10206_v29 = vld [vmem:[#allocation16 + $0x150] sm:$0xff]  ;;  %6643 = vmatpush.bf16.msrb.mxu2 %v10196_v15  ;;  %v5853_v11 = vsel %vm13681_vm13, %v5825_v3, %v5831_v49  ;;  %v5848_v59 = vsel %vm2926_vm15, %v5825_v3, %v5831_v49  ;;  %vm13692_vm14 = vmmov %vm13687_vm0 }
0x1479   : > { %5940 = vst [vmem:[#allocation1] sm:$0xff] %v5937_v47  ;;  %6654 = vmatpush.bf16.msrb.mxu3 %v10206_v29  ;;  %v10205_v47 = vld [vmem:[#allocation16 + $0x148] sm:$0xff]  ;;  %6677 = vmatpush.bf16.msrb.mxu0 %v10225_v43  ;;  %v5854_v34 = vsel %vm5106_vm12, %v5832_v53, %v5833_v33  ;;  %v10228_v15 = vld [vmem:[#allocation16 + $0x200] sm:$0xff] }
0x147a   : > { %v5811_v22 = vsel %vm13083_vm6, %v5804_v45, %v5809_v32  ;;  %6666 = vmatpush.bf16.msra.mxu1 %v10215_v44  ;;  %v10221_v27 = vld [vmem:[#allocation16 + $0x1c8] sm:$0xff]  ;;  %v10220_v32 = vld [vmem:[#allocation16 + $0x1c0] sm:$0xff] }
0x147b   : > { %v5888_v45 = vld [vmem:[#allocation7 + $0x6] sm:$0x3] }
0x147c   : > { %v10229_v29 = vld [vmem:[#allocation16 + $0x208] sm:$0xff]  ;;  %v5894_v2 = vrot.slane %v5888_v45, 1  ;;  %v5896_v56 = vrot.slane %v5888_v45, 3 }
0x147d   : > { %6655 = vmatpush.bf16.msrb.mxu3 %v10205_v47  ;;  %6678 = vmatpush.bf16.msrb.mxu0 %v10224_v42  ;;  %v5885_v42 = vld [vmem:[#allocation7 + $0x4] sm:$0x1] }
0x147e   : > { %6667 = vmatpush.bf16.msra.mxu1 %v10214_v54  ;;  %v5916_v3 = vsel %vm13686_vm10, %v5888_v45, %v5894_v2  ;;  %v5911_v26 = vsel %vm2926_vm15, %v5888_v45, %v5894_v2 }
0x147f   : > { %v13176_v17 = vld [vmem:[#allocation1 + $0x11] ss:$2 sm:$0xff] }
0x1480   : > { %5944 = vst [vmem:[#allocation1 + $0x10] sm:$0xff] %v5938_v7  ;;  %v13187_v38 = vld [vmem:[#allocation1 + $0x1] ss:$2 sm:$0xff]  ;;  %v5828_v7 = vrot.slane %v5824_v21, 1 }
0x1481   : > { %6656 = vmatpush.bf16.msrb.mxu3 %v10204_v62  ;;  %6679 = vmatpush.bf16.msrb.mxu0 %v10223_v39 }
0x1482   : > { %v5841_v18 = vsel %vm13680_vm1, %v5824_v21, %v5828_v7  ;;  %6668 = vmatpush.bf16.msra.mxu1 %v10213_v9  ;;  %v5836_v25 = vsel %vm2926_vm15, %v5824_v21, %v5828_v7  ;;  %vm13689_vm1 = vmmov %vm13685_vm2 }
0x1483   : > { %v5843_v55 = vsel %vm5108_vm9, %v5841_v18, %v5842_v1  ;;  %v5840_v13 = vsel %vm13684_vm11, %v5836_v25, %v5839_v16  ;;  %vm13690_vm13 = vmmov %vm13689_vm1 }
0x1484   : > { %v5845_v50 = vrot.slane %v5843_v55, 1  ;;  %v5858_v19 = vshrl.u32 %v5840_v13, 16  ;;  %vm13694_vm11 = vmmov %vm13687_vm0 }
0x1485   : > { %6680 = vmatpush.bf16.msrb.mxu0 %v10222_v14  ;;  %vm13696_vm10 = vmmov %vm13689_vm1 }
0x1486   : > { %v5863_v12 = vshll.u32 %v5845_v50, 16 }
0x1487   : > { %v13189_v60 = vld [vmem:[#allocation1 + $0x11] ss:$2 sm:$0xff] }
0x1488   : > { %5948 = vst [vmem:[#allocation1] ss:$9 sm:$0xff] %v5760_v28  ;;  %v5865_v35 = vsel %vm13083_vm6, %v5858_v19, %v5863_v12 }
0x1489   : > { %5951 = vst [vmem:[#allocation1 + $0x1] ss:$9 sm:$0xff] %v5761_v5  ;;  %v5851_v5 = vsel %vm13683_vm7, %v5832_v53, %v5833_v33  ;;  %6681 = vmatpush.bf16.msrb.mxu0 %v10221_v27  ;;  %vm13693_vm7 = vmmov %vm13687_vm0 }
0x148a   : > { %v5852_v51 = vsel %vm13685_vm2, %v5848_v59, %v5851_v5  ;;  %vm13695_vm2 = vmmov %vm13688_vm3 }
0x148b   : > { %v5866_v41 = vshrl.u32 %v5852_v51, 16 }
0x148d   : > { %6682 = vmatpush.bf16.msrb.mxu0 %v10220_v32 }
0x1490   : > { %v5952_v57 = vld [vmem:[#allocation1] sm:$0xff] }
0x1491   : > { %6592 = vmatmul.bf16.vlgmr.msra.gmra.mxu2 %v5952_v57  ;;  %5955 = vst [vmem:[#allocation1] ss:$9 sm:$0xff] %v5803_v6  ;;  %v5887_v57 = vld [vmem:[#allocation7 + $0x4] sm:$0x3] }
0x1492   : > { %5958 = vst [vmem:[#allocation1 + $0x1] ss:$9 sm:$0xff] %v5811_v22  ;;  %6688 = vmatpush.bf16.msra.mxu2 %v10235_v48  ;;  %v5895_v22 = vrot.slane %v5888_v45, 2  ;;  %v5891_v21 = vrot.slane %v5887_v57, 1  ;;  %v5892_v47 = vrot.slane %v5887_v57, 2  ;;  %v5893_v44 = vrot.slane %v5887_v57, 3 }
0x1494   : > { %v5917_v48 = vsel %vm5106_vm12, %v5895_v22, %v5896_v56  ;;  %v5904_v62 = vsel %vm13687_vm0, %v5887_v57, %v5891_v21  ;;  %v5905_v54 = vsel %vm5106_vm12, %v5892_v47, %v5893_v44  ;;  %v5899_v49 = vsel %vm2926_vm15, %v5887_v57, %v5891_v21  ;;  %v10243_v21 = vld [vmem:[#allocation18 + $0x38] sm:$0xff]  ;;  %vm13697_vm0 = vmmov %vm13695_vm2 }
0x1495   : > { %v5918_v7 = vsel %vm5108_vm9, %v5916_v3, %v5917_v48  ;;  %v5906_v37 = vsel %vm5108_vm9, %v5904_v62, %v5905_v54  ;;  %v5902_v53 = vsel %vm13688_vm3, %v5892_v47, %v5893_v44  ;;  %v10242_v3 = vld [vmem:[#allocation18 + $0x30] sm:$0xff]  ;;  %v10241_v62 = vld [vmem:[#allocation18 + $0x28] sm:$0xff]  ;;  %vm13699_vm3 = vmmov %vm13693_vm7 }
0x1496   : > { %6689 = vmatpush.bf16.msra.mxu2 %v10234_v40  ;;  %v5908_v33 = vrot.slane %v5906_v37, 1  ;;  %v5903_v1 = vsel %vm13690_vm13, %v5899_v49, %v5902_v53  ;;  %v6791_v48 = vld [vmem:[#allocation8] sm:$0x2]  ;;  %v6733_v49 = vld [vmem:[#allocation8 + $0x2] sm:$0x3]  ;;  %vm13701_vm13 = vmmov %vm13697_vm0 }
0x1497   : > { %v5921_v39 = vshrl.u32 %v5903_v1, 16  ;;  %v6736_v1 = vld [vmem:[#allocation8 + $0x4] sm:$0x3] }
0x1498   : > { %v5926_v9 = vshll.u32 %v5908_v33, 16 }
0x1499   : > { %v5959_v20 = vld [vmem:[#allocation1] sm:$0xff] }
0x149a   : > { %6605 = vmatmul.bf16.vlgmr.msra.gmra.mxu3 %v5959_v20  ;;  %5961 = vst [vmem:[#allocation1] ss:$9 sm:$0xff] %v13165_v61  ;;  %v5855_v61 = vsel %vm5108_vm9, %v5853_v11, %v5854_v34  ;;  %6690 = vmatpush.bf16.msra.mxu2 %v10233_v31  ;;  %v5914_v20 = vsel %vm13678_vm5, %v5895_v22, %v5896_v56  ;;  %vm13698_vm5 = vmmov %vm13689_vm1 }
0x149b   : > { %5963 = vst [vmem:[#allocation1 + $0x1] ss:$9 sm:$0xff] %v13167_v30  ;;  %v10212_v30 = vld [vmem:[#allocation16 + $0x180] sm:$0xff]  ;;  %v5857_v52 = vrot.slane %v5855_v61, 1  ;;  %v5915_v18 = vsel %vm13689_vm1, %v5911_v26, %v5914_v20  ;;  %v5928_v55 = vsel %vm13083_vm6, %v5921_v39, %v5926_v9  ;;  %7563 = vmatpush.bf16.msra.mxu3 %v10243_v21  ;;  %v10239_v9 = vld [vmem:[#allocation18 + $0x18] sm:$0xff]  ;;  %v10249_v39 = vld [vmem:[#allocation18 + $0x68] sm:$0xff] }
0x149c   : > { %6669 = vmatpush.bf16.msra.mxu1 %v10212_v30  ;;  %v5929_v11 = vshrl.u32 %v5915_v18, 16  ;;  %v10253_v21 = vld [vmem:[#allocation18 + $0x88] sm:$0xff]  ;;  %vm13700_vm1 = vmmov %vm13699_vm3 }
0x149d   : > { %v5871_v0 = vshll.u32 %v5857_v52, 16 }
0x149e   : > { %6691 = vmatpush.bf16.msra.mxu2 %v10232_v4 }
0x149f   : > { %v5873_v23 = vsel %vm13083_vm6, %v5866_v41, %v5871_v0  ;;  %7564 = vmatpush.bf16.msra.mxu3 %v10242_v3 }
0x14a2   : > { %v5964_v28 = vld [vmem:[#allocation1] sm:$0xff]  ;;  %6692 = vmatpush.bf16.msra.mxu2 %v10231_v24 }
0x14a3   : > { %6618 = vmatmul.bf16.vlgmr.msrb.gmra.mxu1 %v5964_v28  ;;  %5967 = vst [vmem:[#allocation1] ss:$9 sm:$0xff] %v5822_v10  ;;  %7565 = vmatpush.bf16.msra.mxu3 %v10241_v62  ;;  %v10282_v62 = vld [vmem:[#allocation18 + $0x170] sm:$0xff] }
0x14a4   : > { %5970 = vst [vmem:[#allocation1 + $0x1] ss:$9 sm:$0xff] %v5823_v36 }
0x14a6   : > { %6693 = vmatpush.bf16.msra.mxu2 %v10230_v8 }
0x14aa   : > { %6694 = vmatpush.bf16.msra.mxu2 %v10229_v29 }
0x14ab   : > { %v5971_v6 = vld [vmem:[#allocation1] sm:$0xff] }
0x14ac   : > { %6631 = vmatmul.bf16.vlgmr.msra.gmra.mxu0 %v5971_v6  ;;  %5974 = vst [vmem:[#allocation1] ss:$9 sm:$0xff] %v5865_v35 }
0x14ad   : > { %5977 = vst [vmem:[#allocation1 + $0x1] ss:$9 sm:$0xff] %v5873_v23 }
0x14ae   : > { %6695 = vmatpush.bf16.msra.mxu2 %v10228_v15 }
0x14b4   : > { %v5978_v43 = vld [vmem:[#allocation1] sm:$0xff] }
0x14b5   : > { %6644 = vmatmul.bf16.vlgmr.msrb.gmra.mxu2 %v5978_v43  ;;  %5980 = vst [vmem:[#allocation1] ss:$9 sm:$0xff] %v13171_v46  ;;  %v5886_v46 = vld [vmem:[#allocation7 + $0x6] sm:$0x1] }
0x14b6   : > { %5982 = vst [vmem:[#allocation1 + $0x1] ss:$9 sm:$0xff] %v13176_v17  ;;  %v5920_v17 = vrot.slane %v5918_v7, 1  ;;  %v10251_v7 = vld [vmem:[#allocation18 + $0x78] sm:$0xff] }
0x14b7   : > { %7576 = vmatpush.bf16.msrb.mxu1 %v10251_v7 }
0x14b8   : > { %v5934_v34 = vshll.u32 %v5920_v17, 16  ;;  %v10240_v17 = vld [vmem:[#allocation18 + $0x20] sm:$0xff] }
0x14b9   : > { %7566 = vmatpush.bf16.msra.mxu3 %v10240_v17 }
0x14ba   : > { %v5936_v31 = vsel %vm13083_vm6, %v5929_v11, %v5934_v34 }
0x14bd   : > { %v5983_v40 = vld [vmem:[#allocation1] sm:$0xff]  ;;  %7567 = vmatpush.bf16.msra.mxu3 %v10239_v9 }
0x14be   : > { %6657 = vmatmul.bf16.vlgmr.msrb.gmra.mxu3 %v5983_v40  ;;  %5986 = vst [vmem:[#allocation1] ss:$9 sm:$0xff] %v5885_v42  ;;  %v10250_v40 = vld [vmem:[#allocation18 + $0x70] sm:$0xff] }
0x14bf   : > { %5989 = vst [vmem:[#allocation1 + $0x1] ss:$9 sm:$0xff] %v5886_v46  ;;  %7577 = vmatpush.bf16.msrb.mxu1 %v10250_v40 }
0x14c3   : > { %7578 = vmatpush.bf16.msrb.mxu1 %v10249_v39 }
0x14c6   : > { %v5990_v61 = vld [vmem:[#allocation1] sm:$0xff] }
0x14c7   : > { %6670 = vmatmul.bf16.vlgmr.msra.gmra.mxu1 %v5990_v61  ;;  %5993 = vst [vmem:[#allocation1] ss:$9 sm:$0xff] %v5928_v55  ;;  %v10238_v61 = vld [vmem:[#allocation18 + $0x10] sm:$0xff] }
0x14c8   : > { %5996 = vst [vmem:[#allocation1 + $0x1] ss:$9 sm:$0xff] %v5936_v31  ;;  %v10259_v31 = vld [vmem:[#allocation18 + $0xb8] sm:$0xff]  ;;  %7568 = vmatpush.bf16.msra.mxu3 %v10238_v61  ;;  %v10280_v61 = vld [vmem:[#allocation18 + $0x160] sm:$0xff] }
0x14c9   : > { %7589 = vmatpush.bf16.msra.mxu0 %v10259_v31 }
0x14cf   : > { %v5997_v30 = vld [vmem:[#allocation1] sm:$0xff] }
0x14d0   : > { %6683 = vmatmul.bf16.vlgmr.msrb.gmra.mxu0 %v5997_v30  ;;  %5999 = vst [vmem:[#allocation1] ss:$9 sm:$0xff] %v13187_v38  ;;  %v10831_v38 = vld [vmem:[%s13691_s24] ss:$0 sm:$0xff]  ;;  %v10258_v30 = vld [vmem:[#allocation18 + $0xb0] sm:$0xff]  ;;  %s8769_s24 = sshll.u32 %s8765_s13, 4  ;;  %s8770_s24 = int_to_ptr.hbm [resolvable:$true] %s8769_s24 }
0x14d1   : > { %6001 = vst [vmem:[#allocation1 + $0x1] ss:$9 sm:$0xff] %v13189_v60  ;;  %7590 = vmatpush.bf16.msra.mxu0 %v10258_v30  ;;  %s11060_s3 = sshra.s32 %s8770_s24, 4  ;;  %s11061_s3 = int_to_ptr.hbm [resolvable:$true] %s11060_s3 }
0x14d2   : > { %p11067_p12 = scmp.lt.s32.totalorder %s11061_s3, %s13731_s10 }
0x14d8   : > { %v6002_v14 = vld [vmem:[#allocation1] sm:$0xff] }
0x14d9   : > { %6696 = vmatmul.bf16.vlgmr.msra.gmra.mxu2 %v6002_v14  ;;  %v10248_v14 = vld [vmem:[#allocation18 + $0x60] sm:$0xff] }
0x14da   : > { %7579 = vmatpush.bf16.msrb.mxu1 %v10248_v14  ;;  %v10270_v14 = vld [vmem:[#allocation18 + $0x110] sm:$0xff] }
0x1514   : > { %v6593_v10 = vpop.f32.mrf.mxu2 }
0x1515   : > { %v6594_v12 = vadd.f32 %v10831_v38, %v6593_v10  ;;  %v10267_v10 = vld [vmem:[#allocation18 + $0xf8] sm:$0xff]  ;;  %v10265_v38 = vld [vmem:[#allocation18 + $0xe8] sm:$0xff] }
0x1516   : > { %7602 = vmatpush.bf16.msrb.mxu2 %v10267_v10  ;;  %v10290_v10 = vld [vmem:[#allocation18 + $0x1b0] sm:$0xff] }
0x151c   : > { %v6595_v28 = vpop.f32.mrf.mxu2 }
0x151d   : > { %v6606_v4 = vpop.f32.mrf.mxu3  ;;  %v10266_v28 = vld [vmem:[#allocation18 + $0xf0] sm:$0xff] }
0x151e   : > { %v6607_v27 = vadd.f32 %v6606_v4, %v6594_v12  ;;  %v10237_v4 = vld [vmem:[#allocation18 + $0x8] sm:$0xff]  ;;  %7603 = vmatpush.bf16.msrb.mxu2 %v10266_v28  ;;  %v10275_v12 = vld [vmem:[#allocation18 + $0x138] sm:$0xff] }
0x151f   : > { %7569 = vmatpush.bf16.msra.mxu3 %v10237_v4 }
0x1520   : > { %v6619_v36 = vpop.f32.mrf.mxu1 }
0x1521   : > { %v6620_v19 = vadd.f32 %v6619_v36, %v6607_v27  ;;  %v10257_v36 = vld [vmem:[#allocation18 + $0xa8] sm:$0xff] }
0x1522   : > { %7591 = vmatpush.bf16.msra.mxu0 %v10257_v36  ;;  %7604 = vmatpush.bf16.msrb.mxu2 %v10265_v38 }
0x1525   : > { %v6608_v25 = vpop.f32.mrf.mxu3 }
0x1526   : > { %v10247_v25 = vld [vmem:[#allocation18 + $0x58] sm:$0xff] }
0x1527   : > { %7580 = vmatpush.bf16.msrb.mxu1 %v10247_v25 }
0x1528   : > { %v6621_v16 = vpop.f32.mrf.mxu1 }
0x1529   : > { %v6632_v50 = vpop.f32.mrf.mxu0 }
0x152a   : > { %v6633_v32 = vadd.f32 %v6632_v50, %v6620_v19  ;;  %v10236_v50 = vld [vmem:[#allocation18] sm:$0xff]  ;;  %v10274_v19 = vld [vmem:[#allocation18 + $0x130] sm:$0xff] }
0x152b   : > { %7570 = vmatpush.bf16.msra.mxu3 %v10236_v50 }
0x152f   : > { %7615 = vmatpush.bf16.msrb.mxu3 %v10275_v12  ;;  %v10299_v12 = vld [vmem:[#allocation18 + $0x1f8] sm:$0xff] }
0x1531   : > { %v6634_v59 = vpop.f32.mrf.mxu0 }
0x1532   : > { %v10256_v59 = vld [vmem:[#allocation18 + $0xa0] sm:$0xff] }
0x1533   : > { %7592 = vmatpush.bf16.msra.mxu0 %v10256_v59  ;;  %7616 = vmatpush.bf16.msrb.mxu3 %v10274_v19  ;;  %v10268_v19 = vld [vmem:[#allocation18 + $0x100] sm:$0xff] }
0x1538   : > { %v6645_v5 = vpop.f32.mrf.mxu2 }
0x1539   : > { %v6646_v41 = vadd.f32 %v6645_v5, %v6633_v32  ;;  %v6741_v32 = vld [vmem:[#allocation8] sm:$0x3] }
0x1540   : > { %v6647_v52 = vpop.f32.mrf.mxu2 }
0x1541   : > { %v6658_v13 = vpop.f32.mrf.mxu3  ;;  %v10246_v52 = vld [vmem:[#allocation18 + $0x50] sm:$0xff] }
0x1542   : > { %v6659_v8 = vadd.f32 %v6658_v13, %v6646_v41  ;;  %7581 = vmatpush.bf16.msrb.mxu1 %v10246_v52  ;;  %v10254_v41 = vld [vmem:[#allocation18 + $0x90] sm:$0xff]  ;;  %v10279_v52 = vld [vmem:[#allocation18 + $0x158] sm:$0xff] }
0x1544   : > { %v6671_v51 = vpop.f32.mrf.mxu1 }
0x1545   : > { %v6672_v6 = vadd.f32 %v6671_v51, %v6659_v8  ;;  %v10255_v51 = vld [vmem:[#allocation18 + $0x98] sm:$0xff] }
0x1546   : > { %7593 = vmatpush.bf16.msra.mxu0 %v10255_v51  ;;  %v10289_v51 = vld [vmem:[#allocation18 + $0x1a8] sm:$0xff] }
0x1549   : > { %v6660_v60 = vpop.f32.mrf.mxu3 }
0x154a   : > { %v10245_v60 = vld [vmem:[#allocation18 + $0x48] sm:$0xff]  ;;  %7594 = vmatpush.bf16.msra.mxu0 %v10254_v41 }
0x154b   : > { %7582 = vmatpush.bf16.msrb.mxu1 %v10245_v60 }
0x154c   : > { %v6673_v24 = vpop.f32.mrf.mxu1 }
0x154d   : > { %v6684_v0 = vpop.f32.mrf.mxu0 }
0x154e   : > { %v6685_v23 = vadd.f32 %v6684_v0, %v6672_v6  ;;  %v10264_v0 = vld [vmem:[#allocation18 + $0xe0] sm:$0xff]  ;;  %7595 = vmatpush.bf16.msra.mxu0 %v10253_v21 }
0x154f   : > { %7605 = vmatpush.bf16.msrb.mxu2 %v10264_v0 }
0x1555   : > { %v6686_v35 = vpop.f32.mrf.mxu0 }
0x1556   : > { %v10244_v35 = vld [vmem:[#allocation18 + $0x40] sm:$0xff] }
0x1557   : > { %7583 = vmatpush.bf16.msrb.mxu1 %v10244_v35 }
0x155c   : > { %v6697_v45 = vpop.f32.mrf.mxu2 }
0x155d   : > { %v6698_v29 = vadd.f32 %v6697_v45, %v6685_v23  ;;  %v10263_v45 = vld [vmem:[#allocation18 + $0xd8] sm:$0xff] }
0x155e   : > { %7606 = vmatpush.bf16.msrb.mxu2 %v10263_v45  ;;  %v10287_v45 = vld [vmem:[#allocation18 + $0x198] sm:$0xff] }
0x155f   : > { %v6701_v57 = vmax.f32 %v6698_v29, 0.0  ;;  %v6745_v29 = vrot.slane %v6741_v32, 1 }
0x1561   : > { %v6702_v15 = vmin.f32 %v6701_v57, 6.0  ;;  %v6746_v57 = vrot.slane %v6741_v32, 2  ;;  %v6753_v17 = vsel %vm2926_vm15, %v6741_v32, %v6745_v29 }
0x1563   : > { %v6703_v2 = vpack.c.bf16 %v6702_v15, %v6702_v15  ;;  %v6747_v15 = vrot.slane %v6741_v32, 3 }
0x1564   : > { %v6699_v22 = vpop.f32.mrf.mxu2 }
0x1565   : > { %v6705_v56 = vrot.slane %v6703_v2, 3  ;;  %v10283_v22 = vld [vmem:[#allocation18 + $0x178] sm:$0xff]  ;;  %v6759_v7 = vsel %vm5106_vm12, %v6746_v57, %v6747_v15  ;;  %v6756_v40 = vsel %vm13695_vm2, %v6746_v57, %v6747_v15  ;;  %vm13705_vm2 = vmmov %vm13700_vm1 }
0x1566   : > { %7628 = vmatpush.bf16.msra.mxu1 %v10283_v22  ;;  %v6757_v31 = vsel %vm13696_vm10, %v6753_v17, %v6756_v40  ;;  %v10307_v15 = vld [vmem:[#allocation18 + $0x238] sm:$0xff]  ;;  %v10286_v22 = vld [vmem:[#allocation18 + $0x190] sm:$0xff]  ;;  %v10305_v40 = vld [vmem:[#allocation18 + $0x228] sm:$0xff] }
0x1567   : > { %v6708_v47 = vsel %vm2926_vm15, %v6703_v2, %v6705_v56  ;;  %v6709_v44 = vsel %vm13692_vm14, %v6703_v2, %v6705_v56  ;;  %v10273_v2 = vld [vmem:[#allocation18 + $0x128] sm:$0xff]  ;;  %v6917_v56 = vld [vmem:[#allocation8 + $0x6] sm:$0x2]  ;;  %v6775_v25 = vshrl.u32 %v6757_v31, 16  ;;  %v10295_v17 = vld [vmem:[#allocation18 + $0x1d8] sm:$0xff] }
0x1568   : > { %v6711_v43 = vrot.slane %v6709_v44, 1  ;;  %6712 = vst [vmem:[#allocation1] ss:$2 sm:$0xff] %v6708_v47  ;;  %7617 = vmatpush.bf16.msrb.mxu3 %v10273_v2  ;;  %v10276_v2 = vld [vmem:[#allocation18 + $0x140] sm:$0xff]  ;;  %vm13702_vm14 = vmmov %vm13697_vm0 }
0x1569   : > { %vm13706_vm10 = vmmov %vm13700_vm1 }
0x156a   : > { %6716 = vst [vmem:[#allocation1 + $0x10] ss:$2 sm:$0xff] %v6711_v43  ;;  %7629 = vmatpush.bf16.msra.mxu1 %v10282_v62 }
0x156f   : > { %v6713_v54 = vld [vmem:[#allocation1] sm:$0xff] }
0x1570   : > { %v6718_v37 = vshrl.u32 %v6713_v54, 16  ;;  %6794 = vst [vmem:[#allocation1] sm:$0xff] %v6791_v48  ;;  %v6721_v46 = vshll.u32 %v6713_v54, 16  ;;  %v10262_v48 = vld [vmem:[#allocation18 + $0xd0] sm:$0xff]  ;;  %v6758_v54 = vsel %vm13693_vm7, %v6741_v32, %v6745_v29  ;;  %v10288_v32 = vld [vmem:[#allocation18 + $0x1a0] sm:$0xff]  ;;  %v10297_v29 = vld [vmem:[#allocation18 + $0x1e8] sm:$0xff] }
0x1571   : > { %v6717_v26 = vld [vmem:[#allocation1 + $0x10] sm:$0xff]  ;;  %7607 = vmatpush.bf16.msrb.mxu2 %v10262_v48  ;;  %vm13703_vm7 = vmmov %vm13698_vm5 }
0x1572   : > { %v6720_v20 = vrot.slane %v6718_v37, 7  ;;  %v6724_v42 = vshrl.u32 %v6717_v26, 16  ;;  %v6727_v18 = vshll.u32 %v6717_v26, 16  ;;  %v10272_v37 = vld [vmem:[#allocation18 + $0x120] sm:$0xff]  ;;  %v10306_v48 = vld [vmem:[#allocation18 + $0x230] sm:$0xff] }
0x1573   : > { %v10252_v26 = vld [vmem:[#allocation18 + $0x80] sm:$0xff]  ;;  %7618 = vmatpush.bf16.msrb.mxu3 %v10272_v37 }
0x1574   : > { %v6723_v53 = vor.u32 %v6721_v46, %v6720_v20  ;;  %v6726_v33 = vrot.slane %v6724_v42, 7  ;;  %v6760_v42 = vsel %vm5108_vm9, %v6758_v54, %v6759_v7  ;;  %7596 = vmatpush.bf16.msra.mxu0 %v10252_v26 }
0x1576   : > { %v6729_v11 = vor.u32 %v6727_v18, %v6726_v33  ;;  %v6734_v34 = vsel %vm13157_vm8, %v6723_v53, %v6733_v49  ;;  %v10261_v49 = vld [vmem:[#allocation18 + $0xc8] sm:$0xff]  ;;  %v10271_v53 = vld [vmem:[#allocation18 + $0x118] sm:$0xff]  ;;  %v6739_v18 = vld [vmem:[#allocation8] sm:$0x1] }
0x1577   : > { %6735 = vst [vmem:[#allocation8 + $0x2] sm:$0x3] %v6734_v34  ;;  %v13247_v13 = vld [vmem:[#allocation1 + $0x1] ss:$2 sm:$0xff]  ;;  %v6762_v34 = vrot.slane %v6760_v42, 1  ;;  %7608 = vmatpush.bf16.msrb.mxu2 %v10261_v49  ;;  %7619 = vmatpush.bf16.msrb.mxu3 %v10271_v53  ;;  %v10294_v53 = vld [vmem:[#allocation18 + $0x1d0] sm:$0xff] }
0x1578   : > { %v6737_v55 = vsel %vm13157_vm8, %v6729_v11, %v6736_v1  ;;  %v10281_v33 = vld [vmem:[#allocation18 + $0x168] sm:$0xff]  ;;  %v10291_v1 = vld [vmem:[#allocation18 + $0x1b8] sm:$0xff] }
0x1579   : > { %6738 = vst [vmem:[#allocation8 + $0x4] sm:$0x3] %v6737_v55  ;;  %7630 = vmatpush.bf16.msra.mxu1 %v10281_v33  ;;  %v10260_v55 = vld [vmem:[#allocation18 + $0xc0] sm:$0xff]  ;;  %7641 = vmatpush.bf16.msrb.mxu0 %v10291_v1  ;;  %v10285_v42 = vld [vmem:[#allocation18 + $0x188] sm:$0xff] }
0x157a   : > { %v10304_v1 = vld [vmem:[#allocation18 + $0x220] sm:$0xff] }
0x157b   : > { %7609 = vmatpush.bf16.msrb.mxu2 %v10260_v55  ;;  %7620 = vmatpush.bf16.msrb.mxu3 %v10270_v14 }
0x157d   : > { %7631 = vmatpush.bf16.msra.mxu1 %v10280_v61  ;;  %7642 = vmatpush.bf16.msrb.mxu0 %v10290_v10 }
0x157e   : > { %v6792_v16 = vld [vmem:[#allocation8 + $0x2] sm:$0x2]  ;;  %v6740_v30 = vld [vmem:[#allocation8 + $0x2] sm:$0x1] }
0x157f   : > { %6798 = vst [vmem:[#allocation1 + $0x10] sm:$0xff] %v6792_v16  ;;  %v6853_v5 = vld [vmem:[#allocation8 + $0x2] sm:$0x2]  ;;  %v6780_v16 = vshll.u32 %v6762_v34, 16  ;;  %7654 = vmatpush.bf16.msra.mxu2 %v10299_v12  ;;  %v6801_v33 = vld [vmem:[#allocation8 + $0x2] sm:$0x1] }
0x1580   : > { %6856 = vst [vmem:[#allocation1] sm:$0xff] %v6853_v5  ;;  %v6854_v24 = vld [vmem:[#allocation8 + $0x4] sm:$0x2]  ;;  %v13251_v8 = vld [vmem:[#allocation8 + $0x2] sm:$0x3]  ;;  %v10269_v5 = vld [vmem:[#allocation18 + $0x108] sm:$0xff] }
0x1581   : > { %v6916_v6 = vld [vmem:[#allocation8 + $0x4] sm:$0x2]  ;;  %v6748_v47 = vrot.slane %v13251_v8, 1  ;;  %v6749_v44 = vrot.slane %v13251_v8, 2  ;;  %v6750_v43 = vrot.slane %v13251_v8, 3  ;;  %v6782_v38 = vsel %vm13083_vm6, %v6775_v25, %v6780_v16  ;;  %7632 = vmatpush.bf16.msra.mxu1 %v10279_v52  ;;  %7621 = vmatpush.bf16.msrb.mxu3 %v10269_v5  ;;  %v10303_v25 = vld [vmem:[#allocation18 + $0x218] sm:$0xff] }
0x1582   : > { %7643 = vmatpush.bf16.msrb.mxu0 %v10289_v51  ;;  %v6803_v35 = vld [vmem:[#allocation8 + $0x2] sm:$0x3]  ;;  %v6804_v57 = vld [vmem:[#allocation8 + $0x4] sm:$0x3] }
0x1583   : > { %v6770_v20 = vsel %vm13694_vm11, %v13251_v8, %v6748_v47  ;;  %v6771_v46 = vsel %vm5106_vm12, %v6749_v44, %v6750_v43  ;;  %v6765_v28 = vsel %vm2926_vm15, %v13251_v8, %v6748_v47  ;;  %v6768_v4 = vsel %vm13697_vm0, %v6749_v44, %v6750_v43  ;;  %v10298_v8 = vld [vmem:[#allocation18 + $0x1f0] sm:$0xff]  ;;  %v10296_v43 = vld [vmem:[#allocation18 + $0x1e0] sm:$0xff]  ;;  %vm13704_vm11 = vmmov %vm13698_vm5 }
0x1584   : > { %v6772_v11 = vsel %vm5108_vm9, %v6770_v20, %v6771_v46  ;;  %v6769_v50 = vsel %vm13698_vm5, %v6765_v28, %v6768_v4  ;;  %7655 = vmatpush.bf16.msra.mxu2 %v10298_v8  ;;  %v6808_v21 = vrot.slane %v6803_v35, 2  ;;  %v6809_v47 = vrot.slane %v6803_v35, 3  ;;  %v10302_v52 = vld [vmem:[#allocation18 + $0x210] sm:$0xff]  ;;  %vm13707_vm5 = vmmov %vm13697_vm0 }
0x1585   : > { %v6774_v36 = vrot.slane %v6772_v11, 1  ;;  %v6783_v60 = vshrl.u32 %v6769_v50, 16  ;;  %7622 = vmatpush.bf16.msrb.mxu3 %v10268_v19  ;;  %v6810_v62 = vrot.slane %v6804_v57, 1  ;;  %v6811_v54 = vrot.slane %v6804_v57, 2  ;;  %v6802_v11 = vld [vmem:[#allocation8 + $0x4] sm:$0x1] }
0x1586   : > { %v13249_v27 = vld [vmem:[#allocation1 + $0x11] ss:$2 sm:$0xff]  ;;  %7644 = vmatpush.bf16.msrb.mxu0 %v10288_v32  ;;  %v6812_v7 = vrot.slane %v6804_v57, 3  ;;  %v6821_v26 = vsel %vm5106_vm12, %v6808_v21, %v6809_v47  ;;  %v6818_v31 = vsel %vm13701_vm13, %v6808_v21, %v6809_v47  ;;  %v10300_v19 = vld [vmem:[#allocation18 + $0x200] sm:$0xff]  ;;  %vm13711_vm13 = vmmov %vm13705_vm2 }
0x1587   : > { %6860 = vst [vmem:[#allocation1 + $0x10] sm:$0xff] %v6854_v24  ;;  %v13253_v23 = vld [vmem:[#allocation1 + $0x1] ss:$2 sm:$0xff]  ;;  %v6788_v59 = vshll.u32 %v6774_v36, 16  ;;  %v10278_v24 = vld [vmem:[#allocation18 + $0x150] sm:$0xff]  ;;  %v6832_v20 = vsel %vm13700_vm1, %v6804_v57, %v6810_v62  ;;  %v6827_v61 = vsel %vm2926_vm15, %v6804_v57, %v6810_v62 }
0x1588   : > { %6919 = vst [vmem:[#allocation1] sm:$0xff] %v6916_v6  ;;  %7633 = vmatpush.bf16.msra.mxu1 %v10278_v24  ;;  %v10277_v6 = vld [vmem:[#allocation18 + $0x148] sm:$0xff]  ;;  %7656 = vmatpush.bf16.msra.mxu2 %v10297_v29  ;;  %v6833_v46 = vsel %vm5106_vm12, %v6811_v54, %v6812_v7 }
0x1589   : > { %v6790_v41 = vsel %vm13083_vm6, %v6783_v60, %v6788_v59  ;;  %v10293_v36 = vld [vmem:[#allocation18 + $0x1c8] sm:$0xff]  ;;  %v10292_v59 = vld [vmem:[#allocation18 + $0x1c0] sm:$0xff]  ;;  %v6867_v60 = vld [vmem:[#allocation8 + $0x6] sm:$0x3] }
0x158a   : > { %7645 = vmatpush.bf16.msrb.mxu0 %v10287_v45  ;;  %v10301_v24 = vld [vmem:[#allocation18 + $0x208] sm:$0xff]  ;;  %v6873_v32 = vrot.slane %v6867_v60, 1  ;;  %v6875_v8 = vrot.slane %v6867_v60, 3 }
0x158c   : > { %7634 = vmatpush.bf16.msra.mxu1 %v10277_v6  ;;  %7657 = vmatpush.bf16.msra.mxu2 %v10296_v43  ;;  %v6895_v57 = vsel %vm13705_vm2, %v6867_v60, %v6873_v32  ;;  %v6890_v47 = vsel %vm2926_vm15, %v6867_v60, %v6873_v32  ;;  %v6864_v43 = vld [vmem:[#allocation8 + $0x4] sm:$0x1] }
0x158e   : > { %v13258_v3 = vld [vmem:[#allocation1 + $0x11] ss:$2 sm:$0xff]  ;;  %7646 = vmatpush.bf16.msrb.mxu0 %v10286_v22 }
0x158f   : > { %6923 = vst [vmem:[#allocation1 + $0x10] sm:$0xff] %v6917_v56  ;;  %v13269_v9 = vld [vmem:[#allocation1 + $0x1] ss:$2 sm:$0xff]  ;;  %v6807_v56 = vrot.slane %v6803_v35, 1 }
0x1590   : > { %7635 = vmatpush.bf16.msra.mxu1 %v10276_v2  ;;  %7658 = vmatpush.bf16.msra.mxu2 %v10295_v17 }
0x1591   : > { %v6820_v37 = vsel %vm13699_vm3, %v6803_v35, %v6807_v56  ;;  %v6815_v34 = vsel %vm2926_vm15, %v6803_v35, %v6807_v56  ;;  %vm13708_vm3 = vmmov %vm13703_vm7 }
0x1592   : > { %v6822_v49 = vsel %vm5108_vm9, %v6820_v37, %v6821_v26  ;;  %7647 = vmatpush.bf16.msrb.mxu0 %v10285_v42  ;;  %v6819_v10 = vsel %vm13703_vm7, %v6815_v34, %v6818_v31  ;;  %vm13709_vm1 = vmmov %vm13708_vm3 }
0x1593   : > { %v6824_v55 = vrot.slane %v6822_v49, 1  ;;  %v6837_v50 = vshrl.u32 %v6819_v10, 16  ;;  %vm13714_vm7 = vmmov %vm13697_vm0 }
0x1594   : > { %7659 = vmatpush.bf16.msra.mxu2 %v10294_v53 }
0x1595   : > { %v6842_v4 = vshll.u32 %v6824_v55, 16 }
0x1596   : > { %v13271_v39 = vld [vmem:[#allocation1 + $0x11] ss:$2 sm:$0xff] }
0x1597   : > { %6927 = vst [vmem:[#allocation1] ss:$9 sm:$0xff] %v6739_v18  ;;  %v6844_v51 = vsel %vm13083_vm6, %v6837_v50, %v6842_v4 }
0x1598   : > { %6930 = vst [vmem:[#allocation1 + $0x1] ss:$9 sm:$0xff] %v6740_v30  ;;  %v6830_v30 = vsel %vm13702_vm14, %v6811_v54, %v6812_v7  ;;  %7660 = vmatpush.bf16.msra.mxu2 %v10293_v36  ;;  %vm13713_vm14 = vmmov %vm13705_vm2 }
0x1599   : > { %v6831_v28 = vsel %vm13704_vm11, %v6827_v61, %v6830_v30  ;;  %vm13715_vm11 = vmmov %vm13709_vm1 }
0x159a   : > { %v6845_v5 = vshrl.u32 %v6831_v28, 16 }
0x159c   : > { %7661 = vmatpush.bf16.msra.mxu2 %v10292_v59 }
0x159f   : > { %v6931_v0 = vld [vmem:[#allocation1] sm:$0xff] }
0x15a0   : > { %7571 = vmatmul.bf16.vlgmr.msra.gmra.mxu3 %v6931_v0  ;;  %6934 = vst [vmem:[#allocation1] ss:$9 sm:$0xff] %v6782_v38  ;;  %v6866_v0 = vld [vmem:[#allocation8 + $0x4] sm:$0x3] }
0x15a1   : > { %6937 = vst [vmem:[#allocation1 + $0x1] ss:$9 sm:$0xff] %v6790_v41  ;;  %7667 = vmatpush.bf16.msra.mxu3 %v10307_v15  ;;  %v6874_v41 = vrot.slane %v6867_v60, 2  ;;  %v6870_v35 = vrot.slane %v6866_v0, 1  ;;  %v6871_v6 = vrot.slane %v6866_v0, 2  ;;  %v6872_v45 = vrot.slane %v6866_v0, 3 }
0x15a3   : > { %v6896_v15 = vsel %vm5106_vm12, %v6874_v41, %v6875_v8  ;;  %v6883_v2 = vsel %vm13706_vm10, %v6866_v0, %v6870_v35  ;;  %v6884_v22 = vsel %vm5106_vm12, %v6871_v6, %v6872_v45  ;;  %v6878_v62 = vsel %vm2926_vm15, %v6866_v0, %v6870_v35  ;;  %v10315_v35 = vld [vmem:[#allocation19 + $0x38] sm:$0xff]  ;;  %vm13717_vm10 = vmmov %vm13709_vm1 }
0x15a4   : > { %v6897_v56 = vsel %vm5108_vm9, %v6895_v57, %v6896_v15  ;;  %v6885_v21 = vsel %vm5108_vm9, %v6883_v2, %v6884_v22  ;;  %v6881_v54 = vsel %vm13707_vm5, %v6871_v6, %v6872_v45  ;;  %v10314_v57 = vld [vmem:[#allocation19 + $0x30] sm:$0xff]  ;;  %v7770_v15 = vld [vmem:[#allocation9] sm:$0x2]  ;;  %v10313_v2 = vld [vmem:[#allocation19 + $0x28] sm:$0xff] }
0x15a5   : > { %7668 = vmatpush.bf16.msra.mxu3 %v10306_v48  ;;  %v6887_v7 = vrot.slane %v6885_v21, 1  ;;  %v6882_v26 = vsel %vm13709_vm1, %v6878_v62, %v6881_v54  ;;  %v7712_v62 = vld [vmem:[#allocation9 + $0x2] sm:$0x3] }
0x15a6   : > { %v6900_v17 = vshrl.u32 %v6882_v26, 16  ;;  %v7715_v26 = vld [vmem:[#allocation9 + $0x4] sm:$0x3] }
0x15a7   : > { %v6905_v42 = vshll.u32 %v6887_v7, 16 }
0x15a8   : > { %v6938_v44 = vld [vmem:[#allocation1] sm:$0xff] }
0x15a9   : > { %7584 = vmatmul.bf16.vlgmr.msrb.gmra.mxu1 %v6938_v44  ;;  %6940 = vst [vmem:[#allocation1] ss:$9 sm:$0xff] %v13247_v13  ;;  %v6834_v13 = vsel %vm5108_vm9, %v6832_v20, %v6833_v46  ;;  %7669 = vmatpush.bf16.msra.mxu3 %v10305_v40  ;;  %v6893_v44 = vsel %vm13697_vm0, %v6874_v41, %v6875_v8 }
0x15aa   : > { %6942 = vst [vmem:[#allocation1 + $0x1] ss:$9 sm:$0xff] %v13249_v27  ;;  %v10284_v27 = vld [vmem:[#allocation18 + $0x180] sm:$0xff]  ;;  %v6836_v14 = vrot.slane %v6834_v13, 1  ;;  %v6894_v37 = vsel %vm13708_vm3, %v6890_v47, %v6893_v44  ;;  %v6907_v49 = vsel %vm13083_vm6, %v6900_v17, %v6905_v42  ;;  %8542 = vmatpush.bf16.msrb.mxu1 %v10315_v35  ;;  %v10311_v42 = vld [vmem:[#allocation19 + $0x18] sm:$0xff]  ;;  %v10321_v17 = vld [vmem:[#allocation19 + $0x68] sm:$0xff] }
0x15ab   : > { %7648 = vmatpush.bf16.msrb.mxu0 %v10284_v27  ;;  %v6908_v20 = vshrl.u32 %v6894_v37, 16 }
0x15ac   : > { %v6850_v16 = vshll.u32 %v6836_v14, 16 }
0x15ad   : > { %7670 = vmatpush.bf16.msra.mxu3 %v10304_v1 }
0x15ae   : > { %v6852_v12 = vsel %vm13083_vm6, %v6845_v5, %v6850_v16  ;;  %8543 = vmatpush.bf16.msrb.mxu1 %v10314_v57  ;;  %v10334_v57 = vld [vmem:[#allocation19 + $0xd0] sm:$0xff] }
0x15b1   : > { %v6943_v18 = vld [vmem:[#allocation1] sm:$0xff]  ;;  %7671 = vmatpush.bf16.msra.mxu3 %v10303_v25 }
0x15b2   : > { %7597 = vmatmul.bf16.vlgmr.msra.gmra.mxu0 %v6943_v18  ;;  %6946 = vst [vmem:[#allocation1] ss:$9 sm:$0xff] %v6801_v33  ;;  %8544 = vmatpush.bf16.msrb.mxu1 %v10313_v2 }
0x15b3   : > { %6949 = vst [vmem:[#allocation1 + $0x1] ss:$9 sm:$0xff] %v6802_v11 }
0x15b5   : > { %7672 = vmatpush.bf16.msra.mxu3 %v10302_v52 }
0x15b9   : > { %7673 = vmatpush.bf16.msra.mxu3 %v10301_v24 }
0x15ba   : > { %v6950_v38 = vld [vmem:[#allocation1] sm:$0xff] }
0x15bb   : > { %7610 = vmatmul.bf16.vlgmr.msrb.gmra.mxu2 %v6950_v38  ;;  %6953 = vst [vmem:[#allocation1] ss:$9 sm:$0xff] %v6844_v51 }
0x15bc   : > { %6956 = vst [vmem:[#allocation1 + $0x1] ss:$9 sm:$0xff] %v6852_v12 }
0x15bd   : > { %7674 = vmatpush.bf16.msra.mxu3 %v10300_v19 }
0x15c3   : > { %v6957_v29 = vld [vmem:[#allocation1] sm:$0xff] }
0x15c4   : > { %7623 = vmatmul.bf16.vlgmr.msrb.gmra.mxu3 %v6957_v29  ;;  %6959 = vst [vmem:[#allocation1] ss:$9 sm:$0xff] %v13253_v23  ;;  %v6865_v23 = vld [vmem:[#allocation8 + $0x6] sm:$0x1] }
0x15c5   : > { %6961 = vst [vmem:[#allocation1 + $0x1] ss:$9 sm:$0xff] %v13258_v3  ;;  %v6899_v3 = vrot.slane %v6897_v56, 1  ;;  %v10323_v56 = vld [vmem:[#allocation19 + $0x78] sm:$0xff] }
0x15c6   : > { %8555 = vmatpush.bf16.msra.mxu0 %v10323_v56  ;;  %v10344_v56 = vld [vmem:[#allocation19 + $0x120] sm:$0xff] }
0x15c7   : > { %v6913_v46 = vshll.u32 %v6899_v3, 16  ;;  %v10312_v3 = vld [vmem:[#allocation19 + $0x20] sm:$0xff] }
0x15c8   : > { %8545 = vmatpush.bf16.msrb.mxu1 %v10312_v3 }
0x15c9   : > { %v6915_v40 = vsel %vm13083_vm6, %v6908_v20, %v6913_v46 }
0x15cc   : > { %v6962_v48 = vld [vmem:[#allocation1] sm:$0xff]  ;;  %8546 = vmatpush.bf16.msrb.mxu1 %v10311_v42 }
0x15cd   : > { %7636 = vmatmul.bf16.vlgmr.msra.gmra.mxu1 %v6962_v48  ;;  %6965 = vst [vmem:[#allocation1] ss:$9 sm:$0xff] %v6864_v43  ;;  %v10322_v48 = vld [vmem:[#allocation19 + $0x70] sm:$0xff] }
0x15ce   : > { %6968 = vst [vmem:[#allocation1 + $0x1] ss:$9 sm:$0xff] %v6865_v23  ;;  %8556 = vmatpush.bf16.msra.mxu0 %v10322_v48  ;;  %v10333_v48 = vld [vmem:[#allocation19 + $0xc8] sm:$0xff] }
0x15d2   : > { %8557 = vmatpush.bf16.msra.mxu0 %v10321_v17 }
0x15d5   : > { %v6969_v13 = vld [vmem:[#allocation1] sm:$0xff] }
0x15d6   : > { %7649 = vmatmul.bf16.vlgmr.msrb.gmra.mxu0 %v6969_v13  ;;  %6972 = vst [vmem:[#allocation1] ss:$9 sm:$0xff] %v6907_v49  ;;  %v10310_v13 = vld [vmem:[#allocation19 + $0x10] sm:$0xff] }
0x15d7   : > { %6975 = vst [vmem:[#allocation1 + $0x1] ss:$9 sm:$0xff] %v6915_v40  ;;  %v10331_v40 = vld [vmem:[#allocation19 + $0xb8] sm:$0xff]  ;;  %8547 = vmatpush.bf16.msrb.mxu1 %v10310_v13 }
0x15d8   : > { %8568 = vmatpush.bf16.msrb.mxu2 %v10331_v40  ;;  %v10332_v40 = vld [vmem:[#allocation19 + $0xc0] sm:$0xff] }
0x15de   : > { %v6976_v27 = vld [vmem:[#allocation1] sm:$0xff] }
0x15df   : > { %7662 = vmatmul.bf16.vlgmr.msra.gmra.mxu2 %v6976_v27  ;;  %6978 = vst [vmem:[#allocation1] ss:$9 sm:$0xff] %v13269_v9  ;;  %v10832_v9 = vld [vmem:[%s13710_s22] ss:$0 sm:$0xff]  ;;  %v10330_v27 = vld [vmem:[#allocation19 + $0xb0] sm:$0xff]  ;;  %s11062_s22 = scalar_lea.hbm %s11061_s3, 1 }
0x15e0   : > { %6980 = vst [vmem:[#allocation1 + $0x1] ss:$9 sm:$0xff] %v13271_v39  ;;  %8569 = vmatpush.bf16.msrb.mxu2 %v10330_v27  ;;  %v10342_v27 = vld [vmem:[#allocation19 + $0x110] sm:$0xff]  ;;  %p11063_p1 = scmp.ne.s32.totalorder %s11061_s3, %s11062_s22  ;;  %p11068_p7 = scmp.lt.s32.totalorder %s11066_s2, %s11062_s22 }
0x15e2   : > { %p11064_p3 = pnand %p11063_p1, %p11416_p4  ;;  %p11069_p8 = por %p11068_p7, %p11067_p12 }
0x15e4   : > { %p11065_p5 = pneg %p11064_p3 }
0x15e6   : > { %p11070_p9 = pnand %p11069_p8, %p11065_p5 }
0x15e7   : > { %v6981_v53 = vld [vmem:[#allocation1] sm:$0xff] }
0x15e8   : > { %7675 = vmatmul.bf16.vlgmr.msra.gmra.mxu3 %v6981_v53  ;;  %v10320_v53 = vld [vmem:[#allocation19 + $0x60] sm:$0xff] }
0x15e9   : > { %8558 = vmatpush.bf16.msra.mxu0 %v10320_v53  ;;  %v10362_v53 = vld [vmem:[#allocation19 + $0x1b0] sm:$0xff] }
0x1623   : > { %v7572_v33 = vpop.f32.mrf.mxu3 }
0x1624   : > { %v7573_v39 = vadd.f32 %v10832_v9, %v7572_v33  ;;  %v10339_v33 = vld [vmem:[#allocation19 + $0xf8] sm:$0xff]  ;;  %v10317_v9 = vld [vmem:[#allocation19 + $0x48] sm:$0xff] }
0x1625   : > { %8581 = vmatpush.bf16.msrb.mxu3 %v10339_v33 }
0x1626   : > { %v7585_v18 = vpop.f32.mrf.mxu1 }
0x1627   : > { %v7586_v25 = vadd.f32 %v7585_v18, %v7573_v39  ;;  %v10338_v18 = vld [vmem:[#allocation19 + $0xf0] sm:$0xff] }
0x1629   : > { %8582 = vmatpush.bf16.msrb.mxu3 %v10338_v18 }
0x162b   : > { %v7574_v1 = vpop.f32.mrf.mxu3 }
0x162c   : > { %v10309_v1 = vld [vmem:[#allocation19 + $0x8] sm:$0xff] }
0x162d   : > { %8548 = vmatpush.bf16.msrb.mxu1 %v10309_v1 }
0x162e   : > { %v7587_v11 = vpop.f32.mrf.mxu1 }
0x162f   : > { %v7598_v34 = vpop.f32.mrf.mxu0  ;;  %v10329_v11 = vld [vmem:[#allocation19 + $0xa8] sm:$0xff] }
0x1630   : > { %v7599_v16 = vadd.f32 %v7598_v34, %v7586_v25  ;;  %v10319_v34 = vld [vmem:[#allocation19 + $0x58] sm:$0xff]  ;;  %8570 = vmatpush.bf16.msrb.mxu2 %v10329_v11  ;;  %v10336_v25 = vld [vmem:[#allocation19 + $0xe0] sm:$0xff] }
0x1631   : > { %8559 = vmatpush.bf16.msra.mxu0 %v10319_v34  ;;  %8549 = vmatpush.bf16.msrb.mxu1 %v10308_v63 }
0x1637   : > { %v7600_v31 = vpop.f32.mrf.mxu0 }
0x163e   : > { %v7611_v55 = vpop.f32.mrf.mxu2 }
0x163f   : > { %v7612_v50 = vadd.f32 %v7611_v55, %v7599_v16  ;;  %v10328_v55 = vld [vmem:[#allocation19 + $0xa0] sm:$0xff]  ;;  %v10346_v16 = vld [vmem:[#allocation19 + $0x130] sm:$0xff] }
0x1640   : > { %8571 = vmatpush.bf16.msrb.mxu2 %v10328_v55  ;;  %v10341_v55 = vld [vmem:[#allocation19 + $0x108] sm:$0xff] }
0x1646   : > { %v7613_v61 = vpop.f32.mrf.mxu2 }
0x1647   : > { %v7624_v30 = vpop.f32.mrf.mxu3 }
0x1648   : > { %v7625_v59 = vadd.f32 %v7624_v30, %v7612_v50  ;;  %v10318_v30 = vld [vmem:[#allocation19 + $0x50] sm:$0xff]  ;;  %v7720_v50 = vld [vmem:[#allocation9] sm:$0x3] }
0x1649   : > { %8560 = vmatpush.bf16.msra.mxu0 %v10318_v30  ;;  %v10361_v30 = vld [vmem:[#allocation19 + $0x1a8] sm:$0xff] }
0x164a   : > { %v7637_v14 = vpop.f32.mrf.mxu1 }
0x164b   : > { %v7638_v52 = vadd.f32 %v7637_v14, %v7625_v59  ;;  %v10326_v59 = vld [vmem:[#allocation19 + $0x90] sm:$0xff] }
0x164d   : > { %8561 = vmatpush.bf16.msra.mxu0 %v10317_v9  ;;  %v10350_v9 = vld [vmem:[#allocation19 + $0x150] sm:$0xff] }
0x164f   : > { %v7626_v10 = vpop.f32.mrf.mxu3 }
0x1650   : > { %v10327_v10 = vld [vmem:[#allocation19 + $0x98] sm:$0xff] }
0x1651   : > { %8572 = vmatpush.bf16.msrb.mxu2 %v10327_v10 }
0x1652   : > { %v7639_v28 = vpop.f32.mrf.mxu1 }
0x1653   : > { %v7650_v4 = vpop.f32.mrf.mxu0  ;;  %v10337_v28 = vld [vmem:[#allocation19 + $0xe8] sm:$0xff] }
0x1654   : > { %v7651_v51 = vadd.f32 %v7650_v4, %v7638_v52  ;;  %v10347_v4 = vld [vmem:[#allocation19 + $0x138] sm:$0xff]  ;;  %8583 = vmatpush.bf16.msrb.mxu3 %v10337_v28  ;;  %v10316_v52 = vld [vmem:[#allocation19 + $0x40] sm:$0xff] }
0x1655   : > { %8594 = vmatpush.bf16.msra.mxu1 %v10347_v4  ;;  %8573 = vmatpush.bf16.msrb.mxu2 %v10326_v59  ;;  %v10371_v28 = vld [vmem:[#allocation19 + $0x1f8] sm:$0xff]  ;;  %v10370_v59 = vld [vmem:[#allocation19 + $0x1f0] sm:$0xff] }
0x1656   : > { %8562 = vmatpush.bf16.msra.mxu0 %v10316_v52  ;;  %v10349_v52 = vld [vmem:[#allocation19 + $0x148] sm:$0xff] }
0x1658   : > { %8584 = vmatpush.bf16.msrb.mxu3 %v10336_v25  ;;  %v10340_v25 = vld [vmem:[#allocation19 + $0x100] sm:$0xff] }
0x1659   : > { %8595 = vmatpush.bf16.msra.mxu1 %v10346_v16  ;;  %v10360_v16 = vld [vmem:[#allocation19 + $0x1a0] sm:$0xff] }
0x165b   : > { %v7652_v36 = vpop.f32.mrf.mxu0 }
0x1662   : > { %v7663_v5 = vpop.f32.mrf.mxu2 }
0x1663   : > { %v7664_v38 = vadd.f32 %v7663_v5, %v7651_v51 }
0x166a   : > { %v7665_v12 = vpop.f32.mrf.mxu2 }
0x166b   : > { %v7676_v60 = vpop.f32.mrf.mxu3  ;;  %v10335_v12 = vld [vmem:[#allocation19 + $0xd8] sm:$0xff] }
0x166c   : > { %v7677_v24 = vadd.f32 %v7676_v60, %v7664_v38  ;;  %v7724_v60 = vrot.slane %v7720_v50, 1  ;;  %8585 = vmatpush.bf16.msrb.mxu3 %v10335_v12  ;;  %v10369_v12 = vld [vmem:[#allocation19 + $0x1e8] sm:$0xff] }
0x166e   : > { %v7680_v0 = vmax.f32 %v7677_v24, 0.0  ;;  %v7725_v24 = vrot.slane %v7720_v50, 2 }
0x1670   : > { %v7681_v19 = vmin.f32 %v7680_v0, 6.0  ;;  %v7726_v0 = vrot.slane %v7720_v50, 3  ;;  %8586 = vmatpush.bf16.msrb.mxu3 %v10334_v57 }
0x1672   : > { %v7682_v32 = vpack.c.bf16 %v7681_v19, %v7681_v19  ;;  %v10345_v19 = vld [vmem:[#allocation19 + $0x128] sm:$0xff]  ;;  %v7735_v3 = vsel %vm13714_vm7, %v7725_v24, %v7726_v0 }
0x1673   : > { %v7678_v41 = vpop.f32.mrf.mxu3  ;;  %8596 = vmatpush.bf16.msra.mxu1 %v10345_v19  ;;  %v10358_v19 = vld [vmem:[#allocation19 + $0x190] sm:$0xff] }
0x1674   : > { %v7684_v8 = vrot.slane %v7682_v32, 3  ;;  %v7896_v41 = vld [vmem:[#allocation9 + $0x6] sm:$0x2]  ;;  %8587 = vmatpush.bf16.msrb.mxu3 %v10333_v48  ;;  %v10366_v48 = vld [vmem:[#allocation19 + $0x1d0] sm:$0xff] }
0x1676   : > { %v7687_v6 = vsel %vm2926_vm15, %v7682_v32, %v7684_v8  ;;  %v7688_v45 = vsel %vm13711_vm13, %v7682_v32, %v7684_v8  ;;  %v10355_v32 = vld [vmem:[#allocation19 + $0x178] sm:$0xff]  ;;  %v10325_v8 = vld [vmem:[#allocation19 + $0x88] sm:$0xff]  ;;  %vm13722_vm13 = vmmov %vm13717_vm10 }
0x1677   : > { %v7690_v29 = vrot.slane %v7688_v45, 1  ;;  %7691 = vst [vmem:[#allocation1] ss:$2 sm:$0xff] %v7687_v6  ;;  %8607 = vmatpush.bf16.msrb.mxu0 %v10355_v32  ;;  %8574 = vmatpush.bf16.msrb.mxu2 %v10325_v8 }
0x1678   : > { %8597 = vmatpush.bf16.msra.mxu1 %v10344_v56  ;;  %8588 = vmatpush.bf16.msrb.mxu3 %v10332_v40 }
0x1679   : > { %7695 = vst [vmem:[#allocation1 + $0x10] ss:$2 sm:$0xff] %v7690_v29 }
0x167c   : > { %8633 = vmatpush.bf16.msra.mxu3 %v10371_v28  ;;  %v7846_v28 = vld [vmem:[#allocation9 + $0x6] sm:$0x3] }
0x167e   : > { %v7692_v22 = vld [vmem:[#allocation1] sm:$0xff] }
0x167f   : > { %v7697_v21 = vshrl.u32 %v7692_v22, 16  ;;  %7773 = vst [vmem:[#allocation1] sm:$0xff] %v7770_v15  ;;  %v7700_v23 = vshll.u32 %v7692_v22, 16  ;;  %v10354_v15 = vld [vmem:[#allocation19 + $0x170] sm:$0xff]  ;;  %v7738_v22 = vsel %vm5106_vm12, %v7725_v24, %v7726_v0  ;;  %v10379_v24 = vld [vmem:[#allocation19 + $0x238] sm:$0xff]  ;;  %v10348_v0 = vld [vmem:[#allocation19 + $0x140] sm:$0xff] }
0x1680   : > { %v7696_v47 = vld [vmem:[#allocation1 + $0x10] sm:$0xff]  ;;  %8608 = vmatpush.bf16.msrb.mxu0 %v10354_v15  ;;  %8634 = vmatpush.bf16.msra.mxu3 %v10370_v59 }
0x1681   : > { %v7699_v44 = vrot.slane %v7697_v21, 7  ;;  %v7703_v43 = vshrl.u32 %v7696_v47, 16  ;;  %v7706_v37 = vshll.u32 %v7696_v47, 16  ;;  %v10324_v21 = vld [vmem:[#allocation19 + $0x80] sm:$0xff] }
0x1682   : > { %8575 = vmatpush.bf16.msrb.mxu2 %v10324_v21 }
0x1683   : > { %v7702_v54 = vor.u32 %v7700_v23, %v7699_v44  ;;  %v7705_v7 = vrot.slane %v7703_v43, 7  ;;  %v7732_v43 = vsel %vm2926_vm15, %v7720_v50, %v7724_v60 }
0x1684   : > { %v7736_v17 = vsel %vm13715_vm11, %v7732_v43, %v7735_v3  ;;  %8635 = vmatpush.bf16.msra.mxu3 %v10369_v12  ;;  %v10377_v43 = vld [vmem:[#allocation19 + $0x228] sm:$0xff] }
0x1685   : > { %v7708_v20 = vor.u32 %v7706_v37, %v7705_v7  ;;  %v7713_v46 = vsel %vm13157_vm8, %v7702_v54, %v7712_v62  ;;  %v10343_v62 = vld [vmem:[#allocation19 + $0x118] sm:$0xff]  ;;  %v10353_v54 = vld [vmem:[#allocation19 + $0x168] sm:$0xff]  ;;  %v7754_v11 = vshrl.u32 %v7736_v17, 16 }
0x1686   : > { %7714 = vst [vmem:[#allocation9 + $0x2] sm:$0x3] %v7713_v46  ;;  %v13329_v14 = vld [vmem:[#allocation1 + $0x1] ss:$2 sm:$0xff]  ;;  %v7718_v7 = vld [vmem:[#allocation9] sm:$0x1]  ;;  %8609 = vmatpush.bf16.msrb.mxu0 %v10353_v54  ;;  %8598 = vmatpush.bf16.msra.mxu1 %v10343_v62 }
0x1687   : > { %v7716_v49 = vsel %vm13157_vm8, %v7708_v20, %v7715_v26  ;;  %vm13712_vm8 = vmmov %vm13705_vm2  ;;  %v10363_v37 = vld [vmem:[#allocation19 + $0x1b8] sm:$0xff] }
0x1688   : > { %7717 = vst [vmem:[#allocation9 + $0x4] sm:$0x3] %v7716_v49  ;;  %v7737_v2 = vsel %vm13712_vm8, %v7720_v50, %v7724_v60  ;;  %v10352_v49 = vld [vmem:[#allocation19 + $0x160] sm:$0xff]  ;;  %8620 = vmatpush.bf16.msra.mxu2 %v10363_v37  ;;  %vm13716_vm2 = vmmov %vm13697_vm0 }
0x1689   : > { %v7739_v23 = vsel %vm5108_vm9, %v7737_v2, %v7738_v22  ;;  %vm13718_vm0 = vmmov %vm13712_vm8 }
0x168a   : > { %v7741_v20 = vrot.slane %v7739_v23, 1  ;;  %8610 = vmatpush.bf16.msrb.mxu0 %v10352_v49  ;;  %8599 = vmatpush.bf16.msra.mxu1 %v10342_v27  ;;  %vm13719_vm5 = vmmov %vm13718_vm0  ;;  %v10367_v23 = vld [vmem:[#allocation19 + $0x1d8] sm:$0xff] }
0x168b   : > { %vm13720_vm3 = vmmov %vm13716_vm2 }
0x168c   : > { %v7759_v34 = vshll.u32 %v7741_v20, 16  ;;  %8621 = vmatpush.bf16.msra.mxu2 %v10362_v53  ;;  %vm13721_vm1 = vmmov %vm13716_vm2 }
0x168d   : > { %v7771_v31 = vld [vmem:[#allocation9 + $0x2] sm:$0x2]  ;;  %v7719_v13 = vld [vmem:[#allocation9 + $0x2] sm:$0x1]  ;;  %vm13723_vm8 = vmmov %vm13717_vm10 }
0x168e   : > { %7777 = vst [vmem:[#allocation1 + $0x10] sm:$0xff] %v7771_v31  ;;  %v7832_v61 = vld [vmem:[#allocation9 + $0x2] sm:$0x2]  ;;  %v7761_v10 = vsel %vm13083_vm6, %v7754_v11, %v7759_v34  ;;  %8600 = vmatpush.bf16.msra.mxu1 %v10341_v55  ;;  %v7780_v62 = vld [vmem:[#allocation9 + $0x2] sm:$0x1]  ;;  %v10374_v55 = vld [vmem:[#allocation19 + $0x210] sm:$0xff] }
0x168f   : > { %7835 = vst [vmem:[#allocation1] sm:$0xff] %v7832_v61  ;;  %v7833_v36 = vld [vmem:[#allocation9 + $0x4] sm:$0x2]  ;;  %v13333_v5 = vld [vmem:[#allocation9 + $0x2] sm:$0x3]  ;;  %vm13725_vm7 = vmmov %vm13718_vm0 }
0x1690   : > { %v7895_v51 = vld [vmem:[#allocation9 + $0x4] sm:$0x2]  ;;  %v7727_v35 = vrot.slane %v13333_v5, 1  ;;  %v7728_v6 = vrot.slane %v13333_v5, 2  ;;  %v7729_v45 = vrot.slane %v13333_v5, 3  ;;  %8622 = vmatpush.bf16.msra.mxu2 %v10361_v30  ;;  %vm13726_vm11 = vmmov %vm13721_vm1 }
0x1691   : > { %v10351_v61 = vld [vmem:[#allocation19 + $0x158] sm:$0xff] }
0x1692   : > { %v7749_v47 = vsel %vm13713_vm14, %v13333_v5, %v7727_v35  ;;  %v7750_v44 = vsel %vm5106_vm12, %v7728_v6, %v7729_v45  ;;  %v7744_v33 = vsel %vm2926_vm15, %v13333_v5, %v7727_v35  ;;  %v7747_v18 = vsel %vm13716_vm2, %v7728_v6, %v7729_v45  ;;  %8611 = vmatpush.bf16.msrb.mxu0 %v10351_v61  ;;  %v7782_v5 = vld [vmem:[#allocation9 + $0x2] sm:$0x3]  ;;  %v7783_v60 = vld [vmem:[#allocation9 + $0x4] sm:$0x3]  ;;  %v10368_v6 = vld [vmem:[#allocation19 + $0x1e0] sm:$0xff] }
0x1693   : > { %v7751_v26 = vsel %vm5108_vm9, %v7749_v47, %v7750_v44  ;;  %v7748_v31 = vsel %vm13717_vm10, %v7744_v33, %v7747_v18  ;;  %8601 = vmatpush.bf16.msra.mxu1 %v10340_v25  ;;  %v7786_v32 = vrot.slane %v7782_v5, 1  ;;  %v7788_v8 = vrot.slane %v7782_v5, 3  ;;  %v10378_v45 = vld [vmem:[#allocation19 + $0x230] sm:$0xff]  ;;  %8636 = vmatpush.bf16.msra.mxu3 %v10368_v6  ;;  %v10357_v44 = vld [vmem:[#allocation19 + $0x188] sm:$0xff]  ;;  %v7781_v37 = vld [vmem:[#allocation9 + $0x4] sm:$0x1] }
0x1694   : > { %v7753_v1 = vrot.slane %v7751_v26, 1  ;;  %v7762_v4 = vshrl.u32 %v7748_v31, 16  ;;  %8623 = vmatpush.bf16.msra.mxu2 %v10360_v16  ;;  %v7789_v57 = vrot.slane %v7783_v60, 1  ;;  %v7790_v15 = vrot.slane %v7783_v60, 2  ;;  %v10365_v18 = vld [vmem:[#allocation19 + $0x1c8] sm:$0xff]  ;;  %v10364_v31 = vld [vmem:[#allocation19 + $0x1c0] sm:$0xff]  ;;  %vm13724_vm14 = vmmov %vm13718_vm0 }
0x1695   : > { %v13331_v39 = vld [vmem:[#allocation1 + $0x11] ss:$2 sm:$0xff]  ;;  %v7791_v2 = vrot.slane %v7783_v60, 3  ;;  %v7799_v22 = vsel %vm13718_vm0, %v7782_v5, %v7786_v32  ;;  %v7794_v26 = vsel %vm2926_vm15, %v7782_v5, %v7786_v32  ;;  %v7852_v25 = vrot.slane %v7846_v28, 1  ;;  %vm13727_vm2 = vmmov %vm13721_vm1 }
0x1696   : > { %7839 = vst [vmem:[#allocation1 + $0x10] sm:$0xff] %v7833_v36  ;;  %v13335_v38 = vld [vmem:[#allocation1 + $0x1] ss:$2 sm:$0xff]  ;;  %v7767_v63 = vshll.u32 %v7753_v1, 16  ;;  %8612 = vmatpush.bf16.msrb.mxu0 %v10350_v9  ;;  %v7811_v21 = vsel %vm13719_vm5, %v7783_v60, %v7789_v57  ;;  %v7806_v40 = vsel %vm2926_vm15, %v7783_v60, %v7789_v57  ;;  %v10375_v1 = vld [vmem:[#allocation19 + $0x218] sm:$0xff]  ;;  %v7853_v16 = vrot.slane %v7846_v28, 2  ;;  %vm13728_vm10 = vmmov %vm13723_vm8 }
0x1697   : > { %7898 = vst [vmem:[#allocation1] sm:$0xff] %v7895_v51  ;;  %v10359_v51 = vld [vmem:[#allocation19 + $0x198] sm:$0xff]  ;;  %v7812_v47 = vsel %vm5106_vm12, %v7790_v15, %v7791_v2  ;;  %8637 = vmatpush.bf16.msra.mxu3 %v10367_v23  ;;  %v7809_v49 = vsel %vm13721_vm1, %v7790_v15, %v7791_v2  ;;  %v7874_v12 = vsel %vm13724_vm14, %v7846_v28, %v7852_v25 }
0x1698   : > { %v7769_v50 = vsel %vm13083_vm6, %v7762_v4, %v7767_v63  ;;  %8624 = vmatpush.bf16.msra.mxu2 %v10359_v51  ;;  %v7810_v53 = vsel %vm13723_vm8, %v7806_v40, %v7809_v49  ;;  %v10373_v4 = vld [vmem:[#allocation19 + $0x208] sm:$0xff]  ;;  %v7845_v9 = vld [vmem:[#allocation9 + $0x4] sm:$0x3] }
0x1699   : > { %v7824_v63 = vshrl.u32 %v7810_v53, 16  ;;  %v7849_v59 = vrot.slane %v7845_v9, 1  ;;  %v10385_v49 = vld [vmem:[#allocation21 + $0x28] sm:$0xff]  ;;  %v10383_v53 = vld [vmem:[#allocation21 + $0x18] sm:$0xff] }
0x169a   : > { %8613 = vmatpush.bf16.msrb.mxu0 %v10349_v52  ;;  %v7851_v52 = vrot.slane %v7845_v9, 3 }
0x169b   : > { %8638 = vmatpush.bf16.msra.mxu3 %v10366_v48 }
0x169c   : > { %8625 = vmatpush.bf16.msra.mxu2 %v10358_v19 }
0x169d   : > { %v13340_v29 = vld [vmem:[#allocation1 + $0x11] ss:$2 sm:$0xff] }
0x169e   : > { %7902 = vst [vmem:[#allocation1 + $0x10] sm:$0xff] %v7896_v41  ;;  %v13351_v46 = vld [vmem:[#allocation1 + $0x1] ss:$2 sm:$0xff]  ;;  %v7787_v41 = vrot.slane %v7782_v5, 2  ;;  %8614 = vmatpush.bf16.msrb.mxu0 %v10348_v0  ;;  %v7850_v5 = vrot.slane %v7845_v9, 2 }
0x169f   : > { %8639 = vmatpush.bf16.msra.mxu3 %v10365_v18  ;;  %v10382_v18 = vld [vmem:[#allocation21 + $0x10] sm:$0xff] }
0x16a0   : > { %v7800_v56 = vsel %vm5106_vm12, %v7787_v41, %v7788_v8  ;;  %8626 = vmatpush.bf16.msra.mxu2 %v10357_v44  ;;  %v7797_v20 = vsel %vm13720_vm3, %v7787_v41, %v7788_v8  ;;  %v7863_v0 = vsel %vm5106_vm12, %v7850_v5, %v7851_v52  ;;  %v7869_v41 = vsel %vm2926_vm15, %v7846_v28, %v7852_v25 }
0x16a1   : > { %v7801_v3 = vsel %vm5108_vm9, %v7799_v22, %v7800_v56  ;;  %v7798_v27 = vsel %vm13722_vm13, %v7794_v26, %v7797_v20  ;;  %v7860_v57 = vsel %vm13727_vm2, %v7850_v5, %v7851_v52  ;;  %v10387_v26 = vld [vmem:[#allocation21 + $0x38] sm:$0xff] }
0x16a2   : > { %v7803_v17 = vrot.slane %v7801_v3, 1  ;;  %v7816_v34 = vshrl.u32 %v7798_v27, 16 }
0x16a3   : > { %8640 = vmatpush.bf16.msra.mxu3 %v10364_v31 }
0x16a4   : > { %v7821_v33 = vshll.u32 %v7803_v17, 16 }
0x16a5   : > { %v13353_v42 = vld [vmem:[#allocation1 + $0x11] ss:$2 sm:$0xff] }
0x16a6   : > { %7906 = vst [vmem:[#allocation1] ss:$9 sm:$0xff] %v7718_v7  ;;  %v10376_v7 = vld [vmem:[#allocation19 + $0x220] sm:$0xff]  ;;  %v7823_v61 = vsel %vm13083_vm6, %v7816_v34, %v7821_v33  ;;  %v10381_v34 = vld [vmem:[#allocation21 + $0x8] sm:$0xff] }
0x16a7   : > { %7909 = vst [vmem:[#allocation1 + $0x1] ss:$9 sm:$0xff] %v7719_v13  ;;  %v10833_v33 = vld [vmem:[%s13730_s16] ss:$0 sm:$0xff] }
0x16ae   : > { %v7910_v36 = vld [vmem:[#allocation1] sm:$0xff] }
0x16af   : > { %8550 = vmatmul.bf16.vlgmr.msrb.gmra.mxu1 %v7910_v36  ;;  %7913 = vst [vmem:[#allocation1] ss:$9 sm:$0xff] %v7761_v10  ;;  %v10372_v36 = vld [vmem:[#allocation19 + $0x200] sm:$0xff] }
0x16b0   : > { %7916 = vst [vmem:[#allocation1 + $0x1] ss:$9 sm:$0xff] %v7769_v50  ;;  %8646 = vmatpush.bf16.msrb.mxu1 %v10379_v24  ;;  %v7854_v50 = vrot.slane %v7846_v28, 3  ;;  %v7862_v24 = vsel %vm13725_vm7, %v7845_v9, %v7849_v59  ;;  %v11219_v28 = vmov 4.0  }
0x16b1   : > { %v7864_v32 = vsel %vm5108_vm9, %v7862_v24, %v7863_v0  ;;  %10834 = vrcp.f32 %v11219_v28 }
0x16b2   : > { %v7875_v60 = vsel %vm5106_vm12, %v7853_v16, %v7854_v50  ;;  %v7872_v8 = vsel %vm13726_vm11, %v7853_v16, %v7854_v50  ;;  %v7866_v15 = vrot.slane %v7864_v32, 1  ;;  %vm13729_vm12 = vmmov %vm13723_vm8 }
0x16b3   : > { %v7876_v19 = vsel %vm5108_vm9, %v7874_v12, %v7875_v60  ;;  %v7873_v2 = vsel %vm13728_vm10, %v7869_v41, %v7872_v8 }
0x16b4   : > { %8647 = vmatpush.bf16.msrb.mxu1 %v10378_v45  ;;  %v7857_v45 = vsel %vm2926_vm15, %v7845_v9, %v7849_v59  ;;  %v7887_v56 = vshrl.u32 %v7873_v2, 16 }
0x16b5   : > { %v7861_v22 = vsel %vm13729_vm12, %v7857_v45, %v7860_v57 }
0x16b6   : > { %v7879_v44 = vshrl.u32 %v7861_v22, 16  ;;  %v8693_v22 = vld [vmem:[%s13732_s9] sm:$0x1] }
0x16b7   : > { %v7917_v35 = vld [vmem:[#allocation1] sm:$0xff]  ;;  %v10835_v16 = vpop.eup %10834 }
0x16b8   : > { %8563 = vmatmul.bf16.vlgmr.msra.gmra.mxu0 %v7917_v35  ;;  %7919 = vst [vmem:[#allocation1] ss:$9 sm:$0xff] %v13329_v14  ;;  %v7813_v14 = vsel %vm5108_vm9, %v7811_v21, %v7812_v47  ;;  %8648 = vmatpush.bf16.msrb.mxu1 %v10377_v43  ;;  %v7843_v35 = vld [vmem:[#allocation9 + $0x4] sm:$0x1]  ;;  %v7884_v47 = vshll.u32 %v7866_v15, 16  ;;  %v8669_v52 = vmul.f32 4.0, %v10835_v16  ;;  %vm8673_vm15 = vweird.f32 %v10835_v16 }
0x16b9   : > { %7921 = vst [vmem:[#allocation1 + $0x1] ss:$9 sm:$0xff] %v13331_v39  ;;  %v10356_v39 = vld [vmem:[#allocation19 + $0x180] sm:$0xff]  ;;  %v7815_v13 = vrot.slane %v7813_v14, 1  ;;  %8742 = vmatpush.bf16.msra.mxu0 %v10387_v26 }
0x16ba   : > { %8627 = vmatpush.bf16.msra.mxu2 %v10356_v39  ;;  %v7886_v43 = vsel %vm13083_vm6, %v7879_v44, %v7884_v47  ;;  %v8670_v60 = vsub.f32 1.0, %v8669_v52 }
0x16bb   : > { %v7829_v11 = vshll.u32 %v7815_v13, 16 }
0x16bc   : > { %8649 = vmatpush.bf16.msrb.mxu1 %v10376_v7  ;;  %v8671_v41 = vmul.f32 %v10835_v16, %v8670_v60 }
0x16bd   : > { %v7831_v10 = vsel %vm13083_vm6, %v7824_v63, %v7829_v11  ;;  %8743 = vmatpush.bf16.msra.mxu0 %v10386_v58 }
0x16c0   : > { %v7922_v54 = vld [vmem:[#allocation1] sm:$0xff]  ;;  %8650 = vmatpush.bf16.msrb.mxu1 %v10375_v1 }
0x16c1   : > { %8576 = vmatmul.bf16.vlgmr.msrb.gmra.mxu2 %v7922_v54  ;;  %7925 = vst [vmem:[#allocation1] ss:$9 sm:$0xff] %v7780_v62  ;;  %8744 = vmatpush.bf16.msra.mxu0 %v10385_v49 }
0x16c2   : > { %7928 = vst [vmem:[#allocation1 + $0x1] ss:$9 sm:$0xff] %v7781_v37 }
0x16c4   : > { %8651 = vmatpush.bf16.msrb.mxu1 %v10374_v55  ;;  %v10380_v55 = vld [vmem:[#allocation21] sm:$0xff] }
0x16c8   : > { %8652 = vmatpush.bf16.msrb.mxu1 %v10373_v4 }
0x16c9   : > { %v7929_v30 = vld [vmem:[#allocation1] sm:$0xff] }
0x16ca   : > { %8589 = vmatmul.bf16.vlgmr.msrb.gmra.mxu3 %v7929_v30  ;;  %7932 = vst [vmem:[#allocation1] ss:$9 sm:$0xff] %v7823_v61 }
0x16cb   : > { %7935 = vst [vmem:[#allocation1 + $0x1] ss:$9 sm:$0xff] %v7831_v10 }
0x16cc   : > { %8653 = vmatpush.bf16.msrb.mxu1 %v10372_v36 }
0x16d2   : > { %v7936_v51 = vld [vmem:[#allocation1] sm:$0xff] }
0x16d3   : > { %8602 = vmatmul.bf16.vlgmr.msra.gmra.mxu1 %v7936_v51  ;;  %7938 = vst [vmem:[#allocation1] ss:$9 sm:$0xff] %v13335_v38  ;;  %v7844_v38 = vld [vmem:[#allocation9 + $0x6] sm:$0x1] }
0x16d4   : > { %7940 = vst [vmem:[#allocation1 + $0x1] ss:$9 sm:$0xff] %v13340_v29  ;;  %v7878_v29 = vrot.slane %v7876_v19, 1 }
0x16d6   : > { %v7892_v21 = vshll.u32 %v7878_v29, 16 }
0x16d8   : > { %v7894_v23 = vsel %vm13083_vm6, %v7887_v56, %v7892_v21 }
0x16db   : > { %v7941_v6 = vld [vmem:[#allocation1] sm:$0xff] }
0x16dc   : > { %8615 = vmatmul.bf16.vlgmr.msrb.gmra.mxu0 %v7941_v6  ;;  %7944 = vst [vmem:[#allocation1] ss:$9 sm:$0xff] %v7843_v35  ;;  %v8672_v35 = vadd.f32 %v10835_v16, %v8671_v41 }
0x16dd   : > { %7947 = vst [vmem:[#allocation1 + $0x1] ss:$9 sm:$0xff] %v7844_v38 }
0x16de   : > { %v8674_v45 = vsel %vm8673_vm15, %v10835_v16, %v8672_v35 }
0x16e4   : > { %v7948_v3 = vld [vmem:[#allocation1] sm:$0xff] }
0x16e5   : > { %8628 = vmatmul.bf16.vlgmr.msra.gmra.mxu2 %v7948_v3  ;;  %7951 = vst [vmem:[#allocation1] ss:$9 sm:$0xff] %v7886_v43 }
0x16e6   : > { %7954 = vst [vmem:[#allocation1 + $0x1] ss:$9 sm:$0xff] %v7894_v23 }
0x16ed   : > { %v7955_v14 = vld [vmem:[#allocation1] sm:$0xff] }
0x16ee   : > { %8641 = vmatmul.bf16.vlgmr.msra.gmra.mxu3 %v7955_v14  ;;  %7957 = vst [vmem:[#allocation1] ss:$9 sm:$0xff] %v13351_v46  ;;  %v10384_v46 = vld [vmem:[#allocation21 + $0x20] sm:$0xff] }
0x16ef   : > { %7959 = vst [vmem:[#allocation1 + $0x1] ss:$9 sm:$0xff] %v13353_v42  ;;  %8745 = vmatpush.bf16.msra.mxu0 %v10384_v46 }
0x16f3   : > { %8746 = vmatpush.bf16.msra.mxu0 %v10383_v53 }
0x16f6   : > { %v7960_v39 = vld [vmem:[#allocation1] sm:$0xff] }
0x16f7   : > { %8654 = vmatmul.bf16.vlgmr.msrb.gmra.mxu1 %v7960_v39  ;;  %8747 = vmatpush.bf16.msra.mxu0 %v10382_v18 }
0x16fb   : > { %8748 = vmatpush.bf16.msra.mxu0 %v10381_v34 }
0x16ff   : > { %8749 = vmatpush.bf16.msra.mxu0 %v10380_v55 }
0x172c   : > { %v8551_v48 = vpop.f32.mrf.mxu1 }
0x172d   : > { %v8552_v11 = vadd.f32 %v10833_v33, %v8551_v48 }
0x1734   : > { %v8553_v62 = vpop.f32.mrf.mxu1 }
0x1735   : > { %v8564_v54 = vpop.f32.mrf.mxu0 }
0x1736   : > { %v8565_v31 = vadd.f32 %v8564_v54, %v8552_v11 }
0x173d   : > { %v8566_v7 = vpop.f32.mrf.mxu0 }
0x1744   : > { %v8577_v37 = vpop.f32.mrf.mxu2 }
0x1745   : > { %v8578_v63 = vadd.f32 %v8577_v37, %v8565_v31 }
0x174c   : > { %v8579_v20 = vpop.f32.mrf.mxu2 }
0x174d   : > { %v8590_v17 = vpop.f32.mrf.mxu3 }
0x174e   : > { %v8591_v61 = vadd.f32 %v8590_v17, %v8578_v63 }
0x1750   : > { %v8603_v40 = vpop.f32.mrf.mxu1 }
0x1751   : > { %v8604_v10 = vadd.f32 %v8603_v40, %v8591_v61 }
0x1755   : > { %v8592_v13 = vpop.f32.mrf.mxu3 }
0x1758   : > { %v8605_v27 = vpop.f32.mrf.mxu1 }
0x1759   : > { %v8616_v42 = vpop.f32.mrf.mxu0 }
0x175a   : > { %v8617_v4 = vadd.f32 %v8616_v42, %v8604_v10 }
0x1761   : > { %v8618_v1 = vpop.f32.mrf.mxu0 }
0x1768   : > { %v8629_v30 = vpop.f32.mrf.mxu2 }
0x1769   : > { %v8630_v9 = vadd.f32 %v8629_v30, %v8617_v4 }
0x1770   : > { %v8631_v36 = vpop.f32.mrf.mxu2 }
0x1771   : > { %v8642_v25 = vpop.f32.mrf.mxu3 }
0x1772   : > { %v8643_v50 = vadd.f32 %v8642_v25, %v8630_v9 }
0x1774   : > { %v8655_v59 = vpop.f32.mrf.mxu1 }
0x1775   : > { %v8656_v5 = vadd.f32 %v8655_v59, %v8643_v50 }
0x1777   : > { %v8659_v51 = vmax.f32 %v8656_v5, 0.0 }
0x1779   : > { %v8660_v12 = vmin.f32 %v8659_v51, 6.0  ;;  %v8644_v24 = vpop.f32.mrf.mxu3 }
0x177b   : > { %v8661_v0 = vsel %vm2975_vm4, %v8660_v12, 0.0 }
0x177c   : > { %v8662_v19 = vrot.slane %v8661_v0, 4  ;;  %v8657_v32 = vpop.f32.mrf.mxu1 }
0x177e   : > { %v8663_v8 = vadd.f32 %v8662_v19, %v8661_v0 }
0x1780   : > { %v8664_v38 = vrot.slane %v8663_v8, 2 }
0x1782   : > { %v8665_v29 = vadd.f32 %v8664_v38, %v8663_v8 }
0x1784   : > { %v8666_v6 = vrot.slane %v8665_v29, 1 }
0x1786   : > { %v8667_v57 = vadd.f32 %v8666_v6, %v8665_v29 }
0x1788   : > { %v8675_v15 = vmul.f32 %v8674_v45, %v8667_v57 }
0x178a   : > { %v8676_v2 = vpack.c.bf16 %v8675_v15, %v8675_v15 }
0x178c   : > { %8750 = vmatmul.bf16.vlgmr.msra.gmra.mxu0 %v8676_v2 }
0x1809   : > { %v8751_v56 = vpop.f32.mrf.mxu0 }
0x180a   : > { %v8752_v21 = vadd.f32 %v8751_v56, %v8693_v22 }
0x180c   : > { %8755 = vst [vmem:[%s720_s26] sm:$0x1] %v8752_v21 }
0x180d   : > { %11073 = shalt.err (!%p11070_p9)
}
0x180e   : > { %10417 = dma.vmem_to_hbm [thread:$0]  (%p11416_p4), %s8768_s29, 16, %s8770_s24, %s8757_s1  }
0x1811   : > { %v8753_v47 = vpop.f32.mrf.mxu0 }
0x1812 PF: > { %s8781_s15 = sand.u32 1, %s11112_s0   ;;  %p13733_p10 = scmp.ge.s32.totalorder %s11124_s21, 2 }
0x1813   : > { %s8782_s11 = scalar_lea.sflag [#allocation12], %s8781_s15 }
0x1814   : > { %p10443_p11 = pnand %p13733_p10, %p11420_p6 }
0x1816   : > { %p10444_p13 = pneg %p10443_p11 }
0x1818   : > { %11107 = dma.done.wait (%p10444_p13), %s8782_s11, 16  }
0x1819   : > { %11109 = vsyncadd (%p10444_p13), %s8782_s11, 4294967280  ;;  %p35_p0 = scmp.ge.s32.totalorder %s11394_s19, 4   ;;  %s13734_s0 = smov %s11116_s30 }
0x181a   : > { %s13735_s30 = smov %s11120_s20  ;;  %s13736_s20 = smov %s11405_s5 }
0x181b   : > { %s13737_s21 = smov %s11394_s19  ;;  %37 = sbr.rel (!%p35_p0) target bundleno = 25 (0x19), region = 359 }
0x1820   :  { %8787 = vsyncpa [#allocation11], 1 }
0x1821   :  { %8789 = vsyncpa [#allocation11 + $0x1], 1 }
0x1822   :  { %8790 = vsyncpa [#allocation14], 1 }
0x1823   :  { %8791 = vsyncpa [#allocation17], 1 }
0x1824   :  { %8792 = vsyncpa [#allocation20], 1 }
0x1825   :  { %8793 = vsyncpa [#allocation12], 1 }
0x1826   :  { %8795 = vsyncpa [#allocation12 + $0x1], 1 }

</bundles_post_ra>
